<compile_context>
chip_gen: v7x
topology: tpu7x:2x2x1
jax: 0.10.0
libtpu: 0.0.40
codegen_flags: <defaults>
</compile_context>

<pallas_src>
import math

import jax
import jax.numpy as jnp
from jax import lax
from jax.experimental import pallas as pl
from jax.experimental.pallas import tpu as pltpu


_MiB = 1024 * 1024


# ----------------------------------------------------------------------------
# VMEM-aware batch-tile / vmem-limit selection
# ----------------------------------------------------------------------------
def _select_tile_and_vmem(bs, T, in_dim, feat, H, num_layers, out_pad, w_itemsize):
    """Pick (batch_tile, vmem_limit_bytes) from the chip's VMEM capacity."""
    try:
        cap = int(pltpu.get_tpu_info().vmem_capacity_bytes)
    except Exception:
        cap = 64 * _MiB                      # conservative (v7x per-TC) fallback
    vmem_limit = int(min(cap - 12 * _MiB, 100 * _MiB))
    budget = int(vmem_limit * 0.9)           # headroom for compiler scratch

    # Single-buffered weight footprint (weights in compute dtype, biases f32).
    wbytes = in_dim * feat * w_itemsize + feat * 4
    for layer in range(num_layers):
        din = feat if layer == 0 else H
        wbytes += (din * 3 * H + H * 3 * H) * w_itemsize + 2 * 3 * H * 4
    wbytes += 2 * (H * H * w_itemsize + H * 4)
    wbytes += H * out_pad * w_itemsize + out_pad * 4

    def footprint(bt):
        io = 2 * T * bt * in_dim * 4 + 2 * T * bt * out_pad * 4   # dbl-buffered x/out
        scr = T * bt * 3 * H * 4 + T * bt * H * 4 + bt * H * 4    # gi / seq / h
        return wbytes + io + scr

    # Batch-tile candidates: divisors of bs that satisfy the (8,128) sublane
    # rule (multiple of 8, or the full batch), capped at 256.
    cands = [d for d in range(1, bs + 1)
             if bs % d == 0 and (d == bs or d % 8 == 0) and d <= 256]
    if not cands:
        cands = [bs]
    cands.sort(reverse=True)

    bt = cands[-1]
    for c in cands:
        if footprint(c) <= budget:
            bt = c
            break
    return bt, vmem_limit


# ----------------------------------------------------------------------------
# Fused Pallas kernel
# ----------------------------------------------------------------------------
def _make_fused_kernel(num_layers, T, bt, H, compute_dtype, carry_h):
    n_in = 3 + 4 * num_layers + 6
    unroll = True if T <= 32 else 8          # full unroll for short sequences
    cdt = compute_dtype

    def kernel(*refs):
        x_ref = refs[0]                                  # (T, bt, Din) time-major
        we_ref, be_ref = refs[1], refs[2]                # (Din, F) cdt, (1, F) f32
        gru_refs = refs[3:3 + 4 * num_layers]
        (w1_ref, b1_ref, w2_ref, b2_ref,
         w3_ref, b3_ref) = refs[3 + 4 * num_layers:n_in]
        o_ref = refs[n_in]                               # (T, bt, Opad) f32
        gi_scr, seq, h_state = refs[n_in + 1:]

        din = x_ref.shape[-1]

        # ---- pose_embed: one matmul over all T*bt rows -----------------------
        x = x_ref[...].reshape(T * bt, din).astype(cdt)
        inp = (jnp.dot(x, we_ref[...], preferred_element_type=jnp.float32)
               + be_ref[...])                            # (T*bt, F) f32

        # ---- stacked GRU -----------------------------------------------------
        for layer in range(num_layers):
            wih_ref, whh_ref, bih_ref, bhh_ref = gru_refs[4 * layer:4 * layer + 4]

            # Hoisted input projection: ONE big matmul instead of T tiny ones
            # inside the serial recurrence.
            gi_scr[...] = (jnp.dot(inp.astype(cdt), wih_ref[...],
                                   preferred_element_type=jnp.float32)
                           + bih_ref[...]).reshape(T, bt, 3 * H)

            bhh = jnp.broadcast_to(bhh_ref[...], (bt, 3 * H))   # hoisted broadcast

            # Gate slices at H / 2H are lane-aligned for the real model
            # (H=512 -> multiples of 128); sub-vreg selects only at tiny sizes.
            def gates(t, h_prev, bhh=bhh):
                gh = jnp.dot(h_prev.astype(cdt), whh_ref[...],
                             preferred_element_type=jnp.float32) + bhh
                gi = gi_scr[t]                                   # (bt, 3H)
                r = jax.nn.sigmoid(gi[:, :H] + gh[:, :H])
                z = jax.nn.sigmoid(gi[:, H:2 * H] + gh[:, H:2 * H])
                n = jnp.tanh(gi[:, 2 * H:] + r * gh[:, 2 * H:])
                h_new = n + z * (h_prev - n)     # == (1-z)*n + z*h_prev, 1 op less
                seq[t] = h_new
                return h_new

            if carry_h:
                # Small tile: carry h in (a few) vregs, no per-step VMEM round-trip.
                lax.fori_loop(0, T, gates,
                              jnp.zeros((bt, H), jnp.float32), unroll=unroll)
            else:
                h_state[...] = jnp.zeros_like(h_state)

                def step(t, c):
                    h_state[...] = gates(t, h_state[...])
                    return c

                lax.fori_loop(0, T, step, 0, unroll=unroll)

            # Layer output feeds the next layer / MLP.  A single sequence buffer
            # is safe: the next layer's gi projection reads it fully (below /
            # above) before its time loop starts overwriting it.
            inp = seq[...].reshape(T * bt, H)

        # ---- MLP head: row-wise over all T*bt rows ---------------------------
        h1 = jnp.maximum(jnp.dot(inp.astype(cdt), w1_ref[...],
                                 preferred_element_type=jnp.float32)
                         + b1_ref[...], 0.0)
        h2 = jnp.maximum(jnp.dot(h1.astype(cdt), w2_ref[...],
                                 preferred_element_type=jnp.float32)
                         + b2_ref[...], 0.0)
        out = (jnp.dot(h2.astype(cdt), w3_ref[...],
                       preferred_element_type=jnp.float32)
               + b3_ref[...])                            # (T*bt, Opad) lane-dense
        o_ref[...] = out.reshape(T, bt, -1).astype(o_ref.dtype)   # time-major store

    return kernel


def motion_prior_forward(keypoints3d, params, *, batch_tile=None,
                         compute_dtype=jnp.bfloat16):
    bs, seqlen = keypoints3d.shape[:2]
    x = keypoints3d.reshape(bs, seqlen, -1).astype(jnp.float32)   # (B, T, n_kps*3)
    in_dim = x.shape[-1]
    x_tm = jnp.transpose(x, (1, 0, 2))       # (T, B, Din): cheap XLA transpose of raw input

    feat = params["pose_embed_w"].shape[1]
    H = params["gru"][0]["w_hh"].shape[0]
    num_layers = len(params["gru"])
    out_dim = params["fc3_w"].shape[1]
    out_pad = max(128, ((out_dim + 127) // 128) * 128)

    cdt = jnp.dtype(compute_dtype)
    auto_bt, vmem_limit = _select_tile_and_vmem(
        bs, seqlen, in_dim, feat, H, num_layers, out_pad, cdt.itemsize)
    bt = batch_tile if batch_tile is not None else auto_bt
    assert bs % bt == 0 and (bt == bs or bt % 8 == 0)

    carry_h = bt * H <= 16 * 512             # carry hidden state in vregs when small

    # Lane-dense output slab: pad fc3 columns up to a multiple of 128.
    w3p = jnp.pad(params["fc3_w"], ((0, 0), (0, out_pad - out_dim))).astype(cdt)
    b3p = jnp.pad(params["fc3_b"], (0, out_pad - out_dim)).astype(jnp.float32)

    kernel = _make_fused_kernel(num_layers, seqlen, bt, H, cdt, carry_h)
    const2d = lambda i: (0, 0)

    def build_and_run(single_buffer_weights):
        wkw = ({"pipeline_mode": pl.Buffered(buffer_count=1)}
               if single_buffer_weights else {})

        args = [x_tm]
        in_specs = [pl.BlockSpec((seqlen, bt, in_dim), lambda i: (0, i, 0))]

        def add_w(arr, shape):
            args.append(arr)
            in_specs.append(pl.BlockSpec(shape, const2d, **wkw))

        add_w(params["pose_embed_w"].astype(cdt), (in_dim, feat))
        add_w(params["pose_embed_b"].reshape(1, feat).astype(jnp.float32), (1, feat))
        for lyr in params["gru"]:
            din_l = lyr["w_ih"].shape[0]
            add_w(lyr["w_ih"].astype(cdt), (din_l, 3 * H))
            add_w(lyr["w_hh"].astype(cdt), (H, 3 * H))
            add_w(lyr["b_ih"].reshape(1, 3 * H).astype(jnp.float32), (1, 3 * H))
            add_w(lyr["b_hh"].reshape(1, 3 * H).astype(jnp.float32), (1, 3 * H))
        add_w(params["fc1_w"].astype(cdt), (H, H))
        add_w(params["fc1_b"].reshape(1, H).astype(jnp.float32), (1, H))
        add_w(params["fc2_w"].astype(cdt), (H, H))
        add_w(params["fc2_b"].reshape(1, H).astype(jnp.float32), (1, H))
        add_w(w3p, (H, out_pad))
        add_w(b3p.reshape(1, out_pad), (1, out_pad))

        return pl.pallas_call(
            kernel,
            out_shape=jax.ShapeDtypeStruct((seqlen, bs, out_pad), jnp.float32),
            grid=(bs // bt,),
            in_specs=in_specs,
            out_specs=pl.BlockSpec((seqlen, bt, out_pad), lambda i: (0, i, 0)),
            scratch_shapes=[
                pltpu.VMEM((seqlen, bt, 3 * H), jnp.float32),   # hoisted input proj
                pltpu.VMEM((seqlen, bt, H), jnp.float32),       # GRU sequence buffer
                pltpu.VMEM((bt, H), jnp.float32),               # hidden state (large-bt path)
            ],
            compiler_params=pltpu.CompilerParams(
                dimension_semantics=("parallel",),              # megacore on v7x
                vmem_limit_bytes=int(vmem_limit),
            ),
        )(*args)

    try:
        out_tm = build_and_run(True)         # single-buffered constant weights
    except Exception:
        out_tm = build_and_run(False)        # fallback: default double-buffering

    # Slice padded columns, then batch-first transpose — both cheap XLA ops.
    return jnp.transpose(out_tm[:, :, :out_dim], (1, 0, 2))


# ----------------------------------------------------------------------------
# Parameter init (deterministic, PyTorch-style uniform bounds)
# ----------------------------------------------------------------------------
def init_params(key, n_kps, feature_size, hidden_size, num_layers, output_size):
    keys = iter(jax.random.split(key, 64))

    def uni(shape, bound):
        return jax.random.uniform(next(keys), shape, jnp.float32, -bound, bound)

    in_dim = n_kps * 3
    params = {}
    b = 1.0 / math.sqrt(in_dim)
    params["pose_embed_w"] = uni((in_dim, feature_size), b)   # stored as (in, out)
    params["pose_embed_b"] = uni((feature_size,), b)

    params["gru"] = []
    bg = 1.0 / math.sqrt(hidden_size)
    for layer in range(num_layers):
        din = feature_size if layer == 0 else hidden_size
        params["gru"].append({
            # PyTorch weight_ih_l{k} is (3H, Din); we store the transpose so the
            # kernel computes x @ W.  Gate column order stays [r | z | n].
            "w_ih": uni((din, 3 * hidden_size), bg),
            "w_hh": uni((hidden_size, 3 * hidden_size), bg),
            "b_ih": uni((3 * hidden_size,), bg),
            "b_hh": uni((3 * hidden_size,), bg),
        })

    bh = 1.0 / math.sqrt(hidden_size)
    params["fc1_w"] = uni((hidden_size, hidden_size), bh)
    params["fc1_b"] = uni((hidden_size,), bh)
    params["fc2_w"] = uni((hidden_size, hidden_size), bh)
    params["fc2_b"] = uni((hidden_size,), bh)
    params["fc3_w"] = uni((hidden_size, output_size), bh)
    params["fc3_b"] = uni((output_size,), bh)
    return params


# ----------------------------------------------------------------------------
# Pure-JAX reference
# ----------------------------------------------------------------------------
def motion_prior_reference(keypoints3d, params):
    bs, seqlen = keypoints3d.shape[:2]
    x = keypoints3d.reshape(bs, seqlen, -1)
    x = x @ params["pose_embed_w"] + params["pose_embed_b"]
    h = jnp.transpose(x, (1, 0, 2))                               # (T, B, F)
    for lyr in params["gru"]:
        H = lyr["w_hh"].shape[0]

        def step(h_prev, x_t, lyr=lyr, H=H):
            gi = x_t @ lyr["w_ih"] + lyr["b_ih"]
            gh = h_prev @ lyr["w_hh"] + lyr["b_hh"]
            r = jax.nn.sigmoid(gi[:, :H] + gh[:, :H])
            z = jax.nn.sigmoid(gi[:, H:2 * H] + gh[:, H:2 * H])
            n = jnp.tanh(gi[:, 2 * H:] + r * gh[:, 2 * H:])
            h_new = (1.0 - z) * n + z * h_prev
            return h_new, h_new

        h0 = jnp.zeros((bs, H), jnp.float32)
        _, h = lax.scan(step, h0, h)
    h = jnp.transpose(h, (1, 0, 2))
    y = jnp.maximum(h @ params["fc1_w"] + params["fc1_b"], 0.0)
    y = jnp.maximum(y @ params["fc2_w"] + params["fc2_b"], 0.0)
    return y @ params["fc3_w"] + params["fc3_b"]


# ----------------------------------------------------------------------------
if __name__ == "__main__":
    import numpy as np

    key = jax.random.PRNGKey(0)
    kp_key, p_key = jax.random.split(key)

    bs, seqlen, n_kps = 2, 8, 4
    feature_size, hidden_size, num_layers, output_size = 32, 32, 3, 3

    keypoints3d = jax.random.normal(kp_key, (bs, seqlen, n_kps, 3), jnp.float32)
    params = init_params(p_key, n_kps, feature_size, hidden_size,
                         num_layers, output_size)

    ref = jax.block_until_ready(motion_prior_reference(keypoints3d, params))

    # Exact path (f32 MXU feed): tight tolerance against the f32 reference.
    out_f32 = jax.block_until_ready(
        motion_prior_forward(keypoints3d, params, compute_dtype=jnp.float32))
    assert out_f32.shape == (bs, seqlen, output_size)
    np.testing.assert_allclose(np.asarray(out_f32), np.asarray(ref),
                               rtol=2e-3, atol=2e-3)

    # Default path (bf16 MXU feed, f32 accumulation/gate math): loose tolerance.
    out = jax.block_until_ready(motion_prior_forward(keypoints3d, params))
    assert out.shape == (bs, seqlen, output_size)
    np.testing.assert_allclose(np.asarray(out), np.asarray(ref),
                               rtol=1e-1, atol=1e-1)

    print("KERNEL_OK")
</pallas_src>

<mosaic_0001>
module attributes {stable_mosaic.version = 11 : i64} {
  func.func @kernel(%arg0: i32, %arg1: memref<8x2x12xf32, #tpu.memory_space<vmem>>, %arg2: memref<12x32xf32, #tpu.memory_space<vmem>>, %arg3: memref<1x32xf32, #tpu.memory_space<vmem>>, %arg4: memref<32x96xf32, #tpu.memory_space<vmem>>, %arg5: memref<32x96xf32, #tpu.memory_space<vmem>>, %arg6: memref<1x96xf32, #tpu.memory_space<vmem>>, %arg7: memref<1x96xf32, #tpu.memory_space<vmem>>, %arg8: memref<32x96xf32, #tpu.memory_space<vmem>>, %arg9: memref<32x96xf32, #tpu.memory_space<vmem>>, %arg10: memref<1x96xf32, #tpu.memory_space<vmem>>, %arg11: memref<1x96xf32, #tpu.memory_space<vmem>>, %arg12: memref<32x96xf32, #tpu.memory_space<vmem>>, %arg13: memref<32x96xf32, #tpu.memory_space<vmem>>, %arg14: memref<1x96xf32, #tpu.memory_space<vmem>>, %arg15: memref<1x96xf32, #tpu.memory_space<vmem>>, %arg16: memref<32x32xf32, #tpu.memory_space<vmem>>, %arg17: memref<1x32xf32, #tpu.memory_space<vmem>>, %arg18: memref<32x32xf32, #tpu.memory_space<vmem>>, %arg19: memref<1x32xf32, #tpu.memory_space<vmem>>, %arg20: memref<32x128xf32, #tpu.memory_space<vmem>>, %arg21: memref<1x128xf32, #tpu.memory_space<vmem>>, %arg22: memref<8x2x128xf32, #tpu.memory_space<vmem>>, %arg23: memref<8x2x96xf32, #tpu.memory_space<vmem>>, %arg24: memref<8x2x32xf32, #tpu.memory_space<vmem>>, %arg25: memref<2x32xf32, #tpu.memory_space<vmem>>) attributes {dimension_semantics = [#tpu.dimension_semantics<parallel>], iteration_bounds = array<i64: 1>, scalar_prefetch = 0 : i64, scratch_operands = 3 : i64, tpu.core_type = #tpu.core_type<tc>, window_params = [{transform_indices = @transform_0, window_bounds = array<i64: 8, 2, 12>}, {pipeline_mode = #tpu.pipeline_mode<synchronous>, transform_indices = @transform_1, window_bounds = array<i64: 12, 32>}, {pipeline_mode = #tpu.pipeline_mode<synchronous>, transform_indices = @transform_2, window_bounds = array<i64: 1, 32>}, {pipeline_mode = #tpu.pipeline_mode<synchronous>, transform_indices = @transform_3, window_bounds = array<i64: 32, 96>}, {pipeline_mode = #tpu.pipeline_mode<synchronous>, transform_indices = @transform_4, window_bounds = array<i64: 32, 96>}, {pipeline_mode = #tpu.pipeline_mode<synchronous>, transform_indices = @transform_5, window_bounds = array<i64: 1, 96>}, {pipeline_mode = #tpu.pipeline_mode<synchronous>, transform_indices = @transform_6, window_bounds = array<i64: 1, 96>}, {pipeline_mode = #tpu.pipeline_mode<synchronous>, transform_indices = @transform_7, window_bounds = array<i64: 32, 96>}, {pipeline_mode = #tpu.pipeline_mode<synchronous>, transform_indices = @transform_8, window_bounds = array<i64: 32, 96>}, {pipeline_mode = #tpu.pipeline_mode<synchronous>, transform_indices = @transform_9, window_bounds = array<i64: 1, 96>}, {pipeline_mode = #tpu.pipeline_mode<synchronous>, transform_indices = @transform_10, window_bounds = array<i64: 1, 96>}, {pipeline_mode = #tpu.pipeline_mode<synchronous>, transform_indices = @transform_11, window_bounds = array<i64: 32, 96>}, {pipeline_mode = #tpu.pipeline_mode<synchronous>, transform_indices = @transform_12, window_bounds = array<i64: 32, 96>}, {pipeline_mode = #tpu.pipeline_mode<synchronous>, transform_indices = @transform_13, window_bounds = array<i64: 1, 96>}, {pipeline_mode = #tpu.pipeline_mode<synchronous>, transform_indices = @transform_14, window_bounds = array<i64: 1, 96>}, {pipeline_mode = #tpu.pipeline_mode<synchronous>, transform_indices = @transform_15, window_bounds = array<i64: 32, 32>}, {pipeline_mode = #tpu.pipeline_mode<synchronous>, transform_indices = @transform_16, window_bounds = array<i64: 1, 32>}, {pipeline_mode = #tpu.pipeline_mode<synchronous>, transform_indices = @transform_17, window_bounds = array<i64: 32, 32>}, {pipeline_mode = #tpu.pipeline_mode<synchronous>, transform_indices = @transform_18, window_bounds = array<i64: 1, 32>}, {pipeline_mode = #tpu.pipeline_mode<synchronous>, transform_indices = @transform_19, window_bounds = array<i64: 32, 128>}, {pipeline_mode = #tpu.pipeline_mode<synchronous>, transform_indices = @transform_20, window_bounds = array<i64: 1, 128>}, {transform_indices = @transform_21, window_bounds = array<i64: 8, 2, 128>}]} {
    %c0 = arith.constant 0 : index
    %c0_0 = arith.constant 0 : index
    %c0_1 = arith.constant 0 : index
    %0 = vector.load %arg1[%c0, %c0_0, %c0_1] : memref<8x2x12xf32, #tpu.memory_space<vmem>>, vector<8x2x12xf32>
    %1 = vector.shape_cast %0 : vector<8x2x12xf32> to vector<16x12xf32>
    %c0_2 = arith.constant 0 : index
    %c0_3 = arith.constant 0 : index
    %2 = vector.load %arg2[%c0_2, %c0_3] : memref<12x32xf32, #tpu.memory_space<vmem>>, vector<12x32xf32>
    %cst = arith.constant dense<0.000000e+00> : vector<16x32xf32>
    %3 = tpu.matmul %1, %2, %cst {dimension_numbers = #tpu.dot_dimension_numbers<[1], [0], [0], [1], [0, 0, 1, 1], [], []>} : vector<16x12xf32>, vector<12x32xf32>, vector<16x32xf32> -> vector<16x32xf32>
    %c0_4 = arith.constant 0 : index
    %c0_5 = arith.constant 0 : index
    %4 = vector.load %arg3[%c0_4, %c0_5] : memref<1x32xf32, #tpu.memory_space<vmem>>, vector<1x32xf32>
    %5 = vector.broadcast %4 : vector<1x32xf32> to vector<16x32xf32>
    %6 = arith.addf %3, %5 : vector<16x32xf32>
    %c0_6 = arith.constant 0 : index
    %c0_7 = arith.constant 0 : index
    %7 = vector.load %arg4[%c0_6, %c0_7] : memref<32x96xf32, #tpu.memory_space<vmem>>, vector<32x96xf32>
    %cst_8 = arith.constant dense<0.000000e+00> : vector<16x96xf32>
    %8 = tpu.matmul %6, %7, %cst_8 {dimension_numbers = #tpu.dot_dimension_numbers<[1], [0], [0], [1], [0, 0, 1, 1], [], []>} : vector<16x32xf32>, vector<32x96xf32>, vector<16x96xf32> -> vector<16x96xf32>
    %c0_9 = arith.constant 0 : index
    %c0_10 = arith.constant 0 : index
    %9 = vector.load %arg6[%c0_9, %c0_10] : memref<1x96xf32, #tpu.memory_space<vmem>>, vector<1x96xf32>
    %10 = vector.broadcast %9 : vector<1x96xf32> to vector<16x96xf32>
    %11 = arith.addf %8, %10 : vector<16x96xf32>
    %12 = vector.shape_cast %11 : vector<16x96xf32> to vector<8x2x96xf32>
    %c0_11 = arith.constant 0 : index
    %c0_12 = arith.constant 0 : index
    %c0_13 = arith.constant 0 : index
    %13 = vector.load %arg23[%c0_11, %c0_12, %c0_13] : memref<8x2x96xf32, #tpu.memory_space<vmem>>, vector<8x2x96xf32>
    tpu.vector_store %arg23[%c0_11, %c0_12, %c0_13], %12 {strides = array<i32>} : memref<8x2x96xf32, #tpu.memory_space<vmem>>, vector<8x2x96xf32>,
    %c0_14 = arith.constant 0 : index
    %c0_15 = arith.constant 0 : index
    %14 = vector.load %arg7[%c0_14, %c0_15] : memref<1x96xf32, #tpu.memory_space<vmem>>, vector<1x96xf32>
    %15 = vector.shape_cast %14 : vector<1x96xf32> to vector<1x96xf32>
    %16 = vector.broadcast %15 : vector<1x96xf32> to vector<2x96xf32>
    %cst_16 = arith.constant 0.000000e+00 : f32
    %17 = vector.broadcast %cst_16 : f32 to vector<2x32xf32>
    %c0_i32 = arith.constant 0 : i32
    %c0_17 = arith.constant 0 : index
    %c0_18 = arith.constant 0 : index
    %18 = vector.load %arg5[%c0_17, %c0_18] : memref<32x96xf32, #tpu.memory_space<vmem>>, vector<32x96xf32>
    %cst_19 = arith.constant dense<0.000000e+00> : vector<2x96xf32>
    %19 = tpu.matmul %17, %18, %cst_19 {dimension_numbers = #tpu.dot_dimension_numbers<[1], [0], [0], [1], [0, 0, 1, 1], [], []>} : vector<2x32xf32>, vector<32x96xf32>, vector<2x96xf32> -> vector<2x96xf32>
    %20 = arith.addf %19, %16 : vector<2x96xf32>
    %21 = arith.index_cast %c0_i32 : i32 to index
    %c0_20 = arith.constant 0 : index
    %c0_21 = arith.constant 0 : index
    %22 = vector.load %arg23[%21, %c0_20, %c0_21] : memref<8x2x96xf32, #tpu.memory_space<vmem>>, vector<1x2x96xf32>
    %23 = vector.shape_cast %22 : vector<1x2x96xf32> to vector<2x96xf32>
    %24 = vector.extract_strided_slice %23 {offsets = [0, 0], sizes = [2, 32], strides = [1, 1]} : vector<2x96xf32> to vector<2x32xf32>
    %25 = vector.extract_strided_slice %20 {offsets = [0, 0], sizes = [2, 32], strides = [1, 1]} : vector<2x96xf32> to vector<2x32xf32>
    %26 = arith.addf %24, %25 : vector<2x32xf32>
    %27 = arith.negf %26 : vector<2x32xf32>
    %28 = math.exp %27 : vector<2x32xf32>
    %cst_22 = arith.constant 1.000000e+00 : f32
    %29 = vector.broadcast %cst_22 : f32 to vector<2x32xf32>
    %30 = arith.addf %29, %28 : vector<2x32xf32>
    %31 = arith.divf %29, %30 : vector<2x32xf32>
    %32 = vector.extract_strided_slice %23 {offsets = [0, 32], sizes = [2, 32], strides = [1, 1]} : vector<2x96xf32> to vector<2x32xf32>
    %33 = vector.extract_strided_slice %20 {offsets = [0, 32], sizes = [2, 32], strides = [1, 1]} : vector<2x96xf32> to vector<2x32xf32>
    %34 = arith.addf %32, %33 : vector<2x32xf32>
    %35 = arith.negf %34 : vector<2x32xf32>
    %36 = math.exp %35 : vector<2x32xf32>
    %cst_23 = arith.constant 1.000000e+00 : f32
    %37 = vector.broadcast %cst_23 : f32 to vector<2x32xf32>
    %38 = arith.addf %37, %36 : vector<2x32xf32>
    %39 = arith.divf %37, %38 : vector<2x32xf32>
    %40 = vector.extract_strided_slice %23 {offsets = [0, 64], sizes = [2, 32], strides = [1, 1]} : vector<2x96xf32> to vector<2x32xf32>
    %41 = vector.extract_strided_slice %20 {offsets = [0, 64], sizes = [2, 32], strides = [1, 1]} : vector<2x96xf32> to vector<2x32xf32>
    %42 = arith.mulf %31, %41 : vector<2x32xf32>
    %43 = arith.addf %40, %42 : vector<2x32xf32>
    %44 = math.tanh %43 : vector<2x32xf32>
    %45 = arith.subf %17, %44 : vector<2x32xf32>
    %46 = arith.mulf %39, %45 : vector<2x32xf32>
    %47 = arith.addf %44, %46 : vector<2x32xf32>
    %48 = arith.index_cast %c0_i32 : i32 to index
    %c0_24 = arith.constant 0 : index
    %c0_25 = arith.constant 0 : index
    %49 = vector.load %arg24[%48, %c0_24, %c0_25] : memref<8x2x32xf32, #tpu.memory_space<vmem>>, vector<1x2x32xf32>
    %50 = vector.shape_cast %49 : vector<1x2x32xf32> to vector<2x32xf32>
    %51 = vector.shape_cast %47 : vector<2x32xf32> to vector<1x2x32xf32>
    tpu.vector_store %arg24[%48, %c0_24, %c0_25], %51 {strides = array<i32>} : memref<8x2x32xf32, #tpu.memory_space<vmem>>, vector<1x2x32xf32>,
    %c1_i32 = arith.constant 1 : i32
    %c0_26 = arith.constant 0 : index
    %c0_27 = arith.constant 0 : index
    %52 = vector.load %arg5[%c0_26, %c0_27] : memref<32x96xf32, #tpu.memory_space<vmem>>, vector<32x96xf32>
    %cst_28 = arith.constant dense<0.000000e+00> : vector<2x96xf32>
    %53 = tpu.matmul %47, %52, %cst_28 {dimension_numbers = #tpu.dot_dimension_numbers<[1], [0], [0], [1], [0, 0, 1, 1], [], []>} : vector<2x32xf32>, vector<32x96xf32>, vector<2x96xf32> -> vector<2x96xf32>
    %54 = arith.addf %53, %16 : vector<2x96xf32>
    %55 = arith.index_cast %c1_i32 : i32 to index
    %c0_29 = arith.constant 0 : index
    %c0_30 = arith.constant 0 : index
    %56 = vector.load %arg23[%55, %c0_29, %c0_30] : memref<8x2x96xf32, #tpu.memory_space<vmem>>, vector<1x2x96xf32>
    %57 = vector.shape_cast %56 : vector<1x2x96xf32> to vector<2x96xf32>
    %58 = vector.extract_strided_slice %57 {offsets = [0, 0], sizes = [2, 32], strides = [1, 1]} : vector<2x96xf32> to vector<2x32xf32>
    %59 = vector.extract_strided_slice %54 {offsets = [0, 0], sizes = [2, 32], strides = [1, 1]} : vector<2x96xf32> to vector<2x32xf32>
    %60 = arith.addf %58, %59 : vector<2x32xf32>
    %61 = arith.negf %60 : vector<2x32xf32>
    %62 = math.exp %61 : vector<2x32xf32>
    %cst_31 = arith.constant 1.000000e+00 : f32
    %63 = vector.broadcast %cst_31 : f32 to vector<2x32xf32>
    %64 = arith.addf %63, %62 : vector<2x32xf32>
    %65 = arith.divf %63, %64 : vector<2x32xf32>
    %66 = vector.extract_strided_slice %57 {offsets = [0, 32], sizes = [2, 32], strides = [1, 1]} : vector<2x96xf32> to vector<2x32xf32>
    %67 = vector.extract_strided_slice %54 {offsets = [0, 32], sizes = [2, 32], strides = [1, 1]} : vector<2x96xf32> to vector<2x32xf32>
    %68 = arith.addf %66, %67 : vector<2x32xf32>
    %69 = arith.negf %68 : vector<2x32xf32>
    %70 = math.exp %69 : vector<2x32xf32>
    %cst_32 = arith.constant 1.000000e+00 : f32
    %71 = vector.broadcast %cst_32 : f32 to vector<2x32xf32>
    %72 = arith.addf %71, %70 : vector<2x32xf32>
    %73 = arith.divf %71, %72 : vector<2x32xf32>
    %74 = vector.extract_strided_slice %57 {offsets = [0, 64], sizes = [2, 32], strides = [1, 1]} : vector<2x96xf32> to vector<2x32xf32>
    %75 = vector.extract_strided_slice %54 {offsets = [0, 64], sizes = [2, 32], strides = [1, 1]} : vector<2x96xf32> to vector<2x32xf32>
    %76 = arith.mulf %65, %75 : vector<2x32xf32>
    %77 = arith.addf %74, %76 : vector<2x32xf32>
    %78 = math.tanh %77 : vector<2x32xf32>
    %79 = arith.subf %47, %78 : vector<2x32xf32>
    %80 = arith.mulf %73, %79 : vector<2x32xf32>
    %81 = arith.addf %78, %80 : vector<2x32xf32>
    %82 = arith.index_cast %c1_i32 : i32 to index
    %c0_33 = arith.constant 0 : index
    %c0_34 = arith.constant 0 : index
    %83 = vector.load %arg24[%82, %c0_33, %c0_34] : memref<8x2x32xf32, #tpu.memory_space<vmem>>, vector<1x2x32xf32>
    %84 = vector.shape_cast %83 : vector<1x2x32xf32> to vector<2x32xf32>
    %85 = vector.shape_cast %81 : vector<2x32xf32> to vector<1x2x32xf32>
    tpu.vector_store %arg24[%82, %c0_33, %c0_34], %85 {strides = array<i32>} : memref<8x2x32xf32, #tpu.memory_space<vmem>>, vector<1x2x32xf32>,
    %c2_i32 = arith.constant 2 : i32
    %c0_35 = arith.constant 0 : index
    %c0_36 = arith.constant 0 : index
    %86 = vector.load %arg5[%c0_35, %c0_36] : memref<32x96xf32, #tpu.memory_space<vmem>>, vector<32x96xf32>
    %cst_37 = arith.constant dense<0.000000e+00> : vector<2x96xf32>
    %87 = tpu.matmul %81, %86, %cst_37 {dimension_numbers = #tpu.dot_dimension_numbers<[1], [0], [0], [1], [0, 0, 1, 1], [], []>} : vector<2x32xf32>, vector<32x96xf32>, vector<2x96xf32> -> vector<2x96xf32>
    %88 = arith.addf %87, %16 : vector<2x96xf32>
    %89 = arith.index_cast %c2_i32 : i32 to index
    %c0_38 = arith.constant 0 : index
    %c0_39 = arith.constant 0 : index
    %90 = vector.load %arg23[%89, %c0_38, %c0_39] : memref<8x2x96xf32, #tpu.memory_space<vmem>>, vector<1x2x96xf32>
    %91 = vector.shape_cast %90 : vector<1x2x96xf32> to vector<2x96xf32>
    %92 = vector.extract_strided_slice %91 {offsets = [0, 0], sizes = [2, 32], strides = [1, 1]} : vector<2x96xf32> to vector<2x32xf32>
    %93 = vector.extract_strided_slice %88 {offsets = [0, 0], sizes = [2, 32], strides = [1, 1]} : vector<2x96xf32> to vector<2x32xf32>
    %94 = arith.addf %92, %93 : vector<2x32xf32>
    %95 = arith.negf %94 : vector<2x32xf32>
    %96 = math.exp %95 : vector<2x32xf32>
    %cst_40 = arith.constant 1.000000e+00 : f32
    %97 = vector.broadcast %cst_40 : f32 to vector<2x32xf32>
    %98 = arith.addf %97, %96 : vector<2x32xf32>
    %99 = arith.divf %97, %98 : vector<2x32xf32>
    %100 = vector.extract_strided_slice %91 {offsets = [0, 32], sizes = [2, 32], strides = [1, 1]} : vector<2x96xf32> to vector<2x32xf32>
    %101 = vector.extract_strided_slice %88 {offsets = [0, 32], sizes = [2, 32], strides = [1, 1]} : vector<2x96xf32> to vector<2x32xf32>
    %102 = arith.addf %100, %101 : vector<2x32xf32>
    %103 = arith.negf %102 : vector<2x32xf32>
    %104 = math.exp %103 : vector<2x32xf32>
    %cst_41 = arith.constant 1.000000e+00 : f32
    %105 = vector.broadcast %cst_41 : f32 to vector<2x32xf32>
    %106 = arith.addf %105, %104 : vector<2x32xf32>
    %107 = arith.divf %105, %106 : vector<2x32xf32>
    %108 = vector.extract_strided_slice %91 {offsets = [0, 64], sizes = [2, 32], strides = [1, 1]} : vector<2x96xf32> to vector<2x32xf32>
    %109 = vector.extract_strided_slice %88 {offsets = [0, 64], sizes = [2, 32], strides = [1, 1]} : vector<2x96xf32> to vector<2x32xf32>
    %110 = arith.mulf %99, %109 : vector<2x32xf32>
    %111 = arith.addf %108, %110 : vector<2x32xf32>
    %112 = math.tanh %111 : vector<2x32xf32>
    %113 = arith.subf %81, %112 : vector<2x32xf32>
    %114 = arith.mulf %107, %113 : vector<2x32xf32>
    %115 = arith.addf %112, %114 : vector<2x32xf32>
    %116 = arith.index_cast %c2_i32 : i32 to index
    %c0_42 = arith.constant 0 : index
    %c0_43 = arith.constant 0 : index
    %117 = vector.load %arg24[%116, %c0_42, %c0_43] : memref<8x2x32xf32, #tpu.memory_space<vmem>>, vector<1x2x32xf32>
    %118 = vector.shape_cast %117 : vector<1x2x32xf32> to vector<2x32xf32>
    %119 = vector.shape_cast %115 : vector<2x32xf32> to vector<1x2x32xf32>
    tpu.vector_store %arg24[%116, %c0_42, %c0_43], %119 {strides = array<i32>} : memref<8x2x32xf32, #tpu.memory_space<vmem>>, vector<1x2x32xf32>,
    %c3_i32 = arith.constant 3 : i32
    %c0_44 = arith.constant 0 : index
    %c0_45 = arith.constant 0 : index
    %120 = vector.load %arg5[%c0_44, %c0_45] : memref<32x96xf32, #tpu.memory_space<vmem>>, vector<32x96xf32>
    %cst_46 = arith.constant dense<0.000000e+00> : vector<2x96xf32>
    %121 = tpu.matmul %115, %120, %cst_46 {dimension_numbers = #tpu.dot_dimension_numbers<[1], [0], [0], [1], [0, 0, 1, 1], [], []>} : vector<2x32xf32>, vector<32x96xf32>, vector<2x96xf32> -> vector<2x96xf32>
    %122 = arith.addf %121, %16 : vector<2x96xf32>
    %123 = arith.index_cast %c3_i32 : i32 to index
    %c0_47 = arith.constant 0 : index
    %c0_48 = arith.constant 0 : index
    %124 = vector.load %arg23[%123, %c0_47, %c0_48] : memref<8x2x96xf32, #tpu.memory_space<vmem>>, vector<1x2x96xf32>
    %125 = vector.shape_cast %124 : vector<1x2x96xf32> to vector<2x96xf32>
    %126 = vector.extract_strided_slice %125 {offsets = [0, 0], sizes = [2, 32], strides = [1, 1]} : vector<2x96xf32> to vector<2x32xf32>
    %127 = vector.extract_strided_slice %122 {offsets = [0, 0], sizes = [2, 32], strides = [1, 1]} : vector<2x96xf32> to vector<2x32xf32>
    %128 = arith.addf %126, %127 : vector<2x32xf32>
    %129 = arith.negf %128 : vector<2x32xf32>
    %130 = math.exp %129 : vector<2x32xf32>
    %cst_49 = arith.constant 1.000000e+00 : f32
    %131 = vector.broadcast %cst_49 : f32 to vector<2x32xf32>
    %132 = arith.addf %131, %130 : vector<2x32xf32>
    %133 = arith.divf %131, %132 : vector<2x32xf32>
    %134 = vector.extract_strided_slice %125 {offsets = [0, 32], sizes = [2, 32], strides = [1, 1]} : vector<2x96xf32> to vector<2x32xf32>
    %135 = vector.extract_strided_slice %122 {offsets = [0, 32], sizes = [2, 32], strides = [1, 1]} : vector<2x96xf32> to vector<2x32xf32>
    %136 = arith.addf %134, %135 : vector<2x32xf32>
    %137 = arith.negf %136 : vector<2x32xf32>
    %138 = math.exp %137 : vector<2x32xf32>
    %cst_50 = arith.constant 1.000000e+00 : f32
    %139 = vector.broadcast %cst_50 : f32 to vector<2x32xf32>
    %140 = arith.addf %139, %138 : vector<2x32xf32>
    %141 = arith.divf %139, %140 : vector<2x32xf32>
    %142 = vector.extract_strided_slice %125 {offsets = [0, 64], sizes = [2, 32], strides = [1, 1]} : vector<2x96xf32> to vector<2x32xf32>
    %143 = vector.extract_strided_slice %122 {offsets = [0, 64], sizes = [2, 32], strides = [1, 1]} : vector<2x96xf32> to vector<2x32xf32>
    %144 = arith.mulf %133, %143 : vector<2x32xf32>
    %145 = arith.addf %142, %144 : vector<2x32xf32>
    %146 = math.tanh %145 : vector<2x32xf32>
    %147 = arith.subf %115, %146 : vector<2x32xf32>
    %148 = arith.mulf %141, %147 : vector<2x32xf32>
    %149 = arith.addf %146, %148 : vector<2x32xf32>
    %150 = arith.index_cast %c3_i32 : i32 to index
    %c0_51 = arith.constant 0 : index
    %c0_52 = arith.constant 0 : index
    %151 = vector.load %arg24[%150, %c0_51, %c0_52] : memref<8x2x32xf32, #tpu.memory_space<vmem>>, vector<1x2x32xf32>
    %152 = vector.shape_cast %151 : vector<1x2x32xf32> to vector<2x32xf32>
    %153 = vector.shape_cast %149 : vector<2x32xf32> to vector<1x2x32xf32>
    tpu.vector_store %arg24[%150, %c0_51, %c0_52], %153 {strides = array<i32>} : memref<8x2x32xf32, #tpu.memory_space<vmem>>, vector<1x2x32xf32>,
    %c4_i32 = arith.constant 4 : i32
    %c0_53 = arith.constant 0 : index
    %c0_54 = arith.constant 0 : index
    %154 = vector.load %arg5[%c0_53, %c0_54] : memref<32x96xf32, #tpu.memory_space<vmem>>, vector<32x96xf32>
    %cst_55 = arith.constant dense<0.000000e+00> : vector<2x96xf32>
    %155 = tpu.matmul %149, %154, %cst_55 {dimension_numbers = #tpu.dot_dimension_numbers<[1], [0], [0], [1], [0, 0, 1, 1], [], []>} : vector<2x32xf32>, vector<32x96xf32>, vector<2x96xf32> -> vector<2x96xf32>
    %156 = arith.addf %155, %16 : vector<2x96xf32>
    %157 = arith.index_cast %c4_i32 : i32 to index
    %c0_56 = arith.constant 0 : index
    %c0_57 = arith.constant 0 : index
    %158 = vector.load %arg23[%157, %c0_56, %c0_57] : memref<8x2x96xf32, #tpu.memory_space<vmem>>, vector<1x2x96xf32>
    %159 = vector.shape_cast %158 : vector<1x2x96xf32> to vector<2x96xf32>
    %160 = vector.extract_strided_slice %159 {offsets = [0, 0], sizes = [2, 32], strides = [1, 1]} : vector<2x96xf32> to vector<2x32xf32>
    %161 = vector.extract_strided_slice %156 {offsets = [0, 0], sizes = [2, 32], strides = [1, 1]} : vector<2x96xf32> to vector<2x32xf32>
    %162 = arith.addf %160, %161 : vector<2x32xf32>
    %163 = arith.negf %162 : vector<2x32xf32>
    %164 = math.exp %163 : vector<2x32xf32>
    %cst_58 = arith.constant 1.000000e+00 : f32
    %165 = vector.broadcast %cst_58 : f32 to vector<2x32xf32>
    %166 = arith.addf %165, %164 : vector<2x32xf32>
    %167 = arith.divf %165, %166 : vector<2x32xf32>
    %168 = vector.extract_strided_slice %159 {offsets = [0, 32], sizes = [2, 32], strides = [1, 1]} : vector<2x96xf32> to vector<2x32xf32>
    %169 = vector.extract_strided_slice %156 {offsets = [0, 32], sizes = [2, 32], strides = [1, 1]} : vector<2x96xf32> to vector<2x32xf32>
    %170 = arith.addf %168, %169 : vector<2x32xf32>
    %171 = arith.negf %170 : vector<2x32xf32>
    %172 = math.exp %171 : vector<2x32xf32>
    %cst_59 = arith.constant 1.000000e+00 : f32
    %173 = vector.broadcast %cst_59 : f32 to vector<2x32xf32>
    %174 = arith.addf %173, %172 : vector<2x32xf32>
    %175 = arith.divf %173, %174 : vector<2x32xf32>
    %176 = vector.extract_strided_slice %159 {offsets = [0, 64], sizes = [2, 32], strides = [1, 1]} : vector<2x96xf32> to vector<2x32xf32>
    %177 = vector.extract_strided_slice %156 {offsets = [0, 64], sizes = [2, 32], strides = [1, 1]} : vector<2x96xf32> to vector<2x32xf32>
    %178 = arith.mulf %167, %177 : vector<2x32xf32>
    %179 = arith.addf %176, %178 : vector<2x32xf32>
    %180 = math.tanh %179 : vector<2x32xf32>
    %181 = arith.subf %149, %180 : vector<2x32xf32>
    %182 = arith.mulf %175, %181 : vector<2x32xf32>
    %183 = arith.addf %180, %182 : vector<2x32xf32>
    %184 = arith.index_cast %c4_i32 : i32 to index
    %c0_60 = arith.constant 0 : index
    %c0_61 = arith.constant 0 : index
    %185 = vector.load %arg24[%184, %c0_60, %c0_61] : memref<8x2x32xf32, #tpu.memory_space<vmem>>, vector<1x2x32xf32>
    %186 = vector.shape_cast %185 : vector<1x2x32xf32> to vector<2x32xf32>
    %187 = vector.shape_cast %183 : vector<2x32xf32> to vector<1x2x32xf32>
    tpu.vector_store %arg24[%184, %c0_60, %c0_61], %187 {strides = array<i32>} : memref<8x2x32xf32, #tpu.memory_space<vmem>>, vector<1x2x32xf32>,
    %c5_i32 = arith.constant 5 : i32
    %c0_62 = arith.constant 0 : index
    %c0_63 = arith.constant 0 : index
    %188 = vector.load %arg5[%c0_62, %c0_63] : memref<32x96xf32, #tpu.memory_space<vmem>>, vector<32x96xf32>
    %cst_64 = arith.constant dense<0.000000e+00> : vector<2x96xf32>
    %189 = tpu.matmul %183, %188, %cst_64 {dimension_numbers = #tpu.dot_dimension_numbers<[1], [0], [0], [1], [0, 0, 1, 1], [], []>} : vector<2x32xf32>, vector<32x96xf32>, vector<2x96xf32> -> vector<2x96xf32>
    %190 = arith.addf %189, %16 : vector<2x96xf32>
    %191 = arith.index_cast %c5_i32 : i32 to index
    %c0_65 = arith.constant 0 : index
    %c0_66 = arith.constant 0 : index
    %192 = vector.load %arg23[%191, %c0_65, %c0_66] : memref<8x2x96xf32, #tpu.memory_space<vmem>>, vector<1x2x96xf32>
    %193 = vector.shape_cast %192 : vector<1x2x96xf32> to vector<2x96xf32>
    %194 = vector.extract_strided_slice %193 {offsets = [0, 0], sizes = [2, 32], strides = [1, 1]} : vector<2x96xf32> to vector<2x32xf32>
    %195 = vector.extract_strided_slice %190 {offsets = [0, 0], sizes = [2, 32], strides = [1, 1]} : vector<2x96xf32> to vector<2x32xf32>
    %196 = arith.addf %194, %195 : vector<2x32xf32>
    %197 = arith.negf %196 : vector<2x32xf32>
    %198 = math.exp %197 : vector<2x32xf32>
    %cst_67 = arith.constant 1.000000e+00 : f32
    %199 = vector.broadcast %cst_67 : f32 to vector<2x32xf32>
    %200 = arith.addf %199, %198 : vector<2x32xf32>
    %201 = arith.divf %199, %200 : vector<2x32xf32>
    %202 = vector.extract_strided_slice %193 {offsets = [0, 32], sizes = [2, 32], strides = [1, 1]} : vector<2x96xf32> to vector<2x32xf32>
    %203 = vector.extract_strided_slice %190 {offsets = [0, 32], sizes = [2, 32], strides = [1, 1]} : vector<2x96xf32> to vector<2x32xf32>
    %204 = arith.addf %202, %203 : vector<2x32xf32>
    %205 = arith.negf %204 : vector<2x32xf32>
    %206 = math.exp %205 : vector<2x32xf32>
    %cst_68 = arith.constant 1.000000e+00 : f32
    %207 = vector.broadcast %cst_68 : f32 to vector<2x32xf32>
    %208 = arith.addf %207, %206 : vector<2x32xf32>
    %209 = arith.divf %207, %208 : vector<2x32xf32>
    %210 = vector.extract_strided_slice %193 {offsets = [0, 64], sizes = [2, 32], strides = [1, 1]} : vector<2x96xf32> to vector<2x32xf32>
    %211 = vector.extract_strided_slice %190 {offsets = [0, 64], sizes = [2, 32], strides = [1, 1]} : vector<2x96xf32> to vector<2x32xf32>
    %212 = arith.mulf %201, %211 : vector<2x32xf32>
    %213 = arith.addf %210, %212 : vector<2x32xf32>
    %214 = math.tanh %213 : vector<2x32xf32>
    %215 = arith.subf %183, %214 : vector<2x32xf32>
    %216 = arith.mulf %209, %215 : vector<2x32xf32>
    %217 = arith.addf %214, %216 : vector<2x32xf32>
    %218 = arith.index_cast %c5_i32 : i32 to index
    %c0_69 = arith.constant 0 : index
    %c0_70 = arith.constant 0 : index
    %219 = vector.load %arg24[%218, %c0_69, %c0_70] : memref<8x2x32xf32, #tpu.memory_space<vmem>>, vector<1x2x32xf32>
    %220 = vector.shape_cast %219 : vector<1x2x32xf32> to vector<2x32xf32>
    %221 = vector.shape_cast %217 : vector<2x32xf32> to vector<1x2x32xf32>
    tpu.vector_store %arg24[%218, %c0_69, %c0_70], %221 {strides = array<i32>} : memref<8x2x32xf32, #tpu.memory_space<vmem>>, vector<1x2x32xf32>,
    %c6_i32 = arith.constant 6 : i32
    %c0_71 = arith.constant 0 : index
    %c0_72 = arith.constant 0 : index
    %222 = vector.load %arg5[%c0_71, %c0_72] : memref<32x96xf32, #tpu.memory_space<vmem>>, vector<32x96xf32>
    %cst_73 = arith.constant dense<0.000000e+00> : vector<2x96xf32>
    %223 = tpu.matmul %217, %222, %cst_73 {dimension_numbers = #tpu.dot_dimension_numbers<[1], [0], [0], [1], [0, 0, 1, 1], [], []>} : vector<2x32xf32>, vector<32x96xf32>, vector<2x96xf32> -> vector<2x96xf32>
    %224 = arith.addf %223, %16 : vector<2x96xf32>
    %225 = arith.index_cast %c6_i32 : i32 to index
    %c0_74 = arith.constant 0 : index
    %c0_75 = arith.constant 0 : index
    %226 = vector.load %arg23[%225, %c0_74, %c0_75] : memref<8x2x96xf32, #tpu.memory_space<vmem>>, vector<1x2x96xf32>
    %227 = vector.shape_cast %226 : vector<1x2x96xf32> to vector<2x96xf32>
    %228 = vector.extract_strided_slice %227 {offsets = [0, 0], sizes = [2, 32], strides = [1, 1]} : vector<2x96xf32> to vector<2x32xf32>
    %229 = vector.extract_strided_slice %224 {offsets = [0, 0], sizes = [2, 32], strides = [1, 1]} : vector<2x96xf32> to vector<2x32xf32>
    %230 = arith.addf %228, %229 : vector<2x32xf32>
    %231 = arith.negf %230 : vector<2x32xf32>
    %232 = math.exp %231 : vector<2x32xf32>
    %cst_76 = arith.constant 1.000000e+00 : f32
    %233 = vector.broadcast %cst_76 : f32 to vector<2x32xf32>
    %234 = arith.addf %233, %232 : vector<2x32xf32>
    %235 = arith.divf %233, %234 : vector<2x32xf32>
    %236 = vector.extract_strided_slice %227 {offsets = [0, 32], sizes = [2, 32], strides = [1, 1]} : vector<2x96xf32> to vector<2x32xf32>
    %237 = vector.extract_strided_slice %224 {offsets = [0, 32], sizes = [2, 32], strides = [1, 1]} : vector<2x96xf32> to vector<2x32xf32>
    %238 = arith.addf %236, %237 : vector<2x32xf32>
    %239 = arith.negf %238 : vector<2x32xf32>
    %240 = math.exp %239 : vector<2x32xf32>
    %cst_77 = arith.constant 1.000000e+00 : f32
    %241 = vector.broadcast %cst_77 : f32 to vector<2x32xf32>
    %242 = arith.addf %241, %240 : vector<2x32xf32>
    %243 = arith.divf %241, %242 : vector<2x32xf32>
    %244 = vector.extract_strided_slice %227 {offsets = [0, 64], sizes = [2, 32], strides = [1, 1]} : vector<2x96xf32> to vector<2x32xf32>
    %245 = vector.extract_strided_slice %224 {offsets = [0, 64], sizes = [2, 32], strides = [1, 1]} : vector<2x96xf32> to vector<2x32xf32>
    %246 = arith.mulf %235, %245 : vector<2x32xf32>
    %247 = arith.addf %244, %246 : vector<2x32xf32>
    %248 = math.tanh %247 : vector<2x32xf32>
    %249 = arith.subf %217, %248 : vector<2x32xf32>
    %250 = arith.mulf %243, %249 : vector<2x32xf32>
    %251 = arith.addf %248, %250 : vector<2x32xf32>
    %252 = arith.index_cast %c6_i32 : i32 to index
    %c0_78 = arith.constant 0 : index
    %c0_79 = arith.constant 0 : index
    %253 = vector.load %arg24[%252, %c0_78, %c0_79] : memref<8x2x32xf32, #tpu.memory_space<vmem>>, vector<1x2x32xf32>
    %254 = vector.shape_cast %253 : vector<1x2x32xf32> to vector<2x32xf32>
    %255 = vector.shape_cast %251 : vector<2x32xf32> to vector<1x2x32xf32>
    tpu.vector_store %arg24[%252, %c0_78, %c0_79], %255 {strides = array<i32>} : memref<8x2x32xf32, #tpu.memory_space<vmem>>, vector<1x2x32xf32>,
    %c7_i32 = arith.constant 7 : i32
    %c0_80 = arith.constant 0 : index
    %c0_81 = arith.constant 0 : index
    %256 = vector.load %arg5[%c0_80, %c0_81] : memref<32x96xf32, #tpu.memory_space<vmem>>, vector<32x96xf32>
    %cst_82 = arith.constant dense<0.000000e+00> : vector<2x96xf32>
    %257 = tpu.matmul %251, %256, %cst_82 {dimension_numbers = #tpu.dot_dimension_numbers<[1], [0], [0], [1], [0, 0, 1, 1], [], []>} : vector<2x32xf32>, vector<32x96xf32>, vector<2x96xf32> -> vector<2x96xf32>
    %258 = arith.addf %257, %16 : vector<2x96xf32>
    %259 = arith.index_cast %c7_i32 : i32 to index
    %c0_83 = arith.constant 0 : index
    %c0_84 = arith.constant 0 : index
    %260 = vector.load %arg23[%259, %c0_83, %c0_84] : memref<8x2x96xf32, #tpu.memory_space<vmem>>, vector<1x2x96xf32>
    %261 = vector.shape_cast %260 : vector<1x2x96xf32> to vector<2x96xf32>
    %262 = vector.extract_strided_slice %261 {offsets = [0, 0], sizes = [2, 32], strides = [1, 1]} : vector<2x96xf32> to vector<2x32xf32>
    %263 = vector.extract_strided_slice %258 {offsets = [0, 0], sizes = [2, 32], strides = [1, 1]} : vector<2x96xf32> to vector<2x32xf32>
    %264 = arith.addf %262, %263 : vector<2x32xf32>
    %265 = arith.negf %264 : vector<2x32xf32>
    %266 = math.exp %265 : vector<2x32xf32>
    %cst_85 = arith.constant 1.000000e+00 : f32
    %267 = vector.broadcast %cst_85 : f32 to vector<2x32xf32>
    %268 = arith.addf %267, %266 : vector<2x32xf32>
    %269 = arith.divf %267, %268 : vector<2x32xf32>
    %270 = vector.extract_strided_slice %261 {offsets = [0, 32], sizes = [2, 32], strides = [1, 1]} : vector<2x96xf32> to vector<2x32xf32>
    %271 = vector.extract_strided_slice %258 {offsets = [0, 32], sizes = [2, 32], strides = [1, 1]} : vector<2x96xf32> to vector<2x32xf32>
    %272 = arith.addf %270, %271 : vector<2x32xf32>
    %273 = arith.negf %272 : vector<2x32xf32>
    %274 = math.exp %273 : vector<2x32xf32>
    %cst_86 = arith.constant 1.000000e+00 : f32
    %275 = vector.broadcast %cst_86 : f32 to vector<2x32xf32>
    %276 = arith.addf %275, %274 : vector<2x32xf32>
    %277 = arith.divf %275, %276 : vector<2x32xf32>
    %278 = vector.extract_strided_slice %261 {offsets = [0, 64], sizes = [2, 32], strides = [1, 1]} : vector<2x96xf32> to vector<2x32xf32>
    %279 = vector.extract_strided_slice %258 {offsets = [0, 64], sizes = [2, 32], strides = [1, 1]} : vector<2x96xf32> to vector<2x32xf32>
    %280 = arith.mulf %269, %279 : vector<2x32xf32>
    %281 = arith.addf %278, %280 : vector<2x32xf32>
    %282 = math.tanh %281 : vector<2x32xf32>
    %283 = arith.subf %251, %282 : vector<2x32xf32>
    %284 = arith.mulf %277, %283 : vector<2x32xf32>
    %285 = arith.addf %282, %284 : vector<2x32xf32>
    %286 = arith.index_cast %c7_i32 : i32 to index
    %c0_87 = arith.constant 0 : index
    %c0_88 = arith.constant 0 : index
    %287 = vector.load %arg24[%286, %c0_87, %c0_88] : memref<8x2x32xf32, #tpu.memory_space<vmem>>, vector<1x2x32xf32>
    %288 = vector.shape_cast %287 : vector<1x2x32xf32> to vector<2x32xf32>
    %289 = vector.shape_cast %285 : vector<2x32xf32> to vector<1x2x32xf32>
    tpu.vector_store %arg24[%286, %c0_87, %c0_88], %289 {strides = array<i32>} : memref<8x2x32xf32, #tpu.memory_space<vmem>>, vector<1x2x32xf32>,
    %c8_i32 = arith.constant 8 : i32
    %c0_89 = arith.constant 0 : index
    %c0_90 = arith.constant 0 : index
    %c0_91 = arith.constant 0 : index
    %290 = vector.load %arg24[%c0_89, %c0_90, %c0_91] : memref<8x2x32xf32, #tpu.memory_space<vmem>>, vector<8x2x32xf32>
    %291 = vector.shape_cast %290 : vector<8x2x32xf32> to vector<16x32xf32>
    %c0_92 = arith.constant 0 : index
    %c0_93 = arith.constant 0 : index
    %292 = vector.load %arg8[%c0_92, %c0_93] : memref<32x96xf32, #tpu.memory_space<vmem>>, vector<32x96xf32>
    %cst_94 = arith.constant dense<0.000000e+00> : vector<16x96xf32>
    %293 = tpu.matmul %291, %292, %cst_94 {dimension_numbers = #tpu.dot_dimension_numbers<[1], [0], [0], [1], [0, 0, 1, 1], [], []>} : vector<16x32xf32>, vector<32x96xf32>, vector<16x96xf32> -> vector<16x96xf32>
    %c0_95 = arith.constant 0 : index
    %c0_96 = arith.constant 0 : index
    %294 = vector.load %arg10[%c0_95, %c0_96] : memref<1x96xf32, #tpu.memory_space<vmem>>, vector<1x96xf32>
    %295 = vector.broadcast %294 : vector<1x96xf32> to vector<16x96xf32>
    %296 = arith.addf %293, %295 : vector<16x96xf32>
    %297 = vector.shape_cast %296 : vector<16x96xf32> to vector<8x2x96xf32>
    %c0_97 = arith.constant 0 : index
    %c0_98 = arith.constant 0 : index
    %c0_99 = arith.constant 0 : index
    %298 = vector.load %arg23[%c0_97, %c0_98, %c0_99] : memref<8x2x96xf32, #tpu.memory_space<vmem>>, vector<8x2x96xf32>
    tpu.vector_store %arg23[%c0_97, %c0_98, %c0_99], %297 {strides = array<i32>} : memref<8x2x96xf32, #tpu.memory_space<vmem>>, vector<8x2x96xf32>,
    %c0_100 = arith.constant 0 : index
    %c0_101 = arith.constant 0 : index
    %299 = vector.load %arg11[%c0_100, %c0_101] : memref<1x96xf32, #tpu.memory_space<vmem>>, vector<1x96xf32>
    %300 = vector.shape_cast %299 : vector<1x96xf32> to vector<1x96xf32>
    %301 = vector.broadcast %300 : vector<1x96xf32> to vector<2x96xf32>
    %cst_102 = arith.constant 0.000000e+00 : f32
    %302 = vector.broadcast %cst_102 : f32 to vector<2x32xf32>
    %c0_i32_103 = arith.constant 0 : i32
    %c0_104 = arith.constant 0 : index
    %c0_105 = arith.constant 0 : index
    %303 = vector.load %arg9[%c0_104, %c0_105] : memref<32x96xf32, #tpu.memory_space<vmem>>, vector<32x96xf32>
    %cst_106 = arith.constant dense<0.000000e+00> : vector<2x96xf32>
    %304 = tpu.matmul %302, %303, %cst_106 {dimension_numbers = #tpu.dot_dimension_numbers<[1], [0], [0], [1], [0, 0, 1, 1], [], []>} : vector<2x32xf32>, vector<32x96xf32>, vector<2x96xf32> -> vector<2x96xf32>
    %305 = arith.addf %304, %301 : vector<2x96xf32>
    %306 = arith.index_cast %c0_i32_103 : i32 to index
    %c0_107 = arith.constant 0 : index
    %c0_108 = arith.constant 0 : index
    %307 = vector.load %arg23[%306, %c0_107, %c0_108] : memref<8x2x96xf32, #tpu.memory_space<vmem>>, vector<1x2x96xf32>
    %308 = vector.shape_cast %307 : vector<1x2x96xf32> to vector<2x96xf32>
    %309 = vector.extract_strided_slice %308 {offsets = [0, 0], sizes = [2, 32], strides = [1, 1]} : vector<2x96xf32> to vector<2x32xf32>
    %310 = vector.extract_strided_slice %305 {offsets = [0, 0], sizes = [2, 32], strides = [1, 1]} : vector<2x96xf32> to vector<2x32xf32>
    %311 = arith.addf %309, %310 : vector<2x32xf32>
    %312 = arith.negf %311 : vector<2x32xf32>
    %313 = math.exp %312 : vector<2x32xf32>
    %cst_109 = arith.constant 1.000000e+00 : f32
    %314 = vector.broadcast %cst_109 : f32 to vector<2x32xf32>
    %315 = arith.addf %314, %313 : vector<2x32xf32>
    %316 = arith.divf %314, %315 : vector<2x32xf32>
    %317 = vector.extract_strided_slice %308 {offsets = [0, 32], sizes = [2, 32], strides = [1, 1]} : vector<2x96xf32> to vector<2x32xf32>
    %318 = vector.extract_strided_slice %305 {offsets = [0, 32], sizes = [2, 32], strides = [1, 1]} : vector<2x96xf32> to vector<2x32xf32>
    %319 = arith.addf %317, %318 : vector<2x32xf32>
    %320 = arith.negf %319 : vector<2x32xf32>
    %321 = math.exp %320 : vector<2x32xf32>
    %cst_110 = arith.constant 1.000000e+00 : f32
    %322 = vector.broadcast %cst_110 : f32 to vector<2x32xf32>
    %323 = arith.addf %322, %321 : vector<2x32xf32>
    %324 = arith.divf %322, %323 : vector<2x32xf32>
    %325 = vector.extract_strided_slice %308 {offsets = [0, 64], sizes = [2, 32], strides = [1, 1]} : vector<2x96xf32> to vector<2x32xf32>
    %326 = vector.extract_strided_slice %305 {offsets = [0, 64], sizes = [2, 32], strides = [1, 1]} : vector<2x96xf32> to vector<2x32xf32>
    %327 = arith.mulf %316, %326 : vector<2x32xf32>
    %328 = arith.addf %325, %327 : vector<2x32xf32>
    %329 = math.tanh %328 : vector<2x32xf32>
    %330 = arith.subf %302, %329 : vector<2x32xf32>
    %331 = arith.mulf %324, %330 : vector<2x32xf32>
    %332 = arith.addf %329, %331 : vector<2x32xf32>
    %333 = arith.index_cast %c0_i32_103 : i32 to index
    %c0_111 = arith.constant 0 : index
    %c0_112 = arith.constant 0 : index
    %334 = vector.load %arg24[%333, %c0_111, %c0_112] : memref<8x2x32xf32, #tpu.memory_space<vmem>>, vector<1x2x32xf32>
    %335 = vector.shape_cast %334 : vector<1x2x32xf32> to vector<2x32xf32>
    %336 = vector.shape_cast %332 : vector<2x32xf32> to vector<1x2x32xf32>
    tpu.vector_store %arg24[%333, %c0_111, %c0_112], %336 {strides = array<i32>} : memref<8x2x32xf32, #tpu.memory_space<vmem>>, vector<1x2x32xf32>,
    %c1_i32_113 = arith.constant 1 : i32
    %c0_114 = arith.constant 0 : index
    %c0_115 = arith.constant 0 : index
    %337 = vector.load %arg9[%c0_114, %c0_115] : memref<32x96xf32, #tpu.memory_space<vmem>>, vector<32x96xf32>
    %cst_116 = arith.constant dense<0.000000e+00> : vector<2x96xf32>
    %338 = tpu.matmul %332, %337, %cst_116 {dimension_numbers = #tpu.dot_dimension_numbers<[1], [0], [0], [1], [0, 0, 1, 1], [], []>} : vector<2x32xf32>, vector<32x96xf32>, vector<2x96xf32> -> vector<2x96xf32>
    %339 = arith.addf %338, %301 : vector<2x96xf32>
    %340 = arith.index_cast %c1_i32_113 : i32 to index
    %c0_117 = arith.constant 0 : index
    %c0_118 = arith.constant 0 : index
    %341 = vector.load %arg23[%340, %c0_117, %c0_118] : memref<8x2x96xf32, #tpu.memory_space<vmem>>, vector<1x2x96xf32>
    %342 = vector.shape_cast %341 : vector<1x2x96xf32> to vector<2x96xf32>
    %343 = vector.extract_strided_slice %342 {offsets = [0, 0], sizes = [2, 32], strides = [1, 1]} : vector<2x96xf32> to vector<2x32xf32>
    %344 = vector.extract_strided_slice %339 {offsets = [0, 0], sizes = [2, 32], strides = [1, 1]} : vector<2x96xf32> to vector<2x32xf32>
    %345 = arith.addf %343, %344 : vector<2x32xf32>
    %346 = arith.negf %345 : vector<2x32xf32>
    %347 = math.exp %346 : vector<2x32xf32>
    %cst_119 = arith.constant 1.000000e+00 : f32
    %348 = vector.broadcast %cst_119 : f32 to vector<2x32xf32>
    %349 = arith.addf %348, %347 : vector<2x32xf32>
    %350 = arith.divf %348, %349 : vector<2x32xf32>
    %351 = vector.extract_strided_slice %342 {offsets = [0, 32], sizes = [2, 32], strides = [1, 1]} : vector<2x96xf32> to vector<2x32xf32>
    %352 = vector.extract_strided_slice %339 {offsets = [0, 32], sizes = [2, 32], strides = [1, 1]} : vector<2x96xf32> to vector<2x32xf32>
    %353 = arith.addf %351, %352 : vector<2x32xf32>
    %354 = arith.negf %353 : vector<2x32xf32>
    %355 = math.exp %354 : vector<2x32xf32>
    %cst_120 = arith.constant 1.000000e+00 : f32
    %356 = vector.broadcast %cst_120 : f32 to vector<2x32xf32>
    %357 = arith.addf %356, %355 : vector<2x32xf32>
    %358 = arith.divf %356, %357 : vector<2x32xf32>
    %359 = vector.extract_strided_slice %342 {offsets = [0, 64], sizes = [2, 32], strides = [1, 1]} : vector<2x96xf32> to vector<2x32xf32>
    %360 = vector.extract_strided_slice %339 {offsets = [0, 64], sizes = [2, 32], strides = [1, 1]} : vector<2x96xf32> to vector<2x32xf32>
    %361 = arith.mulf %350, %360 : vector<2x32xf32>
    %362 = arith.addf %359, %361 : vector<2x32xf32>
    %363 = math.tanh %362 : vector<2x32xf32>
    %364 = arith.subf %332, %363 : vector<2x32xf32>
    %365 = arith.mulf %358, %364 : vector<2x32xf32>
    %366 = arith.addf %363, %365 : vector<2x32xf32>
    %367 = arith.index_cast %c1_i32_113 : i32 to index
    %c0_121 = arith.constant 0 : index
    %c0_122 = arith.constant 0 : index
    %368 = vector.load %arg24[%367, %c0_121, %c0_122] : memref<8x2x32xf32, #tpu.memory_space<vmem>>, vector<1x2x32xf32>
    %369 = vector.shape_cast %368 : vector<1x2x32xf32> to vector<2x32xf32>
    %370 = vector.shape_cast %366 : vector<2x32xf32> to vector<1x2x32xf32>
    tpu.vector_store %arg24[%367, %c0_121, %c0_122], %370 {strides = array<i32>} : memref<8x2x32xf32, #tpu.memory_space<vmem>>, vector<1x2x32xf32>,
    %c2_i32_123 = arith.constant 2 : i32
    %c0_124 = arith.constant 0 : index
    %c0_125 = arith.constant 0 : index
    %371 = vector.load %arg9[%c0_124, %c0_125] : memref<32x96xf32, #tpu.memory_space<vmem>>, vector<32x96xf32>
    %cst_126 = arith.constant dense<0.000000e+00> : vector<2x96xf32>
    %372 = tpu.matmul %366, %371, %cst_126 {dimension_numbers = #tpu.dot_dimension_numbers<[1], [0], [0], [1], [0, 0, 1, 1], [], []>} : vector<2x32xf32>, vector<32x96xf32>, vector<2x96xf32> -> vector<2x96xf32>
    %373 = arith.addf %372, %301 : vector<2x96xf32>
    %374 = arith.index_cast %c2_i32_123 : i32 to index
    %c0_127 = arith.constant 0 : index
    %c0_128 = arith.constant 0 : index
    %375 = vector.load %arg23[%374, %c0_127, %c0_128] : memref<8x2x96xf32, #tpu.memory_space<vmem>>, vector<1x2x96xf32>
    %376 = vector.shape_cast %375 : vector<1x2x96xf32> to vector<2x96xf32>
    %377 = vector.extract_strided_slice %376 {offsets = [0, 0], sizes = [2, 32], strides = [1, 1]} : vector<2x96xf32> to vector<2x32xf32>
    %378 = vector.extract_strided_slice %373 {offsets = [0, 0], sizes = [2, 32], strides = [1, 1]} : vector<2x96xf32> to vector<2x32xf32>
    %379 = arith.addf %377, %378 : vector<2x32xf32>
    %380 = arith.negf %379 : vector<2x32xf32>
    %381 = math.exp %380 : vector<2x32xf32>
    %cst_129 = arith.constant 1.000000e+00 : f32
    %382 = vector.broadcast %cst_129 : f32 to vector<2x32xf32>
    %383 = arith.addf %382, %381 : vector<2x32xf32>
    %384 = arith.divf %382, %383 : vector<2x32xf32>
    %385 = vector.extract_strided_slice %376 {offsets = [0, 32], sizes = [2, 32], strides = [1, 1]} : vector<2x96xf32> to vector<2x32xf32>
    %386 = vector.extract_strided_slice %373 {offsets = [0, 32], sizes = [2, 32], strides = [1, 1]} : vector<2x96xf32> to vector<2x32xf32>
    %387 = arith.addf %385, %386 : vector<2x32xf32>
    %388 = arith.negf %387 : vector<2x32xf32>
    %389 = math.exp %388 : vector<2x32xf32>
    %cst_130 = arith.constant 1.000000e+00 : f32
    %390 = vector.broadcast %cst_130 : f32 to vector<2x32xf32>
    %391 = arith.addf %390, %389 : vector<2x32xf32>
    %392 = arith.divf %390, %391 : vector<2x32xf32>
    %393 = vector.extract_strided_slice %376 {offsets = [0, 64], sizes = [2, 32], strides = [1, 1]} : vector<2x96xf32> to vector<2x32xf32>
    %394 = vector.extract_strided_slice %373 {offsets = [0, 64], sizes = [2, 32], strides = [1, 1]} : vector<2x96xf32> to vector<2x32xf32>
    %395 = arith.mulf %384, %394 : vector<2x32xf32>
    %396 = arith.addf %393, %395 : vector<2x32xf32>
    %397 = math.tanh %396 : vector<2x32xf32>
    %398 = arith.subf %366, %397 : vector<2x32xf32>
    %399 = arith.mulf %392, %398 : vector<2x32xf32>
    %400 = arith.addf %397, %399 : vector<2x32xf32>
    %401 = arith.index_cast %c2_i32_123 : i32 to index
    %c0_131 = arith.constant 0 : index
    %c0_132 = arith.constant 0 : index
    %402 = vector.load %arg24[%401, %c0_131, %c0_132] : memref<8x2x32xf32, #tpu.memory_space<vmem>>, vector<1x2x32xf32>
    %403 = vector.shape_cast %402 : vector<1x2x32xf32> to vector<2x32xf32>
    %404 = vector.shape_cast %400 : vector<2x32xf32> to vector<1x2x32xf32>
    tpu.vector_store %arg24[%401, %c0_131, %c0_132], %404 {strides = array<i32>} : memref<8x2x32xf32, #tpu.memory_space<vmem>>, vector<1x2x32xf32>,
    %c3_i32_133 = arith.constant 3 : i32
    %c0_134 = arith.constant 0 : index
    %c0_135 = arith.constant 0 : index
    %405 = vector.load %arg9[%c0_134, %c0_135] : memref<32x96xf32, #tpu.memory_space<vmem>>, vector<32x96xf32>
    %cst_136 = arith.constant dense<0.000000e+00> : vector<2x96xf32>
    %406 = tpu.matmul %400, %405, %cst_136 {dimension_numbers = #tpu.dot_dimension_numbers<[1], [0], [0], [1], [0, 0, 1, 1], [], []>} : vector<2x32xf32>, vector<32x96xf32>, vector<2x96xf32> -> vector<2x96xf32>
    %407 = arith.addf %406, %301 : vector<2x96xf32>
    %408 = arith.index_cast %c3_i32_133 : i32 to index
    %c0_137 = arith.constant 0 : index
    %c0_138 = arith.constant 0 : index
    %409 = vector.load %arg23[%408, %c0_137, %c0_138] : memref<8x2x96xf32, #tpu.memory_space<vmem>>, vector<1x2x96xf32>
    %410 = vector.shape_cast %409 : vector<1x2x96xf32> to vector<2x96xf32>
    %411 = vector.extract_strided_slice %410 {offsets = [0, 0], sizes = [2, 32], strides = [1, 1]} : vector<2x96xf32> to vector<2x32xf32>
    %412 = vector.extract_strided_slice %407 {offsets = [0, 0], sizes = [2, 32], strides = [1, 1]} : vector<2x96xf32> to vector<2x32xf32>
    %413 = arith.addf %411, %412 : vector<2x32xf32>
    %414 = arith.negf %413 : vector<2x32xf32>
    %415 = math.exp %414 : vector<2x32xf32>
    %cst_139 = arith.constant 1.000000e+00 : f32
    %416 = vector.broadcast %cst_139 : f32 to vector<2x32xf32>
    %417 = arith.addf %416, %415 : vector<2x32xf32>
    %418 = arith.divf %416, %417 : vector<2x32xf32>
    %419 = vector.extract_strided_slice %410 {offsets = [0, 32], sizes = [2, 32], strides = [1, 1]} : vector<2x96xf32> to vector<2x32xf32>
    %420 = vector.extract_strided_slice %407 {offsets = [0, 32], sizes = [2, 32], strides = [1, 1]} : vector<2x96xf32> to vector<2x32xf32>
    %421 = arith.addf %419, %420 : vector<2x32xf32>
    %422 = arith.negf %421 : vector<2x32xf32>
    %423 = math.exp %422 : vector<2x32xf32>
    %cst_140 = arith.constant 1.000000e+00 : f32
    %424 = vector.broadcast %cst_140 : f32 to vector<2x32xf32>
    %425 = arith.addf %424, %423 : vector<2x32xf32>
    %426 = arith.divf %424, %425 : vector<2x32xf32>
    %427 = vector.extract_strided_slice %410 {offsets = [0, 64], sizes = [2, 32], strides = [1, 1]} : vector<2x96xf32> to vector<2x32xf32>
    %428 = vector.extract_strided_slice %407 {offsets = [0, 64], sizes = [2, 32], strides = [1, 1]} : vector<2x96xf32> to vector<2x32xf32>
    %429 = arith.mulf %418, %428 : vector<2x32xf32>
    %430 = arith.addf %427, %429 : vector<2x32xf32>
    %431 = math.tanh %430 : vector<2x32xf32>
    %432 = arith.subf %400, %431 : vector<2x32xf32>
    %433 = arith.mulf %426, %432 : vector<2x32xf32>
    %434 = arith.addf %431, %433 : vector<2x32xf32>
    %435 = arith.index_cast %c3_i32_133 : i32 to index
    %c0_141 = arith.constant 0 : index
    %c0_142 = arith.constant 0 : index
    %436 = vector.load %arg24[%435, %c0_141, %c0_142] : memref<8x2x32xf32, #tpu.memory_space<vmem>>, vector<1x2x32xf32>
    %437 = vector.shape_cast %436 : vector<1x2x32xf32> to vector<2x32xf32>
    %438 = vector.shape_cast %434 : vector<2x32xf32> to vector<1x2x32xf32>
    tpu.vector_store %arg24[%435, %c0_141, %c0_142], %438 {strides = array<i32>} : memref<8x2x32xf32, #tpu.memory_space<vmem>>, vector<1x2x32xf32>,
    %c4_i32_143 = arith.constant 4 : i32
    %c0_144 = arith.constant 0 : index
    %c0_145 = arith.constant 0 : index
    %439 = vector.load %arg9[%c0_144, %c0_145] : memref<32x96xf32, #tpu.memory_space<vmem>>, vector<32x96xf32>
    %cst_146 = arith.constant dense<0.000000e+00> : vector<2x96xf32>
    %440 = tpu.matmul %434, %439, %cst_146 {dimension_numbers = #tpu.dot_dimension_numbers<[1], [0], [0], [1], [0, 0, 1, 1], [], []>} : vector<2x32xf32>, vector<32x96xf32>, vector<2x96xf32> -> vector<2x96xf32>
    %441 = arith.addf %440, %301 : vector<2x96xf32>
    %442 = arith.index_cast %c4_i32_143 : i32 to index
    %c0_147 = arith.constant 0 : index
    %c0_148 = arith.constant 0 : index
    %443 = vector.load %arg23[%442, %c0_147, %c0_148] : memref<8x2x96xf32, #tpu.memory_space<vmem>>, vector<1x2x96xf32>
    %444 = vector.shape_cast %443 : vector<1x2x96xf32> to vector<2x96xf32>
    %445 = vector.extract_strided_slice %444 {offsets = [0, 0], sizes = [2, 32], strides = [1, 1]} : vector<2x96xf32> to vector<2x32xf32>
    %446 = vector.extract_strided_slice %441 {offsets = [0, 0], sizes = [2, 32], strides = [1, 1]} : vector<2x96xf32> to vector<2x32xf32>
    %447 = arith.addf %445, %446 : vector<2x32xf32>
    %448 = arith.negf %447 : vector<2x32xf32>
    %449 = math.exp %448 : vector<2x32xf32>
    %cst_149 = arith.constant 1.000000e+00 : f32
    %450 = vector.broadcast %cst_149 : f32 to vector<2x32xf32>
    %451 = arith.addf %450, %449 : vector<2x32xf32>
    %452 = arith.divf %450, %451 : vector<2x32xf32>
    %453 = vector.extract_strided_slice %444 {offsets = [0, 32], sizes = [2, 32], strides = [1, 1]} : vector<2x96xf32> to vector<2x32xf32>
    %454 = vector.extract_strided_slice %441 {offsets = [0, 32], sizes = [2, 32], strides = [1, 1]} : vector<2x96xf32> to vector<2x32xf32>
    %455 = arith.addf %453, %454 : vector<2x32xf32>
    %456 = arith.negf %455 : vector<2x32xf32>
    %457 = math.exp %456 : vector<2x32xf32>
    %cst_150 = arith.constant 1.000000e+00 : f32
    %458 = vector.broadcast %cst_150 : f32 to vector<2x32xf32>
    %459 = arith.addf %458, %457 : vector<2x32xf32>
    %460 = arith.divf %458, %459 : vector<2x32xf32>
    %461 = vector.extract_strided_slice %444 {offsets = [0, 64], sizes = [2, 32], strides = [1, 1]} : vector<2x96xf32> to vector<2x32xf32>
    %462 = vector.extract_strided_slice %441 {offsets = [0, 64], sizes = [2, 32], strides = [1, 1]} : vector<2x96xf32> to vector<2x32xf32>
    %463 = arith.mulf %452, %462 : vector<2x32xf32>
    %464 = arith.addf %461, %463 : vector<2x32xf32>
    %465 = math.tanh %464 : vector<2x32xf32>
    %466 = arith.subf %434, %465 : vector<2x32xf32>
    %467 = arith.mulf %460, %466 : vector<2x32xf32>
    %468 = arith.addf %465, %467 : vector<2x32xf32>
    %469 = arith.index_cast %c4_i32_143 : i32 to index
    %c0_151 = arith.constant 0 : index
    %c0_152 = arith.constant 0 : index
    %470 = vector.load %arg24[%469, %c0_151, %c0_152] : memref<8x2x32xf32, #tpu.memory_space<vmem>>, vector<1x2x32xf32>
    %471 = vector.shape_cast %470 : vector<1x2x32xf32> to vector<2x32xf32>
    %472 = vector.shape_cast %468 : vector<2x32xf32> to vector<1x2x32xf32>
    tpu.vector_store %arg24[%469, %c0_151, %c0_152], %472 {strides = array<i32>} : memref<8x2x32xf32, #tpu.memory_space<vmem>>, vector<1x2x32xf32>,
    %c5_i32_153 = arith.constant 5 : i32
    %c0_154 = arith.constant 0 : index
    %c0_155 = arith.constant 0 : index
    %473 = vector.load %arg9[%c0_154, %c0_155] : memref<32x96xf32, #tpu.memory_space<vmem>>, vector<32x96xf32>
    %cst_156 = arith.constant dense<0.000000e+00> : vector<2x96xf32>
    %474 = tpu.matmul %468, %473, %cst_156 {dimension_numbers = #tpu.dot_dimension_numbers<[1], [0], [0], [1], [0, 0, 1, 1], [], []>} : vector<2x32xf32>, vector<32x96xf32>, vector<2x96xf32> -> vector<2x96xf32>
    %475 = arith.addf %474, %301 : vector<2x96xf32>
    %476 = arith.index_cast %c5_i32_153 : i32 to index
    %c0_157 = arith.constant 0 : index
    %c0_158 = arith.constant 0 : index
    %477 = vector.load %arg23[%476, %c0_157, %c0_158] : memref<8x2x96xf32, #tpu.memory_space<vmem>>, vector<1x2x96xf32>
    %478 = vector.shape_cast %477 : vector<1x2x96xf32> to vector<2x96xf32>
    %479 = vector.extract_strided_slice %478 {offsets = [0, 0], sizes = [2, 32], strides = [1, 1]} : vector<2x96xf32> to vector<2x32xf32>
    %480 = vector.extract_strided_slice %475 {offsets = [0, 0], sizes = [2, 32], strides = [1, 1]} : vector<2x96xf32> to vector<2x32xf32>
    %481 = arith.addf %479, %480 : vector<2x32xf32>
    %482 = arith.negf %481 : vector<2x32xf32>
    %483 = math.exp %482 : vector<2x32xf32>
    %cst_159 = arith.constant 1.000000e+00 : f32
    %484 = vector.broadcast %cst_159 : f32 to vector<2x32xf32>
    %485 = arith.addf %484, %483 : vector<2x32xf32>
    %486 = arith.divf %484, %485 : vector<2x32xf32>
    %487 = vector.extract_strided_slice %478 {offsets = [0, 32], sizes = [2, 32], strides = [1, 1]} : vector<2x96xf32> to vector<2x32xf32>
    %488 = vector.extract_strided_slice %475 {offsets = [0, 32], sizes = [2, 32], strides = [1, 1]} : vector<2x96xf32> to vector<2x32xf32>
    %489 = arith.addf %487, %488 : vector<2x32xf32>
    %490 = arith.negf %489 : vector<2x32xf32>
    %491 = math.exp %490 : vector<2x32xf32>
    %cst_160 = arith.constant 1.000000e+00 : f32
    %492 = vector.broadcast %cst_160 : f32 to vector<2x32xf32>
    %493 = arith.addf %492, %491 : vector<2x32xf32>
    %494 = arith.divf %492, %493 : vector<2x32xf32>
    %495 = vector.extract_strided_slice %478 {offsets = [0, 64], sizes = [2, 32], strides = [1, 1]} : vector<2x96xf32> to vector<2x32xf32>
    %496 = vector.extract_strided_slice %475 {offsets = [0, 64], sizes = [2, 32], strides = [1, 1]} : vector<2x96xf32> to vector<2x32xf32>
    %497 = arith.mulf %486, %496 : vector<2x32xf32>
    %498 = arith.addf %495, %497 : vector<2x32xf32>
    %499 = math.tanh %498 : vector<2x32xf32>
    %500 = arith.subf %468, %499 : vector<2x32xf32>
    %501 = arith.mulf %494, %500 : vector<2x32xf32>
    %502 = arith.addf %499, %501 : vector<2x32xf32>
    %503 = arith.index_cast %c5_i32_153 : i32 to index
    %c0_161 = arith.constant 0 : index
    %c0_162 = arith.constant 0 : index
    %504 = vector.load %arg24[%503, %c0_161, %c0_162] : memref<8x2x32xf32, #tpu.memory_space<vmem>>, vector<1x2x32xf32>
    %505 = vector.shape_cast %504 : vector<1x2x32xf32> to vector<2x32xf32>
    %506 = vector.shape_cast %502 : vector<2x32xf32> to vector<1x2x32xf32>
    tpu.vector_store %arg24[%503, %c0_161, %c0_162], %506 {strides = array<i32>} : memref<8x2x32xf32, #tpu.memory_space<vmem>>, vector<1x2x32xf32>,
    %c6_i32_163 = arith.constant 6 : i32
    %c0_164 = arith.constant 0 : index
    %c0_165 = arith.constant 0 : index
    %507 = vector.load %arg9[%c0_164, %c0_165] : memref<32x96xf32, #tpu.memory_space<vmem>>, vector<32x96xf32>
    %cst_166 = arith.constant dense<0.000000e+00> : vector<2x96xf32>
    %508 = tpu.matmul %502, %507, %cst_166 {dimension_numbers = #tpu.dot_dimension_numbers<[1], [0], [0], [1], [0, 0, 1, 1], [], []>} : vector<2x32xf32>, vector<32x96xf32>, vector<2x96xf32> -> vector<2x96xf32>
    %509 = arith.addf %508, %301 : vector<2x96xf32>
    %510 = arith.index_cast %c6_i32_163 : i32 to index
    %c0_167 = arith.constant 0 : index
    %c0_168 = arith.constant 0 : index
    %511 = vector.load %arg23[%510, %c0_167, %c0_168] : memref<8x2x96xf32, #tpu.memory_space<vmem>>, vector<1x2x96xf32>
    %512 = vector.shape_cast %511 : vector<1x2x96xf32> to vector<2x96xf32>
    %513 = vector.extract_strided_slice %512 {offsets = [0, 0], sizes = [2, 32], strides = [1, 1]} : vector<2x96xf32> to vector<2x32xf32>
    %514 = vector.extract_strided_slice %509 {offsets = [0, 0], sizes = [2, 32], strides = [1, 1]} : vector<2x96xf32> to vector<2x32xf32>
    %515 = arith.addf %513, %514 : vector<2x32xf32>
    %516 = arith.negf %515 : vector<2x32xf32>
    %517 = math.exp %516 : vector<2x32xf32>
    %cst_169 = arith.constant 1.000000e+00 : f32
    %518 = vector.broadcast %cst_169 : f32 to vector<2x32xf32>
    %519 = arith.addf %518, %517 : vector<2x32xf32>
    %520 = arith.divf %518, %519 : vector<2x32xf32>
    %521 = vector.extract_strided_slice %512 {offsets = [0, 32], sizes = [2, 32], strides = [1, 1]} : vector<2x96xf32> to vector<2x32xf32>
    %522 = vector.extract_strided_slice %509 {offsets = [0, 32], sizes = [2, 32], strides = [1, 1]} : vector<2x96xf32> to vector<2x32xf32>
    %523 = arith.addf %521, %522 : vector<2x32xf32>
    %524 = arith.negf %523 : vector<2x32xf32>
    %525 = math.exp %524 : vector<2x32xf32>
    %cst_170 = arith.constant 1.000000e+00 : f32
    %526 = vector.broadcast %cst_170 : f32 to vector<2x32xf32>
    %527 = arith.addf %526, %525 : vector<2x32xf32>
    %528 = arith.divf %526, %527 : vector<2x32xf32>
    %529 = vector.extract_strided_slice %512 {offsets = [0, 64], sizes = [2, 32], strides = [1, 1]} : vector<2x96xf32> to vector<2x32xf32>
    %530 = vector.extract_strided_slice %509 {offsets = [0, 64], sizes = [2, 32], strides = [1, 1]} : vector<2x96xf32> to vector<2x32xf32>
    %531 = arith.mulf %520, %530 : vector<2x32xf32>
    %532 = arith.addf %529, %531 : vector<2x32xf32>
    %533 = math.tanh %532 : vector<2x32xf32>
    %534 = arith.subf %502, %533 : vector<2x32xf32>
    %535 = arith.mulf %528, %534 : vector<2x32xf32>
    %536 = arith.addf %533, %535 : vector<2x32xf32>
    %537 = arith.index_cast %c6_i32_163 : i32 to index
    %c0_171 = arith.constant 0 : index
    %c0_172 = arith.constant 0 : index
    %538 = vector.load %arg24[%537, %c0_171, %c0_172] : memref<8x2x32xf32, #tpu.memory_space<vmem>>, vector<1x2x32xf32>
    %539 = vector.shape_cast %538 : vector<1x2x32xf32> to vector<2x32xf32>
    %540 = vector.shape_cast %536 : vector<2x32xf32> to vector<1x2x32xf32>
    tpu.vector_store %arg24[%537, %c0_171, %c0_172], %540 {strides = array<i32>} : memref<8x2x32xf32, #tpu.memory_space<vmem>>, vector<1x2x32xf32>,
    %c7_i32_173 = arith.constant 7 : i32
    %c0_174 = arith.constant 0 : index
    %c0_175 = arith.constant 0 : index
    %541 = vector.load %arg9[%c0_174, %c0_175] : memref<32x96xf32, #tpu.memory_space<vmem>>, vector<32x96xf32>
    %cst_176 = arith.constant dense<0.000000e+00> : vector<2x96xf32>
    %542 = tpu.matmul %536, %541, %cst_176 {dimension_numbers = #tpu.dot_dimension_numbers<[1], [0], [0], [1], [0, 0, 1, 1], [], []>} : vector<2x32xf32>, vector<32x96xf32>, vector<2x96xf32> -> vector<2x96xf32>
    %543 = arith.addf %542, %301 : vector<2x96xf32>
    %544 = arith.index_cast %c7_i32_173 : i32 to index
    %c0_177 = arith.constant 0 : index
    %c0_178 = arith.constant 0 : index
    %545 = vector.load %arg23[%544, %c0_177, %c0_178] : memref<8x2x96xf32, #tpu.memory_space<vmem>>, vector<1x2x96xf32>
    %546 = vector.shape_cast %545 : vector<1x2x96xf32> to vector<2x96xf32>
    %547 = vector.extract_strided_slice %546 {offsets = [0, 0], sizes = [2, 32], strides = [1, 1]} : vector<2x96xf32> to vector<2x32xf32>
    %548 = vector.extract_strided_slice %543 {offsets = [0, 0], sizes = [2, 32], strides = [1, 1]} : vector<2x96xf32> to vector<2x32xf32>
    %549 = arith.addf %547, %548 : vector<2x32xf32>
    %550 = arith.negf %549 : vector<2x32xf32>
    %551 = math.exp %550 : vector<2x32xf32>
    %cst_179 = arith.constant 1.000000e+00 : f32
    %552 = vector.broadcast %cst_179 : f32 to vector<2x32xf32>
    %553 = arith.addf %552, %551 : vector<2x32xf32>
    %554 = arith.divf %552, %553 : vector<2x32xf32>
    %555 = vector.extract_strided_slice %546 {offsets = [0, 32], sizes = [2, 32], strides = [1, 1]} : vector<2x96xf32> to vector<2x32xf32>
    %556 = vector.extract_strided_slice %543 {offsets = [0, 32], sizes = [2, 32], strides = [1, 1]} : vector<2x96xf32> to vector<2x32xf32>
    %557 = arith.addf %555, %556 : vector<2x32xf32>
    %558 = arith.negf %557 : vector<2x32xf32>
    %559 = math.exp %558 : vector<2x32xf32>
    %cst_180 = arith.constant 1.000000e+00 : f32
    %560 = vector.broadcast %cst_180 : f32 to vector<2x32xf32>
    %561 = arith.addf %560, %559 : vector<2x32xf32>
    %562 = arith.divf %560, %561 : vector<2x32xf32>
    %563 = vector.extract_strided_slice %546 {offsets = [0, 64], sizes = [2, 32], strides = [1, 1]} : vector<2x96xf32> to vector<2x32xf32>
    %564 = vector.extract_strided_slice %543 {offsets = [0, 64], sizes = [2, 32], strides = [1, 1]} : vector<2x96xf32> to vector<2x32xf32>
    %565 = arith.mulf %554, %564 : vector<2x32xf32>
    %566 = arith.addf %563, %565 : vector<2x32xf32>
    %567 = math.tanh %566 : vector<2x32xf32>
    %568 = arith.subf %536, %567 : vector<2x32xf32>
    %569 = arith.mulf %562, %568 : vector<2x32xf32>
    %570 = arith.addf %567, %569 : vector<2x32xf32>
    %571 = arith.index_cast %c7_i32_173 : i32 to index
    %c0_181 = arith.constant 0 : index
    %c0_182 = arith.constant 0 : index
    %572 = vector.load %arg24[%571, %c0_181, %c0_182] : memref<8x2x32xf32, #tpu.memory_space<vmem>>, vector<1x2x32xf32>
    %573 = vector.shape_cast %572 : vector<1x2x32xf32> to vector<2x32xf32>
    %574 = vector.shape_cast %570 : vector<2x32xf32> to vector<1x2x32xf32>
    tpu.vector_store %arg24[%571, %c0_181, %c0_182], %574 {strides = array<i32>} : memref<8x2x32xf32, #tpu.memory_space<vmem>>, vector<1x2x32xf32>,
    %c8_i32_183 = arith.constant 8 : i32
    %c0_184 = arith.constant 0 : index
    %c0_185 = arith.constant 0 : index
    %c0_186 = arith.constant 0 : index
    %575 = vector.load %arg24[%c0_184, %c0_185, %c0_186] : memref<8x2x32xf32, #tpu.memory_space<vmem>>, vector<8x2x32xf32>
    %576 = vector.shape_cast %575 : vector<8x2x32xf32> to vector<16x32xf32>
    %c0_187 = arith.constant 0 : index
    %c0_188 = arith.constant 0 : index
    %577 = vector.load %arg12[%c0_187, %c0_188] : memref<32x96xf32, #tpu.memory_space<vmem>>, vector<32x96xf32>
    %cst_189 = arith.constant dense<0.000000e+00> : vector<16x96xf32>
    %578 = tpu.matmul %576, %577, %cst_189 {dimension_numbers = #tpu.dot_dimension_numbers<[1], [0], [0], [1], [0, 0, 1, 1], [], []>} : vector<16x32xf32>, vector<32x96xf32>, vector<16x96xf32> -> vector<16x96xf32>
    %c0_190 = arith.constant 0 : index
    %c0_191 = arith.constant 0 : index
    %579 = vector.load %arg14[%c0_190, %c0_191] : memref<1x96xf32, #tpu.memory_space<vmem>>, vector<1x96xf32>
    %580 = vector.broadcast %579 : vector<1x96xf32> to vector<16x96xf32>
    %581 = arith.addf %578, %580 : vector<16x96xf32>
    %582 = vector.shape_cast %581 : vector<16x96xf32> to vector<8x2x96xf32>
    %c0_192 = arith.constant 0 : index
    %c0_193 = arith.constant 0 : index
    %c0_194 = arith.constant 0 : index
    %583 = vector.load %arg23[%c0_192, %c0_193, %c0_194] : memref<8x2x96xf32, #tpu.memory_space<vmem>>, vector<8x2x96xf32>
    tpu.vector_store %arg23[%c0_192, %c0_193, %c0_194], %582 {strides = array<i32>} : memref<8x2x96xf32, #tpu.memory_space<vmem>>, vector<8x2x96xf32>,
    %c0_195 = arith.constant 0 : index
    %c0_196 = arith.constant 0 : index
    %584 = vector.load %arg15[%c0_195, %c0_196] : memref<1x96xf32, #tpu.memory_space<vmem>>, vector<1x96xf32>
    %585 = vector.shape_cast %584 : vector<1x96xf32> to vector<1x96xf32>
    %586 = vector.broadcast %585 : vector<1x96xf32> to vector<2x96xf32>
    %cst_197 = arith.constant 0.000000e+00 : f32
    %587 = vector.broadcast %cst_197 : f32 to vector<2x32xf32>
    %c0_i32_198 = arith.constant 0 : i32
    %c0_199 = arith.constant 0 : index
    %c0_200 = arith.constant 0 : index
    %588 = vector.load %arg13[%c0_199, %c0_200] : memref<32x96xf32, #tpu.memory_space<vmem>>, vector<32x96xf32>
    %cst_201 = arith.constant dense<0.000000e+00> : vector<2x96xf32>
    %589 = tpu.matmul %587, %588, %cst_201 {dimension_numbers = #tpu.dot_dimension_numbers<[1], [0], [0], [1], [0, 0, 1, 1], [], []>} : vector<2x32xf32>, vector<32x96xf32>, vector<2x96xf32> -> vector<2x96xf32>
    %590 = arith.addf %589, %586 : vector<2x96xf32>
    %591 = arith.index_cast %c0_i32_198 : i32 to index
    %c0_202 = arith.constant 0 : index
    %c0_203 = arith.constant 0 : index
    %592 = vector.load %arg23[%591, %c0_202, %c0_203] : memref<8x2x96xf32, #tpu.memory_space<vmem>>, vector<1x2x96xf32>
    %593 = vector.shape_cast %592 : vector<1x2x96xf32> to vector<2x96xf32>
    %594 = vector.extract_strided_slice %593 {offsets = [0, 0], sizes = [2, 32], strides = [1, 1]} : vector<2x96xf32> to vector<2x32xf32>
    %595 = vector.extract_strided_slice %590 {offsets = [0, 0], sizes = [2, 32], strides = [1, 1]} : vector<2x96xf32> to vector<2x32xf32>
    %596 = arith.addf %594, %595 : vector<2x32xf32>
    %597 = arith.negf %596 : vector<2x32xf32>
    %598 = math.exp %597 : vector<2x32xf32>
    %cst_204 = arith.constant 1.000000e+00 : f32
    %599 = vector.broadcast %cst_204 : f32 to vector<2x32xf32>
    %600 = arith.addf %599, %598 : vector<2x32xf32>
    %601 = arith.divf %599, %600 : vector<2x32xf32>
    %602 = vector.extract_strided_slice %593 {offsets = [0, 32], sizes = [2, 32], strides = [1, 1]} : vector<2x96xf32> to vector<2x32xf32>
    %603 = vector.extract_strided_slice %590 {offsets = [0, 32], sizes = [2, 32], strides = [1, 1]} : vector<2x96xf32> to vector<2x32xf32>
    %604 = arith.addf %602, %603 : vector<2x32xf32>
    %605 = arith.negf %604 : vector<2x32xf32>
    %606 = math.exp %605 : vector<2x32xf32>
    %cst_205 = arith.constant 1.000000e+00 : f32
    %607 = vector.broadcast %cst_205 : f32 to vector<2x32xf32>
    %608 = arith.addf %607, %606 : vector<2x32xf32>
    %609 = arith.divf %607, %608 : vector<2x32xf32>
    %610 = vector.extract_strided_slice %593 {offsets = [0, 64], sizes = [2, 32], strides = [1, 1]} : vector<2x96xf32> to vector<2x32xf32>
    %611 = vector.extract_strided_slice %590 {offsets = [0, 64], sizes = [2, 32], strides = [1, 1]} : vector<2x96xf32> to vector<2x32xf32>
    %612 = arith.mulf %601, %611 : vector<2x32xf32>
    %613 = arith.addf %610, %612 : vector<2x32xf32>
    %614 = math.tanh %613 : vector<2x32xf32>
    %615 = arith.subf %587, %614 : vector<2x32xf32>
    %616 = arith.mulf %609, %615 : vector<2x32xf32>
    %617 = arith.addf %614, %616 : vector<2x32xf32>
    %618 = arith.index_cast %c0_i32_198 : i32 to index
    %c0_206 = arith.constant 0 : index
    %c0_207 = arith.constant 0 : index
    %619 = vector.load %arg24[%618, %c0_206, %c0_207] : memref<8x2x32xf32, #tpu.memory_space<vmem>>, vector<1x2x32xf32>
    %620 = vector.shape_cast %619 : vector<1x2x32xf32> to vector<2x32xf32>
    %621 = vector.shape_cast %617 : vector<2x32xf32> to vector<1x2x32xf32>
    tpu.vector_store %arg24[%618, %c0_206, %c0_207], %621 {strides = array<i32>} : memref<8x2x32xf32, #tpu.memory_space<vmem>>, vector<1x2x32xf32>,
    %c1_i32_208 = arith.constant 1 : i32
    %c0_209 = arith.constant 0 : index
    %c0_210 = arith.constant 0 : index
    %622 = vector.load %arg13[%c0_209, %c0_210] : memref<32x96xf32, #tpu.memory_space<vmem>>, vector<32x96xf32>
    %cst_211 = arith.constant dense<0.000000e+00> : vector<2x96xf32>
    %623 = tpu.matmul %617, %622, %cst_211 {dimension_numbers = #tpu.dot_dimension_numbers<[1], [0], [0], [1], [0, 0, 1, 1], [], []>} : vector<2x32xf32>, vector<32x96xf32>, vector<2x96xf32> -> vector<2x96xf32>
    %624 = arith.addf %623, %586 : vector<2x96xf32>
    %625 = arith.index_cast %c1_i32_208 : i32 to index
    %c0_212 = arith.constant 0 : index
    %c0_213 = arith.constant 0 : index
    %626 = vector.load %arg23[%625, %c0_212, %c0_213] : memref<8x2x96xf32, #tpu.memory_space<vmem>>, vector<1x2x96xf32>
    %627 = vector.shape_cast %626 : vector<1x2x96xf32> to vector<2x96xf32>
    %628 = vector.extract_strided_slice %627 {offsets = [0, 0], sizes = [2, 32], strides = [1, 1]} : vector<2x96xf32> to vector<2x32xf32>
    %629 = vector.extract_strided_slice %624 {offsets = [0, 0], sizes = [2, 32], strides = [1, 1]} : vector<2x96xf32> to vector<2x32xf32>
    %630 = arith.addf %628, %629 : vector<2x32xf32>
    %631 = arith.negf %630 : vector<2x32xf32>
    %632 = math.exp %631 : vector<2x32xf32>
    %cst_214 = arith.constant 1.000000e+00 : f32
    %633 = vector.broadcast %cst_214 : f32 to vector<2x32xf32>
    %634 = arith.addf %633, %632 : vector<2x32xf32>
    %635 = arith.divf %633, %634 : vector<2x32xf32>
    %636 = vector.extract_strided_slice %627 {offsets = [0, 32], sizes = [2, 32], strides = [1, 1]} : vector<2x96xf32> to vector<2x32xf32>
    %637 = vector.extract_strided_slice %624 {offsets = [0, 32], sizes = [2, 32], strides = [1, 1]} : vector<2x96xf32> to vector<2x32xf32>
    %638 = arith.addf %636, %637 : vector<2x32xf32>
    %639 = arith.negf %638 : vector<2x32xf32>
    %640 = math.exp %639 : vector<2x32xf32>
    %cst_215 = arith.constant 1.000000e+00 : f32
    %641 = vector.broadcast %cst_215 : f32 to vector<2x32xf32>
    %642 = arith.addf %641, %640 : vector<2x32xf32>
    %643 = arith.divf %641, %642 : vector<2x32xf32>
    %644 = vector.extract_strided_slice %627 {offsets = [0, 64], sizes = [2, 32], strides = [1, 1]} : vector<2x96xf32> to vector<2x32xf32>
    %645 = vector.extract_strided_slice %624 {offsets = [0, 64], sizes = [2, 32], strides = [1, 1]} : vector<2x96xf32> to vector<2x32xf32>
    %646 = arith.mulf %635, %645 : vector<2x32xf32>
    %647 = arith.addf %644, %646 : vector<2x32xf32>
    %648 = math.tanh %647 : vector<2x32xf32>
    %649 = arith.subf %617, %648 : vector<2x32xf32>
    %650 = arith.mulf %643, %649 : vector<2x32xf32>
    %651 = arith.addf %648, %650 : vector<2x32xf32>
    %652 = arith.index_cast %c1_i32_208 : i32 to index
    %c0_216 = arith.constant 0 : index
    %c0_217 = arith.constant 0 : index
    %653 = vector.load %arg24[%652, %c0_216, %c0_217] : memref<8x2x32xf32, #tpu.memory_space<vmem>>, vector<1x2x32xf32>
    %654 = vector.shape_cast %653 : vector<1x2x32xf32> to vector<2x32xf32>
    %655 = vector.shape_cast %651 : vector<2x32xf32> to vector<1x2x32xf32>
    tpu.vector_store %arg24[%652, %c0_216, %c0_217], %655 {strides = array<i32>} : memref<8x2x32xf32, #tpu.memory_space<vmem>>, vector<1x2x32xf32>,
    %c2_i32_218 = arith.constant 2 : i32
    %c0_219 = arith.constant 0 : index
    %c0_220 = arith.constant 0 : index
    %656 = vector.load %arg13[%c0_219, %c0_220] : memref<32x96xf32, #tpu.memory_space<vmem>>, vector<32x96xf32>
    %cst_221 = arith.constant dense<0.000000e+00> : vector<2x96xf32>
    %657 = tpu.matmul %651, %656, %cst_221 {dimension_numbers = #tpu.dot_dimension_numbers<[1], [0], [0], [1], [0, 0, 1, 1], [], []>} : vector<2x32xf32>, vector<32x96xf32>, vector<2x96xf32> -> vector<2x96xf32>
    %658 = arith.addf %657, %586 : vector<2x96xf32>
    %659 = arith.index_cast %c2_i32_218 : i32 to index
    %c0_222 = arith.constant 0 : index
    %c0_223 = arith.constant 0 : index
    %660 = vector.load %arg23[%659, %c0_222, %c0_223] : memref<8x2x96xf32, #tpu.memory_space<vmem>>, vector<1x2x96xf32>
    %661 = vector.shape_cast %660 : vector<1x2x96xf32> to vector<2x96xf32>
    %662 = vector.extract_strided_slice %661 {offsets = [0, 0], sizes = [2, 32], strides = [1, 1]} : vector<2x96xf32> to vector<2x32xf32>
    %663 = vector.extract_strided_slice %658 {offsets = [0, 0], sizes = [2, 32], strides = [1, 1]} : vector<2x96xf32> to vector<2x32xf32>
    %664 = arith.addf %662, %663 : vector<2x32xf32>
    %665 = arith.negf %664 : vector<2x32xf32>
    %666 = math.exp %665 : vector<2x32xf32>
    %cst_224 = arith.constant 1.000000e+00 : f32
    %667 = vector.broadcast %cst_224 : f32 to vector<2x32xf32>
    %668 = arith.addf %667, %666 : vector<2x32xf32>
    %669 = arith.divf %667, %668 : vector<2x32xf32>
    %670 = vector.extract_strided_slice %661 {offsets = [0, 32], sizes = [2, 32], strides = [1, 1]} : vector<2x96xf32> to vector<2x32xf32>
    %671 = vector.extract_strided_slice %658 {offsets = [0, 32], sizes = [2, 32], strides = [1, 1]} : vector<2x96xf32> to vector<2x32xf32>
    %672 = arith.addf %670, %671 : vector<2x32xf32>
    %673 = arith.negf %672 : vector<2x32xf32>
    %674 = math.exp %673 : vector<2x32xf32>
    %cst_225 = arith.constant 1.000000e+00 : f32
    %675 = vector.broadcast %cst_225 : f32 to vector<2x32xf32>
    %676 = arith.addf %675, %674 : vector<2x32xf32>
    %677 = arith.divf %675, %676 : vector<2x32xf32>
    %678 = vector.extract_strided_slice %661 {offsets = [0, 64], sizes = [2, 32], strides = [1, 1]} : vector<2x96xf32> to vector<2x32xf32>
    %679 = vector.extract_strided_slice %658 {offsets = [0, 64], sizes = [2, 32], strides = [1, 1]} : vector<2x96xf32> to vector<2x32xf32>
    %680 = arith.mulf %669, %679 : vector<2x32xf32>
    %681 = arith.addf %678, %680 : vector<2x32xf32>
    %682 = math.tanh %681 : vector<2x32xf32>
    %683 = arith.subf %651, %682 : vector<2x32xf32>
    %684 = arith.mulf %677, %683 : vector<2x32xf32>
    %685 = arith.addf %682, %684 : vector<2x32xf32>
    %686 = arith.index_cast %c2_i32_218 : i32 to index
    %c0_226 = arith.constant 0 : index
    %c0_227 = arith.constant 0 : index
    %687 = vector.load %arg24[%686, %c0_226, %c0_227] : memref<8x2x32xf32, #tpu.memory_space<vmem>>, vector<1x2x32xf32>
    %688 = vector.shape_cast %687 : vector<1x2x32xf32> to vector<2x32xf32>
    %689 = vector.shape_cast %685 : vector<2x32xf32> to vector<1x2x32xf32>
    tpu.vector_store %arg24[%686, %c0_226, %c0_227], %689 {strides = array<i32>} : memref<8x2x32xf32, #tpu.memory_space<vmem>>, vector<1x2x32xf32>,
    %c3_i32_228 = arith.constant 3 : i32
    %c0_229 = arith.constant 0 : index
    %c0_230 = arith.constant 0 : index
    %690 = vector.load %arg13[%c0_229, %c0_230] : memref<32x96xf32, #tpu.memory_space<vmem>>, vector<32x96xf32>
    %cst_231 = arith.constant dense<0.000000e+00> : vector<2x96xf32>
    %691 = tpu.matmul %685, %690, %cst_231 {dimension_numbers = #tpu.dot_dimension_numbers<[1], [0], [0], [1], [0, 0, 1, 1], [], []>} : vector<2x32xf32>, vector<32x96xf32>, vector<2x96xf32> -> vector<2x96xf32>
    %692 = arith.addf %691, %586 : vector<2x96xf32>
    %693 = arith.index_cast %c3_i32_228 : i32 to index
    %c0_232 = arith.constant 0 : index
    %c0_233 = arith.constant 0 : index
    %694 = vector.load %arg23[%693, %c0_232, %c0_233] : memref<8x2x96xf32, #tpu.memory_space<vmem>>, vector<1x2x96xf32>
    %695 = vector.shape_cast %694 : vector<1x2x96xf32> to vector<2x96xf32>
    %696 = vector.extract_strided_slice %695 {offsets = [0, 0], sizes = [2, 32], strides = [1, 1]} : vector<2x96xf32> to vector<2x32xf32>
    %697 = vector.extract_strided_slice %692 {offsets = [0, 0], sizes = [2, 32], strides = [1, 1]} : vector<2x96xf32> to vector<2x32xf32>
    %698 = arith.addf %696, %697 : vector<2x32xf32>
    %699 = arith.negf %698 : vector<2x32xf32>
    %700 = math.exp %699 : vector<2x32xf32>
    %cst_234 = arith.constant 1.000000e+00 : f32
    %701 = vector.broadcast %cst_234 : f32 to vector<2x32xf32>
    %702 = arith.addf %701, %700 : vector<2x32xf32>
    %703 = arith.divf %701, %702 : vector<2x32xf32>
    %704 = vector.extract_strided_slice %695 {offsets = [0, 32], sizes = [2, 32], strides = [1, 1]} : vector<2x96xf32> to vector<2x32xf32>
    %705 = vector.extract_strided_slice %692 {offsets = [0, 32], sizes = [2, 32], strides = [1, 1]} : vector<2x96xf32> to vector<2x32xf32>
    %706 = arith.addf %704, %705 : vector<2x32xf32>
    %707 = arith.negf %706 : vector<2x32xf32>
    %708 = math.exp %707 : vector<2x32xf32>
    %cst_235 = arith.constant 1.000000e+00 : f32
    %709 = vector.broadcast %cst_235 : f32 to vector<2x32xf32>
    %710 = arith.addf %709, %708 : vector<2x32xf32>
    %711 = arith.divf %709, %710 : vector<2x32xf32>
    %712 = vector.extract_strided_slice %695 {offsets = [0, 64], sizes = [2, 32], strides = [1, 1]} : vector<2x96xf32> to vector<2x32xf32>
    %713 = vector.extract_strided_slice %692 {offsets = [0, 64], sizes = [2, 32], strides = [1, 1]} : vector<2x96xf32> to vector<2x32xf32>
    %714 = arith.mulf %703, %713 : vector<2x32xf32>
    %715 = arith.addf %712, %714 : vector<2x32xf32>
    %716 = math.tanh %715 : vector<2x32xf32>
    %717 = arith.subf %685, %716 : vector<2x32xf32>
    %718 = arith.mulf %711, %717 : vector<2x32xf32>
    %719 = arith.addf %716, %718 : vector<2x32xf32>
    %720 = arith.index_cast %c3_i32_228 : i32 to index
    %c0_236 = arith.constant 0 : index
    %c0_237 = arith.constant 0 : index
    %721 = vector.load %arg24[%720, %c0_236, %c0_237] : memref<8x2x32xf32, #tpu.memory_space<vmem>>, vector<1x2x32xf32>
    %722 = vector.shape_cast %721 : vector<1x2x32xf32> to vector<2x32xf32>
    %723 = vector.shape_cast %719 : vector<2x32xf32> to vector<1x2x32xf32>
    tpu.vector_store %arg24[%720, %c0_236, %c0_237], %723 {strides = array<i32>} : memref<8x2x32xf32, #tpu.memory_space<vmem>>, vector<1x2x32xf32>,
    %c4_i32_238 = arith.constant 4 : i32
    %c0_239 = arith.constant 0 : index
    %c0_240 = arith.constant 0 : index
    %724 = vector.load %arg13[%c0_239, %c0_240] : memref<32x96xf32, #tpu.memory_space<vmem>>, vector<32x96xf32>
    %cst_241 = arith.constant dense<0.000000e+00> : vector<2x96xf32>
    %725 = tpu.matmul %719, %724, %cst_241 {dimension_numbers = #tpu.dot_dimension_numbers<[1], [0], [0], [1], [0, 0, 1, 1], [], []>} : vector<2x32xf32>, vector<32x96xf32>, vector<2x96xf32> -> vector<2x96xf32>
    %726 = arith.addf %725, %586 : vector<2x96xf32>
    %727 = arith.index_cast %c4_i32_238 : i32 to index
    %c0_242 = arith.constant 0 : index
    %c0_243 = arith.constant 0 : index
    %728 = vector.load %arg23[%727, %c0_242, %c0_243] : memref<8x2x96xf32, #tpu.memory_space<vmem>>, vector<1x2x96xf32>
    %729 = vector.shape_cast %728 : vector<1x2x96xf32> to vector<2x96xf32>
    %730 = vector.extract_strided_slice %729 {offsets = [0, 0], sizes = [2, 32], strides = [1, 1]} : vector<2x96xf32> to vector<2x32xf32>
    %731 = vector.extract_strided_slice %726 {offsets = [0, 0], sizes = [2, 32], strides = [1, 1]} : vector<2x96xf32> to vector<2x32xf32>
    %732 = arith.addf %730, %731 : vector<2x32xf32>
    %733 = arith.negf %732 : vector<2x32xf32>
    %734 = math.exp %733 : vector<2x32xf32>
    %cst_244 = arith.constant 1.000000e+00 : f32
    %735 = vector.broadcast %cst_244 : f32 to vector<2x32xf32>
    %736 = arith.addf %735, %734 : vector<2x32xf32>
    %737 = arith.divf %735, %736 : vector<2x32xf32>
    %738 = vector.extract_strided_slice %729 {offsets = [0, 32], sizes = [2, 32], strides = [1, 1]} : vector<2x96xf32> to vector<2x32xf32>
    %739 = vector.extract_strided_slice %726 {offsets = [0, 32], sizes = [2, 32], strides = [1, 1]} : vector<2x96xf32> to vector<2x32xf32>
    %740 = arith.addf %738, %739 : vector<2x32xf32>
    %741 = arith.negf %740 : vector<2x32xf32>
    %742 = math.exp %741 : vector<2x32xf32>
    %cst_245 = arith.constant 1.000000e+00 : f32
    %743 = vector.broadcast %cst_245 : f32 to vector<2x32xf32>
    %744 = arith.addf %743, %742 : vector<2x32xf32>
    %745 = arith.divf %743, %744 : vector<2x32xf32>
    %746 = vector.extract_strided_slice %729 {offsets = [0, 64], sizes = [2, 32], strides = [1, 1]} : vector<2x96xf32> to vector<2x32xf32>
    %747 = vector.extract_strided_slice %726 {offsets = [0, 64], sizes = [2, 32], strides = [1, 1]} : vector<2x96xf32> to vector<2x32xf32>
    %748 = arith.mulf %737, %747 : vector<2x32xf32>
    %749 = arith.addf %746, %748 : vector<2x32xf32>
    %750 = math.tanh %749 : vector<2x32xf32>
    %751 = arith.subf %719, %750 : vector<2x32xf32>
    %752 = arith.mulf %745, %751 : vector<2x32xf32>
    %753 = arith.addf %750, %752 : vector<2x32xf32>
    %754 = arith.index_cast %c4_i32_238 : i32 to index
    %c0_246 = arith.constant 0 : index
    %c0_247 = arith.constant 0 : index
    %755 = vector.load %arg24[%754, %c0_246, %c0_247] : memref<8x2x32xf32, #tpu.memory_space<vmem>>, vector<1x2x32xf32>
    %756 = vector.shape_cast %755 : vector<1x2x32xf32> to vector<2x32xf32>
    %757 = vector.shape_cast %753 : vector<2x32xf32> to vector<1x2x32xf32>
    tpu.vector_store %arg24[%754, %c0_246, %c0_247], %757 {strides = array<i32>} : memref<8x2x32xf32, #tpu.memory_space<vmem>>, vector<1x2x32xf32>,
    %c5_i32_248 = arith.constant 5 : i32
    %c0_249 = arith.constant 0 : index
    %c0_250 = arith.constant 0 : index
    %758 = vector.load %arg13[%c0_249, %c0_250] : memref<32x96xf32, #tpu.memory_space<vmem>>, vector<32x96xf32>
    %cst_251 = arith.constant dense<0.000000e+00> : vector<2x96xf32>
    %759 = tpu.matmul %753, %758, %cst_251 {dimension_numbers = #tpu.dot_dimension_numbers<[1], [0], [0], [1], [0, 0, 1, 1], [], []>} : vector<2x32xf32>, vector<32x96xf32>, vector<2x96xf32> -> vector<2x96xf32>
    %760 = arith.addf %759, %586 : vector<2x96xf32>
    %761 = arith.index_cast %c5_i32_248 : i32 to index
    %c0_252 = arith.constant 0 : index
    %c0_253 = arith.constant 0 : index
    %762 = vector.load %arg23[%761, %c0_252, %c0_253] : memref<8x2x96xf32, #tpu.memory_space<vmem>>, vector<1x2x96xf32>
    %763 = vector.shape_cast %762 : vector<1x2x96xf32> to vector<2x96xf32>
    %764 = vector.extract_strided_slice %763 {offsets = [0, 0], sizes = [2, 32], strides = [1, 1]} : vector<2x96xf32> to vector<2x32xf32>
    %765 = vector.extract_strided_slice %760 {offsets = [0, 0], sizes = [2, 32], strides = [1, 1]} : vector<2x96xf32> to vector<2x32xf32>
    %766 = arith.addf %764, %765 : vector<2x32xf32>
    %767 = arith.negf %766 : vector<2x32xf32>
    %768 = math.exp %767 : vector<2x32xf32>
    %cst_254 = arith.constant 1.000000e+00 : f32
    %769 = vector.broadcast %cst_254 : f32 to vector<2x32xf32>
    %770 = arith.addf %769, %768 : vector<2x32xf32>
    %771 = arith.divf %769, %770 : vector<2x32xf32>
    %772 = vector.extract_strided_slice %763 {offsets = [0, 32], sizes = [2, 32], strides = [1, 1]} : vector<2x96xf32> to vector<2x32xf32>
    %773 = vector.extract_strided_slice %760 {offsets = [0, 32], sizes = [2, 32], strides = [1, 1]} : vector<2x96xf32> to vector<2x32xf32>
    %774 = arith.addf %772, %773 : vector<2x32xf32>
    %775 = arith.negf %774 : vector<2x32xf32>
    %776 = math.exp %775 : vector<2x32xf32>
    %cst_255 = arith.constant 1.000000e+00 : f32
    %777 = vector.broadcast %cst_255 : f32 to vector<2x32xf32>
    %778 = arith.addf %777, %776 : vector<2x32xf32>
    %779 = arith.divf %777, %778 : vector<2x32xf32>
    %780 = vector.extract_strided_slice %763 {offsets = [0, 64], sizes = [2, 32], strides = [1, 1]} : vector<2x96xf32> to vector<2x32xf32>
    %781 = vector.extract_strided_slice %760 {offsets = [0, 64], sizes = [2, 32], strides = [1, 1]} : vector<2x96xf32> to vector<2x32xf32>
    %782 = arith.mulf %771, %781 : vector<2x32xf32>
    %783 = arith.addf %780, %782 : vector<2x32xf32>
    %784 = math.tanh %783 : vector<2x32xf32>
    %785 = arith.subf %753, %784 : vector<2x32xf32>
    %786 = arith.mulf %779, %785 : vector<2x32xf32>
    %787 = arith.addf %784, %786 : vector<2x32xf32>
    %788 = arith.index_cast %c5_i32_248 : i32 to index
    %c0_256 = arith.constant 0 : index
    %c0_257 = arith.constant 0 : index
    %789 = vector.load %arg24[%788, %c0_256, %c0_257] : memref<8x2x32xf32, #tpu.memory_space<vmem>>, vector<1x2x32xf32>
    %790 = vector.shape_cast %789 : vector<1x2x32xf32> to vector<2x32xf32>
    %791 = vector.shape_cast %787 : vector<2x32xf32> to vector<1x2x32xf32>
    tpu.vector_store %arg24[%788, %c0_256, %c0_257], %791 {strides = array<i32>} : memref<8x2x32xf32, #tpu.memory_space<vmem>>, vector<1x2x32xf32>,
    %c6_i32_258 = arith.constant 6 : i32
    %c0_259 = arith.constant 0 : index
    %c0_260 = arith.constant 0 : index
    %792 = vector.load %arg13[%c0_259, %c0_260] : memref<32x96xf32, #tpu.memory_space<vmem>>, vector<32x96xf32>
    %cst_261 = arith.constant dense<0.000000e+00> : vector<2x96xf32>
    %793 = tpu.matmul %787, %792, %cst_261 {dimension_numbers = #tpu.dot_dimension_numbers<[1], [0], [0], [1], [0, 0, 1, 1], [], []>} : vector<2x32xf32>, vector<32x96xf32>, vector<2x96xf32> -> vector<2x96xf32>
    %794 = arith.addf %793, %586 : vector<2x96xf32>
    %795 = arith.index_cast %c6_i32_258 : i32 to index
    %c0_262 = arith.constant 0 : index
    %c0_263 = arith.constant 0 : index
    %796 = vector.load %arg23[%795, %c0_262, %c0_263] : memref<8x2x96xf32, #tpu.memory_space<vmem>>, vector<1x2x96xf32>
    %797 = vector.shape_cast %796 : vector<1x2x96xf32> to vector<2x96xf32>
    %798 = vector.extract_strided_slice %797 {offsets = [0, 0], sizes = [2, 32], strides = [1, 1]} : vector<2x96xf32> to vector<2x32xf32>
    %799 = vector.extract_strided_slice %794 {offsets = [0, 0], sizes = [2, 32], strides = [1, 1]} : vector<2x96xf32> to vector<2x32xf32>
    %800 = arith.addf %798, %799 : vector<2x32xf32>
    %801 = arith.negf %800 : vector<2x32xf32>
    %802 = math.exp %801 : vector<2x32xf32>
    %cst_264 = arith.constant 1.000000e+00 : f32
    %803 = vector.broadcast %cst_264 : f32 to vector<2x32xf32>
    %804 = arith.addf %803, %802 : vector<2x32xf32>
    %805 = arith.divf %803, %804 : vector<2x32xf32>
    %806 = vector.extract_strided_slice %797 {offsets = [0, 32], sizes = [2, 32], strides = [1, 1]} : vector<2x96xf32> to vector<2x32xf32>
    %807 = vector.extract_strided_slice %794 {offsets = [0, 32], sizes = [2, 32], strides = [1, 1]} : vector<2x96xf32> to vector<2x32xf32>
    %808 = arith.addf %806, %807 : vector<2x32xf32>
    %809 = arith.negf %808 : vector<2x32xf32>
    %810 = math.exp %809 : vector<2x32xf32>
    %cst_265 = arith.constant 1.000000e+00 : f32
    %811 = vector.broadcast %cst_265 : f32 to vector<2x32xf32>
    %812 = arith.addf %811, %810 : vector<2x32xf32>
    %813 = arith.divf %811, %812 : vector<2x32xf32>
    %814 = vector.extract_strided_slice %797 {offsets = [0, 64], sizes = [2, 32], strides = [1, 1]} : vector<2x96xf32> to vector<2x32xf32>
    %815 = vector.extract_strided_slice %794 {offsets = [0, 64], sizes = [2, 32], strides = [1, 1]} : vector<2x96xf32> to vector<2x32xf32>
    %816 = arith.mulf %805, %815 : vector<2x32xf32>
    %817 = arith.addf %814, %816 : vector<2x32xf32>
    %818 = math.tanh %817 : vector<2x32xf32>
    %819 = arith.subf %787, %818 : vector<2x32xf32>
    %820 = arith.mulf %813, %819 : vector<2x32xf32>
    %821 = arith.addf %818, %820 : vector<2x32xf32>
    %822 = arith.index_cast %c6_i32_258 : i32 to index
    %c0_266 = arith.constant 0 : index
    %c0_267 = arith.constant 0 : index
    %823 = vector.load %arg24[%822, %c0_266, %c0_267] : memref<8x2x32xf32, #tpu.memory_space<vmem>>, vector<1x2x32xf32>
    %824 = vector.shape_cast %823 : vector<1x2x32xf32> to vector<2x32xf32>
    %825 = vector.shape_cast %821 : vector<2x32xf32> to vector<1x2x32xf32>
    tpu.vector_store %arg24[%822, %c0_266, %c0_267], %825 {strides = array<i32>} : memref<8x2x32xf32, #tpu.memory_space<vmem>>, vector<1x2x32xf32>,
    %c7_i32_268 = arith.constant 7 : i32
    %c0_269 = arith.constant 0 : index
    %c0_270 = arith.constant 0 : index
    %826 = vector.load %arg13[%c0_269, %c0_270] : memref<32x96xf32, #tpu.memory_space<vmem>>, vector<32x96xf32>
    %cst_271 = arith.constant dense<0.000000e+00> : vector<2x96xf32>
    %827 = tpu.matmul %821, %826, %cst_271 {dimension_numbers = #tpu.dot_dimension_numbers<[1], [0], [0], [1], [0, 0, 1, 1], [], []>} : vector<2x32xf32>, vector<32x96xf32>, vector<2x96xf32> -> vector<2x96xf32>
    %828 = arith.addf %827, %586 : vector<2x96xf32>
    %829 = arith.index_cast %c7_i32_268 : i32 to index
    %c0_272 = arith.constant 0 : index
    %c0_273 = arith.constant 0 : index
    %830 = vector.load %arg23[%829, %c0_272, %c0_273] : memref<8x2x96xf32, #tpu.memory_space<vmem>>, vector<1x2x96xf32>
    %831 = vector.shape_cast %830 : vector<1x2x96xf32> to vector<2x96xf32>
    %832 = vector.extract_strided_slice %831 {offsets = [0, 0], sizes = [2, 32], strides = [1, 1]} : vector<2x96xf32> to vector<2x32xf32>
    %833 = vector.extract_strided_slice %828 {offsets = [0, 0], sizes = [2, 32], strides = [1, 1]} : vector<2x96xf32> to vector<2x32xf32>
    %834 = arith.addf %832, %833 : vector<2x32xf32>
    %835 = arith.negf %834 : vector<2x32xf32>
    %836 = math.exp %835 : vector<2x32xf32>
    %cst_274 = arith.constant 1.000000e+00 : f32
    %837 = vector.broadcast %cst_274 : f32 to vector<2x32xf32>
    %838 = arith.addf %837, %836 : vector<2x32xf32>
    %839 = arith.divf %837, %838 : vector<2x32xf32>
    %840 = vector.extract_strided_slice %831 {offsets = [0, 32], sizes = [2, 32], strides = [1, 1]} : vector<2x96xf32> to vector<2x32xf32>
    %841 = vector.extract_strided_slice %828 {offsets = [0, 32], sizes = [2, 32], strides = [1, 1]} : vector<2x96xf32> to vector<2x32xf32>
    %842 = arith.addf %840, %841 : vector<2x32xf32>
    %843 = arith.negf %842 : vector<2x32xf32>
    %844 = math.exp %843 : vector<2x32xf32>
    %cst_275 = arith.constant 1.000000e+00 : f32
    %845 = vector.broadcast %cst_275 : f32 to vector<2x32xf32>
    %846 = arith.addf %845, %844 : vector<2x32xf32>
    %847 = arith.divf %845, %846 : vector<2x32xf32>
    %848 = vector.extract_strided_slice %831 {offsets = [0, 64], sizes = [2, 32], strides = [1, 1]} : vector<2x96xf32> to vector<2x32xf32>
    %849 = vector.extract_strided_slice %828 {offsets = [0, 64], sizes = [2, 32], strides = [1, 1]} : vector<2x96xf32> to vector<2x32xf32>
    %850 = arith.mulf %839, %849 : vector<2x32xf32>
    %851 = arith.addf %848, %850 : vector<2x32xf32>
    %852 = math.tanh %851 : vector<2x32xf32>
    %853 = arith.subf %821, %852 : vector<2x32xf32>
    %854 = arith.mulf %847, %853 : vector<2x32xf32>
    %855 = arith.addf %852, %854 : vector<2x32xf32>
    %856 = arith.index_cast %c7_i32_268 : i32 to index
    %c0_276 = arith.constant 0 : index
    %c0_277 = arith.constant 0 : index
    %857 = vector.load %arg24[%856, %c0_276, %c0_277] : memref<8x2x32xf32, #tpu.memory_space<vmem>>, vector<1x2x32xf32>
    %858 = vector.shape_cast %857 : vector<1x2x32xf32> to vector<2x32xf32>
    %859 = vector.shape_cast %855 : vector<2x32xf32> to vector<1x2x32xf32>
    tpu.vector_store %arg24[%856, %c0_276, %c0_277], %859 {strides = array<i32>} : memref<8x2x32xf32, #tpu.memory_space<vmem>>, vector<1x2x32xf32>,
    %c8_i32_278 = arith.constant 8 : i32
    %c0_279 = arith.constant 0 : index
    %c0_280 = arith.constant 0 : index
    %c0_281 = arith.constant 0 : index
    %860 = vector.load %arg24[%c0_279, %c0_280, %c0_281] : memref<8x2x32xf32, #tpu.memory_space<vmem>>, vector<8x2x32xf32>
    %861 = vector.shape_cast %860 : vector<8x2x32xf32> to vector<16x32xf32>
    %c0_282 = arith.constant 0 : index
    %c0_283 = arith.constant 0 : index
    %862 = vector.load %arg16[%c0_282, %c0_283] : memref<32x32xf32, #tpu.memory_space<vmem>>, vector<32x32xf32>
    %cst_284 = arith.constant dense<0.000000e+00> : vector<16x32xf32>
    %863 = tpu.matmul %861, %862, %cst_284 {dimension_numbers = #tpu.dot_dimension_numbers<[1], [0], [0], [1], [0, 0, 1, 1], [], []>} : vector<16x32xf32>, vector<32x32xf32>, vector<16x32xf32> -> vector<16x32xf32>
    %c0_285 = arith.constant 0 : index
    %c0_286 = arith.constant 0 : index
    %864 = vector.load %arg17[%c0_285, %c0_286] : memref<1x32xf32, #tpu.memory_space<vmem>>, vector<1x32xf32>
    %865 = vector.broadcast %864 : vector<1x32xf32> to vector<16x32xf32>
    %866 = arith.addf %863, %865 : vector<16x32xf32>
    %cst_287 = arith.constant 0.000000e+00 : f32
    %867 = vector.broadcast %cst_287 : f32 to vector<16x32xf32>
    %868 = arith.maximumf %866, %867 : vector<16x32xf32>
    %c0_288 = arith.constant 0 : index
    %c0_289 = arith.constant 0 : index
    %869 = vector.load %arg18[%c0_288, %c0_289] : memref<32x32xf32, #tpu.memory_space<vmem>>, vector<32x32xf32>
    %cst_290 = arith.constant dense<0.000000e+00> : vector<16x32xf32>
    %870 = tpu.matmul %868, %869, %cst_290 {dimension_numbers = #tpu.dot_dimension_numbers<[1], [0], [0], [1], [0, 0, 1, 1], [], []>} : vector<16x32xf32>, vector<32x32xf32>, vector<16x32xf32> -> vector<16x32xf32>
    %c0_291 = arith.constant 0 : index
    %c0_292 = arith.constant 0 : index
    %871 = vector.load %arg19[%c0_291, %c0_292] : memref<1x32xf32, #tpu.memory_space<vmem>>, vector<1x32xf32>
    %872 = vector.broadcast %871 : vector<1x32xf32> to vector<16x32xf32>
    %873 = arith.addf %870, %872 : vector<16x32xf32>
    %cst_293 = arith.constant 0.000000e+00 : f32
    %874 = vector.broadcast %cst_293 : f32 to vector<16x32xf32>
    %875 = arith.maximumf %873, %874 : vector<16x32xf32>
    %c0_294 = arith.constant 0 : index
    %c0_295 = arith.constant 0 : index
    %876 = vector.load %arg20[%c0_294, %c0_295] : memref<32x128xf32, #tpu.memory_space<vmem>>, vector<32x128xf32>
    %cst_296 = arith.constant dense<0.000000e+00> : vector<16x128xf32>
    %877 = tpu.matmul %875, %876, %cst_296 {dimension_numbers = #tpu.dot_dimension_numbers<[1], [0], [0], [1], [0, 0, 1, 1], [], []>} : vector<16x32xf32>, vector<32x128xf32>, vector<16x128xf32> -> vector<16x128xf32>
    %c0_297 = arith.constant 0 : index
    %c0_298 = arith.constant 0 : index
    %878 = vector.load %arg21[%c0_297, %c0_298] : memref<1x128xf32, #tpu.memory_space<vmem>>, vector<1x128xf32>
    %879 = vector.broadcast %878 : vector<1x128xf32> to vector<16x128xf32>
    %880 = arith.addf %877, %879 : vector<16x128xf32>
    %881 = vector.shape_cast %880 : vector<16x128xf32> to vector<8x2x128xf32>
    %c0_299 = arith.constant 0 : index
    %c0_300 = arith.constant 0 : index
    %c0_301 = arith.constant 0 : index
    %882 = vector.load %arg22[%c0_299, %c0_300, %c0_301] : memref<8x2x128xf32, #tpu.memory_space<vmem>>, vector<8x2x128xf32>
    tpu.vector_store %arg22[%c0_299, %c0_300, %c0_301], %881 {strides = array<i32>} : memref<8x2x128xf32, #tpu.memory_space<vmem>>, vector<8x2x128xf32>,
    return
  }
  func.func @transform_0(%arg0: i32) -> (i32, i32, i32) {
    %c0_i32 = arith.constant 0 : i32
    %c0_i32_0 = arith.constant 0 : i32
    %c0_i32_1 = arith.constant 0 : i32
    return %c0_i32, %arg0, %c0_i32_0 : i32, i32, i32
  }
  func.func @transform_1(%arg0: i32) -> (i32, i32) {
    %c0_i32 = arith.constant 0 : i32
    %c0_i32_0 = arith.constant 0 : i32
    %c0_i32_1 = arith.constant 0 : i32
    return %c0_i32, %c0_i32_0 : i32, i32
  }
  func.func @transform_2(%arg0: i32) -> (i32, i32) {
    %c0_i32 = arith.constant 0 : i32
    %c0_i32_0 = arith.constant 0 : i32
    %c0_i32_1 = arith.constant 0 : i32
    return %c0_i32, %c0_i32_0 : i32, i32
  }
  func.func @transform_3(%arg0: i32) -> (i32, i32) {
    %c0_i32 = arith.constant 0 : i32
    %c0_i32_0 = arith.constant 0 : i32
    %c0_i32_1 = arith.constant 0 : i32
    return %c0_i32, %c0_i32_0 : i32, i32
  }
  func.func @transform_4(%arg0: i32) -> (i32, i32) {
    %c0_i32 = arith.constant 0 : i32
    %c0_i32_0 = arith.constant 0 : i32
    %c0_i32_1 = arith.constant 0 : i32
    return %c0_i32, %c0_i32_0 : i32, i32
  }
  func.func @transform_5(%arg0: i32) -> (i32, i32) {
    %c0_i32 = arith.constant 0 : i32
    %c0_i32_0 = arith.constant 0 : i32
    %c0_i32_1 = arith.constant 0 : i32
    return %c0_i32, %c0_i32_0 : i32, i32
  }
  func.func @transform_6(%arg0: i32) -> (i32, i32) {
    %c0_i32 = arith.constant 0 : i32
    %c0_i32_0 = arith.constant 0 : i32
    %c0_i32_1 = arith.constant 0 : i32
    return %c0_i32, %c0_i32_0 : i32, i32
  }
  func.func @transform_7(%arg0: i32) -> (i32, i32) {
    %c0_i32 = arith.constant 0 : i32
    %c0_i32_0 = arith.constant 0 : i32
    %c0_i32_1 = arith.constant 0 : i32
    return %c0_i32, %c0_i32_0 : i32, i32
  }
  func.func @transform_8(%arg0: i32) -> (i32, i32) {
    %c0_i32 = arith.constant 0 : i32
    %c0_i32_0 = arith.constant 0 : i32
    %c0_i32_1 = arith.constant 0 : i32
    return %c0_i32, %c0_i32_0 : i32, i32
  }
  func.func @transform_9(%arg0: i32) -> (i32, i32) {
    %c0_i32 = arith.constant 0 : i32
    %c0_i32_0 = arith.constant 0 : i32
    %c0_i32_1 = arith.constant 0 : i32
    return %c0_i32, %c0_i32_0 : i32, i32
  }
  func.func @transform_10(%arg0: i32) -> (i32, i32) {
    %c0_i32 = arith.constant 0 : i32
    %c0_i32_0 = arith.constant 0 : i32
    %c0_i32_1 = arith.constant 0 : i32
    return %c0_i32, %c0_i32_0 : i32, i32
  }
  func.func @transform_11(%arg0: i32) -> (i32, i32) {
    %c0_i32 = arith.constant 0 : i32
    %c0_i32_0 = arith.constant 0 : i32
    %c0_i32_1 = arith.constant 0 : i32
    return %c0_i32, %c0_i32_0 : i32, i32
  }
  func.func @transform_12(%arg0: i32) -> (i32, i32) {
    %c0_i32 = arith.constant 0 : i32
    %c0_i32_0 = arith.constant 0 : i32
    %c0_i32_1 = arith.constant 0 : i32
    return %c0_i32, %c0_i32_0 : i32, i32
  }
  func.func @transform_13(%arg0: i32) -> (i32, i32) {
    %c0_i32 = arith.constant 0 : i32
    %c0_i32_0 = arith.constant 0 : i32
    %c0_i32_1 = arith.constant 0 : i32
    return %c0_i32, %c0_i32_0 : i32, i32
  }
  func.func @transform_14(%arg0: i32) -> (i32, i32) {
    %c0_i32 = arith.constant 0 : i32
    %c0_i32_0 = arith.constant 0 : i32
    %c0_i32_1 = arith.constant 0 : i32
    return %c0_i32, %c0_i32_0 : i32, i32
  }
  func.func @transform_15(%arg0: i32) -> (i32, i32) {
    %c0_i32 = arith.constant 0 : i32
    %c0_i32_0 = arith.constant 0 : i32
    %c0_i32_1 = arith.constant 0 : i32
    return %c0_i32, %c0_i32_0 : i32, i32
  }
  func.func @transform_16(%arg0: i32) -> (i32, i32) {
    %c0_i32 = arith.constant 0 : i32
    %c0_i32_0 = arith.constant 0 : i32
    %c0_i32_1 = arith.constant 0 : i32
    return %c0_i32, %c0_i32_0 : i32, i32
  }
  func.func @transform_17(%arg0: i32) -> (i32, i32) {
    %c0_i32 = arith.constant 0 : i32
    %c0_i32_0 = arith.constant 0 : i32
    %c0_i32_1 = arith.constant 0 : i32
    return %c0_i32, %c0_i32_0 : i32, i32
  }
  func.func @transform_18(%arg0: i32) -> (i32, i32) {
    %c0_i32 = arith.constant 0 : i32
    %c0_i32_0 = arith.constant 0 : i32
    %c0_i32_1 = arith.constant 0 : i32
    return %c0_i32, %c0_i32_0 : i32, i32
  }
  func.func @transform_19(%arg0: i32) -> (i32, i32) {
    %c0_i32 = arith.constant 0 : i32
    %c0_i32_0 = arith.constant 0 : i32
    %c0_i32_1 = arith.constant 0 : i32
    return %c0_i32, %c0_i32_0 : i32, i32
  }
  func.func @transform_20(%arg0: i32) -> (i32, i32) {
    %c0_i32 = arith.constant 0 : i32
    %c0_i32_0 = arith.constant 0 : i32
    %c0_i32_1 = arith.constant 0 : i32
    return %c0_i32, %c0_i32_0 : i32, i32
  }
  func.func @transform_21(%arg0: i32) -> (i32, i32, i32) {
    %c0_i32 = arith.constant 0 : i32
    %c0_i32_0 = arith.constant 0 : i32
    %c0_i32_1 = arith.constant 0 : i32
    return %c0_i32, %arg0, %c0_i32_0 : i32, i32, i32
  }
}

module attributes {stable_mosaic.version = 11 : i64} {
  func.func @kernel(%arg0: i32, %arg1: memref<8x2x12xf32, #tpu.memory_space<vmem>>, %arg2: memref<12x32xf32, #tpu.memory_space<vmem>>, %arg3: memref<1x32xf32, #tpu.memory_space<vmem>>, %arg4: memref<32x96xf32, #tpu.memory_space<vmem>>, %arg5: memref<32x96xf32, #tpu.memory_space<vmem>>, %arg6: memref<1x96xf32, #tpu.memory_space<vmem>>, %arg7: memref<1x96xf32, #tpu.memory_space<vmem>>, %arg8: memref<32x96xf32, #tpu.memory_space<vmem>>, %arg9: memref<32x96xf32, #tpu.memory_space<vmem>>, %arg10: memref<1x96xf32, #tpu.memory_space<vmem>>, %arg11: memref<1x96xf32, #tpu.memory_space<vmem>>, %arg12: memref<32x96xf32, #tpu.memory_space<vmem>>, %arg13: memref<32x96xf32, #tpu.memory_space<vmem>>, %arg14: memref<1x96xf32, #tpu.memory_space<vmem>>, %arg15: memref<1x96xf32, #tpu.memory_space<vmem>>, %arg16: memref<32x32xf32, #tpu.memory_space<vmem>>, %arg17: memref<1x32xf32, #tpu.memory_space<vmem>>, %arg18: memref<32x32xf32, #tpu.memory_space<vmem>>, %arg19: memref<1x32xf32, #tpu.memory_space<vmem>>, %arg20: memref<32x128xf32, #tpu.memory_space<vmem>>, %arg21: memref<1x128xf32, #tpu.memory_space<vmem>>, %arg22: memref<8x2x128xf32, #tpu.memory_space<vmem>>, %arg23: memref<8x2x96xf32, #tpu.memory_space<vmem>>, %arg24: memref<8x2x32xf32, #tpu.memory_space<vmem>>, %arg25: memref<2x32xf32, #tpu.memory_space<vmem>>) attributes {dimension_semantics = [#tpu.dimension_semantics<parallel>], iteration_bounds = array<i64: 1>, scalar_prefetch = 0 : i64, scratch_operands = 3 : i64, tpu.core_type = #tpu.core_type<tc>, window_params = [{transform_indices = @transform_0, window_bounds = array<i64: 8, 2, 12>}, {pipeline_mode = #tpu.pipeline_mode<synchronous>, transform_indices = @transform_1, window_bounds = array<i64: 12, 32>}, {pipeline_mode = #tpu.pipeline_mode<synchronous>, transform_indices = @transform_2, window_bounds = array<i64: 1, 32>}, {pipeline_mode = #tpu.pipeline_mode<synchronous>, transform_indices = @transform_3, window_bounds = array<i64: 32, 96>}, {pipeline_mode = #tpu.pipeline_mode<synchronous>, transform_indices = @transform_4, window_bounds = array<i64: 32, 96>}, {pipeline_mode = #tpu.pipeline_mode<synchronous>, transform_indices = @transform_5, window_bounds = array<i64: 1, 96>}, {pipeline_mode = #tpu.pipeline_mode<synchronous>, transform_indices = @transform_6, window_bounds = array<i64: 1, 96>}, {pipeline_mode = #tpu.pipeline_mode<synchronous>, transform_indices = @transform_7, window_bounds = array<i64: 32, 96>}, {pipeline_mode = #tpu.pipeline_mode<synchronous>, transform_indices = @transform_8, window_bounds = array<i64: 32, 96>}, {pipeline_mode = #tpu.pipeline_mode<synchronous>, transform_indices = @transform_9, window_bounds = array<i64: 1, 96>}, {pipeline_mode = #tpu.pipeline_mode<synchronous>, transform_indices = @transform_10, window_bounds = array<i64: 1, 96>}, {pipeline_mode = #tpu.pipeline_mode<synchronous>, transform_indices = @transform_11, window_bounds = array<i64: 32, 96>}, {pipeline_mode = #tpu.pipeline_mode<synchronous>, transform_indices = @transform_12, window_bounds = array<i64: 32, 96>}, {pipeline_mode = #tpu.pipeline_mode<synchronous>, transform_indices = @transform_13, window_bounds = array<i64: 1, 96>}, {pipeline_mode = #tpu.pipeline_mode<synchronous>, transform_indices = @transform_14, window_bounds = array<i64: 1, 96>}, {pipeline_mode = #tpu.pipeline_mode<synchronous>, transform_indices = @transform_15, window_bounds = array<i64: 32, 32>}, {pipeline_mode = #tpu.pipeline_mode<synchronous>, transform_indices = @transform_16, window_bounds = array<i64: 1, 32>}, {pipeline_mode = #tpu.pipeline_mode<synchronous>, transform_indices = @transform_17, window_bounds = array<i64: 32, 32>}, {pipeline_mode = #tpu.pipeline_mode<synchronous>, transform_indices = @transform_18, window_bounds = array<i64: 1, 32>}, {pipeline_mode = #tpu.pipeline_mode<synchronous>, transform_indices = @transform_19, window_bounds = array<i64: 32, 128>}, {pipeline_mode = #tpu.pipeline_mode<synchronous>, transform_indices = @transform_20, window_bounds = array<i64: 1, 128>}, {transform_indices = @transform_21, window_bounds = array<i64: 8, 2, 128>}]} {
    %c0 = arith.constant 0 : index
    %c0_0 = arith.constant 0 : index
    %c0_1 = arith.constant 0 : index
    %0 = vector.load %arg1[%c0, %c0_0, %c0_1] : memref<8x2x12xf32, #tpu.memory_space<vmem>>, vector<8x2x12xf32>
    %1 = vector.shape_cast %0 : vector<8x2x12xf32> to vector<16x12xf32>
    %c0_2 = arith.constant 0 : index
    %c0_3 = arith.constant 0 : index
    %2 = vector.load %arg2[%c0_2, %c0_3] : memref<12x32xf32, #tpu.memory_space<vmem>>, vector<12x32xf32>
    %cst = arith.constant dense<0.000000e+00> : vector<16x32xf32>
    %3 = tpu.matmul %1, %2, %cst {dimension_numbers = #tpu.dot_dimension_numbers<[1], [0], [0], [1], [0, 0, 1, 1], [], []>} : vector<16x12xf32>, vector<12x32xf32>, vector<16x32xf32> -> vector<16x32xf32>
    %c0_4 = arith.constant 0 : index
    %c0_5 = arith.constant 0 : index
    %4 = vector.load %arg3[%c0_4, %c0_5] : memref<1x32xf32, #tpu.memory_space<vmem>>, vector<1x32xf32>
    %5 = vector.broadcast %4 : vector<1x32xf32> to vector<16x32xf32>
    %6 = arith.addf %3, %5 : vector<16x32xf32>
    %c0_6 = arith.constant 0 : index
    %c0_7 = arith.constant 0 : index
    %7 = vector.load %arg4[%c0_6, %c0_7] : memref<32x96xf32, #tpu.memory_space<vmem>>, vector<32x96xf32>
    %cst_8 = arith.constant dense<0.000000e+00> : vector<16x96xf32>
    %8 = tpu.matmul %6, %7, %cst_8 {dimension_numbers = #tpu.dot_dimension_numbers<[1], [0], [0], [1], [0, 0, 1, 1], [], []>} : vector<16x32xf32>, vector<32x96xf32>, vector<16x96xf32> -> vector<16x96xf32>
    %c0_9 = arith.constant 0 : index
    %c0_10 = arith.constant 0 : index
    %9 = vector.load %arg6[%c0_9, %c0_10] : memref<1x96xf32, #tpu.memory_space<vmem>>, vector<1x96xf32>
    %10 = vector.broadcast %9 : vector<1x96xf32> to vector<16x96xf32>
    %11 = arith.addf %8, %10 : vector<16x96xf32>
    %12 = vector.shape_cast %11 : vector<16x96xf32> to vector<8x2x96xf32>
    %c0_11 = arith.constant 0 : index
    %c0_12 = arith.constant 0 : index
    %c0_13 = arith.constant 0 : index
    %13 = vector.load %arg23[%c0_11, %c0_12, %c0_13] : memref<8x2x96xf32, #tpu.memory_space<vmem>>, vector<8x2x96xf32>
    tpu.vector_store %arg23[%c0_11, %c0_12, %c0_13], %12 {strides = array<i32>} : memref<8x2x96xf32, #tpu.memory_space<vmem>>, vector<8x2x96xf32>,
    %c0_14 = arith.constant 0 : index
    %c0_15 = arith.constant 0 : index
    %14 = vector.load %arg7[%c0_14, %c0_15] : memref<1x96xf32, #tpu.memory_space<vmem>>, vector<1x96xf32>
    %15 = vector.shape_cast %14 : vector<1x96xf32> to vector<1x96xf32>
    %16 = vector.broadcast %15 : vector<1x96xf32> to vector<2x96xf32>
    %cst_16 = arith.constant 0.000000e+00 : f32
    %17 = vector.broadcast %cst_16 : f32 to vector<2x32xf32>
    %c0_i32 = arith.constant 0 : i32
    %c0_17 = arith.constant 0 : index
    %c0_18 = arith.constant 0 : index
    %18 = vector.load %arg5[%c0_17, %c0_18] : memref<32x96xf32, #tpu.memory_space<vmem>>, vector<32x96xf32>
    %cst_19 = arith.constant dense<0.000000e+00> : vector<2x96xf32>
    %19 = tpu.matmul %17, %18, %cst_19 {dimension_numbers = #tpu.dot_dimension_numbers<[1], [0], [0], [1], [0, 0, 1, 1], [], []>} : vector<2x32xf32>, vector<32x96xf32>, vector<2x96xf32> -> vector<2x96xf32>
    %20 = arith.addf %19, %16 : vector<2x96xf32>
    %21 = arith.index_cast %c0_i32 : i32 to index
    %c0_20 = arith.constant 0 : index
    %c0_21 = arith.constant 0 : index
    %22 = vector.load %arg23[%21, %c0_20, %c0_21] : memref<8x2x96xf32, #tpu.memory_space<vmem>>, vector<1x2x96xf32>
    %23 = vector.shape_cast %22 : vector<1x2x96xf32> to vector<2x96xf32>
    %24 = vector.extract_strided_slice %23 {offsets = [0, 0], sizes = [2, 32], strides = [1, 1]} : vector<2x96xf32> to vector<2x32xf32>
    %25 = vector.extract_strided_slice %20 {offsets = [0, 0], sizes = [2, 32], strides = [1, 1]} : vector<2x96xf32> to vector<2x32xf32>
    %26 = arith.addf %24, %25 : vector<2x32xf32>
    %27 = arith.negf %26 : vector<2x32xf32>
    %28 = math.exp %27 : vector<2x32xf32>
    %cst_22 = arith.constant 1.000000e+00 : f32
    %29 = vector.broadcast %cst_22 : f32 to vector<2x32xf32>
    %30 = arith.addf %29, %28 : vector<2x32xf32>
    %31 = arith.divf %29, %30 : vector<2x32xf32>
    %32 = vector.extract_strided_slice %23 {offsets = [0, 32], sizes = [2, 32], strides = [1, 1]} : vector<2x96xf32> to vector<2x32xf32>
    %33 = vector.extract_strided_slice %20 {offsets = [0, 32], sizes = [2, 32], strides = [1, 1]} : vector<2x96xf32> to vector<2x32xf32>
    %34 = arith.addf %32, %33 : vector<2x32xf32>
    %35 = arith.negf %34 : vector<2x32xf32>
    %36 = math.exp %35 : vector<2x32xf32>
    %cst_23 = arith.constant 1.000000e+00 : f32
    %37 = vector.broadcast %cst_23 : f32 to vector<2x32xf32>
    %38 = arith.addf %37, %36 : vector<2x32xf32>
    %39 = arith.divf %37, %38 : vector<2x32xf32>
    %40 = vector.extract_strided_slice %23 {offsets = [0, 64], sizes = [2, 32], strides = [1, 1]} : vector<2x96xf32> to vector<2x32xf32>
    %41 = vector.extract_strided_slice %20 {offsets = [0, 64], sizes = [2, 32], strides = [1, 1]} : vector<2x96xf32> to vector<2x32xf32>
    %42 = arith.mulf %31, %41 : vector<2x32xf32>
    %43 = arith.addf %40, %42 : vector<2x32xf32>
    %44 = math.tanh %43 : vector<2x32xf32>
    %45 = arith.subf %17, %44 : vector<2x32xf32>
    %46 = arith.mulf %39, %45 : vector<2x32xf32>
    %47 = arith.addf %44, %46 : vector<2x32xf32>
    %48 = arith.index_cast %c0_i32 : i32 to index
    %c0_24 = arith.constant 0 : index
    %c0_25 = arith.constant 0 : index
    %49 = vector.load %arg24[%48, %c0_24, %c0_25] : memref<8x2x32xf32, #tpu.memory_space<vmem>>, vector<1x2x32xf32>
    %50 = vector.shape_cast %49 : vector<1x2x32xf32> to vector<2x32xf32>
    %51 = vector.shape_cast %47 : vector<2x32xf32> to vector<1x2x32xf32>
    tpu.vector_store %arg24[%48, %c0_24, %c0_25], %51 {strides = array<i32>} : memref<8x2x32xf32, #tpu.memory_space<vmem>>, vector<1x2x32xf32>,
    %c1_i32 = arith.constant 1 : i32
    %c0_26 = arith.constant 0 : index
    %c0_27 = arith.constant 0 : index
    %52 = vector.load %arg5[%c0_26, %c0_27] : memref<32x96xf32, #tpu.memory_space<vmem>>, vector<32x96xf32>
    %cst_28 = arith.constant dense<0.000000e+00> : vector<2x96xf32>
    %53 = tpu.matmul %47, %52, %cst_28 {dimension_numbers = #tpu.dot_dimension_numbers<[1], [0], [0], [1], [0, 0, 1, 1], [], []>} : vector<2x32xf32>, vector<32x96xf32>, vector<2x96xf32> -> vector<2x96xf32>
    %54 = arith.addf %53, %16 : vector<2x96xf32>
    %55 = arith.index_cast %c1_i32 : i32 to index
    %c0_29 = arith.constant 0 : index
    %c0_30 = arith.constant 0 : index
    %56 = vector.load %arg23[%55, %c0_29, %c0_30] : memref<8x2x96xf32, #tpu.memory_space<vmem>>, vector<1x2x96xf32>
    %57 = vector.shape_cast %56 : vector<1x2x96xf32> to vector<2x96xf32>
    %58 = vector.extract_strided_slice %57 {offsets = [0, 0], sizes = [2, 32], strides = [1, 1]} : vector<2x96xf32> to vector<2x32xf32>
    %59 = vector.extract_strided_slice %54 {offsets = [0, 0], sizes = [2, 32], strides = [1, 1]} : vector<2x96xf32> to vector<2x32xf32>
    %60 = arith.addf %58, %59 : vector<2x32xf32>
    %61 = arith.negf %60 : vector<2x32xf32>
    %62 = math.exp %61 : vector<2x32xf32>
    %cst_31 = arith.constant 1.000000e+00 : f32
    %63 = vector.broadcast %cst_31 : f32 to vector<2x32xf32>
    %64 = arith.addf %63, %62 : vector<2x32xf32>
    %65 = arith.divf %63, %64 : vector<2x32xf32>
    %66 = vector.extract_strided_slice %57 {offsets = [0, 32], sizes = [2, 32], strides = [1, 1]} : vector<2x96xf32> to vector<2x32xf32>
    %67 = vector.extract_strided_slice %54 {offsets = [0, 32], sizes = [2, 32], strides = [1, 1]} : vector<2x96xf32> to vector<2x32xf32>
    %68 = arith.addf %66, %67 : vector<2x32xf32>
    %69 = arith.negf %68 : vector<2x32xf32>
    %70 = math.exp %69 : vector<2x32xf32>
    %cst_32 = arith.constant 1.000000e+00 : f32
    %71 = vector.broadcast %cst_32 : f32 to vector<2x32xf32>
    %72 = arith.addf %71, %70 : vector<2x32xf32>
    %73 = arith.divf %71, %72 : vector<2x32xf32>
    %74 = vector.extract_strided_slice %57 {offsets = [0, 64], sizes = [2, 32], strides = [1, 1]} : vector<2x96xf32> to vector<2x32xf32>
    %75 = vector.extract_strided_slice %54 {offsets = [0, 64], sizes = [2, 32], strides = [1, 1]} : vector<2x96xf32> to vector<2x32xf32>
    %76 = arith.mulf %65, %75 : vector<2x32xf32>
    %77 = arith.addf %74, %76 : vector<2x32xf32>
    %78 = math.tanh %77 : vector<2x32xf32>
    %79 = arith.subf %47, %78 : vector<2x32xf32>
    %80 = arith.mulf %73, %79 : vector<2x32xf32>
    %81 = arith.addf %78, %80 : vector<2x32xf32>
    %82 = arith.index_cast %c1_i32 : i32 to index
    %c0_33 = arith.constant 0 : index
    %c0_34 = arith.constant 0 : index
    %83 = vector.load %arg24[%82, %c0_33, %c0_34] : memref<8x2x32xf32, #tpu.memory_space<vmem>>, vector<1x2x32xf32>
    %84 = vector.shape_cast %83 : vector<1x2x32xf32> to vector<2x32xf32>
    %85 = vector.shape_cast %81 : vector<2x32xf32> to vector<1x2x32xf32>
    tpu.vector_store %arg24[%82, %c0_33, %c0_34], %85 {strides = array<i32>} : memref<8x2x32xf32, #tpu.memory_space<vmem>>, vector<1x2x32xf32>,
    %c2_i32 = arith.constant 2 : i32
    %c0_35 = arith.constant 0 : index
    %c0_36 = arith.constant 0 : index
    %86 = vector.load %arg5[%c0_35, %c0_36] : memref<32x96xf32, #tpu.memory_space<vmem>>, vector<32x96xf32>
    %cst_37 = arith.constant dense<0.000000e+00> : vector<2x96xf32>
    %87 = tpu.matmul %81, %86, %cst_37 {dimension_numbers = #tpu.dot_dimension_numbers<[1], [0], [0], [1], [0, 0, 1, 1], [], []>} : vector<2x32xf32>, vector<32x96xf32>, vector<2x96xf32> -> vector<2x96xf32>
    %88 = arith.addf %87, %16 : vector<2x96xf32>
    %89 = arith.index_cast %c2_i32 : i32 to index
    %c0_38 = arith.constant 0 : index
    %c0_39 = arith.constant 0 : index
    %90 = vector.load %arg23[%89, %c0_38, %c0_39] : memref<8x2x96xf32, #tpu.memory_space<vmem>>, vector<1x2x96xf32>
    %91 = vector.shape_cast %90 : vector<1x2x96xf32> to vector<2x96xf32>
    %92 = vector.extract_strided_slice %91 {offsets = [0, 0], sizes = [2, 32], strides = [1, 1]} : vector<2x96xf32> to vector<2x32xf32>
    %93 = vector.extract_strided_slice %88 {offsets = [0, 0], sizes = [2, 32], strides = [1, 1]} : vector<2x96xf32> to vector<2x32xf32>
    %94 = arith.addf %92, %93 : vector<2x32xf32>
    %95 = arith.negf %94 : vector<2x32xf32>
    %96 = math.exp %95 : vector<2x32xf32>
    %cst_40 = arith.constant 1.000000e+00 : f32
    %97 = vector.broadcast %cst_40 : f32 to vector<2x32xf32>
    %98 = arith.addf %97, %96 : vector<2x32xf32>
    %99 = arith.divf %97, %98 : vector<2x32xf32>
    %100 = vector.extract_strided_slice %91 {offsets = [0, 32], sizes = [2, 32], strides = [1, 1]} : vector<2x96xf32> to vector<2x32xf32>
    %101 = vector.extract_strided_slice %88 {offsets = [0, 32], sizes = [2, 32], strides = [1, 1]} : vector<2x96xf32> to vector<2x32xf32>
    %102 = arith.addf %100, %101 : vector<2x32xf32>
    %103 = arith.negf %102 : vector<2x32xf32>
    %104 = math.exp %103 : vector<2x32xf32>
    %cst_41 = arith.constant 1.000000e+00 : f32
    %105 = vector.broadcast %cst_41 : f32 to vector<2x32xf32>
    %106 = arith.addf %105, %104 : vector<2x32xf32>
    %107 = arith.divf %105, %106 : vector<2x32xf32>
    %108 = vector.extract_strided_slice %91 {offsets = [0, 64], sizes = [2, 32], strides = [1, 1]} : vector<2x96xf32> to vector<2x32xf32>
    %109 = vector.extract_strided_slice %88 {offsets = [0, 64], sizes = [2, 32], strides = [1, 1]} : vector<2x96xf32> to vector<2x32xf32>
    %110 = arith.mulf %99, %109 : vector<2x32xf32>
    %111 = arith.addf %108, %110 : vector<2x32xf32>
    %112 = math.tanh %111 : vector<2x32xf32>
    %113 = arith.subf %81, %112 : vector<2x32xf32>
    %114 = arith.mulf %107, %113 : vector<2x32xf32>
    %115 = arith.addf %112, %114 : vector<2x32xf32>
    %116 = arith.index_cast %c2_i32 : i32 to index
    %c0_42 = arith.constant 0 : index
    %c0_43 = arith.constant 0 : index
    %117 = vector.load %arg24[%116, %c0_42, %c0_43] : memref<8x2x32xf32, #tpu.memory_space<vmem>>, vector<1x2x32xf32>
    %118 = vector.shape_cast %117 : vector<1x2x32xf32> to vector<2x32xf32>
    %119 = vector.shape_cast %115 : vector<2x32xf32> to vector<1x2x32xf32>
    tpu.vector_store %arg24[%116, %c0_42, %c0_43], %119 {strides = array<i32>} : memref<8x2x32xf32, #tpu.memory_space<vmem>>, vector<1x2x32xf32>,
    %c3_i32 = arith.constant 3 : i32
    %c0_44 = arith.constant 0 : index
    %c0_45 = arith.constant 0 : index
    %120 = vector.load %arg5[%c0_44, %c0_45] : memref<32x96xf32, #tpu.memory_space<vmem>>, vector<32x96xf32>
    %cst_46 = arith.constant dense<0.000000e+00> : vector<2x96xf32>
    %121 = tpu.matmul %115, %120, %cst_46 {dimension_numbers = #tpu.dot_dimension_numbers<[1], [0], [0], [1], [0, 0, 1, 1], [], []>} : vector<2x32xf32>, vector<32x96xf32>, vector<2x96xf32> -> vector<2x96xf32>
    %122 = arith.addf %121, %16 : vector<2x96xf32>
    %123 = arith.index_cast %c3_i32 : i32 to index
    %c0_47 = arith.constant 0 : index
    %c0_48 = arith.constant 0 : index
    %124 = vector.load %arg23[%123, %c0_47, %c0_48] : memref<8x2x96xf32, #tpu.memory_space<vmem>>, vector<1x2x96xf32>
    %125 = vector.shape_cast %124 : vector<1x2x96xf32> to vector<2x96xf32>
    %126 = vector.extract_strided_slice %125 {offsets = [0, 0], sizes = [2, 32], strides = [1, 1]} : vector<2x96xf32> to vector<2x32xf32>
    %127 = vector.extract_strided_slice %122 {offsets = [0, 0], sizes = [2, 32], strides = [1, 1]} : vector<2x96xf32> to vector<2x32xf32>
    %128 = arith.addf %126, %127 : vector<2x32xf32>
    %129 = arith.negf %128 : vector<2x32xf32>
    %130 = math.exp %129 : vector<2x32xf32>
    %cst_49 = arith.constant 1.000000e+00 : f32
    %131 = vector.broadcast %cst_49 : f32 to vector<2x32xf32>
    %132 = arith.addf %131, %130 : vector<2x32xf32>
    %133 = arith.divf %131, %132 : vector<2x32xf32>
    %134 = vector.extract_strided_slice %125 {offsets = [0, 32], sizes = [2, 32], strides = [1, 1]} : vector<2x96xf32> to vector<2x32xf32>
    %135 = vector.extract_strided_slice %122 {offsets = [0, 32], sizes = [2, 32], strides = [1, 1]} : vector<2x96xf32> to vector<2x32xf32>
    %136 = arith.addf %134, %135 : vector<2x32xf32>
    %137 = arith.negf %136 : vector<2x32xf32>
    %138 = math.exp %137 : vector<2x32xf32>
    %cst_50 = arith.constant 1.000000e+00 : f32
    %139 = vector.broadcast %cst_50 : f32 to vector<2x32xf32>
    %140 = arith.addf %139, %138 : vector<2x32xf32>
    %141 = arith.divf %139, %140 : vector<2x32xf32>
    %142 = vector.extract_strided_slice %125 {offsets = [0, 64], sizes = [2, 32], strides = [1, 1]} : vector<2x96xf32> to vector<2x32xf32>
    %143 = vector.extract_strided_slice %122 {offsets = [0, 64], sizes = [2, 32], strides = [1, 1]} : vector<2x96xf32> to vector<2x32xf32>
    %144 = arith.mulf %133, %143 : vector<2x32xf32>
    %145 = arith.addf %142, %144 : vector<2x32xf32>
    %146 = math.tanh %145 : vector<2x32xf32>
    %147 = arith.subf %115, %146 : vector<2x32xf32>
    %148 = arith.mulf %141, %147 : vector<2x32xf32>
    %149 = arith.addf %146, %148 : vector<2x32xf32>
    %150 = arith.index_cast %c3_i32 : i32 to index
    %c0_51 = arith.constant 0 : index
    %c0_52 = arith.constant 0 : index
    %151 = vector.load %arg24[%150, %c0_51, %c0_52] : memref<8x2x32xf32, #tpu.memory_space<vmem>>, vector<1x2x32xf32>
    %152 = vector.shape_cast %151 : vector<1x2x32xf32> to vector<2x32xf32>
    %153 = vector.shape_cast %149 : vector<2x32xf32> to vector<1x2x32xf32>
    tpu.vector_store %arg24[%150, %c0_51, %c0_52], %153 {strides = array<i32>} : memref<8x2x32xf32, #tpu.memory_space<vmem>>, vector<1x2x32xf32>,
    %c4_i32 = arith.constant 4 : i32
    %c0_53 = arith.constant 0 : index
    %c0_54 = arith.constant 0 : index
    %154 = vector.load %arg5[%c0_53, %c0_54] : memref<32x96xf32, #tpu.memory_space<vmem>>, vector<32x96xf32>
    %cst_55 = arith.constant dense<0.000000e+00> : vector<2x96xf32>
    %155 = tpu.matmul %149, %154, %cst_55 {dimension_numbers = #tpu.dot_dimension_numbers<[1], [0], [0], [1], [0, 0, 1, 1], [], []>} : vector<2x32xf32>, vector<32x96xf32>, vector<2x96xf32> -> vector<2x96xf32>
    %156 = arith.addf %155, %16 : vector<2x96xf32>
    %157 = arith.index_cast %c4_i32 : i32 to index
    %c0_56 = arith.constant 0 : index
    %c0_57 = arith.constant 0 : index
    %158 = vector.load %arg23[%157, %c0_56, %c0_57] : memref<8x2x96xf32, #tpu.memory_space<vmem>>, vector<1x2x96xf32>
    %159 = vector.shape_cast %158 : vector<1x2x96xf32> to vector<2x96xf32>
    %160 = vector.extract_strided_slice %159 {offsets = [0, 0], sizes = [2, 32], strides = [1, 1]} : vector<2x96xf32> to vector<2x32xf32>
    %161 = vector.extract_strided_slice %156 {offsets = [0, 0], sizes = [2, 32], strides = [1, 1]} : vector<2x96xf32> to vector<2x32xf32>
    %162 = arith.addf %160, %161 : vector<2x32xf32>
    %163 = arith.negf %162 : vector<2x32xf32>
    %164 = math.exp %163 : vector<2x32xf32>
    %cst_58 = arith.constant 1.000000e+00 : f32
    %165 = vector.broadcast %cst_58 : f32 to vector<2x32xf32>
    %166 = arith.addf %165, %164 : vector<2x32xf32>
    %167 = arith.divf %165, %166 : vector<2x32xf32>
    %168 = vector.extract_strided_slice %159 {offsets = [0, 32], sizes = [2, 32], strides = [1, 1]} : vector<2x96xf32> to vector<2x32xf32>
    %169 = vector.extract_strided_slice %156 {offsets = [0, 32], sizes = [2, 32], strides = [1, 1]} : vector<2x96xf32> to vector<2x32xf32>
    %170 = arith.addf %168, %169 : vector<2x32xf32>
    %171 = arith.negf %170 : vector<2x32xf32>
    %172 = math.exp %171 : vector<2x32xf32>
    %cst_59 = arith.constant 1.000000e+00 : f32
    %173 = vector.broadcast %cst_59 : f32 to vector<2x32xf32>
    %174 = arith.addf %173, %172 : vector<2x32xf32>
    %175 = arith.divf %173, %174 : vector<2x32xf32>
    %176 = vector.extract_strided_slice %159 {offsets = [0, 64], sizes = [2, 32], strides = [1, 1]} : vector<2x96xf32> to vector<2x32xf32>
    %177 = vector.extract_strided_slice %156 {offsets = [0, 64], sizes = [2, 32], strides = [1, 1]} : vector<2x96xf32> to vector<2x32xf32>
    %178 = arith.mulf %167, %177 : vector<2x32xf32>
    %179 = arith.addf %176, %178 : vector<2x32xf32>
    %180 = math.tanh %179 : vector<2x32xf32>
    %181 = arith.subf %149, %180 : vector<2x32xf32>
    %182 = arith.mulf %175, %181 : vector<2x32xf32>
    %183 = arith.addf %180, %182 : vector<2x32xf32>
    %184 = arith.index_cast %c4_i32 : i32 to index
    %c0_60 = arith.constant 0 : index
    %c0_61 = arith.constant 0 : index
    %185 = vector.load %arg24[%184, %c0_60, %c0_61] : memref<8x2x32xf32, #tpu.memory_space<vmem>>, vector<1x2x32xf32>
    %186 = vector.shape_cast %185 : vector<1x2x32xf32> to vector<2x32xf32>
    %187 = vector.shape_cast %183 : vector<2x32xf32> to vector<1x2x32xf32>
    tpu.vector_store %arg24[%184, %c0_60, %c0_61], %187 {strides = array<i32>} : memref<8x2x32xf32, #tpu.memory_space<vmem>>, vector<1x2x32xf32>,
    %c5_i32 = arith.constant 5 : i32
    %c0_62 = arith.constant 0 : index
    %c0_63 = arith.constant 0 : index
    %188 = vector.load %arg5[%c0_62, %c0_63] : memref<32x96xf32, #tpu.memory_space<vmem>>, vector<32x96xf32>
    %cst_64 = arith.constant dense<0.000000e+00> : vector<2x96xf32>
    %189 = tpu.matmul %183, %188, %cst_64 {dimension_numbers = #tpu.dot_dimension_numbers<[1], [0], [0], [1], [0, 0, 1, 1], [], []>} : vector<2x32xf32>, vector<32x96xf32>, vector<2x96xf32> -> vector<2x96xf32>
    %190 = arith.addf %189, %16 : vector<2x96xf32>
    %191 = arith.index_cast %c5_i32 : i32 to index
    %c0_65 = arith.constant 0 : index
    %c0_66 = arith.constant 0 : index
    %192 = vector.load %arg23[%191, %c0_65, %c0_66] : memref<8x2x96xf32, #tpu.memory_space<vmem>>, vector<1x2x96xf32>
    %193 = vector.shape_cast %192 : vector<1x2x96xf32> to vector<2x96xf32>
    %194 = vector.extract_strided_slice %193 {offsets = [0, 0], sizes = [2, 32], strides = [1, 1]} : vector<2x96xf32> to vector<2x32xf32>
    %195 = vector.extract_strided_slice %190 {offsets = [0, 0], sizes = [2, 32], strides = [1, 1]} : vector<2x96xf32> to vector<2x32xf32>
    %196 = arith.addf %194, %195 : vector<2x32xf32>
    %197 = arith.negf %196 : vector<2x32xf32>
    %198 = math.exp %197 : vector<2x32xf32>
    %cst_67 = arith.constant 1.000000e+00 : f32
    %199 = vector.broadcast %cst_67 : f32 to vector<2x32xf32>
    %200 = arith.addf %199, %198 : vector<2x32xf32>
    %201 = arith.divf %199, %200 : vector<2x32xf32>
    %202 = vector.extract_strided_slice %193 {offsets = [0, 32], sizes = [2, 32], strides = [1, 1]} : vector<2x96xf32> to vector<2x32xf32>
    %203 = vector.extract_strided_slice %190 {offsets = [0, 32], sizes = [2, 32], strides = [1, 1]} : vector<2x96xf32> to vector<2x32xf32>
    %204 = arith.addf %202, %203 : vector<2x32xf32>
    %205 = arith.negf %204 : vector<2x32xf32>
    %206 = math.exp %205 : vector<2x32xf32>
    %cst_68 = arith.constant 1.000000e+00 : f32
    %207 = vector.broadcast %cst_68 : f32 to vector<2x32xf32>
    %208 = arith.addf %207, %206 : vector<2x32xf32>
    %209 = arith.divf %207, %208 : vector<2x32xf32>
    %210 = vector.extract_strided_slice %193 {offsets = [0, 64], sizes = [2, 32], strides = [1, 1]} : vector<2x96xf32> to vector<2x32xf32>
    %211 = vector.extract_strided_slice %190 {offsets = [0, 64], sizes = [2, 32], strides = [1, 1]} : vector<2x96xf32> to vector<2x32xf32>
    %212 = arith.mulf %201, %211 : vector<2x32xf32>
    %213 = arith.addf %210, %212 : vector<2x32xf32>
    %214 = math.tanh %213 : vector<2x32xf32>
    %215 = arith.subf %183, %214 : vector<2x32xf32>
    %216 = arith.mulf %209, %215 : vector<2x32xf32>
    %217 = arith.addf %214, %216 : vector<2x32xf32>
    %218 = arith.index_cast %c5_i32 : i32 to index
    %c0_69 = arith.constant 0 : index
    %c0_70 = arith.constant 0 : index
    %219 = vector.load %arg24[%218, %c0_69, %c0_70] : memref<8x2x32xf32, #tpu.memory_space<vmem>>, vector<1x2x32xf32>
    %220 = vector.shape_cast %219 : vector<1x2x32xf32> to vector<2x32xf32>
    %221 = vector.shape_cast %217 : vector<2x32xf32> to vector<1x2x32xf32>
    tpu.vector_store %arg24[%218, %c0_69, %c0_70], %221 {strides = array<i32>} : memref<8x2x32xf32, #tpu.memory_space<vmem>>, vector<1x2x32xf32>,
    %c6_i32 = arith.constant 6 : i32
    %c0_71 = arith.constant 0 : index
    %c0_72 = arith.constant 0 : index
    %222 = vector.load %arg5[%c0_71, %c0_72] : memref<32x96xf32, #tpu.memory_space<vmem>>, vector<32x96xf32>
    %cst_73 = arith.constant dense<0.000000e+00> : vector<2x96xf32>
    %223 = tpu.matmul %217, %222, %cst_73 {dimension_numbers = #tpu.dot_dimension_numbers<[1], [0], [0], [1], [0, 0, 1, 1], [], []>} : vector<2x32xf32>, vector<32x96xf32>, vector<2x96xf32> -> vector<2x96xf32>
    %224 = arith.addf %223, %16 : vector<2x96xf32>
    %225 = arith.index_cast %c6_i32 : i32 to index
    %c0_74 = arith.constant 0 : index
    %c0_75 = arith.constant 0 : index
    %226 = vector.load %arg23[%225, %c0_74, %c0_75] : memref<8x2x96xf32, #tpu.memory_space<vmem>>, vector<1x2x96xf32>
    %227 = vector.shape_cast %226 : vector<1x2x96xf32> to vector<2x96xf32>
    %228 = vector.extract_strided_slice %227 {offsets = [0, 0], sizes = [2, 32], strides = [1, 1]} : vector<2x96xf32> to vector<2x32xf32>
    %229 = vector.extract_strided_slice %224 {offsets = [0, 0], sizes = [2, 32], strides = [1, 1]} : vector<2x96xf32> to vector<2x32xf32>
    %230 = arith.addf %228, %229 : vector<2x32xf32>
    %231 = arith.negf %230 : vector<2x32xf32>
    %232 = math.exp %231 : vector<2x32xf32>
    %cst_76 = arith.constant 1.000000e+00 : f32
    %233 = vector.broadcast %cst_76 : f32 to vector<2x32xf32>
    %234 = arith.addf %233, %232 : vector<2x32xf32>
    %235 = arith.divf %233, %234 : vector<2x32xf32>
    %236 = vector.extract_strided_slice %227 {offsets = [0, 32], sizes = [2, 32], strides = [1, 1]} : vector<2x96xf32> to vector<2x32xf32>
    %237 = vector.extract_strided_slice %224 {offsets = [0, 32], sizes = [2, 32], strides = [1, 1]} : vector<2x96xf32> to vector<2x32xf32>
    %238 = arith.addf %236, %237 : vector<2x32xf32>
    %239 = arith.negf %238 : vector<2x32xf32>
    %240 = math.exp %239 : vector<2x32xf32>
    %cst_77 = arith.constant 1.000000e+00 : f32
    %241 = vector.broadcast %cst_77 : f32 to vector<2x32xf32>
    %242 = arith.addf %241, %240 : vector<2x32xf32>
    %243 = arith.divf %241, %242 : vector<2x32xf32>
    %244 = vector.extract_strided_slice %227 {offsets = [0, 64], sizes = [2, 32], strides = [1, 1]} : vector<2x96xf32> to vector<2x32xf32>
    %245 = vector.extract_strided_slice %224 {offsets = [0, 64], sizes = [2, 32], strides = [1, 1]} : vector<2x96xf32> to vector<2x32xf32>
    %246 = arith.mulf %235, %245 : vector<2x32xf32>
    %247 = arith.addf %244, %246 : vector<2x32xf32>
    %248 = math.tanh %247 : vector<2x32xf32>
    %249 = arith.subf %217, %248 : vector<2x32xf32>
    %250 = arith.mulf %243, %249 : vector<2x32xf32>
    %251 = arith.addf %248, %250 : vector<2x32xf32>
    %252 = arith.index_cast %c6_i32 : i32 to index
    %c0_78 = arith.constant 0 : index
    %c0_79 = arith.constant 0 : index
    %253 = vector.load %arg24[%252, %c0_78, %c0_79] : memref<8x2x32xf32, #tpu.memory_space<vmem>>, vector<1x2x32xf32>
    %254 = vector.shape_cast %253 : vector<1x2x32xf32> to vector<2x32xf32>
    %255 = vector.shape_cast %251 : vector<2x32xf32> to vector<1x2x32xf32>
    tpu.vector_store %arg24[%252, %c0_78, %c0_79], %255 {strides = array<i32>} : memref<8x2x32xf32, #tpu.memory_space<vmem>>, vector<1x2x32xf32>,
    %c7_i32 = arith.constant 7 : i32
    %c0_80 = arith.constant 0 : index
    %c0_81 = arith.constant 0 : index
    %256 = vector.load %arg5[%c0_80, %c0_81] : memref<32x96xf32, #tpu.memory_space<vmem>>, vector<32x96xf32>
    %cst_82 = arith.constant dense<0.000000e+00> : vector<2x96xf32>
    %257 = tpu.matmul %251, %256, %cst_82 {dimension_numbers = #tpu.dot_dimension_numbers<[1], [0], [0], [1], [0, 0, 1, 1], [], []>} : vector<2x32xf32>, vector<32x96xf32>, vector<2x96xf32> -> vector<2x96xf32>
    %258 = arith.addf %257, %16 : vector<2x96xf32>
    %259 = arith.index_cast %c7_i32 : i32 to index
    %c0_83 = arith.constant 0 : index
    %c0_84 = arith.constant 0 : index
    %260 = vector.load %arg23[%259, %c0_83, %c0_84] : memref<8x2x96xf32, #tpu.memory_space<vmem>>, vector<1x2x96xf32>
    %261 = vector.shape_cast %260 : vector<1x2x96xf32> to vector<2x96xf32>
    %262 = vector.extract_strided_slice %261 {offsets = [0, 0], sizes = [2, 32], strides = [1, 1]} : vector<2x96xf32> to vector<2x32xf32>
    %263 = vector.extract_strided_slice %258 {offsets = [0, 0], sizes = [2, 32], strides = [1, 1]} : vector<2x96xf32> to vector<2x32xf32>
    %264 = arith.addf %262, %263 : vector<2x32xf32>
    %265 = arith.negf %264 : vector<2x32xf32>
    %266 = math.exp %265 : vector<2x32xf32>
    %cst_85 = arith.constant 1.000000e+00 : f32
    %267 = vector.broadcast %cst_85 : f32 to vector<2x32xf32>
    %268 = arith.addf %267, %266 : vector<2x32xf32>
    %269 = arith.divf %267, %268 : vector<2x32xf32>
    %270 = vector.extract_strided_slice %261 {offsets = [0, 32], sizes = [2, 32], strides = [1, 1]} : vector<2x96xf32> to vector<2x32xf32>
    %271 = vector.extract_strided_slice %258 {offsets = [0, 32], sizes = [2, 32], strides = [1, 1]} : vector<2x96xf32> to vector<2x32xf32>
    %272 = arith.addf %270, %271 : vector<2x32xf32>
    %273 = arith.negf %272 : vector<2x32xf32>
    %274 = math.exp %273 : vector<2x32xf32>
    %cst_86 = arith.constant 1.000000e+00 : f32
    %275 = vector.broadcast %cst_86 : f32 to vector<2x32xf32>
    %276 = arith.addf %275, %274 : vector<2x32xf32>
    %277 = arith.divf %275, %276 : vector<2x32xf32>
    %278 = vector.extract_strided_slice %261 {offsets = [0, 64], sizes = [2, 32], strides = [1, 1]} : vector<2x96xf32> to vector<2x32xf32>
    %279 = vector.extract_strided_slice %258 {offsets = [0, 64], sizes = [2, 32], strides = [1, 1]} : vector<2x96xf32> to vector<2x32xf32>
    %280 = arith.mulf %269, %279 : vector<2x32xf32>
    %281 = arith.addf %278, %280 : vector<2x32xf32>
    %282 = math.tanh %281 : vector<2x32xf32>
    %283 = arith.subf %251, %282 : vector<2x32xf32>
    %284 = arith.mulf %277, %283 : vector<2x32xf32>
    %285 = arith.addf %282, %284 : vector<2x32xf32>
    %286 = arith.index_cast %c7_i32 : i32 to index
    %c0_87 = arith.constant 0 : index
    %c0_88 = arith.constant 0 : index
    %287 = vector.load %arg24[%286, %c0_87, %c0_88] : memref<8x2x32xf32, #tpu.memory_space<vmem>>, vector<1x2x32xf32>
    %288 = vector.shape_cast %287 : vector<1x2x32xf32> to vector<2x32xf32>
    %289 = vector.shape_cast %285 : vector<2x32xf32> to vector<1x2x32xf32>
    tpu.vector_store %arg24[%286, %c0_87, %c0_88], %289 {strides = array<i32>} : memref<8x2x32xf32, #tpu.memory_space<vmem>>, vector<1x2x32xf32>,
    %c8_i32 = arith.constant 8 : i32
    %c0_89 = arith.constant 0 : index
    %c0_90 = arith.constant 0 : index
    %c0_91 = arith.constant 0 : index
    %290 = vector.load %arg24[%c0_89, %c0_90, %c0_91] : memref<8x2x32xf32, #tpu.memory_space<vmem>>, vector<8x2x32xf32>
    %291 = vector.shape_cast %290 : vector<8x2x32xf32> to vector<16x32xf32>
    %c0_92 = arith.constant 0 : index
    %c0_93 = arith.constant 0 : index
    %292 = vector.load %arg8[%c0_92, %c0_93] : memref<32x96xf32, #tpu.memory_space<vmem>>, vector<32x96xf32>
    %cst_94 = arith.constant dense<0.000000e+00> : vector<16x96xf32>
    %293 = tpu.matmul %291, %292, %cst_94 {dimension_numbers = #tpu.dot_dimension_numbers<[1], [0], [0], [1], [0, 0, 1, 1], [], []>} : vector<16x32xf32>, vector<32x96xf32>, vector<16x96xf32> -> vector<16x96xf32>
    %c0_95 = arith.constant 0 : index
    %c0_96 = arith.constant 0 : index
    %294 = vector.load %arg10[%c0_95, %c0_96] : memref<1x96xf32, #tpu.memory_space<vmem>>, vector<1x96xf32>
    %295 = vector.broadcast %294 : vector<1x96xf32> to vector<16x96xf32>
    %296 = arith.addf %293, %295 : vector<16x96xf32>
    %297 = vector.shape_cast %296 : vector<16x96xf32> to vector<8x2x96xf32>
    %c0_97 = arith.constant 0 : index
    %c0_98 = arith.constant 0 : index
    %c0_99 = arith.constant 0 : index
    %298 = vector.load %arg23[%c0_97, %c0_98, %c0_99] : memref<8x2x96xf32, #tpu.memory_space<vmem>>, vector<8x2x96xf32>
    tpu.vector_store %arg23[%c0_97, %c0_98, %c0_99], %297 {strides = array<i32>} : memref<8x2x96xf32, #tpu.memory_space<vmem>>, vector<8x2x96xf32>,
    %c0_100 = arith.constant 0 : index
    %c0_101 = arith.constant 0 : index
    %299 = vector.load %arg11[%c0_100, %c0_101] : memref<1x96xf32, #tpu.memory_space<vmem>>, vector<1x96xf32>
    %300 = vector.shape_cast %299 : vector<1x96xf32> to vector<1x96xf32>
    %301 = vector.broadcast %300 : vector<1x96xf32> to vector<2x96xf32>
    %cst_102 = arith.constant 0.000000e+00 : f32
    %302 = vector.broadcast %cst_102 : f32 to vector<2x32xf32>
    %c0_i32_103 = arith.constant 0 : i32
    %c0_104 = arith.constant 0 : index
    %c0_105 = arith.constant 0 : index
    %303 = vector.load %arg9[%c0_104, %c0_105] : memref<32x96xf32, #tpu.memory_space<vmem>>, vector<32x96xf32>
    %cst_106 = arith.constant dense<0.000000e+00> : vector<2x96xf32>
    %304 = tpu.matmul %302, %303, %cst_106 {dimension_numbers = #tpu.dot_dimension_numbers<[1], [0], [0], [1], [0, 0, 1, 1], [], []>} : vector<2x32xf32>, vector<32x96xf32>, vector<2x96xf32> -> vector<2x96xf32>
    %305 = arith.addf %304, %301 : vector<2x96xf32>
    %306 = arith.index_cast %c0_i32_103 : i32 to index
    %c0_107 = arith.constant 0 : index
    %c0_108 = arith.constant 0 : index
    %307 = vector.load %arg23[%306, %c0_107, %c0_108] : memref<8x2x96xf32, #tpu.memory_space<vmem>>, vector<1x2x96xf32>
    %308 = vector.shape_cast %307 : vector<1x2x96xf32> to vector<2x96xf32>
    %309 = vector.extract_strided_slice %308 {offsets = [0, 0], sizes = [2, 32], strides = [1, 1]} : vector<2x96xf32> to vector<2x32xf32>
    %310 = vector.extract_strided_slice %305 {offsets = [0, 0], sizes = [2, 32], strides = [1, 1]} : vector<2x96xf32> to vector<2x32xf32>
    %311 = arith.addf %309, %310 : vector<2x32xf32>
    %312 = arith.negf %311 : vector<2x32xf32>
    %313 = math.exp %312 : vector<2x32xf32>
    %cst_109 = arith.constant 1.000000e+00 : f32
    %314 = vector.broadcast %cst_109 : f32 to vector<2x32xf32>
    %315 = arith.addf %314, %313 : vector<2x32xf32>
    %316 = arith.divf %314, %315 : vector<2x32xf32>
    %317 = vector.extract_strided_slice %308 {offsets = [0, 32], sizes = [2, 32], strides = [1, 1]} : vector<2x96xf32> to vector<2x32xf32>
    %318 = vector.extract_strided_slice %305 {offsets = [0, 32], sizes = [2, 32], strides = [1, 1]} : vector<2x96xf32> to vector<2x32xf32>
    %319 = arith.addf %317, %318 : vector<2x32xf32>
    %320 = arith.negf %319 : vector<2x32xf32>
    %321 = math.exp %320 : vector<2x32xf32>
    %cst_110 = arith.constant 1.000000e+00 : f32
    %322 = vector.broadcast %cst_110 : f32 to vector<2x32xf32>
    %323 = arith.addf %322, %321 : vector<2x32xf32>
    %324 = arith.divf %322, %323 : vector<2x32xf32>
    %325 = vector.extract_strided_slice %308 {offsets = [0, 64], sizes = [2, 32], strides = [1, 1]} : vector<2x96xf32> to vector<2x32xf32>
    %326 = vector.extract_strided_slice %305 {offsets = [0, 64], sizes = [2, 32], strides = [1, 1]} : vector<2x96xf32> to vector<2x32xf32>
    %327 = arith.mulf %316, %326 : vector<2x32xf32>
    %328 = arith.addf %325, %327 : vector<2x32xf32>
    %329 = math.tanh %328 : vector<2x32xf32>
    %330 = arith.subf %302, %329 : vector<2x32xf32>
    %331 = arith.mulf %324, %330 : vector<2x32xf32>
    %332 = arith.addf %329, %331 : vector<2x32xf32>
    %333 = arith.index_cast %c0_i32_103 : i32 to index
    %c0_111 = arith.constant 0 : index
    %c0_112 = arith.constant 0 : index
    %334 = vector.load %arg24[%333, %c0_111, %c0_112] : memref<8x2x32xf32, #tpu.memory_space<vmem>>, vector<1x2x32xf32>
    %335 = vector.shape_cast %334 : vector<1x2x32xf32> to vector<2x32xf32>
    %336 = vector.shape_cast %332 : vector<2x32xf32> to vector<1x2x32xf32>
    tpu.vector_store %arg24[%333, %c0_111, %c0_112], %336 {strides = array<i32>} : memref<8x2x32xf32, #tpu.memory_space<vmem>>, vector<1x2x32xf32>,
    %c1_i32_113 = arith.constant 1 : i32
    %c0_114 = arith.constant 0 : index
    %c0_115 = arith.constant 0 : index
    %337 = vector.load %arg9[%c0_114, %c0_115] : memref<32x96xf32, #tpu.memory_space<vmem>>, vector<32x96xf32>
    %cst_116 = arith.constant dense<0.000000e+00> : vector<2x96xf32>
    %338 = tpu.matmul %332, %337, %cst_116 {dimension_numbers = #tpu.dot_dimension_numbers<[1], [0], [0], [1], [0, 0, 1, 1], [], []>} : vector<2x32xf32>, vector<32x96xf32>, vector<2x96xf32> -> vector<2x96xf32>
    %339 = arith.addf %338, %301 : vector<2x96xf32>
    %340 = arith.index_cast %c1_i32_113 : i32 to index
    %c0_117 = arith.constant 0 : index
    %c0_118 = arith.constant 0 : index
    %341 = vector.load %arg23[%340, %c0_117, %c0_118] : memref<8x2x96xf32, #tpu.memory_space<vmem>>, vector<1x2x96xf32>
    %342 = vector.shape_cast %341 : vector<1x2x96xf32> to vector<2x96xf32>
    %343 = vector.extract_strided_slice %342 {offsets = [0, 0], sizes = [2, 32], strides = [1, 1]} : vector<2x96xf32> to vector<2x32xf32>
    %344 = vector.extract_strided_slice %339 {offsets = [0, 0], sizes = [2, 32], strides = [1, 1]} : vector<2x96xf32> to vector<2x32xf32>
    %345 = arith.addf %343, %344 : vector<2x32xf32>
    %346 = arith.negf %345 : vector<2x32xf32>
    %347 = math.exp %346 : vector<2x32xf32>
    %cst_119 = arith.constant 1.000000e+00 : f32
    %348 = vector.broadcast %cst_119 : f32 to vector<2x32xf32>
    %349 = arith.addf %348, %347 : vector<2x32xf32>
    %350 = arith.divf %348, %349 : vector<2x32xf32>
    %351 = vector.extract_strided_slice %342 {offsets = [0, 32], sizes = [2, 32], strides = [1, 1]} : vector<2x96xf32> to vector<2x32xf32>
    %352 = vector.extract_strided_slice %339 {offsets = [0, 32], sizes = [2, 32], strides = [1, 1]} : vector<2x96xf32> to vector<2x32xf32>
    %353 = arith.addf %351, %352 : vector<2x32xf32>
    %354 = arith.negf %353 : vector<2x32xf32>
    %355 = math.exp %354 : vector<2x32xf32>
    %cst_120 = arith.constant 1.000000e+00 : f32
    %356 = vector.broadcast %cst_120 : f32 to vector<2x32xf32>
    %357 = arith.addf %356, %355 : vector<2x32xf32>
    %358 = arith.divf %356, %357 : vector<2x32xf32>
    %359 = vector.extract_strided_slice %342 {offsets = [0, 64], sizes = [2, 32], strides = [1, 1]} : vector<2x96xf32> to vector<2x32xf32>
    %360 = vector.extract_strided_slice %339 {offsets = [0, 64], sizes = [2, 32], strides = [1, 1]} : vector<2x96xf32> to vector<2x32xf32>
    %361 = arith.mulf %350, %360 : vector<2x32xf32>
    %362 = arith.addf %359, %361 : vector<2x32xf32>
    %363 = math.tanh %362 : vector<2x32xf32>
    %364 = arith.subf %332, %363 : vector<2x32xf32>
    %365 = arith.mulf %358, %364 : vector<2x32xf32>
    %366 = arith.addf %363, %365 : vector<2x32xf32>
    %367 = arith.index_cast %c1_i32_113 : i32 to index
    %c0_121 = arith.constant 0 : index
    %c0_122 = arith.constant 0 : index
    %368 = vector.load %arg24[%367, %c0_121, %c0_122] : memref<8x2x32xf32, #tpu.memory_space<vmem>>, vector<1x2x32xf32>
    %369 = vector.shape_cast %368 : vector<1x2x32xf32> to vector<2x32xf32>
    %370 = vector.shape_cast %366 : vector<2x32xf32> to vector<1x2x32xf32>
    tpu.vector_store %arg24[%367, %c0_121, %c0_122], %370 {strides = array<i32>} : memref<8x2x32xf32, #tpu.memory_space<vmem>>, vector<1x2x32xf32>,
    %c2_i32_123 = arith.constant 2 : i32
    %c0_124 = arith.constant 0 : index
    %c0_125 = arith.constant 0 : index
    %371 = vector.load %arg9[%c0_124, %c0_125] : memref<32x96xf32, #tpu.memory_space<vmem>>, vector<32x96xf32>
    %cst_126 = arith.constant dense<0.000000e+00> : vector<2x96xf32>
    %372 = tpu.matmul %366, %371, %cst_126 {dimension_numbers = #tpu.dot_dimension_numbers<[1], [0], [0], [1], [0, 0, 1, 1], [], []>} : vector<2x32xf32>, vector<32x96xf32>, vector<2x96xf32> -> vector<2x96xf32>
    %373 = arith.addf %372, %301 : vector<2x96xf32>
    %374 = arith.index_cast %c2_i32_123 : i32 to index
    %c0_127 = arith.constant 0 : index
    %c0_128 = arith.constant 0 : index
    %375 = vector.load %arg23[%374, %c0_127, %c0_128] : memref<8x2x96xf32, #tpu.memory_space<vmem>>, vector<1x2x96xf32>
    %376 = vector.shape_cast %375 : vector<1x2x96xf32> to vector<2x96xf32>
    %377 = vector.extract_strided_slice %376 {offsets = [0, 0], sizes = [2, 32], strides = [1, 1]} : vector<2x96xf32> to vector<2x32xf32>
    %378 = vector.extract_strided_slice %373 {offsets = [0, 0], sizes = [2, 32], strides = [1, 1]} : vector<2x96xf32> to vector<2x32xf32>
    %379 = arith.addf %377, %378 : vector<2x32xf32>
    %380 = arith.negf %379 : vector<2x32xf32>
    %381 = math.exp %380 : vector<2x32xf32>
    %cst_129 = arith.constant 1.000000e+00 : f32
    %382 = vector.broadcast %cst_129 : f32 to vector<2x32xf32>
    %383 = arith.addf %382, %381 : vector<2x32xf32>
    %384 = arith.divf %382, %383 : vector<2x32xf32>
    %385 = vector.extract_strided_slice %376 {offsets = [0, 32], sizes = [2, 32], strides = [1, 1]} : vector<2x96xf32> to vector<2x32xf32>
    %386 = vector.extract_strided_slice %373 {offsets = [0, 32], sizes = [2, 32], strides = [1, 1]} : vector<2x96xf32> to vector<2x32xf32>
    %387 = arith.addf %385, %386 : vector<2x32xf32>
    %388 = arith.negf %387 : vector<2x32xf32>
    %389 = math.exp %388 : vector<2x32xf32>
    %cst_130 = arith.constant 1.000000e+00 : f32
    %390 = vector.broadcast %cst_130 : f32 to vector<2x32xf32>
    %391 = arith.addf %390, %389 : vector<2x32xf32>
    %392 = arith.divf %390, %391 : vector<2x32xf32>
    %393 = vector.extract_strided_slice %376 {offsets = [0, 64], sizes = [2, 32], strides = [1, 1]} : vector<2x96xf32> to vector<2x32xf32>
    %394 = vector.extract_strided_slice %373 {offsets = [0, 64], sizes = [2, 32], strides = [1, 1]} : vector<2x96xf32> to vector<2x32xf32>
    %395 = arith.mulf %384, %394 : vector<2x32xf32>
    %396 = arith.addf %393, %395 : vector<2x32xf32>
    %397 = math.tanh %396 : vector<2x32xf32>
    %398 = arith.subf %366, %397 : vector<2x32xf32>
    %399 = arith.mulf %392, %398 : vector<2x32xf32>
    %400 = arith.addf %397, %399 : vector<2x32xf32>
    %401 = arith.index_cast %c2_i32_123 : i32 to index
    %c0_131 = arith.constant 0 : index
    %c0_132 = arith.constant 0 : index
    %402 = vector.load %arg24[%401, %c0_131, %c0_132] : memref<8x2x32xf32, #tpu.memory_space<vmem>>, vector<1x2x32xf32>
    %403 = vector.shape_cast %402 : vector<1x2x32xf32> to vector<2x32xf32>
    %404 = vector.shape_cast %400 : vector<2x32xf32> to vector<1x2x32xf32>
    tpu.vector_store %arg24[%401, %c0_131, %c0_132], %404 {strides = array<i32>} : memref<8x2x32xf32, #tpu.memory_space<vmem>>, vector<1x2x32xf32>,
    %c3_i32_133 = arith.constant 3 : i32
    %c0_134 = arith.constant 0 : index
    %c0_135 = arith.constant 0 : index
    %405 = vector.load %arg9[%c0_134, %c0_135] : memref<32x96xf32, #tpu.memory_space<vmem>>, vector<32x96xf32>
    %cst_136 = arith.constant dense<0.000000e+00> : vector<2x96xf32>
    %406 = tpu.matmul %400, %405, %cst_136 {dimension_numbers = #tpu.dot_dimension_numbers<[1], [0], [0], [1], [0, 0, 1, 1], [], []>} : vector<2x32xf32>, vector<32x96xf32>, vector<2x96xf32> -> vector<2x96xf32>
    %407 = arith.addf %406, %301 : vector<2x96xf32>
    %408 = arith.index_cast %c3_i32_133 : i32 to index
    %c0_137 = arith.constant 0 : index
    %c0_138 = arith.constant 0 : index
    %409 = vector.load %arg23[%408, %c0_137, %c0_138] : memref<8x2x96xf32, #tpu.memory_space<vmem>>, vector<1x2x96xf32>
    %410 = vector.shape_cast %409 : vector<1x2x96xf32> to vector<2x96xf32>
    %411 = vector.extract_strided_slice %410 {offsets = [0, 0], sizes = [2, 32], strides = [1, 1]} : vector<2x96xf32> to vector<2x32xf32>
    %412 = vector.extract_strided_slice %407 {offsets = [0, 0], sizes = [2, 32], strides = [1, 1]} : vector<2x96xf32> to vector<2x32xf32>
    %413 = arith.addf %411, %412 : vector<2x32xf32>
    %414 = arith.negf %413 : vector<2x32xf32>
    %415 = math.exp %414 : vector<2x32xf32>
    %cst_139 = arith.constant 1.000000e+00 : f32
    %416 = vector.broadcast %cst_139 : f32 to vector<2x32xf32>
    %417 = arith.addf %416, %415 : vector<2x32xf32>
    %418 = arith.divf %416, %417 : vector<2x32xf32>
    %419 = vector.extract_strided_slice %410 {offsets = [0, 32], sizes = [2, 32], strides = [1, 1]} : vector<2x96xf32> to vector<2x32xf32>
    %420 = vector.extract_strided_slice %407 {offsets = [0, 32], sizes = [2, 32], strides = [1, 1]} : vector<2x96xf32> to vector<2x32xf32>
    %421 = arith.addf %419, %420 : vector<2x32xf32>
    %422 = arith.negf %421 : vector<2x32xf32>
    %423 = math.exp %422 : vector<2x32xf32>
    %cst_140 = arith.constant 1.000000e+00 : f32
    %424 = vector.broadcast %cst_140 : f32 to vector<2x32xf32>
    %425 = arith.addf %424, %423 : vector<2x32xf32>
    %426 = arith.divf %424, %425 : vector<2x32xf32>
    %427 = vector.extract_strided_slice %410 {offsets = [0, 64], sizes = [2, 32], strides = [1, 1]} : vector<2x96xf32> to vector<2x32xf32>
    %428 = vector.extract_strided_slice %407 {offsets = [0, 64], sizes = [2, 32], strides = [1, 1]} : vector<2x96xf32> to vector<2x32xf32>
    %429 = arith.mulf %418, %428 : vector<2x32xf32>
    %430 = arith.addf %427, %429 : vector<2x32xf32>
    %431 = math.tanh %430 : vector<2x32xf32>
    %432 = arith.subf %400, %431 : vector<2x32xf32>
    %433 = arith.mulf %426, %432 : vector<2x32xf32>
    %434 = arith.addf %431, %433 : vector<2x32xf32>
    %435 = arith.index_cast %c3_i32_133 : i32 to index
    %c0_141 = arith.constant 0 : index
    %c0_142 = arith.constant 0 : index
    %436 = vector.load %arg24[%435, %c0_141, %c0_142] : memref<8x2x32xf32, #tpu.memory_space<vmem>>, vector<1x2x32xf32>
    %437 = vector.shape_cast %436 : vector<1x2x32xf32> to vector<2x32xf32>
    %438 = vector.shape_cast %434 : vector<2x32xf32> to vector<1x2x32xf32>
    tpu.vector_store %arg24[%435, %c0_141, %c0_142], %438 {strides = array<i32>} : memref<8x2x32xf32, #tpu.memory_space<vmem>>, vector<1x2x32xf32>,
    %c4_i32_143 = arith.constant 4 : i32
    %c0_144 = arith.constant 0 : index
    %c0_145 = arith.constant 0 : index
    %439 = vector.load %arg9[%c0_144, %c0_145] : memref<32x96xf32, #tpu.memory_space<vmem>>, vector<32x96xf32>
    %cst_146 = arith.constant dense<0.000000e+00> : vector<2x96xf32>
    %440 = tpu.matmul %434, %439, %cst_146 {dimension_numbers = #tpu.dot_dimension_numbers<[1], [0], [0], [1], [0, 0, 1, 1], [], []>} : vector<2x32xf32>, vector<32x96xf32>, vector<2x96xf32> -> vector<2x96xf32>
    %441 = arith.addf %440, %301 : vector<2x96xf32>
    %442 = arith.index_cast %c4_i32_143 : i32 to index
    %c0_147 = arith.constant 0 : index
    %c0_148 = arith.constant 0 : index
    %443 = vector.load %arg23[%442, %c0_147, %c0_148] : memref<8x2x96xf32, #tpu.memory_space<vmem>>, vector<1x2x96xf32>
    %444 = vector.shape_cast %443 : vector<1x2x96xf32> to vector<2x96xf32>
    %445 = vector.extract_strided_slice %444 {offsets = [0, 0], sizes = [2, 32], strides = [1, 1]} : vector<2x96xf32> to vector<2x32xf32>
    %446 = vector.extract_strided_slice %441 {offsets = [0, 0], sizes = [2, 32], strides = [1, 1]} : vector<2x96xf32> to vector<2x32xf32>
    %447 = arith.addf %445, %446 : vector<2x32xf32>
    %448 = arith.negf %447 : vector<2x32xf32>
    %449 = math.exp %448 : vector<2x32xf32>
    %cst_149 = arith.constant 1.000000e+00 : f32
    %450 = vector.broadcast %cst_149 : f32 to vector<2x32xf32>
    %451 = arith.addf %450, %449 : vector<2x32xf32>
    %452 = arith.divf %450, %451 : vector<2x32xf32>
    %453 = vector.extract_strided_slice %444 {offsets = [0, 32], sizes = [2, 32], strides = [1, 1]} : vector<2x96xf32> to vector<2x32xf32>
    %454 = vector.extract_strided_slice %441 {offsets = [0, 32], sizes = [2, 32], strides = [1, 1]} : vector<2x96xf32> to vector<2x32xf32>
    %455 = arith.addf %453, %454 : vector<2x32xf32>
    %456 = arith.negf %455 : vector<2x32xf32>
    %457 = math.exp %456 : vector<2x32xf32>
    %cst_150 = arith.constant 1.000000e+00 : f32
    %458 = vector.broadcast %cst_150 : f32 to vector<2x32xf32>
    %459 = arith.addf %458, %457 : vector<2x32xf32>
    %460 = arith.divf %458, %459 : vector<2x32xf32>
    %461 = vector.extract_strided_slice %444 {offsets = [0, 64], sizes = [2, 32], strides = [1, 1]} : vector<2x96xf32> to vector<2x32xf32>
    %462 = vector.extract_strided_slice %441 {offsets = [0, 64], sizes = [2, 32], strides = [1, 1]} : vector<2x96xf32> to vector<2x32xf32>
    %463 = arith.mulf %452, %462 : vector<2x32xf32>
    %464 = arith.addf %461, %463 : vector<2x32xf32>
    %465 = math.tanh %464 : vector<2x32xf32>
    %466 = arith.subf %434, %465 : vector<2x32xf32>
    %467 = arith.mulf %460, %466 : vector<2x32xf32>
    %468 = arith.addf %465, %467 : vector<2x32xf32>
    %469 = arith.index_cast %c4_i32_143 : i32 to index
    %c0_151 = arith.constant 0 : index
    %c0_152 = arith.constant 0 : index
    %470 = vector.load %arg24[%469, %c0_151, %c0_152] : memref<8x2x32xf32, #tpu.memory_space<vmem>>, vector<1x2x32xf32>
    %471 = vector.shape_cast %470 : vector<1x2x32xf32> to vector<2x32xf32>
    %472 = vector.shape_cast %468 : vector<2x32xf32> to vector<1x2x32xf32>
    tpu.vector_store %arg24[%469, %c0_151, %c0_152], %472 {strides = array<i32>} : memref<8x2x32xf32, #tpu.memory_space<vmem>>, vector<1x2x32xf32>,
    %c5_i32_153 = arith.constant 5 : i32
    %c0_154 = arith.constant 0 : index
    %c0_155 = arith.constant 0 : index
    %473 = vector.load %arg9[%c0_154, %c0_155] : memref<32x96xf32, #tpu.memory_space<vmem>>, vector<32x96xf32>
    %cst_156 = arith.constant dense<0.000000e+00> : vector<2x96xf32>
    %474 = tpu.matmul %468, %473, %cst_156 {dimension_numbers = #tpu.dot_dimension_numbers<[1], [0], [0], [1], [0, 0, 1, 1], [], []>} : vector<2x32xf32>, vector<32x96xf32>, vector<2x96xf32> -> vector<2x96xf32>
    %475 = arith.addf %474, %301 : vector<2x96xf32>
    %476 = arith.index_cast %c5_i32_153 : i32 to index
    %c0_157 = arith.constant 0 : index
    %c0_158 = arith.constant 0 : index
    %477 = vector.load %arg23[%476, %c0_157, %c0_158] : memref<8x2x96xf32, #tpu.memory_space<vmem>>, vector<1x2x96xf32>
    %478 = vector.shape_cast %477 : vector<1x2x96xf32> to vector<2x96xf32>
    %479 = vector.extract_strided_slice %478 {offsets = [0, 0], sizes = [2, 32], strides = [1, 1]} : vector<2x96xf32> to vector<2x32xf32>
    %480 = vector.extract_strided_slice %475 {offsets = [0, 0], sizes = [2, 32], strides = [1, 1]} : vector<2x96xf32> to vector<2x32xf32>
    %481 = arith.addf %479, %480 : vector<2x32xf32>
    %482 = arith.negf %481 : vector<2x32xf32>
    %483 = math.exp %482 : vector<2x32xf32>
    %cst_159 = arith.constant 1.000000e+00 : f32
    %484 = vector.broadcast %cst_159 : f32 to vector<2x32xf32>
    %485 = arith.addf %484, %483 : vector<2x32xf32>
    %486 = arith.divf %484, %485 : vector<2x32xf32>
    %487 = vector.extract_strided_slice %478 {offsets = [0, 32], sizes = [2, 32], strides = [1, 1]} : vector<2x96xf32> to vector<2x32xf32>
    %488 = vector.extract_strided_slice %475 {offsets = [0, 32], sizes = [2, 32], strides = [1, 1]} : vector<2x96xf32> to vector<2x32xf32>
    %489 = arith.addf %487, %488 : vector<2x32xf32>
    %490 = arith.negf %489 : vector<2x32xf32>
    %491 = math.exp %490 : vector<2x32xf32>
    %cst_160 = arith.constant 1.000000e+00 : f32
    %492 = vector.broadcast %cst_160 : f32 to vector<2x32xf32>
    %493 = arith.addf %492, %491 : vector<2x32xf32>
    %494 = arith.divf %492, %493 : vector<2x32xf32>
    %495 = vector.extract_strided_slice %478 {offsets = [0, 64], sizes = [2, 32], strides = [1, 1]} : vector<2x96xf32> to vector<2x32xf32>
    %496 = vector.extract_strided_slice %475 {offsets = [0, 64], sizes = [2, 32], strides = [1, 1]} : vector<2x96xf32> to vector<2x32xf32>
    %497 = arith.mulf %486, %496 : vector<2x32xf32>
    %498 = arith.addf %495, %497 : vector<2x32xf32>
    %499 = math.tanh %498 : vector<2x32xf32>
    %500 = arith.subf %468, %499 : vector<2x32xf32>
    %501 = arith.mulf %494, %500 : vector<2x32xf32>
    %502 = arith.addf %499, %501 : vector<2x32xf32>
    %503 = arith.index_cast %c5_i32_153 : i32 to index
    %c0_161 = arith.constant 0 : index
    %c0_162 = arith.constant 0 : index
    %504 = vector.load %arg24[%503, %c0_161, %c0_162] : memref<8x2x32xf32, #tpu.memory_space<vmem>>, vector<1x2x32xf32>
    %505 = vector.shape_cast %504 : vector<1x2x32xf32> to vector<2x32xf32>
    %506 = vector.shape_cast %502 : vector<2x32xf32> to vector<1x2x32xf32>
    tpu.vector_store %arg24[%503, %c0_161, %c0_162], %506 {strides = array<i32>} : memref<8x2x32xf32, #tpu.memory_space<vmem>>, vector<1x2x32xf32>,
    %c6_i32_163 = arith.constant 6 : i32
    %c0_164 = arith.constant 0 : index
    %c0_165 = arith.constant 0 : index
    %507 = vector.load %arg9[%c0_164, %c0_165] : memref<32x96xf32, #tpu.memory_space<vmem>>, vector<32x96xf32>
    %cst_166 = arith.constant dense<0.000000e+00> : vector<2x96xf32>
    %508 = tpu.matmul %502, %507, %cst_166 {dimension_numbers = #tpu.dot_dimension_numbers<[1], [0], [0], [1], [0, 0, 1, 1], [], []>} : vector<2x32xf32>, vector<32x96xf32>, vector<2x96xf32> -> vector<2x96xf32>
    %509 = arith.addf %508, %301 : vector<2x96xf32>
    %510 = arith.index_cast %c6_i32_163 : i32 to index
    %c0_167 = arith.constant 0 : index
    %c0_168 = arith.constant 0 : index
    %511 = vector.load %arg23[%510, %c0_167, %c0_168] : memref<8x2x96xf32, #tpu.memory_space<vmem>>, vector<1x2x96xf32>
    %512 = vector.shape_cast %511 : vector<1x2x96xf32> to vector<2x96xf32>
    %513 = vector.extract_strided_slice %512 {offsets = [0, 0], sizes = [2, 32], strides = [1, 1]} : vector<2x96xf32> to vector<2x32xf32>
    %514 = vector.extract_strided_slice %509 {offsets = [0, 0], sizes = [2, 32], strides = [1, 1]} : vector<2x96xf32> to vector<2x32xf32>
    %515 = arith.addf %513, %514 : vector<2x32xf32>
    %516 = arith.negf %515 : vector<2x32xf32>
    %517 = math.exp %516 : vector<2x32xf32>
    %cst_169 = arith.constant 1.000000e+00 : f32
    %518 = vector.broadcast %cst_169 : f32 to vector<2x32xf32>
    %519 = arith.addf %518, %517 : vector<2x32xf32>
    %520 = arith.divf %518, %519 : vector<2x32xf32>
    %521 = vector.extract_strided_slice %512 {offsets = [0, 32], sizes = [2, 32], strides = [1, 1]} : vector<2x96xf32> to vector<2x32xf32>
    %522 = vector.extract_strided_slice %509 {offsets = [0, 32], sizes = [2, 32], strides = [1, 1]} : vector<2x96xf32> to vector<2x32xf32>
    %523 = arith.addf %521, %522 : vector<2x32xf32>
    %524 = arith.negf %523 : vector<2x32xf32>
    %525 = math.exp %524 : vector<2x32xf32>
    %cst_170 = arith.constant 1.000000e+00 : f32
    %526 = vector.broadcast %cst_170 : f32 to vector<2x32xf32>
    %527 = arith.addf %526, %525 : vector<2x32xf32>
    %528 = arith.divf %526, %527 : vector<2x32xf32>
    %529 = vector.extract_strided_slice %512 {offsets = [0, 64], sizes = [2, 32], strides = [1, 1]} : vector<2x96xf32> to vector<2x32xf32>
    %530 = vector.extract_strided_slice %509 {offsets = [0, 64], sizes = [2, 32], strides = [1, 1]} : vector<2x96xf32> to vector<2x32xf32>
    %531 = arith.mulf %520, %530 : vector<2x32xf32>
    %532 = arith.addf %529, %531 : vector<2x32xf32>
    %533 = math.tanh %532 : vector<2x32xf32>
    %534 = arith.subf %502, %533 : vector<2x32xf32>
    %535 = arith.mulf %528, %534 : vector<2x32xf32>
    %536 = arith.addf %533, %535 : vector<2x32xf32>
    %537 = arith.index_cast %c6_i32_163 : i32 to index
    %c0_171 = arith.constant 0 : index
    %c0_172 = arith.constant 0 : index
    %538 = vector.load %arg24[%537, %c0_171, %c0_172] : memref<8x2x32xf32, #tpu.memory_space<vmem>>, vector<1x2x32xf32>
    %539 = vector.shape_cast %538 : vector<1x2x32xf32> to vector<2x32xf32>
    %540 = vector.shape_cast %536 : vector<2x32xf32> to vector<1x2x32xf32>
    tpu.vector_store %arg24[%537, %c0_171, %c0_172], %540 {strides = array<i32>} : memref<8x2x32xf32, #tpu.memory_space<vmem>>, vector<1x2x32xf32>,
    %c7_i32_173 = arith.constant 7 : i32
    %c0_174 = arith.constant 0 : index
    %c0_175 = arith.constant 0 : index
    %541 = vector.load %arg9[%c0_174, %c0_175] : memref<32x96xf32, #tpu.memory_space<vmem>>, vector<32x96xf32>
    %cst_176 = arith.constant dense<0.000000e+00> : vector<2x96xf32>
    %542 = tpu.matmul %536, %541, %cst_176 {dimension_numbers = #tpu.dot_dimension_numbers<[1], [0], [0], [1], [0, 0, 1, 1], [], []>} : vector<2x32xf32>, vector<32x96xf32>, vector<2x96xf32> -> vector<2x96xf32>
    %543 = arith.addf %542, %301 : vector<2x96xf32>
    %544 = arith.index_cast %c7_i32_173 : i32 to index
    %c0_177 = arith.constant 0 : index
    %c0_178 = arith.constant 0 : index
    %545 = vector.load %arg23[%544, %c0_177, %c0_178] : memref<8x2x96xf32, #tpu.memory_space<vmem>>, vector<1x2x96xf32>
    %546 = vector.shape_cast %545 : vector<1x2x96xf32> to vector<2x96xf32>
    %547 = vector.extract_strided_slice %546 {offsets = [0, 0], sizes = [2, 32], strides = [1, 1]} : vector<2x96xf32> to vector<2x32xf32>
    %548 = vector.extract_strided_slice %543 {offsets = [0, 0], sizes = [2, 32], strides = [1, 1]} : vector<2x96xf32> to vector<2x32xf32>
    %549 = arith.addf %547, %548 : vector<2x32xf32>
    %550 = arith.negf %549 : vector<2x32xf32>
    %551 = math.exp %550 : vector<2x32xf32>
    %cst_179 = arith.constant 1.000000e+00 : f32
    %552 = vector.broadcast %cst_179 : f32 to vector<2x32xf32>
    %553 = arith.addf %552, %551 : vector<2x32xf32>
    %554 = arith.divf %552, %553 : vector<2x32xf32>
    %555 = vector.extract_strided_slice %546 {offsets = [0, 32], sizes = [2, 32], strides = [1, 1]} : vector<2x96xf32> to vector<2x32xf32>
    %556 = vector.extract_strided_slice %543 {offsets = [0, 32], sizes = [2, 32], strides = [1, 1]} : vector<2x96xf32> to vector<2x32xf32>
    %557 = arith.addf %555, %556 : vector<2x32xf32>
    %558 = arith.negf %557 : vector<2x32xf32>
    %559 = math.exp %558 : vector<2x32xf32>
    %cst_180 = arith.constant 1.000000e+00 : f32
    %560 = vector.broadcast %cst_180 : f32 to vector<2x32xf32>
    %561 = arith.addf %560, %559 : vector<2x32xf32>
    %562 = arith.divf %560, %561 : vector<2x32xf32>
    %563 = vector.extract_strided_slice %546 {offsets = [0, 64], sizes = [2, 32], strides = [1, 1]} : vector<2x96xf32> to vector<2x32xf32>
    %564 = vector.extract_strided_slice %543 {offsets = [0, 64], sizes = [2, 32], strides = [1, 1]} : vector<2x96xf32> to vector<2x32xf32>
    %565 = arith.mulf %554, %564 : vector<2x32xf32>
    %566 = arith.addf %563, %565 : vector<2x32xf32>
    %567 = math.tanh %566 : vector<2x32xf32>
    %568 = arith.subf %536, %567 : vector<2x32xf32>
    %569 = arith.mulf %562, %568 : vector<2x32xf32>
    %570 = arith.addf %567, %569 : vector<2x32xf32>
    %571 = arith.index_cast %c7_i32_173 : i32 to index
    %c0_181 = arith.constant 0 : index
    %c0_182 = arith.constant 0 : index
    %572 = vector.load %arg24[%571, %c0_181, %c0_182] : memref<8x2x32xf32, #tpu.memory_space<vmem>>, vector<1x2x32xf32>
    %573 = vector.shape_cast %572 : vector<1x2x32xf32> to vector<2x32xf32>
    %574 = vector.shape_cast %570 : vector<2x32xf32> to vector<1x2x32xf32>
    tpu.vector_store %arg24[%571, %c0_181, %c0_182], %574 {strides = array<i32>} : memref<8x2x32xf32, #tpu.memory_space<vmem>>, vector<1x2x32xf32>,
    %c8_i32_183 = arith.constant 8 : i32
    %c0_184 = arith.constant 0 : index
    %c0_185 = arith.constant 0 : index
    %c0_186 = arith.constant 0 : index
    %575 = vector.load %arg24[%c0_184, %c0_185, %c0_186] : memref<8x2x32xf32, #tpu.memory_space<vmem>>, vector<8x2x32xf32>
    %576 = vector.shape_cast %575 : vector<8x2x32xf32> to vector<16x32xf32>
    %c0_187 = arith.constant 0 : index
    %c0_188 = arith.constant 0 : index
    %577 = vector.load %arg12[%c0_187, %c0_188] : memref<32x96xf32, #tpu.memory_space<vmem>>, vector<32x96xf32>
    %cst_189 = arith.constant dense<0.000000e+00> : vector<16x96xf32>
    %578 = tpu.matmul %576, %577, %cst_189 {dimension_numbers = #tpu.dot_dimension_numbers<[1], [0], [0], [1], [0, 0, 1, 1], [], []>} : vector<16x32xf32>, vector<32x96xf32>, vector<16x96xf32> -> vector<16x96xf32>
    %c0_190 = arith.constant 0 : index
    %c0_191 = arith.constant 0 : index
    %579 = vector.load %arg14[%c0_190, %c0_191] : memref<1x96xf32, #tpu.memory_space<vmem>>, vector<1x96xf32>
    %580 = vector.broadcast %579 : vector<1x96xf32> to vector<16x96xf32>
    %581 = arith.addf %578, %580 : vector<16x96xf32>
    %582 = vector.shape_cast %581 : vector<16x96xf32> to vector<8x2x96xf32>
    %c0_192 = arith.constant 0 : index
    %c0_193 = arith.constant 0 : index
    %c0_194 = arith.constant 0 : index
    %583 = vector.load %arg23[%c0_192, %c0_193, %c0_194] : memref<8x2x96xf32, #tpu.memory_space<vmem>>, vector<8x2x96xf32>
    tpu.vector_store %arg23[%c0_192, %c0_193, %c0_194], %582 {strides = array<i32>} : memref<8x2x96xf32, #tpu.memory_space<vmem>>, vector<8x2x96xf32>,
    %c0_195 = arith.constant 0 : index
    %c0_196 = arith.constant 0 : index
    %584 = vector.load %arg15[%c0_195, %c0_196] : memref<1x96xf32, #tpu.memory_space<vmem>>, vector<1x96xf32>
    %585 = vector.shape_cast %584 : vector<1x96xf32> to vector<1x96xf32>
    %586 = vector.broadcast %585 : vector<1x96xf32> to vector<2x96xf32>
    %cst_197 = arith.constant 0.000000e+00 : f32
    %587 = vector.broadcast %cst_197 : f32 to vector<2x32xf32>
    %c0_i32_198 = arith.constant 0 : i32
    %c0_199 = arith.constant 0 : index
    %c0_200 = arith.constant 0 : index
    %588 = vector.load %arg13[%c0_199, %c0_200] : memref<32x96xf32, #tpu.memory_space<vmem>>, vector<32x96xf32>
    %cst_201 = arith.constant dense<0.000000e+00> : vector<2x96xf32>
    %589 = tpu.matmul %587, %588, %cst_201 {dimension_numbers = #tpu.dot_dimension_numbers<[1], [0], [0], [1], [0, 0, 1, 1], [], []>} : vector<2x32xf32>, vector<32x96xf32>, vector<2x96xf32> -> vector<2x96xf32>
    %590 = arith.addf %589, %586 : vector<2x96xf32>
    %591 = arith.index_cast %c0_i32_198 : i32 to index
    %c0_202 = arith.constant 0 : index
    %c0_203 = arith.constant 0 : index
    %592 = vector.load %arg23[%591, %c0_202, %c0_203] : memref<8x2x96xf32, #tpu.memory_space<vmem>>, vector<1x2x96xf32>
    %593 = vector.shape_cast %592 : vector<1x2x96xf32> to vector<2x96xf32>
    %594 = vector.extract_strided_slice %593 {offsets = [0, 0], sizes = [2, 32], strides = [1, 1]} : vector<2x96xf32> to vector<2x32xf32>
    %595 = vector.extract_strided_slice %590 {offsets = [0, 0], sizes = [2, 32], strides = [1, 1]} : vector<2x96xf32> to vector<2x32xf32>
    %596 = arith.addf %594, %595 : vector<2x32xf32>
    %597 = arith.negf %596 : vector<2x32xf32>
    %598 = math.exp %597 : vector<2x32xf32>
    %cst_204 = arith.constant 1.000000e+00 : f32
    %599 = vector.broadcast %cst_204 : f32 to vector<2x32xf32>
    %600 = arith.addf %599, %598 : vector<2x32xf32>
    %601 = arith.divf %599, %600 : vector<2x32xf32>
    %602 = vector.extract_strided_slice %593 {offsets = [0, 32], sizes = [2, 32], strides = [1, 1]} : vector<2x96xf32> to vector<2x32xf32>
    %603 = vector.extract_strided_slice %590 {offsets = [0, 32], sizes = [2, 32], strides = [1, 1]} : vector<2x96xf32> to vector<2x32xf32>
    %604 = arith.addf %602, %603 : vector<2x32xf32>
    %605 = arith.negf %604 : vector<2x32xf32>
    %606 = math.exp %605 : vector<2x32xf32>
    %cst_205 = arith.constant 1.000000e+00 : f32
    %607 = vector.broadcast %cst_205 : f32 to vector<2x32xf32>
    %608 = arith.addf %607, %606 : vector<2x32xf32>
    %609 = arith.divf %607, %608 : vector<2x32xf32>
    %610 = vector.extract_strided_slice %593 {offsets = [0, 64], sizes = [2, 32], strides = [1, 1]} : vector<2x96xf32> to vector<2x32xf32>
    %611 = vector.extract_strided_slice %590 {offsets = [0, 64], sizes = [2, 32], strides = [1, 1]} : vector<2x96xf32> to vector<2x32xf32>
    %612 = arith.mulf %601, %611 : vector<2x32xf32>
    %613 = arith.addf %610, %612 : vector<2x32xf32>
    %614 = math.tanh %613 : vector<2x32xf32>
    %615 = arith.subf %587, %614 : vector<2x32xf32>
    %616 = arith.mulf %609, %615 : vector<2x32xf32>
    %617 = arith.addf %614, %616 : vector<2x32xf32>
    %618 = arith.index_cast %c0_i32_198 : i32 to index
    %c0_206 = arith.constant 0 : index
    %c0_207 = arith.constant 0 : index
    %619 = vector.load %arg24[%618, %c0_206, %c0_207] : memref<8x2x32xf32, #tpu.memory_space<vmem>>, vector<1x2x32xf32>
    %620 = vector.shape_cast %619 : vector<1x2x32xf32> to vector<2x32xf32>
    %621 = vector.shape_cast %617 : vector<2x32xf32> to vector<1x2x32xf32>
    tpu.vector_store %arg24[%618, %c0_206, %c0_207], %621 {strides = array<i32>} : memref<8x2x32xf32, #tpu.memory_space<vmem>>, vector<1x2x32xf32>,
    %c1_i32_208 = arith.constant 1 : i32
    %c0_209 = arith.constant 0 : index
    %c0_210 = arith.constant 0 : index
    %622 = vector.load %arg13[%c0_209, %c0_210] : memref<32x96xf32, #tpu.memory_space<vmem>>, vector<32x96xf32>
    %cst_211 = arith.constant dense<0.000000e+00> : vector<2x96xf32>
    %623 = tpu.matmul %617, %622, %cst_211 {dimension_numbers = #tpu.dot_dimension_numbers<[1], [0], [0], [1], [0, 0, 1, 1], [], []>} : vector<2x32xf32>, vector<32x96xf32>, vector<2x96xf32> -> vector<2x96xf32>
    %624 = arith.addf %623, %586 : vector<2x96xf32>
    %625 = arith.index_cast %c1_i32_208 : i32 to index
    %c0_212 = arith.constant 0 : index
    %c0_213 = arith.constant 0 : index
    %626 = vector.load %arg23[%625, %c0_212, %c0_213] : memref<8x2x96xf32, #tpu.memory_space<vmem>>, vector<1x2x96xf32>
    %627 = vector.shape_cast %626 : vector<1x2x96xf32> to vector<2x96xf32>
    %628 = vector.extract_strided_slice %627 {offsets = [0, 0], sizes = [2, 32], strides = [1, 1]} : vector<2x96xf32> to vector<2x32xf32>
    %629 = vector.extract_strided_slice %624 {offsets = [0, 0], sizes = [2, 32], strides = [1, 1]} : vector<2x96xf32> to vector<2x32xf32>
    %630 = arith.addf %628, %629 : vector<2x32xf32>
    %631 = arith.negf %630 : vector<2x32xf32>
    %632 = math.exp %631 : vector<2x32xf32>
    %cst_214 = arith.constant 1.000000e+00 : f32
    %633 = vector.broadcast %cst_214 : f32 to vector<2x32xf32>
    %634 = arith.addf %633, %632 : vector<2x32xf32>
    %635 = arith.divf %633, %634 : vector<2x32xf32>
    %636 = vector.extract_strided_slice %627 {offsets = [0, 32], sizes = [2, 32], strides = [1, 1]} : vector<2x96xf32> to vector<2x32xf32>
    %637 = vector.extract_strided_slice %624 {offsets = [0, 32], sizes = [2, 32], strides = [1, 1]} : vector<2x96xf32> to vector<2x32xf32>
    %638 = arith.addf %636, %637 : vector<2x32xf32>
    %639 = arith.negf %638 : vector<2x32xf32>
    %640 = math.exp %639 : vector<2x32xf32>
    %cst_215 = arith.constant 1.000000e+00 : f32
    %641 = vector.broadcast %cst_215 : f32 to vector<2x32xf32>
    %642 = arith.addf %641, %640 : vector<2x32xf32>
    %643 = arith.divf %641, %642 : vector<2x32xf32>
    %644 = vector.extract_strided_slice %627 {offsets = [0, 64], sizes = [2, 32], strides = [1, 1]} : vector<2x96xf32> to vector<2x32xf32>
    %645 = vector.extract_strided_slice %624 {offsets = [0, 64], sizes = [2, 32], strides = [1, 1]} : vector<2x96xf32> to vector<2x32xf32>
    %646 = arith.mulf %635, %645 : vector<2x32xf32>
    %647 = arith.addf %644, %646 : vector<2x32xf32>
    %648 = math.tanh %647 : vector<2x32xf32>
    %649 = arith.subf %617, %648 : vector<2x32xf32>
    %650 = arith.mulf %643, %649 : vector<2x32xf32>
    %651 = arith.addf %648, %650 : vector<2x32xf32>
    %652 = arith.index_cast %c1_i32_208 : i32 to index
    %c0_216 = arith.constant 0 : index
    %c0_217 = arith.constant 0 : index
    %653 = vector.load %arg24[%652, %c0_216, %c0_217] : memref<8x2x32xf32, #tpu.memory_space<vmem>>, vector<1x2x32xf32>
    %654 = vector.shape_cast %653 : vector<1x2x32xf32> to vector<2x32xf32>
    %655 = vector.shape_cast %651 : vector<2x32xf32> to vector<1x2x32xf32>
    tpu.vector_store %arg24[%652, %c0_216, %c0_217], %655 {strides = array<i32>} : memref<8x2x32xf32, #tpu.memory_space<vmem>>, vector<1x2x32xf32>,
    %c2_i32_218 = arith.constant 2 : i32
    %c0_219 = arith.constant 0 : index
    %c0_220 = arith.constant 0 : index
    %656 = vector.load %arg13[%c0_219, %c0_220] : memref<32x96xf32, #tpu.memory_space<vmem>>, vector<32x96xf32>
    %cst_221 = arith.constant dense<0.000000e+00> : vector<2x96xf32>
    %657 = tpu.matmul %651, %656, %cst_221 {dimension_numbers = #tpu.dot_dimension_numbers<[1], [0], [0], [1], [0, 0, 1, 1], [], []>} : vector<2x32xf32>, vector<32x96xf32>, vector<2x96xf32> -> vector<2x96xf32>
    %658 = arith.addf %657, %586 : vector<2x96xf32>
    %659 = arith.index_cast %c2_i32_218 : i32 to index
    %c0_222 = arith.constant 0 : index
    %c0_223 = arith.constant 0 : index
    %660 = vector.load %arg23[%659, %c0_222, %c0_223] : memref<8x2x96xf32, #tpu.memory_space<vmem>>, vector<1x2x96xf32>
    %661 = vector.shape_cast %660 : vector<1x2x96xf32> to vector<2x96xf32>
    %662 = vector.extract_strided_slice %661 {offsets = [0, 0], sizes = [2, 32], strides = [1, 1]} : vector<2x96xf32> to vector<2x32xf32>
    %663 = vector.extract_strided_slice %658 {offsets = [0, 0], sizes = [2, 32], strides = [1, 1]} : vector<2x96xf32> to vector<2x32xf32>
    %664 = arith.addf %662, %663 : vector<2x32xf32>
    %665 = arith.negf %664 : vector<2x32xf32>
    %666 = math.exp %665 : vector<2x32xf32>
    %cst_224 = arith.constant 1.000000e+00 : f32
    %667 = vector.broadcast %cst_224 : f32 to vector<2x32xf32>
    %668 = arith.addf %667, %666 : vector<2x32xf32>
    %669 = arith.divf %667, %668 : vector<2x32xf32>
    %670 = vector.extract_strided_slice %661 {offsets = [0, 32], sizes = [2, 32], strides = [1, 1]} : vector<2x96xf32> to vector<2x32xf32>
    %671 = vector.extract_strided_slice %658 {offsets = [0, 32], sizes = [2, 32], strides = [1, 1]} : vector<2x96xf32> to vector<2x32xf32>
    %672 = arith.addf %670, %671 : vector<2x32xf32>
    %673 = arith.negf %672 : vector<2x32xf32>
    %674 = math.exp %673 : vector<2x32xf32>
    %cst_225 = arith.constant 1.000000e+00 : f32
    %675 = vector.broadcast %cst_225 : f32 to vector<2x32xf32>
    %676 = arith.addf %675, %674 : vector<2x32xf32>
    %677 = arith.divf %675, %676 : vector<2x32xf32>
    %678 = vector.extract_strided_slice %661 {offsets = [0, 64], sizes = [2, 32], strides = [1, 1]} : vector<2x96xf32> to vector<2x32xf32>
    %679 = vector.extract_strided_slice %658 {offsets = [0, 64], sizes = [2, 32], strides = [1, 1]} : vector<2x96xf32> to vector<2x32xf32>
    %680 = arith.mulf %669, %679 : vector<2x32xf32>
    %681 = arith.addf %678, %680 : vector<2x32xf32>
    %682 = math.tanh %681 : vector<2x32xf32>
    %683 = arith.subf %651, %682 : vector<2x32xf32>
    %684 = arith.mulf %677, %683 : vector<2x32xf32>
    %685 = arith.addf %682, %684 : vector<2x32xf32>
    %686 = arith.index_cast %c2_i32_218 : i32 to index
    %c0_226 = arith.constant 0 : index
    %c0_227 = arith.constant 0 : index
    %687 = vector.load %arg24[%686, %c0_226, %c0_227] : memref<8x2x32xf32, #tpu.memory_space<vmem>>, vector<1x2x32xf32>
    %688 = vector.shape_cast %687 : vector<1x2x32xf32> to vector<2x32xf32>
    %689 = vector.shape_cast %685 : vector<2x32xf32> to vector<1x2x32xf32>
    tpu.vector_store %arg24[%686, %c0_226, %c0_227], %689 {strides = array<i32>} : memref<8x2x32xf32, #tpu.memory_space<vmem>>, vector<1x2x32xf32>,
    %c3_i32_228 = arith.constant 3 : i32
    %c0_229 = arith.constant 0 : index
    %c0_230 = arith.constant 0 : index
    %690 = vector.load %arg13[%c0_229, %c0_230] : memref<32x96xf32, #tpu.memory_space<vmem>>, vector<32x96xf32>
    %cst_231 = arith.constant dense<0.000000e+00> : vector<2x96xf32>
    %691 = tpu.matmul %685, %690, %cst_231 {dimension_numbers = #tpu.dot_dimension_numbers<[1], [0], [0], [1], [0, 0, 1, 1], [], []>} : vector<2x32xf32>, vector<32x96xf32>, vector<2x96xf32> -> vector<2x96xf32>
    %692 = arith.addf %691, %586 : vector<2x96xf32>
    %693 = arith.index_cast %c3_i32_228 : i32 to index
    %c0_232 = arith.constant 0 : index
    %c0_233 = arith.constant 0 : index
    %694 = vector.load %arg23[%693, %c0_232, %c0_233] : memref<8x2x96xf32, #tpu.memory_space<vmem>>, vector<1x2x96xf32>
    %695 = vector.shape_cast %694 : vector<1x2x96xf32> to vector<2x96xf32>
    %696 = vector.extract_strided_slice %695 {offsets = [0, 0], sizes = [2, 32], strides = [1, 1]} : vector<2x96xf32> to vector<2x32xf32>
    %697 = vector.extract_strided_slice %692 {offsets = [0, 0], sizes = [2, 32], strides = [1, 1]} : vector<2x96xf32> to vector<2x32xf32>
    %698 = arith.addf %696, %697 : vector<2x32xf32>
    %699 = arith.negf %698 : vector<2x32xf32>
    %700 = math.exp %699 : vector<2x32xf32>
    %cst_234 = arith.constant 1.000000e+00 : f32
    %701 = vector.broadcast %cst_234 : f32 to vector<2x32xf32>
    %702 = arith.addf %701, %700 : vector<2x32xf32>
    %703 = arith.divf %701, %702 : vector<2x32xf32>
    %704 = vector.extract_strided_slice %695 {offsets = [0, 32], sizes = [2, 32], strides = [1, 1]} : vector<2x96xf32> to vector<2x32xf32>
    %705 = vector.extract_strided_slice %692 {offsets = [0, 32], sizes = [2, 32], strides = [1, 1]} : vector<2x96xf32> to vector<2x32xf32>
    %706 = arith.addf %704, %705 : vector<2x32xf32>
    %707 = arith.negf %706 : vector<2x32xf32>
    %708 = math.exp %707 : vector<2x32xf32>
    %cst_235 = arith.constant 1.000000e+00 : f32
    %709 = vector.broadcast %cst_235 : f32 to vector<2x32xf32>
    %710 = arith.addf %709, %708 : vector<2x32xf32>
    %711 = arith.divf %709, %710 : vector<2x32xf32>
    %712 = vector.extract_strided_slice %695 {offsets = [0, 64], sizes = [2, 32], strides = [1, 1]} : vector<2x96xf32> to vector<2x32xf32>
    %713 = vector.extract_strided_slice %692 {offsets = [0, 64], sizes = [2, 32], strides = [1, 1]} : vector<2x96xf32> to vector<2x32xf32>
    %714 = arith.mulf %703, %713 : vector<2x32xf32>
    %715 = arith.addf %712, %714 : vector<2x32xf32>
    %716 = math.tanh %715 : vector<2x32xf32>
    %717 = arith.subf %685, %716 : vector<2x32xf32>
    %718 = arith.mulf %711, %717 : vector<2x32xf32>
    %719 = arith.addf %716, %718 : vector<2x32xf32>
    %720 = arith.index_cast %c3_i32_228 : i32 to index
    %c0_236 = arith.constant 0 : index
    %c0_237 = arith.constant 0 : index
    %721 = vector.load %arg24[%720, %c0_236, %c0_237] : memref<8x2x32xf32, #tpu.memory_space<vmem>>, vector<1x2x32xf32>
    %722 = vector.shape_cast %721 : vector<1x2x32xf32> to vector<2x32xf32>
    %723 = vector.shape_cast %719 : vector<2x32xf32> to vector<1x2x32xf32>
    tpu.vector_store %arg24[%720, %c0_236, %c0_237], %723 {strides = array<i32>} : memref<8x2x32xf32, #tpu.memory_space<vmem>>, vector<1x2x32xf32>,
    %c4_i32_238 = arith.constant 4 : i32
    %c0_239 = arith.constant 0 : index
    %c0_240 = arith.constant 0 : index
    %724 = vector.load %arg13[%c0_239, %c0_240] : memref<32x96xf32, #tpu.memory_space<vmem>>, vector<32x96xf32>
    %cst_241 = arith.constant dense<0.000000e+00> : vector<2x96xf32>
    %725 = tpu.matmul %719, %724, %cst_241 {dimension_numbers = #tpu.dot_dimension_numbers<[1], [0], [0], [1], [0, 0, 1, 1], [], []>} : vector<2x32xf32>, vector<32x96xf32>, vector<2x96xf32> -> vector<2x96xf32>
    %726 = arith.addf %725, %586 : vector<2x96xf32>
    %727 = arith.index_cast %c4_i32_238 : i32 to index
    %c0_242 = arith.constant 0 : index
    %c0_243 = arith.constant 0 : index
    %728 = vector.load %arg23[%727, %c0_242, %c0_243] : memref<8x2x96xf32, #tpu.memory_space<vmem>>, vector<1x2x96xf32>
    %729 = vector.shape_cast %728 : vector<1x2x96xf32> to vector<2x96xf32>
    %730 = vector.extract_strided_slice %729 {offsets = [0, 0], sizes = [2, 32], strides = [1, 1]} : vector<2x96xf32> to vector<2x32xf32>
    %731 = vector.extract_strided_slice %726 {offsets = [0, 0], sizes = [2, 32], strides = [1, 1]} : vector<2x96xf32> to vector<2x32xf32>
    %732 = arith.addf %730, %731 : vector<2x32xf32>
    %733 = arith.negf %732 : vector<2x32xf32>
    %734 = math.exp %733 : vector<2x32xf32>
    %cst_244 = arith.constant 1.000000e+00 : f32
    %735 = vector.broadcast %cst_244 : f32 to vector<2x32xf32>
    %736 = arith.addf %735, %734 : vector<2x32xf32>
    %737 = arith.divf %735, %736 : vector<2x32xf32>
    %738 = vector.extract_strided_slice %729 {offsets = [0, 32], sizes = [2, 32], strides = [1, 1]} : vector<2x96xf32> to vector<2x32xf32>
    %739 = vector.extract_strided_slice %726 {offsets = [0, 32], sizes = [2, 32], strides = [1, 1]} : vector<2x96xf32> to vector<2x32xf32>
    %740 = arith.addf %738, %739 : vector<2x32xf32>
    %741 = arith.negf %740 : vector<2x32xf32>
    %742 = math.exp %741 : vector<2x32xf32>
    %cst_245 = arith.constant 1.000000e+00 : f32
    %743 = vector.broadcast %cst_245 : f32 to vector<2x32xf32>
    %744 = arith.addf %743, %742 : vector<2x32xf32>
    %745 = arith.divf %743, %744 : vector<2x32xf32>
    %746 = vector.extract_strided_slice %729 {offsets = [0, 64], sizes = [2, 32], strides = [1, 1]} : vector<2x96xf32> to vector<2x32xf32>
    %747 = vector.extract_strided_slice %726 {offsets = [0, 64], sizes = [2, 32], strides = [1, 1]} : vector<2x96xf32> to vector<2x32xf32>
    %748 = arith.mulf %737, %747 : vector<2x32xf32>
    %749 = arith.addf %746, %748 : vector<2x32xf32>
    %750 = math.tanh %749 : vector<2x32xf32>
    %751 = arith.subf %719, %750 : vector<2x32xf32>
    %752 = arith.mulf %745, %751 : vector<2x32xf32>
    %753 = arith.addf %750, %752 : vector<2x32xf32>
    %754 = arith.index_cast %c4_i32_238 : i32 to index
    %c0_246 = arith.constant 0 : index
    %c0_247 = arith.constant 0 : index
    %755 = vector.load %arg24[%754, %c0_246, %c0_247] : memref<8x2x32xf32, #tpu.memory_space<vmem>>, vector<1x2x32xf32>
    %756 = vector.shape_cast %755 : vector<1x2x32xf32> to vector<2x32xf32>
    %757 = vector.shape_cast %753 : vector<2x32xf32> to vector<1x2x32xf32>
    tpu.vector_store %arg24[%754, %c0_246, %c0_247], %757 {strides = array<i32>} : memref<8x2x32xf32, #tpu.memory_space<vmem>>, vector<1x2x32xf32>,
    %c5_i32_248 = arith.constant 5 : i32
    %c0_249 = arith.constant 0 : index
    %c0_250 = arith.constant 0 : index
    %758 = vector.load %arg13[%c0_249, %c0_250] : memref<32x96xf32, #tpu.memory_space<vmem>>, vector<32x96xf32>
    %cst_251 = arith.constant dense<0.000000e+00> : vector<2x96xf32>
    %759 = tpu.matmul %753, %758, %cst_251 {dimension_numbers = #tpu.dot_dimension_numbers<[1], [0], [0], [1], [0, 0, 1, 1], [], []>} : vector<2x32xf32>, vector<32x96xf32>, vector<2x96xf32> -> vector<2x96xf32>
    %760 = arith.addf %759, %586 : vector<2x96xf32>
    %761 = arith.index_cast %c5_i32_248 : i32 to index
    %c0_252 = arith.constant 0 : index
    %c0_253 = arith.constant 0 : index
    %762 = vector.load %arg23[%761, %c0_252, %c0_253] : memref<8x2x96xf32, #tpu.memory_space<vmem>>, vector<1x2x96xf32>
    %763 = vector.shape_cast %762 : vector<1x2x96xf32> to vector<2x96xf32>
    %764 = vector.extract_strided_slice %763 {offsets = [0, 0], sizes = [2, 32], strides = [1, 1]} : vector<2x96xf32> to vector<2x32xf32>
    %765 = vector.extract_strided_slice %760 {offsets = [0, 0], sizes = [2, 32], strides = [1, 1]} : vector<2x96xf32> to vector<2x32xf32>
    %766 = arith.addf %764, %765 : vector<2x32xf32>
    %767 = arith.negf %766 : vector<2x32xf32>
    %768 = math.exp %767 : vector<2x32xf32>
    %cst_254 = arith.constant 1.000000e+00 : f32
    %769 = vector.broadcast %cst_254 : f32 to vector<2x32xf32>
    %770 = arith.addf %769, %768 : vector<2x32xf32>
    %771 = arith.divf %769, %770 : vector<2x32xf32>
    %772 = vector.extract_strided_slice %763 {offsets = [0, 32], sizes = [2, 32], strides = [1, 1]} : vector<2x96xf32> to vector<2x32xf32>
    %773 = vector.extract_strided_slice %760 {offsets = [0, 32], sizes = [2, 32], strides = [1, 1]} : vector<2x96xf32> to vector<2x32xf32>
    %774 = arith.addf %772, %773 : vector<2x32xf32>
    %775 = arith.negf %774 : vector<2x32xf32>
    %776 = math.exp %775 : vector<2x32xf32>
    %cst_255 = arith.constant 1.000000e+00 : f32
    %777 = vector.broadcast %cst_255 : f32 to vector<2x32xf32>
    %778 = arith.addf %777, %776 : vector<2x32xf32>
    %779 = arith.divf %777, %778 : vector<2x32xf32>
    %780 = vector.extract_strided_slice %763 {offsets = [0, 64], sizes = [2, 32], strides = [1, 1]} : vector<2x96xf32> to vector<2x32xf32>
    %781 = vector.extract_strided_slice %760 {offsets = [0, 64], sizes = [2, 32], strides = [1, 1]} : vector<2x96xf32> to vector<2x32xf32>
    %782 = arith.mulf %771, %781 : vector<2x32xf32>
    %783 = arith.addf %780, %782 : vector<2x32xf32>
    %784 = math.tanh %783 : vector<2x32xf32>
    %785 = arith.subf %753, %784 : vector<2x32xf32>
    %786 = arith.mulf %779, %785 : vector<2x32xf32>
    %787 = arith.addf %784, %786 : vector<2x32xf32>
    %788 = arith.index_cast %c5_i32_248 : i32 to index
    %c0_256 = arith.constant 0 : index
    %c0_257 = arith.constant 0 : index
    %789 = vector.load %arg24[%788, %c0_256, %c0_257] : memref<8x2x32xf32, #tpu.memory_space<vmem>>, vector<1x2x32xf32>
    %790 = vector.shape_cast %789 : vector<1x2x32xf32> to vector<2x32xf32>
    %791 = vector.shape_cast %787 : vector<2x32xf32> to vector<1x2x32xf32>
    tpu.vector_store %arg24[%788, %c0_256, %c0_257], %791 {strides = array<i32>} : memref<8x2x32xf32, #tpu.memory_space<vmem>>, vector<1x2x32xf32>,
    %c6_i32_258 = arith.constant 6 : i32
    %c0_259 = arith.constant 0 : index
    %c0_260 = arith.constant 0 : index
    %792 = vector.load %arg13[%c0_259, %c0_260] : memref<32x96xf32, #tpu.memory_space<vmem>>, vector<32x96xf32>
    %cst_261 = arith.constant dense<0.000000e+00> : vector<2x96xf32>
    %793 = tpu.matmul %787, %792, %cst_261 {dimension_numbers = #tpu.dot_dimension_numbers<[1], [0], [0], [1], [0, 0, 1, 1], [], []>} : vector<2x32xf32>, vector<32x96xf32>, vector<2x96xf32> -> vector<2x96xf32>
    %794 = arith.addf %793, %586 : vector<2x96xf32>
    %795 = arith.index_cast %c6_i32_258 : i32 to index
    %c0_262 = arith.constant 0 : index
    %c0_263 = arith.constant 0 : index
    %796 = vector.load %arg23[%795, %c0_262, %c0_263] : memref<8x2x96xf32, #tpu.memory_space<vmem>>, vector<1x2x96xf32>
    %797 = vector.shape_cast %796 : vector<1x2x96xf32> to vector<2x96xf32>
    %798 = vector.extract_strided_slice %797 {offsets = [0, 0], sizes = [2, 32], strides = [1, 1]} : vector<2x96xf32> to vector<2x32xf32>
    %799 = vector.extract_strided_slice %794 {offsets = [0, 0], sizes = [2, 32], strides = [1, 1]} : vector<2x96xf32> to vector<2x32xf32>
    %800 = arith.addf %798, %799 : vector<2x32xf32>
    %801 = arith.negf %800 : vector<2x32xf32>
    %802 = math.exp %801 : vector<2x32xf32>
    %cst_264 = arith.constant 1.000000e+00 : f32
    %803 = vector.broadcast %cst_264 : f32 to vector<2x32xf32>
    %804 = arith.addf %803, %802 : vector<2x32xf32>
    %805 = arith.divf %803, %804 : vector<2x32xf32>
    %806 = vector.extract_strided_slice %797 {offsets = [0, 32], sizes = [2, 32], strides = [1, 1]} : vector<2x96xf32> to vector<2x32xf32>
    %807 = vector.extract_strided_slice %794 {offsets = [0, 32], sizes = [2, 32], strides = [1, 1]} : vector<2x96xf32> to vector<2x32xf32>
    %808 = arith.addf %806, %807 : vector<2x32xf32>
    %809 = arith.negf %808 : vector<2x32xf32>
    %810 = math.exp %809 : vector<2x32xf32>
    %cst_265 = arith.constant 1.000000e+00 : f32
    %811 = vector.broadcast %cst_265 : f32 to vector<2x32xf32>
    %812 = arith.addf %811, %810 : vector<2x32xf32>
    %813 = arith.divf %811, %812 : vector<2x32xf32>
    %814 = vector.extract_strided_slice %797 {offsets = [0, 64], sizes = [2, 32], strides = [1, 1]} : vector<2x96xf32> to vector<2x32xf32>
    %815 = vector.extract_strided_slice %794 {offsets = [0, 64], sizes = [2, 32], strides = [1, 1]} : vector<2x96xf32> to vector<2x32xf32>
    %816 = arith.mulf %805, %815 : vector<2x32xf32>
    %817 = arith.addf %814, %816 : vector<2x32xf32>
    %818 = math.tanh %817 : vector<2x32xf32>
    %819 = arith.subf %787, %818 : vector<2x32xf32>
    %820 = arith.mulf %813, %819 : vector<2x32xf32>
    %821 = arith.addf %818, %820 : vector<2x32xf32>
    %822 = arith.index_cast %c6_i32_258 : i32 to index
    %c0_266 = arith.constant 0 : index
    %c0_267 = arith.constant 0 : index
    %823 = vector.load %arg24[%822, %c0_266, %c0_267] : memref<8x2x32xf32, #tpu.memory_space<vmem>>, vector<1x2x32xf32>
    %824 = vector.shape_cast %823 : vector<1x2x32xf32> to vector<2x32xf32>
    %825 = vector.shape_cast %821 : vector<2x32xf32> to vector<1x2x32xf32>
    tpu.vector_store %arg24[%822, %c0_266, %c0_267], %825 {strides = array<i32>} : memref<8x2x32xf32, #tpu.memory_space<vmem>>, vector<1x2x32xf32>,
    %c7_i32_268 = arith.constant 7 : i32
    %c0_269 = arith.constant 0 : index
    %c0_270 = arith.constant 0 : index
    %826 = vector.load %arg13[%c0_269, %c0_270] : memref<32x96xf32, #tpu.memory_space<vmem>>, vector<32x96xf32>
    %cst_271 = arith.constant dense<0.000000e+00> : vector<2x96xf32>
    %827 = tpu.matmul %821, %826, %cst_271 {dimension_numbers = #tpu.dot_dimension_numbers<[1], [0], [0], [1], [0, 0, 1, 1], [], []>} : vector<2x32xf32>, vector<32x96xf32>, vector<2x96xf32> -> vector<2x96xf32>
    %828 = arith.addf %827, %586 : vector<2x96xf32>
    %829 = arith.index_cast %c7_i32_268 : i32 to index
    %c0_272 = arith.constant 0 : index
    %c0_273 = arith.constant 0 : index
    %830 = vector.load %arg23[%829, %c0_272, %c0_273] : memref<8x2x96xf32, #tpu.memory_space<vmem>>, vector<1x2x96xf32>
    %831 = vector.shape_cast %830 : vector<1x2x96xf32> to vector<2x96xf32>
    %832 = vector.extract_strided_slice %831 {offsets = [0, 0], sizes = [2, 32], strides = [1, 1]} : vector<2x96xf32> to vector<2x32xf32>
    %833 = vector.extract_strided_slice %828 {offsets = [0, 0], sizes = [2, 32], strides = [1, 1]} : vector<2x96xf32> to vector<2x32xf32>
    %834 = arith.addf %832, %833 : vector<2x32xf32>
    %835 = arith.negf %834 : vector<2x32xf32>
    %836 = math.exp %835 : vector<2x32xf32>
    %cst_274 = arith.constant 1.000000e+00 : f32
    %837 = vector.broadcast %cst_274 : f32 to vector<2x32xf32>
    %838 = arith.addf %837, %836 : vector<2x32xf32>
    %839 = arith.divf %837, %838 : vector<2x32xf32>
    %840 = vector.extract_strided_slice %831 {offsets = [0, 32], sizes = [2, 32], strides = [1, 1]} : vector<2x96xf32> to vector<2x32xf32>
    %841 = vector.extract_strided_slice %828 {offsets = [0, 32], sizes = [2, 32], strides = [1, 1]} : vector<2x96xf32> to vector<2x32xf32>
    %842 = arith.addf %840, %841 : vector<2x32xf32>
    %843 = arith.negf %842 : vector<2x32xf32>
    %844 = math.exp %843 : vector<2x32xf32>
    %cst_275 = arith.constant 1.000000e+00 : f32
    %845 = vector.broadcast %cst_275 : f32 to vector<2x32xf32>
    %846 = arith.addf %845, %844 : vector<2x32xf32>
    %847 = arith.divf %845, %846 : vector<2x32xf32>
    %848 = vector.extract_strided_slice %831 {offsets = [0, 64], sizes = [2, 32], strides = [1, 1]} : vector<2x96xf32> to vector<2x32xf32>
    %849 = vector.extract_strided_slice %828 {offsets = [0, 64], sizes = [2, 32], strides = [1, 1]} : vector<2x96xf32> to vector<2x32xf32>
    %850 = arith.mulf %839, %849 : vector<2x32xf32>
    %851 = arith.addf %848, %850 : vector<2x32xf32>
    %852 = math.tanh %851 : vector<2x32xf32>
    %853 = arith.subf %821, %852 : vector<2x32xf32>
    %854 = arith.mulf %847, %853 : vector<2x32xf32>
    %855 = arith.addf %852, %854 : vector<2x32xf32>
    %856 = arith.index_cast %c7_i32_268 : i32 to index
    %c0_276 = arith.constant 0 : index
    %c0_277 = arith.constant 0 : index
    %857 = vector.load %arg24[%856, %c0_276, %c0_277] : memref<8x2x32xf32, #tpu.memory_space<vmem>>, vector<1x2x32xf32>
    %858 = vector.shape_cast %857 : vector<1x2x32xf32> to vector<2x32xf32>
    %859 = vector.shape_cast %855 : vector<2x32xf32> to vector<1x2x32xf32>
    tpu.vector_store %arg24[%856, %c0_276, %c0_277], %859 {strides = array<i32>} : memref<8x2x32xf32, #tpu.memory_space<vmem>>, vector<1x2x32xf32>,
    %c8_i32_278 = arith.constant 8 : i32
    %c0_279 = arith.constant 0 : index
    %c0_280 = arith.constant 0 : index
    %c0_281 = arith.constant 0 : index
    %860 = vector.load %arg24[%c0_279, %c0_280, %c0_281] : memref<8x2x32xf32, #tpu.memory_space<vmem>>, vector<8x2x32xf32>
    %861 = vector.shape_cast %860 : vector<8x2x32xf32> to vector<16x32xf32>
    %c0_282 = arith.constant 0 : index
    %c0_283 = arith.constant 0 : index
    %862 = vector.load %arg16[%c0_282, %c0_283] : memref<32x32xf32, #tpu.memory_space<vmem>>, vector<32x32xf32>
    %cst_284 = arith.constant dense<0.000000e+00> : vector<16x32xf32>
    %863 = tpu.matmul %861, %862, %cst_284 {dimension_numbers = #tpu.dot_dimension_numbers<[1], [0], [0], [1], [0, 0, 1, 1], [], []>} : vector<16x32xf32>, vector<32x32xf32>, vector<16x32xf32> -> vector<16x32xf32>
    %c0_285 = arith.constant 0 : index
    %c0_286 = arith.constant 0 : index
    %864 = vector.load %arg17[%c0_285, %c0_286] : memref<1x32xf32, #tpu.memory_space<vmem>>, vector<1x32xf32>
    %865 = vector.broadcast %864 : vector<1x32xf32> to vector<16x32xf32>
    %866 = arith.addf %863, %865 : vector<16x32xf32>
    %cst_287 = arith.constant 0.000000e+00 : f32
    %867 = vector.broadcast %cst_287 : f32 to vector<16x32xf32>
    %868 = arith.maximumf %866, %867 : vector<16x32xf32>
    %c0_288 = arith.constant 0 : index
    %c0_289 = arith.constant 0 : index
    %869 = vector.load %arg18[%c0_288, %c0_289] : memref<32x32xf32, #tpu.memory_space<vmem>>, vector<32x32xf32>
    %cst_290 = arith.constant dense<0.000000e+00> : vector<16x32xf32>
    %870 = tpu.matmul %868, %869, %cst_290 {dimension_numbers = #tpu.dot_dimension_numbers<[1], [0], [0], [1], [0, 0, 1, 1], [], []>} : vector<16x32xf32>, vector<32x32xf32>, vector<16x32xf32> -> vector<16x32xf32>
    %c0_291 = arith.constant 0 : index
    %c0_292 = arith.constant 0 : index
    %871 = vector.load %arg19[%c0_291, %c0_292] : memref<1x32xf32, #tpu.memory_space<vmem>>, vector<1x32xf32>
    %872 = vector.broadcast %871 : vector<1x32xf32> to vector<16x32xf32>
    %873 = arith.addf %870, %872 : vector<16x32xf32>
    %cst_293 = arith.constant 0.000000e+00 : f32
    %874 = vector.broadcast %cst_293 : f32 to vector<16x32xf32>
    %875 = arith.maximumf %873, %874 : vector<16x32xf32>
    %c0_294 = arith.constant 0 : index
    %c0_295 = arith.constant 0 : index
    %876 = vector.load %arg20[%c0_294, %c0_295] : memref<32x128xf32, #tpu.memory_space<vmem>>, vector<32x128xf32>
    %cst_296 = arith.constant dense<0.000000e+00> : vector<16x128xf32>
    %877 = tpu.matmul %875, %876, %cst_296 {dimension_numbers = #tpu.dot_dimension_numbers<[1], [0], [0], [1], [0, 0, 1, 1], [], []>} : vector<16x32xf32>, vector<32x128xf32>, vector<16x128xf32> -> vector<16x128xf32>
    %c0_297 = arith.constant 0 : index
    %c0_298 = arith.constant 0 : index
    %878 = vector.load %arg21[%c0_297, %c0_298] : memref<1x128xf32, #tpu.memory_space<vmem>>, vector<1x128xf32>
    %879 = vector.broadcast %878 : vector<1x128xf32> to vector<16x128xf32>
    %880 = arith.addf %877, %879 : vector<16x128xf32>
    %881 = vector.shape_cast %880 : vector<16x128xf32> to vector<8x2x128xf32>
    %c0_299 = arith.constant 0 : index
    %c0_300 = arith.constant 0 : index
    %c0_301 = arith.constant 0 : index
    %882 = vector.load %arg22[%c0_299, %c0_300, %c0_301] : memref<8x2x128xf32, #tpu.memory_space<vmem>>, vector<8x2x128xf32>
    tpu.vector_store %arg22[%c0_299, %c0_300, %c0_301], %881 {strides = array<i32>} : memref<8x2x128xf32, #tpu.memory_space<vmem>>, vector<8x2x128xf32>,
    return
  }
  func.func @transform_0(%arg0: i32) -> (i32, i32, i32) {
    %c0_i32 = arith.constant 0 : i32
    %c0_i32_0 = arith.constant 0 : i32
    %c0_i32_1 = arith.constant 0 : i32
    return %c0_i32, %arg0, %c0_i32_0 : i32, i32, i32
  }
  func.func @transform_1(%arg0: i32) -> (i32, i32) {
    %c0_i32 = arith.constant 0 : i32
    %c0_i32_0 = arith.constant 0 : i32
    %c0_i32_1 = arith.constant 0 : i32
    return %c0_i32, %c0_i32_0 : i32, i32
  }
  func.func @transform_2(%arg0: i32) -> (i32, i32) {
    %c0_i32 = arith.constant 0 : i32
    %c0_i32_0 = arith.constant 0 : i32
    %c0_i32_1 = arith.constant 0 : i32
    return %c0_i32, %c0_i32_0 : i32, i32
  }
  func.func @transform_3(%arg0: i32) -> (i32, i32) {
    %c0_i32 = arith.constant 0 : i32
    %c0_i32_0 = arith.constant 0 : i32
    %c0_i32_1 = arith.constant 0 : i32
    return %c0_i32, %c0_i32_0 : i32, i32
  }
  func.func @transform_4(%arg0: i32) -> (i32, i32) {
    %c0_i32 = arith.constant 0 : i32
    %c0_i32_0 = arith.constant 0 : i32
    %c0_i32_1 = arith.constant 0 : i32
    return %c0_i32, %c0_i32_0 : i32, i32
  }
  func.func @transform_5(%arg0: i32) -> (i32, i32) {
    %c0_i32 = arith.constant 0 : i32
    %c0_i32_0 = arith.constant 0 : i32
    %c0_i32_1 = arith.constant 0 : i32
    return %c0_i32, %c0_i32_0 : i32, i32
  }
  func.func @transform_6(%arg0: i32) -> (i32, i32) {
    %c0_i32 = arith.constant 0 : i32
    %c0_i32_0 = arith.constant 0 : i32
    %c0_i32_1 = arith.constant 0 : i32
    return %c0_i32, %c0_i32_0 : i32, i32
  }
  func.func @transform_7(%arg0: i32) -> (i32, i32) {
    %c0_i32 = arith.constant 0 : i32
    %c0_i32_0 = arith.constant 0 : i32
    %c0_i32_1 = arith.constant 0 : i32
    return %c0_i32, %c0_i32_0 : i32, i32
  }
  func.func @transform_8(%arg0: i32) -> (i32, i32) {
    %c0_i32 = arith.constant 0 : i32
    %c0_i32_0 = arith.constant 0 : i32
    %c0_i32_1 = arith.constant 0 : i32
    return %c0_i32, %c0_i32_0 : i32, i32
  }
  func.func @transform_9(%arg0: i32) -> (i32, i32) {
    %c0_i32 = arith.constant 0 : i32
    %c0_i32_0 = arith.constant 0 : i32
    %c0_i32_1 = arith.constant 0 : i32
    return %c0_i32, %c0_i32_0 : i32, i32
  }
  func.func @transform_10(%arg0: i32) -> (i32, i32) {
    %c0_i32 = arith.constant 0 : i32
    %c0_i32_0 = arith.constant 0 : i32
    %c0_i32_1 = arith.constant 0 : i32
    return %c0_i32, %c0_i32_0 : i32, i32
  }
  func.func @transform_11(%arg0: i32) -> (i32, i32) {
    %c0_i32 = arith.constant 0 : i32
    %c0_i32_0 = arith.constant 0 : i32
    %c0_i32_1 = arith.constant 0 : i32
    return %c0_i32, %c0_i32_0 : i32, i32
  }
  func.func @transform_12(%arg0: i32) -> (i32, i32) {
    %c0_i32 = arith.constant 0 : i32
    %c0_i32_0 = arith.constant 0 : i32
    %c0_i32_1 = arith.constant 0 : i32
    return %c0_i32, %c0_i32_0 : i32, i32
  }
  func.func @transform_13(%arg0: i32) -> (i32, i32) {
    %c0_i32 = arith.constant 0 : i32
    %c0_i32_0 = arith.constant 0 : i32
    %c0_i32_1 = arith.constant 0 : i32
    return %c0_i32, %c0_i32_0 : i32, i32
  }
  func.func @transform_14(%arg0: i32) -> (i32, i32) {
    %c0_i32 = arith.constant 0 : i32
    %c0_i32_0 = arith.constant 0 : i32
    %c0_i32_1 = arith.constant 0 : i32
    return %c0_i32, %c0_i32_0 : i32, i32
  }
  func.func @transform_15(%arg0: i32) -> (i32, i32) {
    %c0_i32 = arith.constant 0 : i32
    %c0_i32_0 = arith.constant 0 : i32
    %c0_i32_1 = arith.constant 0 : i32
    return %c0_i32, %c0_i32_0 : i32, i32
  }
  func.func @transform_16(%arg0: i32) -> (i32, i32) {
    %c0_i32 = arith.constant 0 : i32
    %c0_i32_0 = arith.constant 0 : i32
    %c0_i32_1 = arith.constant 0 : i32
    return %c0_i32, %c0_i32_0 : i32, i32
  }
  func.func @transform_17(%arg0: i32) -> (i32, i32) {
    %c0_i32 = arith.constant 0 : i32
    %c0_i32_0 = arith.constant 0 : i32
    %c0_i32_1 = arith.constant 0 : i32
    return %c0_i32, %c0_i32_0 : i32, i32
  }
  func.func @transform_18(%arg0: i32) -> (i32, i32) {
    %c0_i32 = arith.constant 0 : i32
    %c0_i32_0 = arith.constant 0 : i32
    %c0_i32_1 = arith.constant 0 : i32
    return %c0_i32, %c0_i32_0 : i32, i32
  }
  func.func @transform_19(%arg0: i32) -> (i32, i32) {
    %c0_i32 = arith.constant 0 : i32
    %c0_i32_0 = arith.constant 0 : i32
    %c0_i32_1 = arith.constant 0 : i32
    return %c0_i32, %c0_i32_0 : i32, i32
  }
  func.func @transform_20(%arg0: i32) -> (i32, i32) {
    %c0_i32 = arith.constant 0 : i32
    %c0_i32_0 = arith.constant 0 : i32
    %c0_i32_1 = arith.constant 0 : i32
    return %c0_i32, %c0_i32_0 : i32, i32
  }
  func.func @transform_21(%arg0: i32) -> (i32, i32, i32) {
    %c0_i32 = arith.constant 0 : i32
    %c0_i32_0 = arith.constant 0 : i32
    %c0_i32_1 = arith.constant 0 : i32
    return %c0_i32, %arg0, %c0_i32_0 : i32, i32, i32
  }
}

</mosaic_0001>

<bundles_post_ra>
// kernel: tpu_custom_call.1
= control target key start
LH: loop header
LB: loop body
LE: loop exit
PB: predicated region body
PF: predicated region fallthrough
CT: control target
= control target key end

     0   :  { %s6263_s0 = inlined_call_operand.hbm [shape: f32[8,2,12], index: 0, kind: input, shape index: {}]   ;;  %s6264_s1 = inlined_call_operand.hbm [shape: f32[12,32], index: 1, kind: input, shape index: {}]   ;;  %s6265_s2 = inlined_call_operand.hbm [shape: f32[1,32], index: 2, kind: input, shape index: {}]   ;;  %s6266_s3 = inlined_call_operand.hbm [shape: f32[32,96], index: 3, kind: input, shape index: {}]   ;;  %s6267_s4 = inlined_call_operand.hbm [shape: f32[32,96], index: 4, kind: input, shape index: {}]   ;;  %s6268_s5 = inlined_call_operand.hbm [shape: f32[1,96], index: 5, kind: input, shape index: {}]   ;;  %s6269_s6 = inlined_call_operand.hbm [shape: f32[1,96], index: 6, kind: input, shape index: {}]   ;;  %s6270_s7 = inlined_call_operand.hbm [shape: f32[32,96], index: 7, kind: input, shape index: {}]   ;;  %s6271_s8 = inlined_call_operand.hbm [shape: f32[32,96], index: 8, kind: input, shape index: {}]   ;;  %s6272_s9 = inlined_call_operand.hbm [shape: f32[1,96], index: 9, kind: input, shape index: {}]   ;;  %s6273_s10 = inlined_call_operand.hbm [shape: f32[1,96], index: 10, kind: input, shape index: {}]   ;;  %s6274_s11 = inlined_call_operand.vmem [shape: f32[32,96], index: 11, kind: input, shape index: {}]   ;;  %s6275_s12 = inlined_call_operand.hbm [shape: f32[32,96], index: 12, kind: input, shape index: {}]   ;;  %s6276_s13 = inlined_call_operand.hbm [shape: f32[1,96], index: 13, kind: input, shape index: {}]   ;;  %s6277_s14 = inlined_call_operand.hbm [shape: f32[1,96], index: 14, kind: input, shape index: {}]   ;;  %s6278_s15 = inlined_call_operand.hbm [shape: f32[32,32], index: 15, kind: input, shape index: {}]   ;;  %s6279_s16 = inlined_call_operand.hbm [shape: f32[1,32], index: 16, kind: input, shape index: {}]   ;;  %s6280_s17 = inlined_call_operand.vmem [shape: f32[32,32], index: 17, kind: input, shape index: {}]   ;;  %s6281_s18 = inlined_call_operand.vmem [shape: f32[1,32], index: 18, kind: input, shape index: {}]   ;;  %s6282_s19 = inlined_call_operand.hbm [shape: f32[32,128], index: 19, kind: input, shape index: {}]   ;;  %s6283_s20 = inlined_call_operand.vmem [shape: f32[1,128], index: 20, kind: input, shape index: {}]   ;;  %s6284_s21 = inlined_call_operand.hbm [shape: f32[8,2,128], index: 21, kind: output, shape index: {}]  }
   0x1   :  { %6292 = sst [smem:[#allocation43_spill]] %s6263_s0 }
   0x2   :  { %6293 = sst [smem:[#allocation44_spill]] %s6264_s1 }
   0x3   :  { %6294 = sst [smem:[#allocation45_spill]] %s6265_s2 }
   0x4   :  { %6295 = sst [smem:[#allocation46_spill]] %s6266_s3 }
   0x5   :  { %6296 = sst [smem:[#allocation47_spill]] %s6267_s4 }
   0x6   :  { %6297 = sst [smem:[#allocation48_spill]] %s6268_s5 }
   0x7   :  { %6298 = sst [smem:[#allocation49_spill]] %s6281_s18 }
   0x8   :  { %6299 = sst [smem:[#allocation50_spill]] %s6283_s20 }
   0x9   :  { %6300 = sst [smem:[#allocation51_spill]] %s6284_s21 }
   0xa   :  { %26 = vsyncpa [#allocation6], 0 }
   0xb   :  { %27 = vsyncpa [#allocation9], 0 }
   0xc   :  { %28 = vsyncpa [#allocation12], 0 }
   0xd   :  { %29 = vsyncpa [#allocation15], 0 }
   0xe   :  { %30 = vsyncpa [#allocation18], 0 }
   0xf   :  { %31 = vsyncpa [#allocation21], 0 }
  0x10   :  { %32 = vsyncpa [#allocation24], 0 }
  0x11   :  { %33 = vsyncpa [#allocation27], 0 }
  0x12   :  { %34 = vsyncpa [#allocation30], 0 }
  0x13   :  { %35 = vsyncpa [#allocation7], 0  ;;  %s5416_s2 = smov [#allocation8]   ;;  %s6301_s3 = sld [smem:[#allocation44_spill]] }
  0x14   :  { %s53_s25 = sshll.u32 %s5416_s2, 4  ;;  %s54_s25 = int_to_ptr.vmem [resolvable:$true] %s53_s25 }
  0x19   :  { %s5000_s28 = scalar_lea.hbm %s6301_s3, 256 }
  0x1a   :  { %p5001_p0 = scmp.ne.s32.totalorder %s6301_s3, %s5000_s28  ;;  %p5004_p1 = scmp.lt.u32.totalorder %s5000_s28, %s6301_s3 }
  0x1c   :  { %p5006_p2 = pnand %p5004_p1, %p5001_p0 }
  0x1e   :  { %5009 = shalt.err (!%p5006_p2)
}
  0x1f   :  { %s5010_s5 = scalar_lea.vmem %s54_s25, 256  ;;  %p5015_p4 = scmp.lt.s32.totalorder %s54_s25, %s54_s25 }
  0x20   :  { %p5011_p3 = scmp.ne.s32.totalorder %s54_s25, %s5010_s5  ;;  %p5016_p5 = scmp.lt.s32.totalorder %s5010_s5, %s5010_s5 }
  0x22   :  { %p5017_p6 = por %p5016_p5, %p5015_p4 }
  0x24   :  { %p5018_p7 = pnand %p5017_p6, %p5011_p3 }
  0x26   :  { %5021 = shalt.err (!%p5018_p7)
}
  0x27   :  { %s5417_s22 = smov 128   ;;  %s5418_s23 = smov 8  }
  0x28   :  { %59 = dma.hbm_to_vmem [thread:$0]  %s6301_s3, 256, %s54_s25, [#allocation9], %s5417_s22, %s5417_s22, %s5418_s23  }
  0x29   :  { %s5419_s2 = smov [#allocation11]   ;;  %s5420_s27 = smov [#allocation14]  }
  0x2a   :  { %s75_s26 = sshll.u32 %s5419_s2, 4  ;;  %s100_s28 = sshll.u32 %s5420_s27, 4  ;;  %s76_s26 = int_to_ptr.vmem [resolvable:$true] %s75_s26  ;;  %s101_s28 = int_to_ptr.vmem [resolvable:$true] %s100_s28 }
  0x2b   :  { %s6302_s4 = sld [smem:[#allocation46_spill]] }
  0x31   :  { %s5022_s30 = scalar_lea.hbm %s6302_s4, 512 }
  0x32   :  { %p5023_p8 = scmp.ne.s32.totalorder %s6302_s4, %s5022_s30  ;;  %p5026_p9 = scmp.lt.u32.totalorder %s5022_s30, %s6302_s4 }
  0x34   :  { %p5028_p10 = pnand %p5026_p9, %p5023_p8 }
  0x36   :  { %5031 = shalt.err (!%p5028_p10)
}
  0x37   :  { %s5032_s25 = scalar_lea.vmem %s76_s26, 512  ;;  %p5037_p12 = scmp.lt.s32.totalorder %s76_s26, %s76_s26 }
  0x38   :  { %p5033_p11 = scmp.ne.s32.totalorder %s76_s26, %s5032_s25  ;;  %p5038_p13 = scmp.lt.s32.totalorder %s5032_s25, %s5032_s25 }
  0x3a   :  { %p5039_p0 = por %p5038_p13, %p5037_p12 }
  0x3c   :  { %p5040_p1 = pnand %p5039_p0, %p5033_p11 }
  0x3e   :  { %5043 = shalt.err (!%p5040_p1)
}
  0x3f   :  { %81 = dma.hbm_to_vmem [thread:$0]  %s6302_s4, 512, %s76_s26, [#allocation12], %s5417_s22, %s5417_s22, %s5418_s23  }
  0x40   :  { %s6303_s20 = sld [smem:[#allocation48_spill]] }
  0x46   :  { %s5044_s24 = scalar_lea.hbm %s6303_s20, 16 }
  0x47   :  { %p5045_p2 = scmp.ne.s32.totalorder %s6303_s20, %s5044_s24  ;;  %p5048_p3 = scmp.lt.u32.totalorder %s5044_s24, %s6303_s20 }
  0x49   :  { %p5050_p4 = pnand %p5048_p3, %p5045_p2 }
  0x4b   :  { %5053 = shalt.err (!%p5050_p4)
}
  0x4c   :  { %s5054_s30 = scalar_lea.vmem %s101_s28, 16  ;;  %s5058_s5 = scalar_lea.vmem %s101_s28, 32 }
  0x4d   :  { %p5055_p5 = scmp.ne.s32.totalorder %s101_s28, %s5054_s30  ;;  %p5059_p6 = scmp.lt.s32.totalorder %s101_s28, %s101_s28 }
  0x4e   :  { %p5060_p7 = scmp.lt.s32.totalorder %s5058_s5, %s5054_s30 }
  0x50   :  { %p5061_p8 = por %p5060_p7, %p5059_p6 }
  0x52   :  { %p5062_p9 = pnand %p5061_p8, %p5055_p5 }
  0x54   :  { %5065 = shalt.err (!%p5062_p9)
}
  0x55   :  { %103 = dma.hbm_to_vmem [thread:$0]  %s6303_s20, 16, %s101_s28, [#allocation15]  }
  0x56   :  { %s5421_s25 = smov [#allocation17]   ;;  %s5422_s1 = smov [#allocation20]  }
  0x57   :  { %s119_s3 = sshll.u32 %s5421_s25, 4  ;;  %s144_s21 = sshll.u32 %s5422_s1, 4  ;;  %s120_s3 = int_to_ptr.vmem [resolvable:$true] %s119_s3  ;;  %s145_s21 = int_to_ptr.vmem [resolvable:$true] %s144_s21 }
  0x58   :  { %s5066_s2 = scalar_lea.hbm %s6270_s7, 512 }
  0x59   :  { %p5067_p10 = scmp.ne.s32.totalorder %s6270_s7, %s5066_s2  ;;  %p5070_p11 = scmp.lt.u32.totalorder %s5066_s2, %s6270_s7 }
  0x5b   :  { %p5072_p12 = pnand %p5070_p11, %p5067_p10 }
  0x5d   :  { %5075 = shalt.err (!%p5072_p12)
}
  0x5e   :  { %s5076_s28 = scalar_lea.vmem %s120_s3, 512  ;;  %p5081_p0 = scmp.lt.s32.totalorder %s120_s3, %s120_s3 }
  0x5f   :  { %p5077_p13 = scmp.ne.s32.totalorder %s120_s3, %s5076_s28  ;;  %p5082_p1 = scmp.lt.s32.totalorder %s5076_s28, %s5076_s28 }
  0x61   :  { %p5083_p2 = por %p5082_p1, %p5081_p0 }
  0x63   :  { %p5084_p3 = pnand %p5083_p2, %p5077_p13 }
  0x65   :  { %5087 = shalt.err (!%p5084_p3)
}
  0x66   :  { %125 = dma.hbm_to_vmem [thread:$0]  %s6270_s7, 512, %s120_s3, [#allocation18], %s5417_s22, %s5417_s22, %s5418_s23  }
  0x67   :  { %s5088_s25 = scalar_lea.hbm %s6272_s9, 16 }
  0x68   :  { %p5089_p4 = scmp.ne.s32.totalorder %s6272_s9, %s5088_s25  ;;  %p5092_p5 = scmp.lt.u32.totalorder %s5088_s25, %s6272_s9 }
  0x6a   :  { %p5094_p6 = pnand %p5092_p5, %p5089_p4 }
  0x6c   :  { %5097 = shalt.err (!%p5094_p6)
}
  0x6d   :  { %s5098_s27 = scalar_lea.vmem %s145_s21, 16  ;;  %s5102_s29 = scalar_lea.vmem %s145_s21, 32 }
  0x6e   :  { %p5099_p7 = scmp.ne.s32.totalorder %s145_s21, %s5098_s27  ;;  %p5103_p8 = scmp.lt.s32.totalorder %s145_s21, %s145_s21 }
  0x6f   :  { %p5104_p9 = scmp.lt.s32.totalorder %s5102_s29, %s5098_s27 }
  0x71   :  { %p5105_p10 = por %p5104_p9, %p5103_p8 }
  0x73   :  { %p5106_p11 = pnand %p5105_p10, %p5099_p7 }
  0x75   :  { %5109 = shalt.err (!%p5106_p11)
}
  0x76   :  { %147 = dma.hbm_to_vmem [thread:$0]  %s6272_s9, 16, %s145_s21, [#allocation21]  }
  0x77   :  { %s5423_s0 = smov [#allocation23]   ;;  %s5424_s28 = smov [#allocation26]  }
  0x78   :  { %s165_s30 = sshll.u32 %s5423_s0, 4  ;;  %s188_s20 = sshll.u32 %s5424_s28, 4  ;;  %s166_s30 = int_to_ptr.vmem [resolvable:$true] %s165_s30  ;;  %s189_s20 = int_to_ptr.vmem [resolvable:$true] %s188_s20 }
  0x79   :  { %s5110_s4 = scalar_lea.hbm %s6275_s12, 512 }
  0x7a   :  { %p5111_p12 = scmp.ne.s32.totalorder %s6275_s12, %s5110_s4  ;;  %p5114_p13 = scmp.lt.u32.totalorder %s5110_s4, %s6275_s12 }
  0x7c   :  { %p5116_p0 = pnand %p5114_p13, %p5111_p12 }
  0x7e   :  { %5119 = shalt.err (!%p5116_p0)
}
  0x7f   :  { %s5120_s9 = scalar_lea.vmem %s166_s30, 512  ;;  %p5125_p2 = scmp.lt.s32.totalorder %s166_s30, %s166_s30 }
  0x80   :  { %p5121_p1 = scmp.ne.s32.totalorder %s166_s30, %s5120_s9  ;;  %p5126_p3 = scmp.lt.s32.totalorder %s5120_s9, %s5120_s9 }
  0x82   :  { %p5127_p4 = por %p5126_p3, %p5125_p2 }
  0x84   :  { %p5128_p5 = pnand %p5127_p4, %p5121_p1 }
  0x86   :  { %5131 = shalt.err (!%p5128_p5)
}
  0x87   :  { %171 = dma.hbm_to_vmem [thread:$0]  %s6275_s12, 512, %s166_s30, [#allocation24], %s5417_s22, %s5417_s22, %s5418_s23  }
  0x88   :  { %s5132_s7 = scalar_lea.hbm %s6277_s14, 16 }
  0x89   :  { %p5133_p6 = scmp.ne.s32.totalorder %s6277_s14, %s5132_s7  ;;  %p5136_p7 = scmp.lt.u32.totalorder %s5132_s7, %s6277_s14 }
  0x8b   :  { %p5138_p8 = pnand %p5136_p7, %p5133_p6 }
  0x8d   :  { %5141 = shalt.err (!%p5138_p8)
}
  0x8e   :  { %s5142_s26 = scalar_lea.vmem %s189_s20, 16  ;;  %s5146_s4 = scalar_lea.vmem %s189_s20, 32 }
  0x8f   :  { %p5143_p9 = scmp.ne.s32.totalorder %s189_s20, %s5142_s26  ;;  %p5147_p10 = scmp.lt.s32.totalorder %s189_s20, %s189_s20 }
  0x90   :  { %p5148_p11 = scmp.lt.s32.totalorder %s5146_s4, %s5142_s26 }
  0x92   :  { %p5149_p12 = por %p5148_p11, %p5147_p10 }
  0x94   :  { %p5150_p13 = pnand %p5149_p12, %p5143_p9 }
  0x96   :  { %5153 = shalt.err (!%p5150_p13)
}
  0x97   :  { %191 = dma.hbm_to_vmem [thread:$0]  %s6277_s14, 16, %s189_s20, [#allocation27]  }
  0x98   :  { %s5425_s25 = smov [#allocation29]   ;;  %s5426_s18 = smov [#allocation5]  }
  0x99   :  { %s210_s1 = sshll.u32 %s5425_s25, 4  ;;  %s41_s24 = sshll.u32 %s5426_s18, 4  ;;  %s211_s1 = int_to_ptr.vmem [resolvable:$true] %s210_s1  ;;  %s42_s24 = int_to_ptr.vmem [resolvable:$true] %s41_s24 }
  0x9a   :  { %s5154_s2 = scalar_lea.hbm %s6279_s16, 16 }
  0x9b   :  { %p5155_p0 = scmp.ne.s32.totalorder %s6279_s16, %s5154_s2  ;;  %p5158_p1 = scmp.lt.u32.totalorder %s5154_s2, %s6279_s16 }
  0x9d   :  { %p5160_p2 = pnand %p5158_p1, %p5155_p0 }
  0x9f   :  { %5163 = shalt.err (!%p5160_p2)
}
  0xa0   :  { %s5164_s14 = scalar_lea.vmem %s211_s1, 16  ;;  %s5168_s20 = scalar_lea.vmem %s211_s1, 32 }
  0xa1   :  { %p5165_p3 = scmp.ne.s32.totalorder %s211_s1, %s5164_s14  ;;  %p5169_p4 = scmp.lt.s32.totalorder %s211_s1, %s211_s1 }
  0xa2   :  { %p5170_p5 = scmp.lt.s32.totalorder %s5168_s20, %s5164_s14 }
  0xa4   :  { %p5171_p6 = por %p5170_p5, %p5169_p4 }
  0xa6   :  { %p5172_p7 = pnand %p5171_p6, %p5165_p3 }
  0xa8   :  { %5175 = shalt.err (!%p5172_p7)
}
  0xa9   :  { %213 = dma.hbm_to_vmem [thread:$0]  %s6279_s16, 16, %s211_s1, [#allocation30]  }
  0xaa   :  { %s6304_s4 = sld [smem:[#allocation43_spill]] }
  0xb0   :  { %s5176_s12 = scalar_lea.hbm %s6304_s4, 256 }
  0xb1   :  { %p5177_p8 = scmp.ne.s32.totalorder %s6304_s4, %s5176_s12  ;;  %p5180_p9 = scmp.lt.u32.totalorder %s5176_s12, %s6304_s4 }
  0xb3   :  { %p5182_p10 = pnand %p5180_p9, %p5177_p8 }
  0xb5   :  { %5185 = shalt.err (!%p5182_p10)
}
  0xb6   :  { %s5186_s21 = scalar_lea.vmem %s42_s24, 256  ;;  %p5191_p12 = scmp.lt.s32.totalorder %s42_s24, %s42_s24 }
  0xb7   :  { %p5187_p11 = scmp.ne.s32.totalorder %s42_s24, %s5186_s21  ;;  %p5192_p13 = scmp.lt.s32.totalorder %s5186_s21, %s5186_s21 }
  0xb9   :  { %p5193_p0 = por %p5192_p13, %p5191_p12 }
  0xbb   :  { %p5194_p1 = pnand %p5193_p0, %p5187_p11 }
  0xbd   :  { %5197 = shalt.err (!%p5194_p1)
}
  0xbe   :  { %s5427_s16 = smov 32   ;;  %s5428_s1 = smov 2  }
  0xbf   :  { %47 = dma.hbm_to_vmem [thread:$0]  %s6304_s4, 256, %s42_s24, [#allocation6], %s5427_s16, %s5427_s16, %s5428_s1  }
  0xc0   :  { %s5429_s29 = smov [#allocation10]   ;;  %s5430_s3 = smov [#allocation13]  }
  0xc1   :  { %s66_s7 = sshll.u32 %s5429_s29, 4  ;;  %s87_s14 = sshll.u32 %s5430_s3, 4  ;;  %s67_s7 = int_to_ptr.vmem [resolvable:$true] %s66_s7  ;;  %s88_s14 = int_to_ptr.vmem [resolvable:$true] %s87_s14 }
  0xc2   :  { %s6305_s28 = sld [smem:[#allocation45_spill]] }
  0xc8   :  { %s5198_s5 = scalar_lea.hbm %s6305_s28, 16 }
  0xc9   :  { %p5199_p2 = scmp.ne.s32.totalorder %s6305_s28, %s5198_s5  ;;  %p5202_p3 = scmp.lt.u32.totalorder %s5198_s5, %s6305_s28 }
  0xcb   :  { %p5204_p4 = pnand %p5202_p3, %p5199_p2 }
  0xcd   :  { %5207 = shalt.err (!%p5204_p4)
}
  0xce   :  { %s5208_s24 = scalar_lea.vmem %s67_s7, 16  ;;  %s5212_s4 = scalar_lea.vmem %s67_s7, 32 }
  0xcf   :  { %p5209_p5 = scmp.ne.s32.totalorder %s67_s7, %s5208_s24  ;;  %p5213_p6 = scmp.lt.s32.totalorder %s67_s7, %s67_s7 }
  0xd0   :  { %p5214_p7 = scmp.lt.s32.totalorder %s5212_s4, %s5208_s24 }
  0xd2   :  { %p5215_p8 = por %p5214_p7, %p5213_p6 }
  0xd4   :  { %p5216_p9 = pnand %p5215_p8, %p5209_p5 }
  0xd6   :  { %5219 = shalt.err (!%p5216_p9)
}
  0xd7   :  { %69 = dma.hbm_to_vmem [thread:$0]  %s6305_s28, 16, %s67_s7, [#allocation9]  }
  0xd8   :  { %s6306_s27 = sld [smem:[#allocation47_spill]] }
  0xde   :  { %s5220_s29 = scalar_lea.hbm %s6306_s27, 512 }
  0xdf   :  { %p5221_p10 = scmp.ne.s32.totalorder %s6306_s27, %s5220_s29  ;;  %p5224_p11 = scmp.lt.u32.totalorder %s5220_s29, %s6306_s27 }
  0xe1   :  { %p5226_p12 = pnand %p5224_p11, %p5221_p10 }
  0xe3   :  { %5229 = shalt.err (!%p5226_p12)
}
  0xe4   :  { %s5230_s26 = scalar_lea.vmem %s88_s14, 512  ;;  %p5235_p0 = scmp.lt.s32.totalorder %s88_s14, %s88_s14 }
  0xe5   :  { %p5231_p13 = scmp.ne.s32.totalorder %s88_s14, %s5230_s26  ;;  %p5236_p1 = scmp.lt.s32.totalorder %s5230_s26, %s5230_s26 }
  0xe7   :  { %p5237_p2 = por %p5236_p1, %p5235_p0 }
  0xe9   :  { %p5238_p3 = pnand %p5237_p2, %p5231_p13 }
  0xeb   :  { %5241 = shalt.err (!%p5238_p3)
}
  0xec   :  { %93 = dma.hbm_to_vmem [thread:$0]  %s6306_s27, 512, %s88_s14, [#allocation12], %s5417_s22, %s5417_s22, %s5418_s23  }
  0xed   :  { %s5431_s12 = smov [#allocation16]   ;;  %s5432_s25 = smov [#allocation19]  }
  0xee   :  { %s110_s30 = sshll.u32 %s5431_s12, 4  ;;  %s131_s24 = sshll.u32 %s5432_s25, 4  ;;  %s111_s30 = int_to_ptr.vmem [resolvable:$true] %s110_s30  ;;  %s132_s24 = int_to_ptr.vmem [resolvable:$true] %s131_s24 }
  0xef   :  { %s5242_s9 = scalar_lea.hbm %s6269_s6, 16 }
  0xf0   :  { %p5243_p4 = scmp.ne.s32.totalorder %s6269_s6, %s5242_s9  ;;  %p5246_p5 = scmp.lt.u32.totalorder %s5242_s9, %s6269_s6 }
  0xf2   :  { %p5248_p6 = pnand %p5246_p5, %p5243_p4 }
  0xf4   :  { %5251 = shalt.err (!%p5248_p6)
}
  0xf5   :  { %s5252_s14 = scalar_lea.vmem %s111_s30, 16  ;;  %s5256_s27 = scalar_lea.vmem %s111_s30, 32 }
  0xf6   :  { %p5253_p7 = scmp.ne.s32.totalorder %s111_s30, %s5252_s14  ;;  %p5257_p8 = scmp.lt.s32.totalorder %s111_s30, %s111_s30 }
  0xf7   :  { %p5258_p9 = scmp.lt.s32.totalorder %s5256_s27, %s5252_s14 }
  0xf9   :  { %p5259_p10 = por %p5258_p9, %p5257_p8 }
  0xfb   :  { %p5260_p11 = pnand %p5259_p10, %p5253_p7 }
  0xfd   :  { %5263 = shalt.err (!%p5260_p11)
}
  0xfe   :  { %113 = dma.hbm_to_vmem [thread:$0]  %s6269_s6, 16, %s111_s30, [#allocation15]  }
  0xff   :  { %s5264_s7 = scalar_lea.hbm %s6271_s8, 512 }
 0x100   :  { %p5265_p12 = scmp.ne.s32.totalorder %s6271_s8, %s5264_s7  ;;  %p5268_p13 = scmp.lt.u32.totalorder %s5264_s7, %s6271_s8 }
 0x102   :  { %p5270_p0 = pnand %p5268_p13, %p5265_p12 }
 0x104   :  { %5273 = shalt.err (!%p5270_p0)
}
 0x105   :  { %s5274_s18 = scalar_lea.vmem %s132_s24, 512  ;;  %p5279_p2 = scmp.lt.s32.totalorder %s132_s24, %s132_s24 }
 0x106   :  { %p5275_p1 = scmp.ne.s32.totalorder %s132_s24, %s5274_s18  ;;  %p5280_p3 = scmp.lt.s32.totalorder %s5274_s18, %s5274_s18 }
 0x108   :  { %p5281_p4 = por %p5280_p3, %p5279_p2 }
 0x10a   :  { %p5282_p5 = pnand %p5281_p4, %p5275_p1 }
 0x10c   :  { %5285 = shalt.err (!%p5282_p5)
}
 0x10d   :  { %137 = dma.hbm_to_vmem [thread:$0]  %s6271_s8, 512, %s132_s24, [#allocation18], %s5417_s22, %s5417_s22, %s5418_s23  }
 0x10e   :  { %s5433_s9 = smov [#allocation22]   ;;  %s5434_s2 = smov [#allocation25]  }
 0x10f   :  { %s154_s21 = sshll.u32 %s5433_s9, 4  ;;  %s178_s29 = sshll.u32 %s5434_s2, 4  ;;  %s155_s21 = int_to_ptr.vmem [resolvable:$true] %s154_s21  ;;  %s179_s29 = int_to_ptr.vmem [resolvable:$true] %s178_s29 }
 0x110   :  { %s5286_s27 = scalar_lea.hbm %s6273_s10, 16 }
 0x111   :  { %p5287_p6 = scmp.ne.s32.totalorder %s6273_s10, %s5286_s27  ;;  %p5290_p7 = scmp.lt.u32.totalorder %s5286_s27, %s6273_s10 }
 0x113   :  { %p5292_p8 = pnand %p5290_p7, %p5287_p6 }
 0x115   :  { %5295 = shalt.err (!%p5292_p8)
}
 0x116   :  { %s5296_s8 = scalar_lea.vmem %s155_s21, 16  ;;  %s5300_s24 = scalar_lea.vmem %s155_s21, 32 }
 0x117   :  { %p5297_p9 = scmp.ne.s32.totalorder %s155_s21, %s5296_s8  ;;  %p5301_p10 = scmp.lt.s32.totalorder %s155_s21, %s155_s21 }
 0x118   :  { %p5302_p11 = scmp.lt.s32.totalorder %s5300_s24, %s5296_s8 }
 0x11a   :  { %p5303_p12 = por %p5302_p11, %p5301_p10 }
 0x11c   :  { %p5304_p13 = pnand %p5303_p12, %p5297_p9 }
 0x11e   :  { %5307 = shalt.err (!%p5304_p13)
}
 0x11f   :  { %157 = dma.hbm_to_vmem [thread:$0]  %s6273_s10, 16, %s155_s21, [#allocation21]  }
 0x120   :  { %s5308_s4 = scalar_lea.hbm %s6276_s13, 16 }
 0x121   :  { %p5309_p0 = scmp.ne.s32.totalorder %s6276_s13, %s5308_s4  ;;  %p5312_p1 = scmp.lt.u32.totalorder %s5308_s4, %s6276_s13 }
 0x123   :  { %p5314_p2 = pnand %p5312_p1, %p5309_p0 }
 0x125   :  { %5317 = shalt.err (!%p5314_p2)
}
 0x126   :  { %s5318_s2 = scalar_lea.vmem %s179_s29, 16  ;;  %s5322_s3 = scalar_lea.vmem %s179_s29, 32 }
 0x127   :  { %p5319_p3 = scmp.ne.s32.totalorder %s179_s29, %s5318_s2  ;;  %p5323_p4 = scmp.lt.s32.totalorder %s179_s29, %s179_s29 }
 0x128   :  { %p5324_p5 = scmp.lt.s32.totalorder %s5322_s3, %s5318_s2 }
 0x12a   :  { %p5325_p6 = por %p5324_p5, %p5323_p4 }
 0x12c   :  { %p5326_p7 = pnand %p5325_p6, %p5319_p3 }
 0x12e   :  { %5329 = shalt.err (!%p5326_p7)
}
 0x12f   :  { %181 = dma.hbm_to_vmem [thread:$0]  %s6276_s13, 16, %s179_s29, [#allocation24]  }
 0x130   :  { %s5435_s14 = smov [#allocation28]   ;;  %s5436_s20 = smov [#allocation31]  }
 0x131   :  { %s197_s27 = sshll.u32 %s5435_s14, 4  ;;  %s223_s0 = sshll.u32 %s5436_s20, 4  ;;  %s198_s27 = int_to_ptr.vmem [resolvable:$true] %s197_s27  ;;  %s224_s0 = int_to_ptr.vmem [resolvable:$true] %s223_s0 }
 0x132   :  { %s5330_s8 = scalar_lea.hbm %s6278_s15, 512 }
 0x133   :  { %p5331_p8 = scmp.ne.s32.totalorder %s6278_s15, %s5330_s8  ;;  %p5334_p9 = scmp.lt.u32.totalorder %s5330_s8, %s6278_s15 }
 0x135   :  { %p5336_p10 = pnand %p5334_p9, %p5331_p8 }
 0x137   :  { %5339 = shalt.err (!%p5336_p10)
}
 0x138   :  { %s5340_s13 = scalar_lea.vmem %s198_s27, 512  ;;  %p5345_p12 = scmp.lt.s32.totalorder %s198_s27, %s198_s27 }
 0x139   :  { %p5341_p11 = scmp.ne.s32.totalorder %s198_s27, %s5340_s13  ;;  %p5346_p13 = scmp.lt.s32.totalorder %s5340_s13, %s5340_s13 }
 0x13b   :  { %p5347_p0 = por %p5346_p13, %p5345_p12 }
 0x13d   :  { %p5348_p1 = pnand %p5347_p0, %p5341_p11 }
 0x13f   :  { %5351 = shalt.err (!%p5348_p1)
}
 0x140   :  { %203 = dma.hbm_to_vmem [thread:$0]  %s6278_s15, 512, %s198_s27, [#allocation27], %s5417_s22, %s5417_s22, %s5418_s23  }
 0x141   :  { %s5352_s6 = scalar_lea.hbm %s6282_s19, 512 }
 0x142   :  { %p5353_p2 = scmp.ne.s32.totalorder %s6282_s19, %s5352_s6  ;;  %p5356_p3 = scmp.lt.u32.totalorder %s5352_s6, %s6282_s19 }
 0x144   :  { %p5358_p4 = pnand %p5356_p3, %p5353_p2 }
 0x146   :  { %5361 = shalt.err (!%p5358_p4)
}
 0x147   :  { %s5362_s10 = scalar_lea.vmem %s224_s0, 512  ;;  %p5367_p6 = scmp.lt.s32.totalorder %s224_s0, %s224_s0 }
 0x148   :  { %p5363_p5 = scmp.ne.s32.totalorder %s224_s0, %s5362_s10  ;;  %p5368_p7 = scmp.lt.s32.totalorder %s5362_s10, %s5362_s10 }
 0x14a   :  { %p5369_p8 = por %p5368_p7, %p5367_p6 }
 0x14c   :  { %p5370_p9 = pnand %p5369_p8, %p5363_p5 }
 0x14e   :  { %5373 = shalt.err (!%p5370_p9)
}
 0x14f   :  { %229 = dma.hbm_to_vmem [thread:$0]  %s6282_s19, 512, %s224_s0, [#allocation30], %s5417_s22, %s5417_s22, %s5418_s23  }
 0x150   :  { %5396 = dma.done.wait [#allocation6], 256  }
 0x151   :  { %5397 = vsyncadd [#allocation6], 4294967040 }
 0x152   :  { %5398 = dma.done.wait [#allocation9], 272  }
 0x153   :  { %5399 = vsyncadd [#allocation9], 4294967024 }
 0x154   :  { %5400 = dma.done.wait [#allocation12], 1024  }
 0x155   :  { %5401 = vsyncadd [#allocation12], 4294966272 }
 0x156   :  { %5402 = dma.done.wait [#allocation15], 32  }
 0x157   :  { %5403 = vsyncadd [#allocation15], 4294967264 }
 0x158   :  { %5404 = dma.done.wait [#allocation18], 1024  }
 0x159   :  { %5405 = vsyncadd [#allocation18], 4294966272 }
 0x15a   :  { %5406 = dma.done.wait [#allocation21], 32  }
 0x15b   :  { %5407 = vsyncadd [#allocation21], 4294967264 }
 0x15c   :  { %5408 = dma.done.wait [#allocation24], 528  }
 0x15d   :  { %5409 = vsyncadd [#allocation24], 4294966768 }
 0x15e   :  { %5410 = dma.done.wait [#allocation27], 528  }
 0x15f   :  { %5411 = vsyncadd [#allocation27], 4294966768 }
 0x160   :  { %5412 = dma.done.wait [#allocation30], 528  }
 0x161   :  { %5413 = vsyncadd [#allocation30], 4294966768  ;;  %v313_v0 = vlaneseq  ;;  %v5437_v1 = vmov 1983009808   ;;  %vm347_vm0 = vcmask 1043456   ;;  %vm5438_vm1 = vmmov 1  }
 0x162   :  { %v311_v2 = vunpack.c.l.s4 %v5437_v1  ;;  %vm5786_vm2 = vmpackc.low %vm347_vm0, %vm5438_vm1  ;;  %v291_v6 = vld [vmem:[#allocation8] sm:$0xff]  ;;  %v292_v7 = vld [vmem:[#allocation8 + $0x8] sm:$0xf]  ;;  %vm342_vm3 = vcmask 97280   ;;  %v5439_v28 = vmov 0.0|0.0   ;;  %vm5440_vm4 = vmmov 0  }
 0x163   :  { %v314_v4 = vshrl.u32 %v313_v0, 7  ;;  %v283_v8 = vld [vmem:[#allocation5] sm:$0x3]  ;;  %v4629_v10 = vpack.c.bf16 %v292_v7, %v291_v6  ;;  %v284_v11 = vld [vmem:[#allocation5 + $0x2] sm:$0x3]  ;;  %v580_v25 = vld [vmem:[#allocation13 + $0x8] sm:$0xff] }
 0x164   :  { %v312_v3 = vunpack.c.0.s8 %v311_v2  ;;  %v285_v12 = vld [vmem:[#allocation5 + $0x4] sm:$0x3]  ;;  %v286_v13 = vld [vmem:[#allocation5 + $0x6] sm:$0x3]  ;;  %v308_v14 = vcombine.low %v283_v8, %v284_v11  ;;  %v287_v16 = vld [vmem:[#allocation5 + $0x8] sm:$0x3] }
 0x165   :  { %v309_v15 = vcombine.low %v285_v12, %v286_v13  ;;  %v288_v17 = vld [vmem:[#allocation5 + $0xa] sm:$0x3]  ;;  %v289_v18 = vld [vmem:[#allocation5 + $0xc] sm:$0x3]  ;;  %4631 = vmatprep.subr.msk.bf16.mxu0 %vm5786_vm2, %v4629_v10  ;;  %v290_v19 = vld [vmem:[#allocation5 + $0xe] sm:$0x3] }
 0x166   :  { %v5790_v9 = vsub.s32 %v312_v3, %v314_v4  ;;  %v325_v20 = vcombine.low %v287_v16, %v288_v17  ;;  %4634 = vmatpush3.bf16.msk.msra.mxu0 %vm5786_vm2, %v4629_v10  ;;  %v326_v23 = vcombine.low %v289_v18, %v290_v19  ;;  %v579_v24 = vld [vmem:[#allocation13] sm:$0xff]  ;;  %v427_v29 = vld [vmem:[#allocation11 + $0x8] sm:$0xff]  ;;  %v581_v35 = vld [vmem:[#allocation13 + $0x10] sm:$0xff]  ;;  %v5441_v38 = vmov 0.0   ;;  %s5442_s19 = smov 64   ;;  %s5443_s22 = smov 96  }
 0x167   :  { %v426_v26 = vld [vmem:[#allocation11] sm:$0xff]  ;;  %4643 = vmatprep.subr.bf16.mxu0 %v5439_v28  ;;  %v5801_v33 = vpack.c.bf16 %v580_v25, %v579_v24  ;;  %v582_v36 = vld [vmem:[#allocation13 + $0x18] sm:$0xff]  ;;  %v428_v39 = vld [vmem:[#allocation11 + $0x10] sm:$0xff]  ;;  %vm437_vm5 = vcmask 261120   ;;  %vm563_vm6 = vcmask 779264   ;;  %vm690_vm7 = vcmask 254976  }
 0x168   :  { %v316_v21 = vrot.slane %v308_v14, %v5790_v9  ;;  %v323_v22 = vrot.slane %v309_v15, %v5790_v9  ;;  %v333_v27 = vrot.slane %v325_v20, %v5790_v9  ;;  %v340_v31 = vrot.slane %v326_v23, %v5790_v9  ;;  %v429_v40 = vld [vmem:[#allocation11 + $0x18] sm:$0xff]  ;;  %v5821_v47 = vld [vmem:[#allocation16] ss:$0 sm:$0xff]  ;;  %v4062_v51 = vld [vmem:[#allocation14] ss:$0 sm:$0xff]  ;;  %s6309_s18 = sld [smem:[#allocation49_spill]] }
 0x169   :  { %v4635_v32 = vpack.c.bf16 %v427_v29, %v426_v26  ;;  %v5804_v37 = vpack.c.bf16 %v582_v36, %v581_v35  ;;  %v4639_v41 = vpack.c.bf16 %v429_v40, %v428_v39  ;;  %v4058_v42 = vld [vmem:[#allocation10] ss:$0 sm:$0xff]  ;;  %s6310_s9 = sld [smem:[#allocation50_spill]]  ;;  %s5444_s2 = smov [#allocation32]  }
 0x16a   :  { %v324_v30 = vcombine.low %v316_v21, %v323_v22  ;;  %v341_v34 = vcombine.low %v333_v27, %v340_v31  ;;  %s4038_s3 = sshll.u32 %s5444_s2, 4  ;;  %s4039_s3 = int_to_ptr.vmem [resolvable:$true] %s4038_s3 }
 0x16b   :  { %4636 = vmatprep.subr.bf16.mxu1 %v4635_v32  ;;  %s5374_s10 = scalar_lea.vmem %s4039_s3, 256  ;;  %p5379_p11 = scmp.lt.s32.totalorder %s4039_s3, %s4039_s3 }
 0x16c   :  { %4296 = vmatprep.mubr.msk.f32.mxu0 %vm342_vm3, %v324_v30  ;;  %4638 = vmatpush3.bf16.msra.mxu1 %v4635_v32  ;;  %p5375_p10 = scmp.ne.s32.totalorder %s4039_s3, %s5374_s10  ;;  %p5380_p12 = scmp.lt.s32.totalorder %s5374_s10, %s5374_s10 }
 0x16d   :  { %4297 = vmatmul.mubr.msk.f32.vlgmr.msra.gmra.mrb[0].mxu0 %vm342_vm3, %v341_v34  ;;  %4640 = vmatprep.subr.bf16.mxu1 %v4639_v41 }
 0x16e   :  { %4645 = vmatpush3.bf16.msra.mxu0 %v5801_v33  ;;  %4318 = vmatprep.mubr.msk.f32.mxu0 %vm5440_vm4, %v5441_v38  ;;  %p5381_p13 = por %p5380_p12, %p5379_p11 }
 0x16f   :  { %4646 = vmatprep.subr.bf16.mxu0 %v5439_v28 }
 0x170   :  { %4642 = vmatpush3.bf16.msra.mxu1 %v4639_v41  ;;  %p5382_p0 = pnand %p5381_p13, %p5375_p10 }
 0x171   :  { %4649 = vmatprep.subr.bf16.mxu1 %v5439_v28 }
 0x172   :  { %4648 = vmatpush3.bf16.msra.mxu0 %v5804_v37 }
 0x173   :  { %4655 = vmatprep.subr.bf16.mxu0 %v5439_v28 }
 0x175   :  { %4319 = vmatmul.mubr.f32.vlgmr.msra.gmra.mrb[2].mxu0 %v5441_v38 }
 0x176   :  { %4657 = vmatpush3.bf16.msra.mxu0 %v5801_v33  ;;  %4340 = vmatprep.mubr.msk.f32.mxu0 %vm5440_vm4, %v5441_v38 }
 0x177   :  { %4658 = vmatprep.subr.bf16.mxu0 %v5439_v28 }
 0x17a   :  { %4660 = vmatpush3.bf16.msra.mxu0 %v5804_v37 }
 0x17b   :  { %4667 = vmatprep.subr.bf16.mxu0 %v5439_v28 }
 0x240   :  { %v4298_v43 = vpop.f32.mrb[0].mxu0 }
 0x241   :  { %v417_v44 = vpop.f32.mrb[1].mxu0  ;;  %v423_v46 = vadd.f32 %v4298_v43, %v4058_v42 }
 0x242   :  { %v418_v45 = vadd.f32 %v4058_v42, %v417_v44 }
 0x244   :  { %4307 = vmatprep.mubr.msk.f32.mxu1 %vm437_vm5, %v418_v45 }
 0x245   :  { %4308 = vmatmul.mubr.msk.f32.vlgmr.msra.gmra.mrb[0].mxu1 %vm437_vm5, %v423_v46 }
 0x246   :  { %4651 = vmatpush3.bf16.msra.mxu1 %v5801_v33  ;;  %4329 = vmatprep.mubr.msk.f32.mxu1 %vm5440_vm4, %v5441_v38 }
 0x247   :  { %4652 = vmatprep.subr.bf16.mxu1 %v5439_v28 }
 0x248   :  { %v652_v48 = vpop.f32.mrb[2].mxu0 }
 0x249   :  { %v653_v49 = vadd.f32 %v5821_v47, %v652_v48  ;;  %v4320_v50 = vpop.f32.mrb[3].mxu0 }
 0x24a   :  { %4654 = vmatpush3.bf16.msra.mxu1 %v5804_v37 }
 0x24b   :  { %665 = vrot.lane.b32.xlu0 %v653_v49, %s5442_s19  ;;  %4661 = vmatprep.subr.bf16.mxu1 %v5439_v28 }
 0x2bd   :  { %v666_v7 = vpop.permute.xlu0 %665 }
 0x318   :  { %v4309_v52 = vpop.f32.mrb[0].mxu1 }
 0x319   :  { %v516_v53 = vadd.f32 %v4309_v52, %v4062_v51  ;;  %v510_v54 = vpop.f32.mrb[1].mxu1 }
 0x31a   :  { %v511_v55 = vadd.f32 %v4062_v51, %v510_v54 }
 0x31b   :  { %v538_v56 = vcombine.high %v516_v53, %v516_v53  ;;  %v545_v57 = vrot.slane %v516_v53, %v5790_v9 }
 0x31c   :  { %v521_v58 = vcombine.high %v511_v55, %v511_v55  ;;  %v528_v59 = vrot.slane %v511_v55, %v5790_v9 }
 0x31d   :  { %v552_v60 = vrot.slane %v538_v56, %v5790_v9  ;;  %v553_v61 = vcombine.high %v545_v57, %v545_v57  ;;  %568 = vst.msk [vmem:[#allocation2 + $0x8] sm:$0x3] %vm563_vm6, %v545_v57 }
 0x31e   :  { %v535_v62 = vrot.slane %v521_v58, %v5790_v9  ;;  %v536_v63 = vcombine.high %v528_v59, %v528_v59  ;;  %564 = vst.msk [vmem:[#allocation2] sm:$0x3] %vm563_vm6, %v528_v59 }
 0x31f   :  { %v554_v0 = vcombine.high %v552_v60, %v552_v60  ;;  %569 = vst.msk [vmem:[#allocation2 + $0xa] sm:$0x3] %vm563_vm6, %v553_v61  ;;  %570 = vst.msk [vmem:[#allocation2 + $0xc] sm:$0x3] %vm563_vm6, %v552_v60 }
 0x320   :  { %v537_v1 = vcombine.high %v535_v62, %v535_v62  ;;  %565 = vst.msk [vmem:[#allocation2 + $0x2] sm:$0x3] %vm563_vm6, %v536_v63  ;;  %566 = vst.msk [vmem:[#allocation2 + $0x4] sm:$0x3] %vm563_vm6, %v535_v62 }
 0x321   :  { %571 = vst.msk [vmem:[#allocation2 + $0xe] sm:$0x3] %vm563_vm6, %v554_v0 }
 0x322   :  { %567 = vst.msk [vmem:[#allocation2 + $0x6] sm:$0x3] %vm563_vm6, %v537_v1 }
 0x325   :  { %v656_v2 = vld [vmem:[#allocation2] sm:$0x3] }
 0x326   :  { %v657_v3 = vadd.f32 %v656_v2, %v653_v49 }
 0x327   :  { %v769_v23 = vld [vmem:[#allocation2 + $0x2] sm:$0x3]  ;;  %v882_v48 = vld [vmem:[#allocation2 + $0x4] sm:$0x3] }
 0x328   :  { %v4066_v4 = vmul.f32 -1.442695, %v657_v3 }
 0x32a   :  { %4856 = vpow2.f32 %v4066_v4  ;;  %v995_v4 = vld [vmem:[#allocation2 + $0x6] sm:$0x3] }
 0x334   :  { %v4857_v5 = vpop.eup %4856 }
 0x335   :  { %v661_v6 = vadd.f32 1.0, %v4857_v5 }
 0x337   :  { %4858 = vrcp.f32 %v661_v6 }
 0x341   :  { %v4859_v8 = vpop.eup %4858 }
 0x342   :  { %v668_v10 = vmul.f32 %v4859_v8, %v666_v7 }
 0x344   :  { %670 = vrot.lane.b32.xlu0 %v668_v10, %s5442_s19 }
 0x3b6   :  { %v671_v11 = vpop.permute.xlu0 %670 }
 0x3b7   :  { %v673_v12 = vadd.f32 %v671_v11, %v656_v2 }
 0x3b9   :  { %4860 = vtanh.f32 %v673_v12 }
 0x3c3   :  { %v4861_v13 = vpop.eup %4860 }
 0x3c4   :  { %v675_v14 = vsub.f32 0.0, %v4861_v13 }
 0x3c6   :  { %677 = vrot.lane.b32.xlu1 %v675_v14, %s5443_s22 }
 0x438   :  { %v678_v15 = vpop.permute.xlu1 %677 }
 0x439   :  { %v680_v16 = vmul.f32 %v4859_v8, %v678_v15 }
 0x43b   :  { %682 = vrot.lane.b32.xlu1 %v680_v16, %s5427_s16 }
 0x4ad   :  { %v683_v17 = vpop.permute.xlu1 %682 }
 0x4ae   :  { %v685_v18 = vadd.f32 %v4861_v13, %v683_v17 }
 0x4b0   :  { %687 = vrot.lane.b32.xlu0 %v685_v18, %s5442_s19 }
 0x522   :  { %v688_v19 = vpop.permute.xlu0 %687 }
 0x523   :  { %691 = vst.msk [vmem:[#allocation3] sm:$0x3] %vm690_vm7, %v688_v19  ;;  %4330 = vmatmul.mubr.msk.f32.vlgmr.msra.gmra.mrb[2].mxu1 %vm437_vm5, %v688_v19 }
 0x524   :  { %4663 = vmatpush3.bf16.msra.mxu1 %v5801_v33  ;;  %4351 = vmatprep.mubr.msk.f32.mxu1 %vm5440_vm4, %v5441_v38 }
 0x525   :  { %4664 = vmatprep.subr.bf16.mxu1 %v5439_v28 }
 0x528   :  { %4666 = vmatpush3.bf16.msra.mxu1 %v5804_v37 }
 0x529   :  { %4673 = vmatprep.subr.bf16.mxu1 %v5439_v28 }
 0x5f6   :  { %v764_v20 = vpop.f32.mrb[2].mxu1 }
 0x5f7   :  { %v765_v21 = vadd.f32 %v5821_v47, %v764_v20  ;;  %v4331_v22 = vpop.f32.mrb[3].mxu1 }
 0x5f9   :  { %778 = vrot.lane.b32.xlu1 %v765_v21, %s5442_s19  ;;  %v770_v24 = vadd.f32 %v769_v23, %v765_v21 }
 0x5fb   :  { %v4068_v25 = vmul.f32 -1.442695, %v770_v24 }
 0x5fd   :  { %4862 = vpow2.f32 %v4068_v25  ;;  %v1108_v25 = vld [vmem:[#allocation2 + $0x8] sm:$0x3] }
 0x607   :  { %v4863_v26 = vpop.eup %4862 }
 0x608   :  { %v774_v27 = vadd.f32 1.0, %v4863_v26 }
 0x60a   :  { %4864 = vrcp.f32 %v774_v27 }
 0x614   :  { %v4865_v29 = vpop.eup %4864 }
 0x66b   :  { %v779_v30 = vpop.permute.xlu1 %778 }
 0x66c   :  { %v781_v31 = vmul.f32 %v4865_v29, %v779_v30 }
 0x66e   :  { %783 = vrot.lane.b32.xlu0 %v781_v31, %s5442_s19 }
 0x6e0   :  { %v784_v32 = vpop.permute.xlu0 %783 }
 0x6e1   :  { %v786_v34 = vadd.f32 %v784_v32, %v769_v23 }
 0x6e3   :  { %4866 = vtanh.f32 %v786_v34 }
 0x6ed   :  { %v4867_v35 = vpop.eup %4866 }
 0x6ee   :  { %v788_v36 = vsub.f32 %v685_v18, %v4867_v35 }
 0x6f0   :  { %790 = vrot.lane.b32.xlu1 %v788_v36, %s5443_s22 }
 0x762   :  { %v791_v39 = vpop.permute.xlu1 %790 }
 0x763   :  { %v793_v40 = vmul.f32 %v4865_v29, %v791_v39 }
 0x765   :  { %795 = vrot.lane.b32.xlu0 %v793_v40, %s5427_s16 }
 0x7d7   :  { %v796_v41 = vpop.permute.xlu0 %795 }
 0x7d8   :  { %v798_v42 = vadd.f32 %v4867_v35, %v796_v41 }
 0x7da   :  { %800 = vrot.lane.b32.xlu1 %v798_v42, %s5442_s19 }
 0x84c   :  { %v801_v43 = vpop.permute.xlu1 %800 }
 0x84d   :  { %804 = vst.msk [vmem:[#allocation3 + $0x2] sm:$0x3] %vm690_vm7, %v801_v43  ;;  %4341 = vmatmul.mubr.msk.f32.vlgmr.msra.gmra.mrb[4].mxu0 %vm437_vm5, %v801_v43 }
 0x84e   :  { %4669 = vmatpush3.bf16.msra.mxu0 %v5801_v33  ;;  %4362 = vmatprep.mubr.msk.f32.mxu0 %vm5440_vm4, %v5441_v38 }
 0x84f   :  { %4670 = vmatprep.subr.bf16.mxu0 %v5439_v28 }
 0x852   :  { %4672 = vmatpush3.bf16.msra.mxu0 %v5804_v37 }
 0x853   :  { %4679 = vmatprep.subr.bf16.mxu0 %v5439_v28 }
 0x920   :  { %v877_v44 = vpop.f32.mrb[4].mxu0 }
 0x921   :  { %v878_v45 = vadd.f32 %v5821_v47, %v877_v44  ;;  %v4342_v46 = vpop.f32.mrb[5].mxu0 }
 0x923   :  { %891 = vrot.lane.b32.xlu0 %v878_v45, %s5442_s19  ;;  %v883_v49 = vadd.f32 %v882_v48, %v878_v45 }
 0x925   :  { %v4070_v50 = vmul.f32 -1.442695, %v883_v49 }
 0x927   :  { %4868 = vpow2.f32 %v4070_v50  ;;  %v1221_v50 = vld [vmem:[#allocation2 + $0xa] sm:$0x3] }
 0x931   :  { %v4869_v51 = vpop.eup %4868 }
 0x932   :  { %v887_v52 = vadd.f32 1.0, %v4869_v51 }
 0x934   :  { %4870 = vrcp.f32 %v887_v52 }
 0x93e   :  { %v4871_v53 = vpop.eup %4870 }
 0x995   :  { %v892_v54 = vpop.permute.xlu0 %891 }
 0x996   :  { %v894_v55 = vmul.f32 %v4871_v53, %v892_v54 }
 0x998   :  { %896 = vrot.lane.b32.xlu1 %v894_v55, %s5442_s19 }
 0xa0a   :  { %v897_v56 = vpop.permute.xlu1 %896 }
 0xa0b   :  { %v899_v57 = vadd.f32 %v897_v56, %v882_v48 }
 0xa0d   :  { %4872 = vtanh.f32 %v899_v57 }
 0xa17   :  { %v4873_v58 = vpop.eup %4872 }
 0xa18   :  { %v901_v59 = vsub.f32 %v798_v42, %v4873_v58 }
 0xa1a   :  { %903 = vrot.lane.b32.xlu0 %v901_v59, %s5443_s22 }
 0xa8c   :  { %v904_v60 = vpop.permute.xlu0 %903 }
 0xa8d   :  { %v906_v61 = vmul.f32 %v4871_v53, %v904_v60 }
 0xa8f   :  { %908 = vrot.lane.b32.xlu1 %v906_v61, %s5427_s16 }
 0xb01   :  { %v909_v62 = vpop.permute.xlu1 %908 }
 0xb02   :  { %v911_v63 = vadd.f32 %v4873_v58, %v909_v62 }
 0xb04   :  { %913 = vrot.lane.b32.xlu0 %v911_v63, %s5442_s19 }
 0xb76   :  { %v914_v0 = vpop.permute.xlu0 %913 }
 0xb77   :  { %917 = vst.msk [vmem:[#allocation3 + $0x4] sm:$0x3] %vm690_vm7, %v914_v0  ;;  %4352 = vmatmul.mubr.msk.f32.vlgmr.msra.gmra.mrb[4].mxu1 %vm437_vm5, %v914_v0 }
 0xb78   :  { %4675 = vmatpush3.bf16.msra.mxu1 %v5801_v33  ;;  %4373 = vmatprep.mubr.msk.f32.mxu1 %vm5440_vm4, %v5441_v38 }
 0xb79   :  { %4676 = vmatprep.subr.bf16.mxu1 %v5439_v28 }
 0xb7c   :  { %4678 = vmatpush3.bf16.msra.mxu1 %v5804_v37 }
 0xb7d   :  { %4685 = vmatprep.subr.bf16.mxu1 %v5439_v28 }
 0xc4a   :  { %v990_v1 = vpop.f32.mrb[4].mxu1 }
 0xc4b   :  { %v991_v2 = vadd.f32 %v5821_v47, %v990_v1  ;;  %v4353_v3 = vpop.f32.mrb[5].mxu1  ;;  %v1484_v1 = vld [vmem:[#allocation3 + $0x2] sm:$0x3] }
 0xc4d   :  { %1004 = vrot.lane.b32.xlu1 %v991_v2, %s5442_s19  ;;  %v996_v5 = vadd.f32 %v995_v4, %v991_v2  ;;  %v1485_v2 = vld [vmem:[#allocation3 + $0x4] sm:$0x3] }
 0xc4f   :  { %v4072_v6 = vmul.f32 -1.442695, %v996_v5 }
 0xc51   :  { %4874 = vpow2.f32 %v4072_v6 }
 0xc5b   :  { %v4875_v7 = vpop.eup %4874 }
 0xc5c   :  { %v1000_v8 = vadd.f32 1.0, %v4875_v7 }
 0xc5e   :  { %4876 = vrcp.f32 %v1000_v8 }
 0xc68   :  { %v4877_v10 = vpop.eup %4876 }
 0xcbf   :  { %v1005_v11 = vpop.permute.xlu1 %1004 }
 0xcc0   :  { %v1007_v12 = vmul.f32 %v4877_v10, %v1005_v11 }
 0xcc2   :  { %1009 = vrot.lane.b32.xlu0 %v1007_v12, %s5442_s19 }
 0xd34   :  { %v1010_v13 = vpop.permute.xlu0 %1009 }
 0xd35   :  { %v1012_v14 = vadd.f32 %v1010_v13, %v995_v4  ;;  %v1483_v4 = vld [vmem:[#allocation3] sm:$0x3] }
 0xd36   :  { %v1510_v5 = vcombine.low %v1483_v4, %v1484_v1 }
 0xd37   :  { %4878 = vtanh.f32 %v1012_v14  ;;  %v1334_v14 = vld [vmem:[#allocation2 + $0xc] sm:$0x3] }
 0xd38   :  { %v1518_v7 = vrot.slane %v1510_v5, %v5790_v9 }
 0xd41   :  { %v4879_v15 = vpop.eup %4878 }
 0xd42   :  { %v1014_v16 = vsub.f32 %v911_v63, %v4879_v15 }
 0xd44   :  { %1016 = vrot.lane.b32.xlu1 %v1014_v16, %s5443_s22 }
 0xdb6   :  { %v1017_v17 = vpop.permute.xlu1 %1016 }
 0xdb7   :  { %v1019_v18 = vmul.f32 %v4877_v10, %v1017_v17 }
 0xdb9   :  { %1021 = vrot.lane.b32.xlu0 %v1019_v18, %s5427_s16 }
 0xe2b   :  { %v1022_v19 = vpop.permute.xlu0 %1021 }
 0xe2c   :  { %v1024_v20 = vadd.f32 %v4879_v15, %v1022_v19 }
 0xe2e   :  { %1026 = vrot.lane.b32.xlu1 %v1024_v20, %s5442_s19 }
 0xea0   :  { %v1027_v21 = vpop.permute.xlu1 %1026 }
 0xea1   :  { %1030 = vst.msk [vmem:[#allocation3 + $0x6] sm:$0x3] %vm690_vm7, %v1027_v21  ;;  %4363 = vmatmul.mubr.msk.f32.vlgmr.msra.gmra.mrb[6].mxu0 %vm437_vm5, %v1027_v21 }
 0xea2   :  { %4681 = vmatpush3.bf16.msra.mxu0 %v5801_v33  ;;  %4384 = vmatprep.mubr.msk.f32.mxu0 %vm5440_vm4, %v5441_v38 }
 0xea3   :  { %4682 = vmatprep.subr.bf16.mxu0 %v5439_v28 }
 0xea6   :  { %4684 = vmatpush3.bf16.msra.mxu0 %v5804_v37 }
 0xea8   :  { %v1486_v0 = vld [vmem:[#allocation3 + $0x6] sm:$0x3] }
 0xea9   :  { %v1511_v3 = vcombine.low %v1485_v2, %v1486_v0  ;;  %v5953_v0 = vld [vmem:[#allocation22] ss:$0 sm:$0xff] }
 0xeab   :  { %v1525_v6 = vrot.slane %v1511_v3, %v5790_v9 }
 0xead   :  { %v1526_v10 = vcombine.low %v1518_v7, %v1525_v6 }
 0xf74   :  { %v1103_v22 = vpop.f32.mrb[6].mxu0 }
 0xf75   :  { %v1104_v23 = vadd.f32 %v5821_v47, %v1103_v22  ;;  %v4364_v24 = vpop.f32.mrb[7].mxu0 }
 0xf77   :  { %1117 = vrot.lane.b32.xlu0 %v1104_v23, %s5442_s19  ;;  %v1109_v26 = vadd.f32 %v1108_v25, %v1104_v23 }
 0xf79   :  { %v4074_v27 = vmul.f32 -1.442695, %v1109_v26 }
 0xf7b   :  { %4880 = vpow2.f32 %v4074_v27 }
 0xf85   :  { %v4881_v29 = vpop.eup %4880 }
 0xf86   :  { %v1113_v30 = vadd.f32 1.0, %v4881_v29 }
 0xf88   :  { %4882 = vrcp.f32 %v1113_v30 }
 0xf92   :  { %v4883_v31 = vpop.eup %4882 }
 0xfe9   :  { %v1118_v32 = vpop.permute.xlu0 %1117 }
 0xfea   :  { %v1120_v34 = vmul.f32 %v4883_v31, %v1118_v32 }
 0xfec   :  { %1122 = vrot.lane.b32.xlu1 %v1120_v34, %s5442_s19 }
0x105e   :  { %v1123_v35 = vpop.permute.xlu1 %1122 }
0x105f   :  { %v1125_v36 = vadd.f32 %v1123_v35, %v1108_v25 }
0x1061   :  { %4884 = vtanh.f32 %v1125_v36  ;;  %v1447_v36 = vld [vmem:[#allocation2 + $0xe] sm:$0x3] }
0x106b   :  { %v4885_v39 = vpop.eup %4884 }
0x106c   :  { %v1127_v40 = vsub.f32 %v1024_v20, %v4885_v39 }
0x106e   :  { %1129 = vrot.lane.b32.xlu0 %v1127_v40, %s5443_s22 }
0x10e0   :  { %v1130_v41 = vpop.permute.xlu0 %1129 }
0x10e1   :  { %v1132_v42 = vmul.f32 %v4883_v31, %v1130_v41 }
0x10e3   :  { %1134 = vrot.lane.b32.xlu1 %v1132_v42, %s5427_s16 }
0x1155   :  { %v1135_v43 = vpop.permute.xlu1 %1134 }
0x1156   :  { %v1137_v44 = vadd.f32 %v4885_v39, %v1135_v43 }
0x1158   :  { %1139 = vrot.lane.b32.xlu0 %v1137_v44, %s5442_s19 }
0x11ca   :  { %v1140_v45 = vpop.permute.xlu0 %1139 }
0x11cb   :  { %1143 = vst.msk [vmem:[#allocation3 + $0x8] sm:$0x3] %vm690_vm7, %v1140_v45  ;;  %4374 = vmatmul.mubr.msk.f32.vlgmr.msra.gmra.mrb[6].mxu1 %vm437_vm5, %v1140_v45 }
0x11cc   :  { %4687 = vmatpush3.bf16.msra.mxu1 %v5801_v33  ;;  %4395 = vmatprep.mubr.msk.f32.mxu1 %vm5440_vm4, %v5441_v38 }
0x11cd   :  { %4688 = vmatprep.subr.bf16.mxu1 %v5439_v28 }
0x11d0   :  { %4690 = vmatpush3.bf16.msra.mxu1 %v5804_v37 }
0x11d1   :  { %4699 = vmatprep.subr.bf16.mxu1 %v5439_v28 }
0x11d2   :  { %v1487_v6 = vld [vmem:[#allocation3 + $0x8] sm:$0x3] }
0x129e   :  { %v1216_v46 = vpop.f32.mrb[6].mxu1 }
0x129f   :  { %v1217_v48 = vadd.f32 %v5821_v47, %v1216_v46  ;;  %v4375_v49 = vpop.f32.mrb[7].mxu1 }
0x12a1   :  { %1230 = vrot.lane.b32.xlu1 %v1217_v48, %s5442_s19  ;;  %v1222_v51 = vadd.f32 %v1221_v50, %v1217_v48 }
0x12a3   :  { %v4076_v52 = vmul.f32 -1.442695, %v1222_v51  ;;  %v1683_v51 = vld [vmem:[#allocation19 + $0x8] sm:$0xff] }
0x12a5   :  { %4886 = vpow2.f32 %v4076_v52  ;;  %v1684_v52 = vld [vmem:[#allocation19 + $0x10] sm:$0xff] }
0x12af   :  { %v4887_v33 = vpop.eup %4886 }
0x12b0   :  { %v1226_v53 = vadd.f32 1.0, %v4887_v33 }
0x12b2   :  { %4888 = vrcp.f32 %v1226_v53  ;;  %v1685_v53 = vld [vmem:[#allocation19 + $0x18] sm:$0xff] }
0x12bc   :  { %v4889_v54 = vpop.eup %4888 }
0x1313   :  { %v1231_v55 = vpop.permute.xlu1 %1230 }
0x1314   :  { %v1233_v56 = vmul.f32 %v4889_v54, %v1231_v55 }
0x1316   :  { %1235 = vrot.lane.b32.xlu0 %v1233_v56, %s5442_s19 }
0x1388   :  { %v1236_v37 = vpop.permute.xlu0 %1235 }
0x1389   :  { %v1238_v57 = vadd.f32 %v1236_v37, %v1221_v50  ;;  %v1682_v50 = vld [vmem:[#allocation19] sm:$0xff] }
0x138a   :  { %v5935_v33 = vpack.c.bf16 %v1683_v51, %v1682_v50  ;;  %v1491_v37 = vld [vmem:[#allocation17] sm:$0xff] }
0x138b   :  { %4890 = vtanh.f32 %v1238_v57  ;;  %v1492_v57 = vld [vmem:[#allocation17 + $0x8] sm:$0xff] }
0x1395   :  { %v4891_v58 = vpop.eup %4890 }
0x1396   :  { %v1240_v59 = vsub.f32 %v1137_v44, %v4891_v58 }
0x1398   :  { %1242 = vrot.lane.b32.xlu1 %v1240_v59, %s5443_s22  ;;  %v4691_v59 = vpack.c.bf16 %v1492_v57, %v1491_v37 }
0x139a   :  { %4692 = vmatprep.subr.bf16.mxu0 %v4691_v59 }
0x140a   :  { %v1243_v60 = vpop.permute.xlu1 %1242 }
0x140b   :  { %v1245_v61 = vmul.f32 %v4889_v54, %v1243_v60  ;;  %v5938_v54 = vpack.c.bf16 %v1685_v53, %v1684_v52  ;;  %v1494_v60 = vld [vmem:[#allocation17 + $0x18] sm:$0xff] }
0x140d   :  { %1247 = vrot.lane.b32.xlu0 %v1245_v61, %s5427_s16 }
0x147f   :  { %v1248_v62 = vpop.permute.xlu0 %1247 }
0x1480   :  { %v1250_v63 = vadd.f32 %v4891_v58, %v1248_v62  ;;  %v1493_v58 = vld [vmem:[#allocation17 + $0x10] sm:$0xff] }
0x1481   :  { %v4695_v61 = vpack.c.bf16 %v1494_v60, %v1493_v58 }
0x1482   :  { %1252 = vrot.lane.b32.xlu1 %v1250_v63, %s5442_s19 }
0x14f4   :  { %v1253_v8 = vpop.permute.xlu1 %1252 }
0x14f5   :  { %1256 = vst.msk [vmem:[#allocation3 + $0xa] sm:$0x3] %vm690_vm7, %v1253_v8  ;;  %4385 = vmatmul.mubr.msk.f32.vlgmr.msra.gmra.mrb[8].mxu0 %vm437_vm5, %v1253_v8 }
0x14f6   :  { %4406 = vmatprep.mubr.msk.f32.mxu0 %vm437_vm5, %v1526_v10  ;;  %4694 = vmatpush3.bf16.msra.mxu0 %v4691_v59 }
0x14f7   :  { %4696 = vmatprep.subr.bf16.mxu0 %v4695_v61 }
0x14fa   :  { %4698 = vmatpush3.bf16.msra.mxu0 %v4695_v61 }
0x14fb   :  { %4705 = vmatprep.subr.bf16.mxu0 %v5439_v28 }
0x14fc   :  { %v1488_v5 = vld [vmem:[#allocation3 + $0xa] sm:$0x3] }
0x14fd   :  { %v1527_v7 = vcombine.low %v1487_v6, %v1488_v5 }
0x15c8   :  { %v1329_v11 = vpop.f32.mrb[8].mxu0 }
0x15c9   :  { %v1330_v12 = vadd.f32 %v5821_v47, %v1329_v11  ;;  %v4386_v13 = vpop.f32.mrb[9].mxu0 }
0x15cb   :  { %1343 = vrot.lane.b32.xlu0 %v1330_v12, %s5442_s19  ;;  %v1335_v15 = vadd.f32 %v1334_v14, %v1330_v12  ;;  %v1535_v12 = vrot.slane %v1527_v7, %v5790_v9 }
0x15cd   :  { %v4078_v16 = vmul.f32 -1.442695, %v1335_v15  ;;  %v4081_v15 = vld [vmem:[#allocation20] ss:$0 sm:$0xff] }
0x15cf   :  { %4892 = vpow2.f32 %v4078_v16 }
0x15d9   :  { %v4893_v17 = vpop.eup %4892 }
0x15da   :  { %v1339_v18 = vadd.f32 1.0, %v4893_v17 }
0x15dc   :  { %4894 = vrcp.f32 %v1339_v18 }
0x15e6   :  { %v4895_v19 = vpop.eup %4894 }
0x163d   :  { %v1344_v20 = vpop.permute.xlu0 %1343 }
0x163e   :  { %v1346_v21 = vmul.f32 %v4895_v19, %v1344_v20 }
0x1640   :  { %1348 = vrot.lane.b32.xlu1 %v1346_v21, %s5442_s19 }
0x16b2   :  { %v1349_v22 = vpop.permute.xlu1 %1348 }
0x16b3   :  { %v1351_v23 = vadd.f32 %v1349_v22, %v1334_v14 }
0x16b5   :  { %4896 = vtanh.f32 %v1351_v23 }
0x16bf   :  { %v4897_v24 = vpop.eup %4896 }
0x16c0   :  { %v1353_v25 = vsub.f32 %v1250_v63, %v4897_v24 }
0x16c2   :  { %1355 = vrot.lane.b32.xlu0 %v1353_v25, %s5443_s22 }
0x1734   :  { %v1356_v26 = vpop.permute.xlu0 %1355 }
0x1735   :  { %v1358_v27 = vmul.f32 %v4895_v19, %v1356_v26 }
0x1737   :  { %1360 = vrot.lane.b32.xlu1 %v1358_v27, %s5427_s16 }
0x17a9   :  { %v1361_v29 = vpop.permute.xlu1 %1360 }
0x17aa   :  { %v1363_v30 = vadd.f32 %v4897_v24, %v1361_v29 }
0x17ac   :  { %1365 = vrot.lane.b32.xlu0 %v1363_v30, %s5442_s19 }
0x181e   :  { %v1366_v31 = vpop.permute.xlu0 %1365 }
0x181f   :  { %1369 = vst.msk [vmem:[#allocation3 + $0xc] sm:$0x3] %vm690_vm7, %v1366_v31  ;;  %4396 = vmatmul.mubr.msk.f32.vlgmr.msra.gmra.mrb[8].mxu1 %vm437_vm5, %v1366_v31 }
0x1820   :  { %4417 = vmatprep.mubr.msk.f32.mxu1 %vm5440_vm4, %v5441_v38  ;;  %4701 = vmatpush3.bf16.msra.mxu1 %v5935_v33 }
0x1821   :  { %4702 = vmatprep.subr.bf16.mxu1 %v5439_v28 }
0x1824   :  { %4704 = vmatpush3.bf16.msra.mxu1 %v5938_v54 }
0x1825   :  { %4711 = vmatprep.subr.bf16.mxu1 %v5439_v28 }
0x1826   :  { %v1489_v8 = vld [vmem:[#allocation3 + $0xc] sm:$0x3] }
0x1827   :  { %4418 = vmatmul.mubr.f32.vlgmr.msra.gmra.mrb[10].mxu1 %v5441_v38 }
0x1828   :  { %4713 = vmatpush3.bf16.msra.mxu1 %v5935_v33  ;;  %4439 = vmatprep.mubr.msk.f32.mxu1 %vm5440_vm4, %v5441_v38 }
0x1829   :  { %4714 = vmatprep.subr.bf16.mxu1 %v5439_v28 }
0x182c   :  { %4716 = vmatpush3.bf16.msra.mxu1 %v5938_v54 }
0x182d   :  { %4723 = vmatprep.subr.bf16.mxu1 %v5439_v28 }
0x18f2   :  { %v1442_v32 = vpop.f32.mrb[8].mxu1 }
0x18f3   :  { %v1443_v34 = vadd.f32 %v5821_v47, %v1442_v32  ;;  %v4397_v35 = vpop.f32.mrb[9].mxu1 }
0x18f5   :  { %1456 = vrot.lane.b32.xlu1 %v1443_v34, %s5442_s19  ;;  %v1448_v39 = vadd.f32 %v1447_v36, %v1443_v34 }
0x18f7   :  { %v4080_v40 = vmul.f32 -1.442695, %v1448_v39 }
0x18f9   :  { %4898 = vpow2.f32 %v4080_v40 }
0x18fa   :  { %v1752_v1 = vpop.f32.mrb[10].mxu1 }
0x18fb   :  { %v1753_v2 = vadd.f32 %v5953_v0, %v1752_v1  ;;  %v4419_v3 = vpop.f32.mrb[11].mxu1 }
0x1903   :  { %v4899_v41 = vpop.eup %4898 }
0x1904   :  { %v1452_v42 = vadd.f32 1.0, %v4899_v41 }
0x1906   :  { %4900 = vrcp.f32 %v1452_v42 }
0x1910   :  { %v4901_v43 = vpop.eup %4900 }
0x1967   :  { %v1457_v44 = vpop.permute.xlu1 %1456 }
0x1968   :  { %v1459_v45 = vmul.f32 %v4901_v43, %v1457_v44 }
0x196a   :  { %1461 = vrot.lane.b32.xlu0 %v1459_v45, %s5442_s19 }
0x19dc   :  { %v1462_v46 = vpop.permute.xlu0 %1461 }
0x19dd   :  { %v1464_v48 = vadd.f32 %v1462_v46, %v1447_v36 }
0x19df   :  { %4902 = vtanh.f32 %v1464_v48 }
0x19e9   :  { %v4903_v49 = vpop.eup %4902 }
0x19ea   :  { %v1466_v47 = vsub.f32 %v1363_v30, %v4903_v49 }
0x19ec   :  { %1468 = vrot.lane.b32.xlu1 %v1466_v47, %s5443_s22 }
0x1a5e   :  { %v1469_v55 = vpop.permute.xlu1 %1468 }
0x1a5f   :  { %v1471_v56 = vmul.f32 %v4901_v43, %v1469_v55 }
0x1a61   :  { %1473 = vrot.lane.b32.xlu0 %v1471_v56, %s5427_s16 }
0x1a65   :  { %1765 = vrot.lane.b32.xlu0 %v1753_v2, %s5442_s19 }
0x1ad3   :  { %v1474_v62 = vpop.permute.xlu0 %1473 }
0x1ad4   :  { %v1476_v63 = vadd.f32 %v4903_v49, %v1474_v62 }
0x1ad6   :  { %1478 = vrot.lane.b32.xlu1 %v1476_v63, %s5442_s19 }
0x1ad7   :  { %v1766_v39 = vpop.permute.xlu0 %1765 }
0x1b48   :  { %v1479_v4 = vpop.permute.xlu1 %1478 }
0x1b49   :  { %1482 = vst.msk [vmem:[#allocation3 + $0xe] sm:$0x3] %vm690_vm7, %v1479_v4 }
0x1b50   :  { %v1490_v10 = vld [vmem:[#allocation3 + $0xe] sm:$0x3] }
0x1b51   :  { %v1528_v11 = vcombine.low %v1489_v8, %v1490_v10 }
0x1b53   :  { %v1542_v13 = vrot.slane %v1528_v11, %v5790_v9 }
0x1b55   :  { %v1543_v14 = vcombine.low %v1535_v12, %v1542_v13 }
0x1b57   :  { %4407 = vmatmul.mubr.msk.f32.vlgmr.msra.gmra.mrb[10].mxu0 %vm437_vm5, %v1543_v14 }
0x1b58   :  { %4707 = vmatpush3.bf16.msra.mxu0 %v5935_v33  ;;  %4428 = vmatprep.mubr.msk.f32.mxu0 %vm5440_vm4, %v5441_v38 }
0x1b59   :  { %4708 = vmatprep.subr.bf16.mxu0 %v5439_v28 }
0x1b5c   :  { %4710 = vmatpush3.bf16.msra.mxu0 %v5938_v54 }
0x1b5d   :  { %4717 = vmatprep.subr.bf16.mxu0 %v5439_v28 }
0x1c2a   :  { %v4408_v16 = vpop.f32.mrb[10].mxu0 }
0x1c2b   :  { %v1620_v17 = vadd.f32 %v4408_v16, %v4081_v15  ;;  %v1614_v18 = vpop.f32.mrb[11].mxu0 }
0x1c2c   :  { %v1615_v19 = vadd.f32 %v4081_v15, %v1614_v18 }
0x1c2d   :  { %v1642_v20 = vcombine.high %v1620_v17, %v1620_v17  ;;  %v1649_v21 = vrot.slane %v1620_v17, %v5790_v9 }
0x1c2e   :  { %v1625_v22 = vcombine.high %v1615_v19, %v1615_v19  ;;  %v1632_v23 = vrot.slane %v1615_v19, %v5790_v9 }
0x1c2f   :  { %v1656_v24 = vrot.slane %v1642_v20, %v5790_v9  ;;  %v1657_v25 = vcombine.high %v1649_v21, %v1649_v21  ;;  %1671 = vst.msk [vmem:[#allocation2 + $0x8] sm:$0x3] %vm563_vm6, %v1649_v21 }
0x1c30   :  { %v1639_v26 = vrot.slane %v1625_v22, %v5790_v9  ;;  %v1640_v27 = vcombine.high %v1632_v23, %v1632_v23  ;;  %1667 = vst.msk [vmem:[#allocation2] sm:$0x3] %vm563_vm6, %v1632_v23 }
0x1c31   :  { %v1658_v29 = vcombine.high %v1656_v24, %v1656_v24  ;;  %1672 = vst.msk [vmem:[#allocation2 + $0xa] sm:$0x3] %vm563_vm6, %v1657_v25  ;;  %1673 = vst.msk [vmem:[#allocation2 + $0xc] sm:$0x3] %vm563_vm6, %v1656_v24 }
0x1c32   :  { %v1641_v30 = vcombine.high %v1639_v26, %v1639_v26  ;;  %1668 = vst.msk [vmem:[#allocation2 + $0x2] sm:$0x3] %vm563_vm6, %v1640_v27  ;;  %1669 = vst.msk [vmem:[#allocation2 + $0x4] sm:$0x3] %vm563_vm6, %v1639_v26 }
0x1c33   :  { %1674 = vst.msk [vmem:[#allocation2 + $0xe] sm:$0x3] %vm563_vm6, %v1658_v29 }
0x1c34   :  { %1670 = vst.msk [vmem:[#allocation2 + $0x6] sm:$0x3] %vm563_vm6, %v1641_v30 }
0x1c37   :  { %v1756_v31 = vld [vmem:[#allocation2] sm:$0x3] }
0x1c38   :  { %v1757_v32 = vadd.f32 %v1756_v31, %v1753_v2 }
0x1c39   :  { %v1867_v55 = vld [vmem:[#allocation2 + $0x2] sm:$0x3]  ;;  %v1978_v12 = vld [vmem:[#allocation2 + $0x4] sm:$0x3] }
0x1c3a   :  { %v4085_v34 = vmul.f32 -1.442695, %v1757_v32 }
0x1c3c   :  { %4904 = vpow2.f32 %v4085_v34  ;;  %v2089_v34 = vld [vmem:[#allocation2 + $0x6] sm:$0x3] }
0x1c46   :  { %v4905_v35 = vpop.eup %4904 }
0x1c47   :  { %v1761_v36 = vadd.f32 1.0, %v4905_v35 }
0x1c49   :  { %4906 = vrcp.f32 %v1761_v36 }
0x1c53   :  { %v4907_v40 = vpop.eup %4906 }
0x1c54   :  { %v1768_v41 = vmul.f32 %v4907_v40, %v1766_v39 }
0x1c56   :  { %1770 = vrot.lane.b32.xlu1 %v1768_v41, %s5442_s19 }
0x1cc8   :  { %v1771_v42 = vpop.permute.xlu1 %1770 }
0x1cc9   :  { %v1773_v43 = vadd.f32 %v1771_v42, %v1756_v31 }
0x1ccb   :  { %4908 = vtanh.f32 %v1773_v43 }
0x1cd5   :  { %v4909_v44 = vpop.eup %4908 }
0x1cd6   :  { %v1775_v45 = vsub.f32 0.0, %v4909_v44 }
0x1cd8   :  { %1777 = vrot.lane.b32.xlu0 %v1775_v45, %s5443_s22 }
0x1d4a   :  { %v1778_v46 = vpop.permute.xlu0 %1777 }
0x1d4b   :  { %v1780_v48 = vmul.f32 %v4907_v40, %v1778_v46 }
0x1d4d   :  { %1782 = vrot.lane.b32.xlu1 %v1780_v48, %s5427_s16 }
0x1dbf   :  { %v1783_v49 = vpop.permute.xlu1 %1782 }
0x1dc0   :  { %v1785_v47 = vadd.f32 %v4909_v44, %v1783_v49 }
0x1dc2   :  { %1787 = vrot.lane.b32.xlu0 %v1785_v47, %s5442_s19 }
0x1e34   :  { %v1788_v50 = vpop.permute.xlu0 %1787 }
0x1e35   :  { %1790 = vst.msk [vmem:[#allocation3] sm:$0x3] %vm690_vm7, %v1788_v50  ;;  %4429 = vmatmul.mubr.msk.f32.vlgmr.msra.gmra.mrb[12].mxu0 %vm437_vm5, %v1788_v50 }
0x1e36   :  { %4719 = vmatpush3.bf16.msra.mxu0 %v5935_v33  ;;  %4450 = vmatprep.mubr.msk.f32.mxu0 %vm5440_vm4, %v5441_v38 }
0x1e37   :  { %4720 = vmatprep.subr.bf16.mxu0 %v5439_v28 }
0x1e3a   :  { %4722 = vmatpush3.bf16.msra.mxu0 %v5938_v54 }
0x1e3b   :  { %4729 = vmatprep.subr.bf16.mxu0 %v5439_v28 }
0x1f08   :  { %v1863_v51 = vpop.f32.mrb[12].mxu0 }
0x1f09   :  { %v1864_v52 = vadd.f32 %v5953_v0, %v1863_v51  ;;  %v4430_v53 = vpop.f32.mrb[13].mxu0 }
0x1f0b   :  { %1876 = vrot.lane.b32.xlu1 %v1864_v52, %s5442_s19  ;;  %v1868_v56 = vadd.f32 %v1867_v55, %v1864_v52 }
0x1f0d   :  { %v4087_v37 = vmul.f32 -1.442695, %v1868_v56 }
0x1f0f   :  { %4910 = vpow2.f32 %v4087_v37  ;;  %v2200_v37 = vld [vmem:[#allocation2 + $0x8] sm:$0x3] }
0x1f19   :  { %v4911_v57 = vpop.eup %4910 }
0x1f1a   :  { %v1872_v58 = vadd.f32 1.0, %v4911_v57 }
0x1f1c   :  { %4912 = vrcp.f32 %v1872_v58 }
0x1f26   :  { %v4913_v59 = vpop.eup %4912 }
0x1f7d   :  { %v1877_v60 = vpop.permute.xlu1 %1876 }
0x1f7e   :  { %v1879_v61 = vmul.f32 %v4913_v59, %v1877_v60 }
0x1f80   :  { %1881 = vrot.lane.b32.xlu0 %v1879_v61, %s5442_s19 }
0x1ff2   :  { %v1882_v62 = vpop.permute.xlu0 %1881 }
0x1ff3   :  { %v1884_v63 = vadd.f32 %v1882_v62, %v1867_v55 }
0x1ff5   :  { %4914 = vtanh.f32 %v1884_v63 }
0x1fff   :  { %v4915_v1 = vpop.eup %4914 }
0x2000   :  { %v1886_v2 = vsub.f32 %v1785_v47, %v4915_v1 }
0x2002   :  { %1888 = vrot.lane.b32.xlu1 %v1886_v2, %s5443_s22 }
0x2074   :  { %v1889_v3 = vpop.permute.xlu1 %1888 }
0x2075   :  { %v1891_v4 = vmul.f32 %v4913_v59, %v1889_v3 }
0x2077   :  { %1893 = vrot.lane.b32.xlu0 %v1891_v4, %s5427_s16 }
0x20e9   :  { %v1894_v5 = vpop.permute.xlu0 %1893 }
0x20ea   :  { %v1896_v6 = vadd.f32 %v4915_v1, %v1894_v5 }
0x20ec   :  { %1898 = vrot.lane.b32.xlu1 %v1896_v6, %s5442_s19 }
0x215e   :  { %v1899_v7 = vpop.permute.xlu1 %1898 }
0x215f   :  { %1901 = vst.msk [vmem:[#allocation3 + $0x2] sm:$0x3] %vm690_vm7, %v1899_v7  ;;  %4440 = vmatmul.mubr.msk.f32.vlgmr.msra.gmra.mrb[12].mxu1 %vm437_vm5, %v1899_v7 }
0x2160   :  { %4725 = vmatpush3.bf16.msra.mxu1 %v5935_v33  ;;  %4461 = vmatprep.mubr.msk.f32.mxu1 %vm5440_vm4, %v5441_v38 }
0x2161   :  { %4726 = vmatprep.subr.bf16.mxu1 %v5439_v28 }
0x2164   :  { %4728 = vmatpush3.bf16.msra.mxu1 %v5938_v54 }
0x2165   :  { %4735 = vmatprep.subr.bf16.mxu1 %v5439_v28 }
0x2232   :  { %v1974_v8 = vpop.f32.mrb[12].mxu1 }
0x2233   :  { %v1975_v10 = vadd.f32 %v5953_v0, %v1974_v8  ;;  %v4441_v11 = vpop.f32.mrb[13].mxu1 }
0x2235   :  { %1987 = vrot.lane.b32.xlu0 %v1975_v10, %s5442_s19  ;;  %v1979_v13 = vadd.f32 %v1978_v12, %v1975_v10 }
0x2237   :  { %v4089_v14 = vmul.f32 -1.442695, %v1979_v13 }
0x2239   :  { %4916 = vpow2.f32 %v4089_v14  ;;  %v2311_v14 = vld [vmem:[#allocation2 + $0xa] sm:$0x3] }
0x2243   :  { %v4917_v15 = vpop.eup %4916 }
0x2244   :  { %v1983_v16 = vadd.f32 1.0, %v4917_v15 }
0x2246   :  { %4918 = vrcp.f32 %v1983_v16 }
0x2250   :  { %v4919_v17 = vpop.eup %4918 }
0x22a7   :  { %v1988_v18 = vpop.permute.xlu0 %1987 }
0x22a8   :  { %v1990_v19 = vmul.f32 %v4919_v17, %v1988_v18 }
0x22aa   :  { %1992 = vrot.lane.b32.xlu1 %v1990_v19, %s5442_s19 }
0x231c   :  { %v1993_v20 = vpop.permute.xlu1 %1992 }
0x231d   :  { %v1995_v21 = vadd.f32 %v1993_v20, %v1978_v12 }
0x231f   :  { %4920 = vtanh.f32 %v1995_v21 }
0x2329   :  { %v4921_v22 = vpop.eup %4920 }
0x232a   :  { %v1997_v23 = vsub.f32 %v1896_v6, %v4921_v22 }
0x232c   :  { %1999 = vrot.lane.b32.xlu0 %v1997_v23, %s5443_s22 }
0x239e   :  { %v2000_v24 = vpop.permute.xlu0 %1999 }
0x239f   :  { %v2002_v25 = vmul.f32 %v4919_v17, %v2000_v24 }
0x23a1   :  { %2004 = vrot.lane.b32.xlu1 %v2002_v25, %s5427_s16 }
0x2413   :  { %v2005_v26 = vpop.permute.xlu1 %2004 }
0x2414   :  { %v2007_v27 = vadd.f32 %v4921_v22, %v2005_v26 }
0x2416   :  { %2009 = vrot.lane.b32.xlu0 %v2007_v27, %s5442_s19 }
0x2488   :  { %v2010_v29 = vpop.permute.xlu0 %2009 }
0x2489   :  { %2012 = vst.msk [vmem:[#allocation3 + $0x4] sm:$0x3] %vm690_vm7, %v2010_v29  ;;  %4451 = vmatmul.mubr.msk.f32.vlgmr.msra.gmra.mrb[14].mxu0 %vm437_vm5, %v2010_v29 }
0x248a   :  { %4731 = vmatpush3.bf16.msra.mxu0 %v5935_v33  ;;  %4472 = vmatprep.mubr.msk.f32.mxu0 %vm5440_vm4, %v5441_v38 }
0x248b   :  { %4732 = vmatprep.subr.bf16.mxu0 %v5439_v28 }
0x248e   :  { %4734 = vmatpush3.bf16.msra.mxu0 %v5938_v54 }
0x248f   :  { %4741 = vmatprep.subr.bf16.mxu0 %v5439_v28 }
0x255c   :  { %v2085_v30 = vpop.f32.mrb[14].mxu0 }
0x255d   :  { %v2086_v31 = vadd.f32 %v5953_v0, %v2085_v30  ;;  %v4452_v32 = vpop.f32.mrb[15].mxu0  ;;  %v2569_v30 = vld [vmem:[#allocation3 + $0x2] sm:$0x3] }
0x255f   :  { %2098 = vrot.lane.b32.xlu1 %v2086_v31, %s5442_s19  ;;  %v2090_v35 = vadd.f32 %v2089_v34, %v2086_v31  ;;  %v2570_v31 = vld [vmem:[#allocation3 + $0x4] sm:$0x3] }
0x2561   :  { %v4091_v36 = vmul.f32 -1.442695, %v2090_v35 }
0x2563   :  { %4922 = vpow2.f32 %v4091_v36 }
0x256d   :  { %v4923_v39 = vpop.eup %4922 }
0x256e   :  { %v2094_v40 = vadd.f32 1.0, %v4923_v39 }
0x2570   :  { %4924 = vrcp.f32 %v2094_v40 }
0x257a   :  { %v4925_v41 = vpop.eup %4924 }
0x25d1   :  { %v2099_v42 = vpop.permute.xlu1 %2098 }
0x25d2   :  { %v2101_v43 = vmul.f32 %v4925_v41, %v2099_v42 }
0x25d4   :  { %2103 = vrot.lane.b32.xlu0 %v2101_v43, %s5442_s19 }
0x2646   :  { %v2104_v44 = vpop.permute.xlu0 %2103 }
0x2647   :  { %v2106_v45 = vadd.f32 %v2104_v44, %v2089_v34  ;;  %v2568_v34 = vld [vmem:[#allocation3] sm:$0x3] }
0x2648   :  { %v2595_v35 = vcombine.low %v2568_v34, %v2569_v30 }
0x2649   :  { %4926 = vtanh.f32 %v2106_v45  ;;  %v2422_v45 = vld [vmem:[#allocation2 + $0xc] sm:$0x3] }
0x264a   :  { %v2603_v39 = vrot.slane %v2595_v35, %v5790_v9 }
0x2653   :  { %v4927_v46 = vpop.eup %4926 }
0x2654   :  { %v2108_v48 = vsub.f32 %v2007_v27, %v4927_v46 }
0x2656   :  { %2110 = vrot.lane.b32.xlu1 %v2108_v48, %s5443_s22 }
0x26c8   :  { %v2111_v49 = vpop.permute.xlu1 %2110 }
0x26c9   :  { %v2113_v47 = vmul.f32 %v4925_v41, %v2111_v49 }
0x26cb   :  { %2115 = vrot.lane.b32.xlu0 %v2113_v47, %s5427_s16 }
0x273d   :  { %v2116_v50 = vpop.permute.xlu0 %2115 }
0x273e   :  { %v2118_v51 = vadd.f32 %v4927_v46, %v2116_v50 }
0x2740   :  { %2120 = vrot.lane.b32.xlu1 %v2118_v51, %s5442_s19 }
0x27b2   :  { %v2121_v52 = vpop.permute.xlu1 %2120 }
0x27b3   :  { %2123 = vst.msk [vmem:[#allocation3 + $0x6] sm:$0x3] %vm690_vm7, %v2121_v52  ;;  %4462 = vmatmul.mubr.msk.f32.vlgmr.msra.gmra.mrb[14].mxu1 %vm437_vm5, %v2121_v52 }
0x27b4   :  { %4737 = vmatpush3.bf16.msra.mxu1 %v5935_v33  ;;  %4483 = vmatprep.mubr.msk.f32.mxu1 %vm5440_vm4, %v5441_v38 }
0x27b5   :  { %4738 = vmatprep.subr.bf16.mxu1 %v5439_v28 }
0x27b8   :  { %4740 = vmatpush3.bf16.msra.mxu1 %v5938_v54 }
0x27ba   :  { %v2571_v29 = vld [vmem:[#allocation3 + $0x6] sm:$0x3] }
0x27bb   :  { %v2596_v32 = vcombine.low %v2570_v31, %v2571_v29  ;;  %v6101_v29 = vld [vmem:[#allocation26] ss:$0 sm:$0xff] }
0x27bd   :  { %v2610_v36 = vrot.slane %v2596_v32, %v5790_v9 }
0x27bf   :  { %v2611_v41 = vcombine.low %v2603_v39, %v2610_v36 }
0x2886   :  { %v2196_v53 = vpop.f32.mrb[14].mxu1 }
0x2887   :  { %v2197_v55 = vadd.f32 %v5953_v0, %v2196_v53  ;;  %v4463_v56 = vpop.f32.mrb[15].mxu1 }
0x2889   :  { %2209 = vrot.lane.b32.xlu0 %v2197_v55, %s5442_s19  ;;  %v2201_v57 = vadd.f32 %v2200_v37, %v2197_v55 }
0x288b   :  { %v4093_v58 = vmul.f32 -1.442695, %v2201_v57 }
0x288d   :  { %4928 = vpow2.f32 %v4093_v58 }
0x2897   :  { %v4929_v59 = vpop.eup %4928 }
0x2898   :  { %v2205_v60 = vadd.f32 1.0, %v4929_v59 }
0x289a   :  { %4930 = vrcp.f32 %v2205_v60 }
0x28a4   :  { %v4931_v61 = vpop.eup %4930 }
0x28fb   :  { %v2210_v62 = vpop.permute.xlu0 %2209 }
0x28fc   :  { %v2212_v63 = vmul.f32 %v4931_v61, %v2210_v62 }
0x28fe   :  { %2214 = vrot.lane.b32.xlu1 %v2212_v63, %s5442_s19 }
0x2970   :  { %v2215_v1 = vpop.permute.xlu1 %2214 }
0x2971   :  { %v2217_v2 = vadd.f32 %v2215_v1, %v2200_v37 }
0x2973   :  { %4932 = vtanh.f32 %v2217_v2  ;;  %v2533_v2 = vld [vmem:[#allocation2 + $0xe] sm:$0x3] }
0x297d   :  { %v4933_v3 = vpop.eup %4932 }
0x297e   :  { %v2219_v4 = vsub.f32 %v2118_v51, %v4933_v3 }
0x2980   :  { %2221 = vrot.lane.b32.xlu0 %v2219_v4, %s5443_s22 }
0x29f2   :  { %v2222_v5 = vpop.permute.xlu0 %2221 }
0x29f3   :  { %v2224_v6 = vmul.f32 %v4931_v61, %v2222_v5 }
0x29f5   :  { %2226 = vrot.lane.b32.xlu1 %v2224_v6, %s5427_s16 }
0x2a67   :  { %v2227_v7 = vpop.permute.xlu1 %2226 }
0x2a68   :  { %v2229_v8 = vadd.f32 %v4933_v3, %v2227_v7 }
0x2a6a   :  { %2231 = vrot.lane.b32.xlu0 %v2229_v8, %s5442_s19 }
0x2adc   :  { %v2232_v10 = vpop.permute.xlu0 %2231 }
0x2add   :  { %2234 = vst.msk [vmem:[#allocation3 + $0x8] sm:$0x3] %vm690_vm7, %v2232_v10  ;;  %4473 = vmatmul.mubr.msk.f32.vlgmr.msra.gmra.mrb[16].mxu0 %vm437_vm5, %v2232_v10 }
0x2ade   :  { %4743 = vmatpush3.bf16.msra.mxu0 %v5935_v33  ;;  %4494 = vmatprep.mubr.msk.f32.mxu0 %vm5440_vm4, %v5441_v38 }
0x2adf   :  { %4744 = vmatprep.subr.bf16.mxu0 %v5439_v28 }
0x2ae2   :  { %4746 = vmatpush3.bf16.msra.mxu0 %v5938_v54 }
0x2ae3   :  { %4755 = vmatprep.subr.bf16.mxu0 %v5439_v28 }
0x2ae4   :  { %v2572_v36 = vld [vmem:[#allocation3 + $0x8] sm:$0x3] }
0x2bb0   :  { %v2307_v11 = vpop.f32.mrb[16].mxu0 }
0x2bb1   :  { %v2308_v12 = vadd.f32 %v5953_v0, %v2307_v11  ;;  %v4474_v13 = vpop.f32.mrb[17].mxu0 }
0x2bb3   :  { %2320 = vrot.lane.b32.xlu1 %v2308_v12, %s5442_s19  ;;  %v2312_v15 = vadd.f32 %v2311_v14, %v2308_v12 }
0x2bb5   :  { %v4095_v16 = vmul.f32 -1.442695, %v2312_v15  ;;  %v2768_v15 = vld [vmem:[#allocation23 + $0x8] sm:$0xff] }
0x2bb7   :  { %4934 = vpow2.f32 %v4095_v16  ;;  %v2769_v16 = vld [vmem:[#allocation23 + $0x10] sm:$0xff] }
0x2bc1   :  { %v4935_v33 = vpop.eup %4934 }
0x2bc2   :  { %v2316_v17 = vadd.f32 1.0, %v4935_v33 }
0x2bc4   :  { %4936 = vrcp.f32 %v2316_v17  ;;  %v2770_v17 = vld [vmem:[#allocation23 + $0x18] sm:$0xff] }
0x2bce   :  { %v4937_v18 = vpop.eup %4936 }
0x2c25   :  { %v2321_v19 = vpop.permute.xlu1 %2320 }
0x2c26   :  { %v2323_v20 = vmul.f32 %v4937_v18, %v2321_v19 }
0x2c28   :  { %2325 = vrot.lane.b32.xlu0 %v2323_v20, %s5442_s19 }
0x2c9a   :  { %v2326_v54 = vpop.permute.xlu0 %2325 }
0x2c9b   :  { %v2328_v21 = vadd.f32 %v2326_v54, %v2311_v14  ;;  %v2767_v14 = vld [vmem:[#allocation23] sm:$0xff]  ;;  %v2576_v54 = vld [vmem:[%s6274_s11] sm:$0xff] }
0x2c9c   :  { %v6071_v33 = vpack.c.bf16 %v2768_v15, %v2767_v14 }
0x2c9d   :  { %4938 = vtanh.f32 %v2328_v21  ;;  %v2577_v21 = vld [vmem:[%s6274_s11 + $0x8] sm:$0xff] }
0x2ca7   :  { %v4939_v22 = vpop.eup %4938 }
0x2ca8   :  { %v2330_v23 = vsub.f32 %v2229_v8, %v4939_v22 }
0x2caa   :  { %2332 = vrot.lane.b32.xlu1 %v2330_v23, %s5443_s22  ;;  %v4747_v23 = vpack.c.bf16 %v2577_v21, %v2576_v54 }
0x2cac   :  { %4748 = vmatprep.subr.bf16.mxu1 %v4747_v23 }
0x2d1c   :  { %v2333_v24 = vpop.permute.xlu1 %2332 }
0x2d1d   :  { %v2335_v25 = vmul.f32 %v4937_v18, %v2333_v24  ;;  %v6074_v18 = vpack.c.bf16 %v2770_v17, %v2769_v16  ;;  %v2579_v24 = vld [vmem:[%s6274_s11 + $0x18] sm:$0xff] }
0x2d1f   :  { %2337 = vrot.lane.b32.xlu0 %v2335_v25, %s5427_s16 }
0x2d91   :  { %v2338_v26 = vpop.permute.xlu0 %2337 }
0x2d92   :  { %v2340_v27 = vadd.f32 %v4939_v22, %v2338_v26  ;;  %v2578_v22 = vld [vmem:[%s6274_s11 + $0x10] sm:$0xff] }
0x2d93   :  { %v4751_v25 = vpack.c.bf16 %v2579_v24, %v2578_v22 }
0x2d94   :  { %2342 = vrot.lane.b32.xlu1 %v2340_v27, %s5442_s19 }
0x2e06   :  { %v2343_v40 = vpop.permute.xlu1 %2342 }
0x2e07   :  { %2345 = vst.msk [vmem:[#allocation3 + $0xa] sm:$0x3] %vm690_vm7, %v2343_v40  ;;  %4484 = vmatmul.mubr.msk.f32.vlgmr.msra.gmra.mrb[16].mxu1 %vm437_vm5, %v2343_v40 }
0x2e08   :  { %4505 = vmatprep.mubr.msk.f32.mxu1 %vm437_vm5, %v2611_v41  ;;  %4750 = vmatpush3.bf16.msra.mxu1 %v4747_v23 }
0x2e09   :  { %4752 = vmatprep.subr.bf16.mxu1 %v4751_v25 }
0x2e0c   :  { %4754 = vmatpush3.bf16.msra.mxu1 %v4751_v25 }
0x2e0d   :  { %4761 = vmatprep.subr.bf16.mxu1 %v5439_v28 }
0x2e0e   :  { %v2573_v35 = vld [vmem:[#allocation3 + $0xa] sm:$0x3] }
0x2e0f   :  { %v2612_v39 = vcombine.low %v2572_v36, %v2573_v35 }
0x2eda   :  { %v2418_v42 = vpop.f32.mrb[16].mxu1 }
0x2edb   :  { %v2419_v43 = vadd.f32 %v5953_v0, %v2418_v42  ;;  %v4485_v44 = vpop.f32.mrb[17].mxu1 }
0x2edd   :  { %2431 = vrot.lane.b32.xlu0 %v2419_v43, %s5442_s19  ;;  %v2423_v46 = vadd.f32 %v2422_v45, %v2419_v43  ;;  %v2620_v43 = vrot.slane %v2612_v39, %v5790_v9 }
0x2edf   :  { %v4097_v48 = vmul.f32 -1.442695, %v2423_v46  ;;  %v4100_v46 = vld [vmem:[#allocation25] ss:$0 sm:$0xff] }
0x2ee1   :  { %4940 = vpow2.f32 %v4097_v48 }
0x2eeb   :  { %v4941_v49 = vpop.eup %4940 }
0x2eec   :  { %v2427_v47 = vadd.f32 1.0, %v4941_v49 }
0x2eee   :  { %4942 = vrcp.f32 %v2427_v47 }
0x2ef8   :  { %v4943_v50 = vpop.eup %4942 }
0x2f4f   :  { %v2432_v51 = vpop.permute.xlu0 %2431 }
0x2f50   :  { %v2434_v52 = vmul.f32 %v4943_v50, %v2432_v51 }
0x2f52   :  { %2436 = vrot.lane.b32.xlu1 %v2434_v52, %s5442_s19 }
0x2fc4   :  { %v2437_v53 = vpop.permute.xlu1 %2436 }
0x2fc5   :  { %v2439_v55 = vadd.f32 %v2437_v53, %v2422_v45 }
0x2fc7   :  { %4944 = vtanh.f32 %v2439_v55 }
0x2fd1   :  { %v4945_v56 = vpop.eup %4944 }
0x2fd2   :  { %v2441_v37 = vsub.f32 %v2340_v27, %v4945_v56 }
0x2fd4   :  { %2443 = vrot.lane.b32.xlu0 %v2441_v37, %s5443_s22 }
0x3046   :  { %v2444_v57 = vpop.permute.xlu0 %2443 }
0x3047   :  { %v2446_v58 = vmul.f32 %v4943_v50, %v2444_v57 }
0x3049   :  { %2448 = vrot.lane.b32.xlu1 %v2446_v58, %s5427_s16 }
0x30bb   :  { %v2449_v59 = vpop.permute.xlu1 %2448 }
0x30bc   :  { %v2451_v60 = vadd.f32 %v4945_v56, %v2449_v59 }
0x30be   :  { %2453 = vrot.lane.b32.xlu0 %v2451_v60, %s5442_s19 }
0x3130   :  { %v2454_v61 = vpop.permute.xlu0 %2453 }
0x3131   :  { %2456 = vst.msk [vmem:[#allocation3 + $0xc] sm:$0x3] %vm690_vm7, %v2454_v61  ;;  %4495 = vmatmul.mubr.msk.f32.vlgmr.msra.gmra.mrb[18].mxu0 %vm437_vm5, %v2454_v61 }
0x3132   :  { %4516 = vmatprep.mubr.msk.f32.mxu0 %vm5440_vm4, %v5441_v38  ;;  %4757 = vmatpush3.bf16.msra.mxu0 %v6071_v33 }
0x3133   :  { %4758 = vmatprep.subr.bf16.mxu0 %v5439_v28 }
0x3136   :  { %4760 = vmatpush3.bf16.msra.mxu0 %v6074_v18 }
0x3137   :  { %4767 = vmatprep.subr.bf16.mxu0 %v5439_v28 }
0x3138   :  { %v2574_v40 = vld [vmem:[#allocation3 + $0xc] sm:$0x3] }
0x3139   :  { %4517 = vmatmul.mubr.f32.vlgmr.msra.gmra.mrb[20].mxu0 %v5441_v38 }
0x313a   :  { %4769 = vmatpush3.bf16.msra.mxu0 %v6071_v33  ;;  %4538 = vmatprep.mubr.msk.f32.mxu0 %vm5440_vm4, %v5441_v38 }
0x313b   :  { %4770 = vmatprep.subr.bf16.mxu0 %v5439_v28 }
0x313e   :  { %4772 = vmatpush3.bf16.msra.mxu0 %v6074_v18 }
0x313f   :  { %4779 = vmatprep.subr.bf16.mxu0 %v5439_v28 }
0x3204   :  { %v2529_v62 = vpop.f32.mrb[18].mxu0 }
0x3205   :  { %v2530_v63 = vadd.f32 %v5953_v0, %v2529_v62  ;;  %v4496_v1 = vpop.f32.mrb[19].mxu0 }
0x3207   :  { %2542 = vrot.lane.b32.xlu1 %v2530_v63, %s5442_s19  ;;  %v2534_v3 = vadd.f32 %v2533_v2, %v2530_v63 }
0x3209   :  { %v4099_v4 = vmul.f32 -1.442695, %v2534_v3 }
0x320b   :  { %4946 = vpow2.f32 %v4099_v4 }
0x320c   :  { %v2837_v30 = vpop.f32.mrb[20].mxu0 }
0x320d   :  { %v2838_v31 = vadd.f32 %v6101_v29, %v2837_v30  ;;  %v4518_v32 = vpop.f32.mrb[21].mxu0 }
0x3215   :  { %v4947_v5 = vpop.eup %4946 }
0x3216   :  { %v2538_v6 = vadd.f32 1.0, %v4947_v5 }
0x3218   :  { %4948 = vrcp.f32 %v2538_v6 }
0x3222   :  { %v4949_v7 = vpop.eup %4948 }
0x3279   :  { %v2543_v8 = vpop.permute.xlu1 %2542 }
0x327a   :  { %v2545_v10 = vmul.f32 %v4949_v7, %v2543_v8 }
0x327c   :  { %2547 = vrot.lane.b32.xlu0 %v2545_v10, %s5442_s19 }
0x32ee   :  { %v2548_v11 = vpop.permute.xlu0 %2547 }
0x32ef   :  { %v2550_v12 = vadd.f32 %v2548_v11, %v2533_v2 }
0x32f1   :  { %4950 = vtanh.f32 %v2550_v12 }
0x32fb   :  { %v4951_v13 = vpop.eup %4950 }
0x32fc   :  { %v2552_v0 = vsub.f32 %v2451_v60, %v4951_v13 }
0x32fe   :  { %2554 = vrot.lane.b32.xlu1 %v2552_v0, %s5443_s22 }
0x3370   :  { %v2555_v19 = vpop.permute.xlu1 %2554 }
0x3371   :  { %v2557_v20 = vmul.f32 %v4949_v7, %v2555_v19 }
0x3373   :  { %2559 = vrot.lane.b32.xlu0 %v2557_v20, %s5427_s16 }
0x3377   :  { %2850 = vrot.lane.b32.xlu0 %v2838_v31, %s5442_s19 }
0x33e5   :  { %v2560_v26 = vpop.permute.xlu0 %2559 }
0x33e6   :  { %v2562_v27 = vadd.f32 %v4951_v13, %v2560_v26 }
0x33e8   :  { %2564 = vrot.lane.b32.xlu1 %v2562_v27, %s5442_s19 }
0x33e9   :  { %v2851_v3 = vpop.permute.xlu0 %2850 }
0x345a   :  { %v2565_v34 = vpop.permute.xlu1 %2564 }
0x345b   :  { %2567 = vst.msk [vmem:[#allocation3 + $0xe] sm:$0x3] %vm690_vm7, %v2565_v34 }
0x3462   :  { %v2575_v41 = vld [vmem:[#allocation3 + $0xe] sm:$0x3] }
0x3463   :  { %v2613_v42 = vcombine.low %v2574_v40, %v2575_v41 }
0x3465   :  { %v2627_v44 = vrot.slane %v2613_v42, %v5790_v9 }
0x3467   :  { %v2628_v45 = vcombine.low %v2620_v43, %v2627_v44 }
0x3469   :  { %4506 = vmatmul.mubr.msk.f32.vlgmr.msra.gmra.mrb[18].mxu1 %vm437_vm5, %v2628_v45 }
0x346a   :  { %4763 = vmatpush3.bf16.msra.mxu1 %v6071_v33  ;;  %4527 = vmatprep.mubr.msk.f32.mxu1 %vm5440_vm4, %v5441_v38 }
0x346b   :  { %4764 = vmatprep.subr.bf16.mxu1 %v5439_v28 }
0x346e   :  { %4766 = vmatpush3.bf16.msra.mxu1 %v6074_v18 }
0x346f   :  { %4773 = vmatprep.subr.bf16.mxu1 %v5439_v28 }
0x353c   :  { %v4507_v48 = vpop.f32.mrb[18].mxu1 }
0x353d   :  { %v2705_v49 = vadd.f32 %v4507_v48, %v4100_v46  ;;  %v2699_v47 = vpop.f32.mrb[19].mxu1 }
0x353e   :  { %v2700_v50 = vadd.f32 %v4100_v46, %v2699_v47 }
0x353f   :  { %v2727_v51 = vcombine.high %v2705_v49, %v2705_v49  ;;  %v2734_v52 = vrot.slane %v2705_v49, %v5790_v9 }
0x3540   :  { %v2710_v53 = vcombine.high %v2700_v50, %v2700_v50  ;;  %v2717_v55 = vrot.slane %v2700_v50, %v5790_v9 }
0x3541   :  { %v2741_v56 = vrot.slane %v2727_v51, %v5790_v9  ;;  %v2742_v37 = vcombine.high %v2734_v52, %v2734_v52  ;;  %2756 = vst.msk [vmem:[#allocation2 + $0x8] sm:$0x3] %vm563_vm6, %v2734_v52 }
0x3542   :  { %v2724_v57 = vrot.slane %v2710_v53, %v5790_v9  ;;  %v2725_v58 = vcombine.high %v2717_v55, %v2717_v55  ;;  %2752 = vst.msk [vmem:[#allocation2] sm:$0x3] %vm563_vm6, %v2717_v55 }
0x3543   :  { %v2743_v59 = vcombine.high %v2741_v56, %v2741_v56  ;;  %2757 = vst.msk [vmem:[#allocation2 + $0xa] sm:$0x3] %vm563_vm6, %v2742_v37  ;;  %2758 = vst.msk [vmem:[#allocation2 + $0xc] sm:$0x3] %vm563_vm6, %v2741_v56 }
0x3544   :  { %v2726_v60 = vcombine.high %v2724_v57, %v2724_v57  ;;  %2753 = vst.msk [vmem:[#allocation2 + $0x2] sm:$0x3] %vm563_vm6, %v2725_v58  ;;  %2754 = vst.msk [vmem:[#allocation2 + $0x4] sm:$0x3] %vm563_vm6, %v2724_v57 }
0x3545   :  { %2759 = vst.msk [vmem:[#allocation2 + $0xe] sm:$0x3] %vm563_vm6, %v2743_v59 }
0x3546   :  { %2755 = vst.msk [vmem:[#allocation2 + $0x6] sm:$0x3] %vm563_vm6, %v2726_v60 }
0x3549   :  { %v2841_v61 = vld [vmem:[#allocation2] sm:$0x3] }
0x354a   :  { %v2842_v62 = vadd.f32 %v2841_v61, %v2838_v31 }
0x354b   :  { %v2952_v19 = vld [vmem:[#allocation2 + $0x2] sm:$0x3]  ;;  %v3063_v43 = vld [vmem:[#allocation2 + $0x4] sm:$0x3] }
0x354c   :  { %v4104_v63 = vmul.f32 -1.442695, %v2842_v62 }
0x354e   :  { %4952 = vpow2.f32 %v4104_v63  ;;  %v3174_v63 = vld [vmem:[#allocation2 + $0x6] sm:$0x3] }
0x3558   :  { %v4953_v1 = vpop.eup %4952 }
0x3559   :  { %v2846_v2 = vadd.f32 1.0, %v4953_v1 }
0x355b   :  { %4954 = vrcp.f32 %v2846_v2 }
0x3565   :  { %v4955_v4 = vpop.eup %4954 }
0x3566   :  { %v2853_v5 = vmul.f32 %v4955_v4, %v2851_v3 }
0x3568   :  { %2855 = vrot.lane.b32.xlu1 %v2853_v5, %s5442_s19 }
0x35da   :  { %v2856_v6 = vpop.permute.xlu1 %2855 }
0x35db   :  { %v2858_v7 = vadd.f32 %v2856_v6, %v2841_v61 }
0x35dd   :  { %4956 = vtanh.f32 %v2858_v7 }
0x35e7   :  { %v4957_v8 = vpop.eup %4956 }
0x35e8   :  { %v2860_v10 = vsub.f32 0.0, %v4957_v8 }
0x35ea   :  { %2862 = vrot.lane.b32.xlu0 %v2860_v10, %s5443_s22 }
0x365c   :  { %v2863_v11 = vpop.permute.xlu0 %2862 }
0x365d   :  { %v2865_v12 = vmul.f32 %v4955_v4, %v2863_v11 }
0x365f   :  { %2867 = vrot.lane.b32.xlu1 %v2865_v12, %s5427_s16 }
0x36d1   :  { %v2868_v13 = vpop.permute.xlu1 %2867 }
0x36d2   :  { %v2870_v0 = vadd.f32 %v4957_v8, %v2868_v13 }
0x36d4   :  { %2872 = vrot.lane.b32.xlu0 %v2870_v0, %s5442_s19 }
0x3746   :  { %v2873_v14 = vpop.permute.xlu0 %2872 }
0x3747   :  { %2875 = vst.msk [vmem:[#allocation3] sm:$0x3] %vm690_vm7, %v2873_v14  ;;  %4528 = vmatmul.mubr.msk.f32.vlgmr.msra.gmra.mrb[20].mxu1 %vm437_vm5, %v2873_v14 }
0x3748   :  { %4775 = vmatpush3.bf16.msra.mxu1 %v6071_v33  ;;  %4549 = vmatprep.mubr.msk.f32.mxu1 %vm5440_vm4, %v5441_v38 }
0x3749   :  { %4776 = vmatprep.subr.bf16.mxu1 %v5439_v28 }
0x374c   :  { %4778 = vmatpush3.bf16.msra.mxu1 %v6074_v18 }
0x374d   :  { %4785 = vmatprep.subr.bf16.mxu1 %v5439_v28 }
0x381a   :  { %v2948_v15 = vpop.f32.mrb[20].mxu1 }
0x381b   :  { %v2949_v16 = vadd.f32 %v6101_v29, %v2948_v15  ;;  %v4529_v17 = vpop.f32.mrb[21].mxu1 }
0x381d   :  { %2961 = vrot.lane.b32.xlu1 %v2949_v16, %s5442_s19  ;;  %v2953_v20 = vadd.f32 %v2952_v19, %v2949_v16 }
0x381f   :  { %v4106_v54 = vmul.f32 -1.442695, %v2953_v20 }
0x3821   :  { %4958 = vpow2.f32 %v4106_v54  ;;  %v3285_v54 = vld [vmem:[#allocation2 + $0x8] sm:$0x3] }
0x382b   :  { %v4959_v21 = vpop.eup %4958 }
0x382c   :  { %v2957_v22 = vadd.f32 1.0, %v4959_v21 }
0x382e   :  { %4960 = vrcp.f32 %v2957_v22 }
0x3838   :  { %v4961_v23 = vpop.eup %4960 }
0x388f   :  { %v2962_v24 = vpop.permute.xlu1 %2961 }
0x3890   :  { %v2964_v25 = vmul.f32 %v4961_v23, %v2962_v24 }
0x3892   :  { %2966 = vrot.lane.b32.xlu0 %v2964_v25, %s5442_s19 }
0x3904   :  { %v2967_v26 = vpop.permute.xlu0 %2966 }
0x3905   :  { %v2969_v27 = vadd.f32 %v2967_v26, %v2952_v19 }
0x3907   :  { %4962 = vtanh.f32 %v2969_v27 }
0x3911   :  { %v4963_v30 = vpop.eup %4962 }
0x3912   :  { %v2971_v31 = vsub.f32 %v2870_v0, %v4963_v30 }
0x3914   :  { %2973 = vrot.lane.b32.xlu1 %v2971_v31, %s5443_s22 }
0x3986   :  { %v2974_v32 = vpop.permute.xlu1 %2973 }
0x3987   :  { %v2976_v34 = vmul.f32 %v4961_v23, %v2974_v32 }
0x3989   :  { %2978 = vrot.lane.b32.xlu0 %v2976_v34, %s5427_s16 }
0x39fb   :  { %v2979_v35 = vpop.permute.xlu0 %2978 }
0x39fc   :  { %v2981_v36 = vadd.f32 %v4963_v30, %v2979_v35 }
0x39fe   :  { %2983 = vrot.lane.b32.xlu1 %v2981_v36, %s5442_s19 }
0x3a70   :  { %v2984_v39 = vpop.permute.xlu1 %2983 }
0x3a71   :  { %2986 = vst.msk [vmem:[#allocation3 + $0x2] sm:$0x3] %vm690_vm7, %v2984_v39  ;;  %4539 = vmatmul.mubr.msk.f32.vlgmr.msra.gmra.mrb[22].mxu0 %vm437_vm5, %v2984_v39 }
0x3a72   :  { %4781 = vmatpush3.bf16.msra.mxu0 %v6071_v33  ;;  %4560 = vmatprep.mubr.msk.f32.mxu0 %vm5440_vm4, %v5441_v38 }
0x3a73   :  { %4782 = vmatprep.subr.bf16.mxu0 %v5439_v28 }
0x3a76   :  { %4784 = vmatpush3.bf16.msra.mxu0 %v6074_v18 }
0x3a77   :  { %4791 = vmatprep.subr.bf16.mxu0 %v5439_v28 }
0x3b44   :  { %v3059_v40 = vpop.f32.mrb[22].mxu0 }
0x3b45   :  { %v3060_v41 = vadd.f32 %v6101_v29, %v3059_v40  ;;  %v4540_v42 = vpop.f32.mrb[23].mxu0 }
0x3b47   :  { %3072 = vrot.lane.b32.xlu0 %v3060_v41, %s5442_s19  ;;  %v3064_v44 = vadd.f32 %v3063_v43, %v3060_v41 }
0x3b49   :  { %v4108_v45 = vmul.f32 -1.442695, %v3064_v44 }
0x3b4b   :  { %4964 = vpow2.f32 %v4108_v45  ;;  %v3396_v45 = vld [vmem:[#allocation2 + $0xa] sm:$0x3] }
0x3b55   :  { %v4965_v46 = vpop.eup %4964 }
0x3b56   :  { %v3068_v48 = vadd.f32 1.0, %v4965_v46 }
0x3b58   :  { %4966 = vrcp.f32 %v3068_v48 }
0x3b62   :  { %v4967_v49 = vpop.eup %4966 }
0x3bb9   :  { %v3073_v47 = vpop.permute.xlu0 %3072 }
0x3bba   :  { %v3075_v50 = vmul.f32 %v4967_v49, %v3073_v47 }
0x3bbc   :  { %3077 = vrot.lane.b32.xlu1 %v3075_v50, %s5442_s19 }
0x3c2e   :  { %v3078_v51 = vpop.permute.xlu1 %3077 }
0x3c2f   :  { %v3080_v52 = vadd.f32 %v3078_v51, %v3063_v43 }
0x3c31   :  { %4968 = vtanh.f32 %v3080_v52 }
0x3c3b   :  { %v4969_v53 = vpop.eup %4968 }
0x3c3c   :  { %v3082_v55 = vsub.f32 %v2981_v36, %v4969_v53 }
0x3c3e   :  { %3084 = vrot.lane.b32.xlu0 %v3082_v55, %s5443_s22 }
0x3cb0   :  { %v3085_v56 = vpop.permute.xlu0 %3084 }
0x3cb1   :  { %v3087_v37 = vmul.f32 %v4967_v49, %v3085_v56 }
0x3cb3   :  { %3089 = vrot.lane.b32.xlu1 %v3087_v37, %s5427_s16 }
0x3d25   :  { %v3090_v57 = vpop.permute.xlu1 %3089 }
0x3d26   :  { %v3092_v58 = vadd.f32 %v4969_v53, %v3090_v57 }
0x3d28   :  { %3094 = vrot.lane.b32.xlu0 %v3092_v58, %s5442_s19 }
0x3d9a   :  { %v3095_v59 = vpop.permute.xlu0 %3094 }
0x3d9b   :  { %3097 = vst.msk [vmem:[#allocation3 + $0x4] sm:$0x3] %vm690_vm7, %v3095_v59  ;;  %4550 = vmatmul.mubr.msk.f32.vlgmr.msra.gmra.mrb[22].mxu1 %vm437_vm5, %v3095_v59 }
0x3d9c   :  { %4787 = vmatpush3.bf16.msra.mxu1 %v6071_v33  ;;  %4571 = vmatprep.mubr.msk.f32.mxu1 %vm5440_vm4, %v5441_v38 }
0x3d9d   :  { %4788 = vmatprep.subr.bf16.mxu1 %v5439_v28 }
0x3da0   :  { %4790 = vmatpush3.bf16.msra.mxu1 %v6074_v18 }
0x3da1   :  { %4797 = vmatprep.subr.bf16.mxu1 %v5439_v28 }
0x3da2   :  { %v3655_v59 = vld [vmem:[#allocation3 + $0x4] sm:$0x3] }
0x3e6e   :  { %v3170_v60 = vpop.f32.mrb[22].mxu1 }
0x3e6f   :  { %v3171_v61 = vadd.f32 %v6101_v29, %v3170_v60  ;;  %v4551_v62 = vpop.f32.mrb[23].mxu1 }
0x3e71   :  { %3183 = vrot.lane.b32.xlu1 %v3171_v61, %s5442_s19  ;;  %v3175_v1 = vadd.f32 %v3174_v63, %v3171_v61  ;;  %v3653_v61 = vld [vmem:[#allocation3] sm:$0x3] }
0x3e73   :  { %v4110_v2 = vmul.f32 -1.442695, %v3175_v1 }
0x3e75   :  { %4970 = vpow2.f32 %v4110_v2 }
0x3e7f   :  { %v4971_v3 = vpop.eup %4970 }
0x3e80   :  { %v3179_v4 = vadd.f32 1.0, %v4971_v3 }
0x3e82   :  { %4972 = vrcp.f32 %v3179_v4 }
0x3e8c   :  { %v4973_v5 = vpop.eup %4972 }
0x3ee3   :  { %v3184_v6 = vpop.permute.xlu1 %3183 }
0x3ee4   :  { %v3186_v7 = vmul.f32 %v4973_v5, %v3184_v6 }
0x3ee6   :  { %3188 = vrot.lane.b32.xlu0 %v3186_v7, %s5442_s19  ;;  %v3507_v7 = vld [vmem:[#allocation2 + $0xc] sm:$0x3] }
0x3f58   :  { %v3189_v8 = vpop.permute.xlu0 %3188 }
0x3f59   :  { %v3191_v10 = vadd.f32 %v3189_v8, %v3174_v63 }
0x3f5b   :  { %4974 = vtanh.f32 %v3191_v10 }
0x3f65   :  { %v4975_v11 = vpop.eup %4974 }
0x3f66   :  { %v3193_v12 = vsub.f32 %v3092_v58, %v4975_v11  ;;  %v3654_v58 = vld [vmem:[#allocation3 + $0x2] sm:$0x3] }
0x3f67   :  { %v3680_v62 = vcombine.low %v3653_v61, %v3654_v58 }
0x3f68   :  { %3195 = vrot.lane.b32.xlu1 %v3193_v12, %s5443_s22 }
0x3f69   :  { %v3688_v1 = vrot.slane %v3680_v62, %v5790_v9  ;;  %v3797_v62 = vld [vmem:[%s6280_s17 + $0x10] sm:$0xff] }
0x3fda   :  { %v3196_v13 = vpop.permute.xlu1 %3195 }
0x3fdb   :  { %v3198_v0 = vmul.f32 %v4973_v5, %v3196_v13 }
0x3fdd   :  { %3200 = vrot.lane.b32.xlu0 %v3198_v0, %s5427_s16 }
0x404f   :  { %v3201_v14 = vpop.permute.xlu0 %3200 }
0x4050   :  { %v3203_v15 = vadd.f32 %v4975_v11, %v3201_v14 }
0x4052   :  { %3205 = vrot.lane.b32.xlu1 %v3203_v15, %s5442_s19 }
0x40c4   :  { %v3206_v16 = vpop.permute.xlu1 %3205 }
0x40c5   :  { %3208 = vst.msk [vmem:[#allocation3 + $0x6] sm:$0x3] %vm690_vm7, %v3206_v16  ;;  %4561 = vmatmul.mubr.msk.f32.vlgmr.msra.gmra.mrb[24].mxu0 %vm437_vm5, %v3206_v16 }
0x40c6   :  { %4793 = vmatpush3.bf16.msra.mxu0 %v6071_v33  ;;  %4582 = vmatprep.mubr.msk.f32.mxu0 %vm5440_vm4, %v5441_v38 }
0x40c7   :  { %4794 = vmatprep.subr.bf16.mxu0 %v5439_v28 }
0x40ca   :  { %4796 = vmatpush3.bf16.msra.mxu0 %v6074_v18 }
0x40cc   :  { %v3656_v57 = vld [vmem:[#allocation3 + $0x6] sm:$0x3] }
0x40cd   :  { %v3681_v60 = vcombine.low %v3655_v59, %v3656_v57 }
0x40cf   :  { %v3695_v63 = vrot.slane %v3681_v60, %v5790_v9 }
0x40d1   :  { %v3696_v3 = vcombine.low %v3688_v1, %v3695_v63  ;;  %v3798_v63 = vld [vmem:[%s6280_s17 + $0x18] sm:$0xff] }
0x40d2   :  { %v4815_v1 = vpack.c.bf16 %v3798_v63, %v3797_v62 }
0x4198   :  { %v3281_v17 = vpop.f32.mrb[24].mxu0 }
0x4199   :  { %v3282_v19 = vadd.f32 %v6101_v29, %v3281_v17  ;;  %v4562_v20 = vpop.f32.mrb[25].mxu0 }
0x419b   :  { %3294 = vrot.lane.b32.xlu0 %v3282_v19, %s5442_s19  ;;  %v3286_v21 = vadd.f32 %v3285_v54, %v3282_v19 }
0x419d   :  { %v4112_v22 = vmul.f32 -1.442695, %v3286_v21 }
0x419f   :  { %4976 = vpow2.f32 %v4112_v22 }
0x41a9   :  { %v4977_v23 = vpop.eup %4976 }
0x41aa   :  { %v3290_v24 = vadd.f32 1.0, %v4977_v23 }
0x41ac   :  { %4978 = vrcp.f32 %v3290_v24 }
0x41b6   :  { %v4979_v25 = vpop.eup %4978 }
0x420d   :  { %v3295_v26 = vpop.permute.xlu0 %3294 }
0x420e   :  { %v3297_v27 = vmul.f32 %v4979_v25, %v3295_v26 }
0x4210   :  { %3299 = vrot.lane.b32.xlu1 %v3297_v27, %s5442_s19  ;;  %v3618_v27 = vld [vmem:[#allocation2 + $0xe] sm:$0x3] }
0x4282   :  { %v3300_v30 = vpop.permute.xlu1 %3299 }
0x4283   :  { %v3302_v31 = vadd.f32 %v3300_v30, %v3285_v54 }
0x4285   :  { %4980 = vtanh.f32 %v3302_v31 }
0x428f   :  { %v4981_v32 = vpop.eup %4980 }
0x4290   :  { %v3304_v34 = vsub.f32 %v3203_v15, %v4981_v32 }
0x4292   :  { %3306 = vrot.lane.b32.xlu0 %v3304_v34, %s5443_s22 }
0x4304   :  { %v3307_v35 = vpop.permute.xlu0 %3306 }
0x4305   :  { %v3309_v36 = vmul.f32 %v4979_v25, %v3307_v35 }
0x4307   :  { %3311 = vrot.lane.b32.xlu1 %v3309_v36, %s5427_s16 }
0x4379   :  { %v3312_v39 = vpop.permute.xlu1 %3311 }
0x437a   :  { %v3314_v40 = vadd.f32 %v4981_v32, %v3312_v39 }
0x437c   :  { %3316 = vrot.lane.b32.xlu0 %v3314_v40, %s5442_s19 }
0x43ee   :  { %v3317_v41 = vpop.permute.xlu0 %3316 }
0x43ef   :  { %3319 = vst.msk [vmem:[#allocation3 + $0x8] sm:$0x3] %vm690_vm7, %v3317_v41  ;;  %4572 = vmatmul.mubr.msk.f32.vlgmr.msra.gmra.mrb[24].mxu1 %vm437_vm5, %v3317_v41 }
0x43f0   :  { %4799 = vmatpush3.bf16.msra.mxu1 %v6071_v33  ;;  %4593 = vmatprep.mubr.msk.f32.mxu1 %vm5440_vm4, %v5441_v38 }
0x43f1   :  { %4800 = vmatprep.subr.bf16.mxu1 %v5439_v28 }
0x43f4   :  { %4802 = vmatpush3.bf16.msra.mxu1 %v6074_v18 }
0x44c2   :  { %v3392_v42 = vpop.f32.mrb[24].mxu1 }
0x44c3   :  { %v3393_v43 = vadd.f32 %v6101_v29, %v3392_v42  ;;  %v4573_v44 = vpop.f32.mrb[25].mxu1 }
0x44c5   :  { %3405 = vrot.lane.b32.xlu1 %v3393_v43, %s5442_s19  ;;  %v3397_v46 = vadd.f32 %v3396_v45, %v3393_v43 }
0x44c7   :  { %v4114_v48 = vmul.f32 -1.442695, %v3397_v46  ;;  %v3662_v46 = vld [vmem:[#allocation28 + $0x8] sm:$0xff] }
0x44c9   :  { %4982 = vpow2.f32 %v4114_v48  ;;  %v3663_v48 = vld [vmem:[#allocation28 + $0x10] sm:$0xff] }
0x44d3   :  { %v4983_v49 = vpop.eup %4982 }
0x44d4   :  { %v3401_v47 = vadd.f32 1.0, %v4983_v49 }
0x44d6   :  { %4984 = vrcp.f32 %v3401_v47  ;;  %v3664_v47 = vld [vmem:[#allocation28 + $0x18] sm:$0xff] }
0x44e0   :  { %v4985_v33 = vpop.eup %4984 }
0x4537   :  { %v3406_v50 = vpop.permute.xlu1 %3405 }
0x4538   :  { %v3408_v38 = vmul.f32 %v4985_v33, %v3406_v50 }
0x453a   :  { %3410 = vrot.lane.b32.xlu0 %v3408_v38, %s5442_s19 }
0x45ac   :  { %v3411_v28 = vpop.permute.xlu0 %3410 }
0x45ad   :  { %v3413_v18 = vadd.f32 %v3411_v28, %v3396_v45  ;;  %v3661_v45 = vld [vmem:[#allocation28] sm:$0xff]  ;;  %v3795_v28 = vld [vmem:[%s6280_s17] sm:$0xff] }
0x45ae   :  { %v4803_v49 = vpack.c.bf16 %v3662_v46, %v3661_v45 }
0x45af   :  { %4986 = vtanh.f32 %v3413_v18  ;;  %v3796_v18 = vld [vmem:[%s6280_s17 + $0x8] sm:$0xff] }
0x45b0   :  { %4804 = vmatprep.subr.bf16.mxu0 %v4803_v49 }
0x45b9   :  { %v4987_v51 = vpop.eup %4986 }
0x45ba   :  { %v3415_v52 = vsub.f32 %v3314_v40, %v4987_v51 }
0x45bc   :  { %3417 = vrot.lane.b32.xlu1 %v3415_v52, %s5443_s22 }
0x462e   :  { %v3418_v53 = vpop.permute.xlu1 %3417 }
0x462f   :  { %v3420_v55 = vmul.f32 %v4985_v33, %v3418_v53  ;;  %v4807_v33 = vpack.c.bf16 %v3664_v47, %v3663_v48 }
0x4631   :  { %3422 = vrot.lane.b32.xlu0 %v3420_v55, %s5427_s16  ;;  %v3657_v55 = vld [vmem:[#allocation3 + $0x8] sm:$0x3] }
0x46a3   :  { %v3423_v56 = vpop.permute.xlu0 %3422 }
0x46a4   :  { %v3425_v37 = vadd.f32 %v4987_v51, %v3423_v56  ;;  %v4811_v51 = vpack.c.bf16 %v3796_v18, %v3795_v28 }
0x46a6   :  { %3427 = vrot.lane.b32.xlu1 %v3425_v37, %s5442_s19  ;;  %4812 = vmatprep.subr.bf16.mxu1 %v4811_v51 }
0x4718   :  { %v3428_v2 = vpop.permute.xlu1 %3427 }
0x4719   :  { %3430 = vst.msk [vmem:[#allocation3 + $0xa] sm:$0x3] %vm690_vm7, %v3428_v2  ;;  %4583 = vmatmul.mubr.msk.f32.vlgmr.msra.gmra.mrb[26].mxu0 %vm437_vm5, %v3428_v2  ;;  %v3889_v2 = vld [vmem:[#allocation31] sm:$0xff] }
0x471a   :  { %4604 = vmatprep.mubr.msk.f32.mxu0 %vm437_vm5, %v3696_v3  ;;  %4806 = vmatpush3.bf16.msra.mxu0 %v4803_v49  ;;  %v3890_v3 = vld [vmem:[#allocation31 + $0x8] sm:$0xff] }
0x471b   :  { %4808 = vmatprep.subr.bf16.mxu0 %v4807_v33 }
0x471e   :  { %4810 = vmatpush3.bf16.msra.mxu0 %v4807_v33 }
0x4720   :  { %v3658_v53 = vld [vmem:[#allocation3 + $0xa] sm:$0x3] }
0x4721   :  { %v3697_v56 = vcombine.low %v3657_v55, %v3658_v53 }
0x4723   :  { %v3705_v59 = vrot.slane %v3697_v56, %v5790_v9 }
0x47ec   :  { %v3503_v4 = vpop.f32.mrb[26].mxu0 }
0x47ed   :  { %v3504_v5 = vadd.f32 %v6101_v29, %v3503_v4  ;;  %v4584_v6 = vpop.f32.mrb[27].mxu0  ;;  %v4819_v4 = vpack.c.bf16 %v3890_v3, %v3889_v2 }
0x47ef   :  { %3516 = vrot.lane.b32.xlu0 %v3504_v5, %s5442_s19  ;;  %v3508_v8 = vadd.f32 %v3507_v7, %v3504_v5  ;;  %4820 = vmatprep.subr.bf16.mxu0 %v4819_v4  ;;  %v4119_v5 = vld [vmem:[#allocation29] ss:$0 sm:$0xff] }
0x47f1   :  { %v4116_v10 = vmul.f32 -1.442695, %v3508_v8 }
0x47f3   :  { %4988 = vpow2.f32 %v4116_v10 }
0x47fd   :  { %v4989_v11 = vpop.eup %4988 }
0x47fe   :  { %v3512_v12 = vadd.f32 1.0, %v4989_v11 }
0x4800   :  { %4990 = vrcp.f32 %v3512_v12 }
0x480a   :  { %v4991_v13 = vpop.eup %4990 }
0x4861   :  { %v3517_v0 = vpop.permute.xlu0 %3516 }
0x4862   :  { %v3519_v14 = vmul.f32 %v4991_v13, %v3517_v0  ;;  %v3892_v0 = vld [vmem:[#allocation31 + $0x18] sm:$0xff] }
0x4864   :  { %3521 = vrot.lane.b32.xlu1 %v3519_v14, %s5442_s19 }
0x48d6   :  { %v3522_v15 = vpop.permute.xlu1 %3521 }
0x48d7   :  { %v3524_v16 = vadd.f32 %v3522_v15, %v3507_v7  ;;  %v4122_v15 = vld [vmem:[%s6309_s18] ss:$0 sm:$0xff] }
0x48d9   :  { %4992 = vtanh.f32 %v3524_v16 }
0x48e3   :  { %v4993_v17 = vpop.eup %4992 }
0x48e4   :  { %v3526_v19 = vsub.f32 %v3425_v37, %v4993_v17 }
0x48e6   :  { %3528 = vrot.lane.b32.xlu0 %v3526_v19, %s5443_s22 }
0x4958   :  { %v3529_v20 = vpop.permute.xlu0 %3528 }
0x4959   :  { %v3531_v54 = vmul.f32 %v4991_v13, %v3529_v20  ;;  %v3891_v13 = vld [vmem:[#allocation31 + $0x10] sm:$0xff] }
0x495a   :  { %v4823_v14 = vpack.c.bf16 %v3892_v0, %v3891_v13 }
0x495b   :  { %3533 = vrot.lane.b32.xlu1 %v3531_v54, %s5427_s16 }
0x49cd   :  { %v3534_v21 = vpop.permute.xlu1 %3533 }
0x49ce   :  { %v3536_v22 = vadd.f32 %v4993_v17, %v3534_v21 }
0x49d0   :  { %3538 = vrot.lane.b32.xlu0 %v3536_v22, %s5442_s19 }
0x4a42   :  { %v3539_v23 = vpop.permute.xlu0 %3538 }
0x4a43   :  { %3541 = vst.msk [vmem:[#allocation3 + $0xc] sm:$0x3] %vm690_vm7, %v3539_v23  ;;  %4594 = vmatmul.mubr.msk.f32.vlgmr.msra.gmra.mrb[26].mxu1 %vm437_vm5, %v3539_v23 }
0x4a44   :  { %4814 = vmatpush3.bf16.msra.mxu1 %v4811_v51 }
0x4a45   :  { %4816 = vmatprep.subr.bf16.mxu1 %v4815_v1 }
0x4a48   :  { %4818 = vmatpush3.bf16.msra.mxu1 %v4815_v1 }
0x4a4a   :  { %v3659_v37 = vld [vmem:[#allocation3 + $0xc] sm:$0x3] }
0x4b16   :  { %v3614_v24 = vpop.f32.mrb[26].mxu1 }
0x4b17   :  { %v3615_v25 = vadd.f32 %v6101_v29, %v3614_v24  ;;  %v4595_v26 = vpop.f32.mrb[27].mxu1 }
0x4b19   :  { %3627 = vrot.lane.b32.xlu1 %v3615_v25, %s5442_s19  ;;  %v3619_v30 = vadd.f32 %v3618_v27, %v3615_v25 }
0x4b1b   :  { %v4118_v31 = vmul.f32 -1.442695, %v3619_v30 }
0x4b1d   :  { %4994 = vpow2.f32 %v4118_v31 }
0x4b27   :  { %v4995_v32 = vpop.eup %4994 }
0x4b28   :  { %v3623_v34 = vadd.f32 1.0, %v4995_v32 }
0x4b2a   :  { %4996 = vrcp.f32 %v3623_v34 }
0x4b34   :  { %v4997_v35 = vpop.eup %4996 }
0x4b8b   :  { %v3628_v36 = vpop.permute.xlu1 %3627 }
0x4b8c   :  { %v3630_v39 = vmul.f32 %v4997_v35, %v3628_v36 }
0x4b8e   :  { %3632 = vrot.lane.b32.xlu0 %v3630_v39, %s5442_s19 }
0x4c00   :  { %v3633_v40 = vpop.permute.xlu0 %3632 }
0x4c01   :  { %v3635_v41 = vadd.f32 %v3633_v40, %v3618_v27 }
0x4c03   :  { %4998 = vtanh.f32 %v3635_v41 }
0x4c0d   :  { %v4999_v42 = vpop.eup %4998 }
0x4c0e   :  { %v3637_v29 = vsub.f32 %v3536_v22, %v4999_v42  ;;  %v4125_v22 = vld [vmem:[%s6310_s9] ss:$0 sm:$0xff] }
0x4c10   :  { %3639 = vrot.lane.b32.xlu1 %v3637_v29, %s5443_s22 }
0x4c82   :  { %v3640_v43 = vpop.permute.xlu1 %3639 }
0x4c83   :  { %v3642_v44 = vmul.f32 %v4997_v35, %v3640_v43 }
0x4c85   :  { %3644 = vrot.lane.b32.xlu0 %v3642_v44, %s5427_s16 }
0x4cf7   :  { %v3645_v50 = vpop.permute.xlu0 %3644 }
0x4cf8   :  { %v3647_v38 = vadd.f32 %v4999_v42, %v3645_v50 }
0x4cfa   :  { %3649 = vrot.lane.b32.xlu1 %v3647_v38, %s5442_s19 }
0x4d6c   :  { %v3650_v52 = vpop.permute.xlu1 %3649 }
0x4d6d   :  { %3652 = vst.msk [vmem:[#allocation3 + $0xe] sm:$0x3] %vm690_vm7, %v3650_v52 }
0x4d74   :  { %v3660_v57 = vld [vmem:[#allocation3 + $0xe] sm:$0x3] }
0x4d75   :  { %v3698_v58 = vcombine.low %v3659_v37, %v3660_v57 }
0x4d77   :  { %v3712_v60 = vrot.slane %v3698_v58, %v5790_v9 }
0x4d79   :  { %v3713_v61 = vcombine.low %v3705_v59, %v3712_v60 }
0x4d7b   :  { %4605 = vmatmul.mubr.msk.f32.vlgmr.msra.gmra.mrb[28].mxu0 %vm437_vm5, %v3713_v61 }
0x4d7c   :  { %4822 = vmatpush3.bf16.msra.mxu0 %v4819_v4 }
0x4d7d   :  { %4824 = vmatprep.subr.bf16.mxu0 %v4823_v14 }
0x4d80   :  { %4826 = vmatpush3.bf16.msra.mxu0 %v4823_v14 }
0x4e4e   :  { %v4606_v6 = vpop.f32.mrb[28].mxu0 }
0x4e4f   :  { %v3790_v7 = vadd.f32 %v4606_v6, %v4119_v5  ;;  %v3784_v8 = vpop.f32.mrb[29].mxu0 }
0x4e50   :  { %v3785_v10 = vadd.f32 %v4119_v5, %v3784_v8 }
0x4e51   :  { %v3794_v12 = vmax.f32 %v3790_v7, 0.0 }
0x4e52   :  { %v3793_v11 = vmax.f32 %v3785_v10, 0.0 }
0x4e54   :  { %4615 = vmatprep.mubr.msk.f32.mxu1 %vm437_vm5, %v3793_v11 }
0x4e55   :  { %4616 = vmatmul.mubr.msk.f32.vlgmr.msra.gmra.mrb[28].mxu1 %vm437_vm5, %v3794_v12 }
0x4f28   :  { %v4617_v16 = vpop.f32.mrb[28].mxu1 }
0x4f29   :  { %v3884_v17 = vadd.f32 %v4617_v16, %v4122_v15  ;;  %v3878_v19 = vpop.f32.mrb[29].mxu1 }
0x4f2a   :  { %v3879_v20 = vadd.f32 %v4122_v15, %v3878_v19 }
0x4f2b   :  { %v3888_v21 = vmax.f32 %v3884_v17, 0.0 }
0x4f2c   :  { %v3887_v54 = vmax.f32 %v3879_v20, 0.0 }
0x4f2e   :  { %4626 = vmatprep.mubr.msk.f32.mxu0 %vm437_vm5, %v3887_v54 }
0x4f2f   :  { %4627 = vmatmul.mubr.msk.f32.vlgmr.msra.gmra.mrb[30].mxu0 %vm437_vm5, %v3888_v21 }
0x5002   :  { %v4628_v23 = vpop.f32.mrb[30].mxu0 }
0x5003   :  { %v3978_v24 = vadd.f32 %v4628_v23, %v4125_v22  ;;  %v3972_v25 = vpop.f32.mrb[31].mxu0 }
0x5004   :  { %v3973_v26 = vadd.f32 %v4125_v22, %v3972_v25 }
0x5005   :  { %v4000_v27 = vcombine.high %v3978_v24, %v3978_v24  ;;  %v4007_v30 = vrot.slane %v3978_v24, %v5790_v9  ;;  %4130 = vst.sshfl [vmem:[#allocation32 + $0x8] sm:$0x3 pattern:$0x76325410] %v3978_v24 }
0x5006   :  { %v3983_v31 = vcombine.high %v3973_v26, %v3973_v26  ;;  %v3990_v32 = vrot.slane %v3973_v26, %v5790_v9  ;;  %4128 = vst.sshfl [vmem:[#allocation32] sm:$0x3 pattern:$0x76325410] %v3973_v26 }
0x5007   :  { %v4014_v34 = vrot.slane %v4000_v27, %v5790_v9  ;;  %v4015_v35 = vcombine.high %v4007_v30, %v4007_v30  ;;  %4131 = vst.sshfl [vmem:[#allocation32 + $0xc] sm:$0x3 pattern:$0x76325410] %v4000_v27 }
0x5008   :  { %v3997_v36 = vrot.slane %v3983_v31, %v5790_v9  ;;  %v3998_v39 = vcombine.high %v3990_v32, %v3990_v32  ;;  %4129 = vst.sshfl [vmem:[#allocation32 + $0x4] sm:$0x3 pattern:$0x76325410] %v3983_v31 }
0x5009   :  { %v4016_v40 = vcombine.high %v4014_v34, %v4014_v34  ;;  %4030 = vst [vmem:[#allocation32 + $0xa] sm:$0x3] %v4015_v35 }
0x500a   :  { %v3999_v41 = vcombine.high %v3997_v36, %v3997_v36  ;;  %4026 = vst [vmem:[#allocation32 + $0x2] sm:$0x3] %v3998_v39 }
0x500b   :  { %4032 = vst [vmem:[#allocation32 + $0xe] sm:$0x3] %v4016_v40 }
0x500c   :  { %4028 = vst [vmem:[#allocation32 + $0x6] sm:$0x3] %v3999_v41 }
0x500d   :  { %5385 = shalt.err (!%p5382_p0)
}
0x500e   :  { %s6311_s19 = sld [smem:[#allocation51_spill]] }
0x5014   :  { %s5386_s22 = scalar_lea.hbm %s6311_s19, 256 }
0x5015   :  { %p5387_p1 = scmp.ne.s32.totalorder %s6311_s19, %s5386_s22  ;;  %p5390_p2 = scmp.lt.u32.totalorder %s5386_s22, %s6311_s19 }
0x5017   :  { %p5392_p3 = pnand %p5390_p2, %p5387_p1 }
0x5019   :  { %5395 = shalt.err (!%p5392_p3)
}
0x501a   :  { %4044 = dma.vmem_to_hbm [thread:$0]  %s4039_s3, 256, %s6311_s19, [#allocation7], %s5427_s16, %s5427_s16, %s5428_s1  }
0x501b   :  { %5414 = dma.done.wait [#allocation7], 256  }
0x501c   :  { %5415 = vsyncadd [#allocation7], 4294967040 }
0x501d   :  { %4048 = vsyncpa [#allocation6], 1 }
0x501e   :  { %4049 = vsyncpa [#allocation9], 1 }
0x501f   :  { %4050 = vsyncpa [#allocation12], 1 }
0x5020   :  { %4051 = vsyncpa [#allocation15], 1 }
0x5021   :  { %4052 = vsyncpa [#allocation18], 1 }
0x5022   :  { %4053 = vsyncpa [#allocation21], 1 }
0x5023   :  { %4054 = vsyncpa [#allocation24], 1 }
0x5024   :  { %4055 = vsyncpa [#allocation27], 1 }
0x5025   :  { %4056 = vsyncpa [#allocation30], 1 }
0x5026   :  { %4057 = vsyncpa [#allocation7], 1 }

// kernel: tpu_custom_call.1
= control target key start
LH: loop header
LB: loop body
LE: loop exit
PB: predicated region body
PF: predicated region fallthrough
CT: control target
= control target key end

     0   :  { %s6263_s0 = inlined_call_operand.hbm [shape: f32[8,2,12], index: 0, kind: input, shape index: {}]   ;;  %s6264_s1 = inlined_call_operand.hbm [shape: f32[12,32], index: 1, kind: input, shape index: {}]   ;;  %s6265_s2 = inlined_call_operand.hbm [shape: f32[1,32], index: 2, kind: input, shape index: {}]   ;;  %s6266_s3 = inlined_call_operand.hbm [shape: f32[32,96], index: 3, kind: input, shape index: {}]   ;;  %s6267_s4 = inlined_call_operand.hbm [shape: f32[32,96], index: 4, kind: input, shape index: {}]   ;;  %s6268_s5 = inlined_call_operand.hbm [shape: f32[1,96], index: 5, kind: input, shape index: {}]   ;;  %s6269_s6 = inlined_call_operand.hbm [shape: f32[1,96], index: 6, kind: input, shape index: {}]   ;;  %s6270_s7 = inlined_call_operand.hbm [shape: f32[32,96], index: 7, kind: input, shape index: {}]   ;;  %s6271_s8 = inlined_call_operand.hbm [shape: f32[32,96], index: 8, kind: input, shape index: {}]   ;;  %s6272_s9 = inlined_call_operand.hbm [shape: f32[1,96], index: 9, kind: input, shape index: {}]   ;;  %s6273_s10 = inlined_call_operand.hbm [shape: f32[1,96], index: 10, kind: input, shape index: {}]   ;;  %s6274_s11 = inlined_call_operand.vmem [shape: f32[32,96], index: 11, kind: input, shape index: {}]   ;;  %s6275_s12 = inlined_call_operand.hbm [shape: f32[32,96], index: 12, kind: input, shape index: {}]   ;;  %s6276_s13 = inlined_call_operand.hbm [shape: f32[1,96], index: 13, kind: input, shape index: {}]   ;;  %s6277_s14 = inlined_call_operand.hbm [shape: f32[1,96], index: 14, kind: input, shape index: {}]   ;;  %s6278_s15 = inlined_call_operand.hbm [shape: f32[32,32], index: 15, kind: input, shape index: {}]   ;;  %s6279_s16 = inlined_call_operand.hbm [shape: f32[1,32], index: 16, kind: input, shape index: {}]   ;;  %s6280_s17 = inlined_call_operand.vmem [shape: f32[32,32], index: 17, kind: input, shape index: {}]   ;;  %s6281_s18 = inlined_call_operand.vmem [shape: f32[1,32], index: 18, kind: input, shape index: {}]   ;;  %s6282_s19 = inlined_call_operand.hbm [shape: f32[32,128], index: 19, kind: input, shape index: {}]   ;;  %s6283_s20 = inlined_call_operand.vmem [shape: f32[1,128], index: 20, kind: input, shape index: {}]   ;;  %s6284_s21 = inlined_call_operand.hbm [shape: f32[8,2,128], index: 21, kind: output, shape index: {}]  }
   0x1   :  { %6292 = sst [smem:[#allocation43_spill]] %s6263_s0 }
   0x2   :  { %6293 = sst [smem:[#allocation44_spill]] %s6264_s1 }
   0x3   :  { %6294 = sst [smem:[#allocation45_spill]] %s6265_s2 }
   0x4   :  { %6295 = sst [smem:[#allocation46_spill]] %s6266_s3 }
   0x5   :  { %6296 = sst [smem:[#allocation47_spill]] %s6267_s4 }
   0x6   :  { %6297 = sst [smem:[#allocation48_spill]] %s6268_s5 }
   0x7   :  { %6298 = sst [smem:[#allocation49_spill]] %s6281_s18 }
   0x8   :  { %6299 = sst [smem:[#allocation50_spill]] %s6283_s20 }
   0x9   :  { %6300 = sst [smem:[#allocation51_spill]] %s6284_s21 }
   0xa   :  { %26 = vsyncpa [#allocation6], 0 }
   0xb   :  { %27 = vsyncpa [#allocation9], 0 }
   0xc   :  { %28 = vsyncpa [#allocation12], 0 }
   0xd   :  { %29 = vsyncpa [#allocation15], 0 }
   0xe   :  { %30 = vsyncpa [#allocation18], 0 }
   0xf   :  { %31 = vsyncpa [#allocation21], 0 }
  0x10   :  { %32 = vsyncpa [#allocation24], 0 }
  0x11   :  { %33 = vsyncpa [#allocation27], 0 }
  0x12   :  { %34 = vsyncpa [#allocation30], 0 }
  0x13   :  { %35 = vsyncpa [#allocation7], 0  ;;  %s5416_s2 = smov [#allocation8]   ;;  %s6301_s3 = sld [smem:[#allocation44_spill]] }
  0x14   :  { %s53_s25 = sshll.u32 %s5416_s2, 4  ;;  %s54_s25 = int_to_ptr.vmem [resolvable:$true] %s53_s25 }
  0x19   :  { %s5000_s28 = scalar_lea.hbm %s6301_s3, 256 }
  0x1a   :  { %p5001_p0 = scmp.ne.s32.totalorder %s6301_s3, %s5000_s28  ;;  %p5004_p1 = scmp.lt.u32.totalorder %s5000_s28, %s6301_s3 }
  0x1c   :  { %p5006_p2 = pnand %p5004_p1, %p5001_p0 }
  0x1e   :  { %5009 = shalt.err (!%p5006_p2)
}
  0x1f   :  { %s5010_s5 = scalar_lea.vmem %s54_s25, 256  ;;  %p5015_p4 = scmp.lt.s32.totalorder %s54_s25, %s54_s25 }
  0x20   :  { %p5011_p3 = scmp.ne.s32.totalorder %s54_s25, %s5010_s5  ;;  %p5016_p5 = scmp.lt.s32.totalorder %s5010_s5, %s5010_s5 }
  0x22   :  { %p5017_p6 = por %p5016_p5, %p5015_p4 }
  0x24   :  { %p5018_p7 = pnand %p5017_p6, %p5011_p3 }
  0x26   :  { %5021 = shalt.err (!%p5018_p7)
}
  0x27   :  { %s5417_s22 = smov 128   ;;  %s5418_s23 = smov 8  }
  0x28   :  { %59 = dma.hbm_to_vmem [thread:$0]  %s6301_s3, 256, %s54_s25, [#allocation9], %s5417_s22, %s5417_s22, %s5418_s23  }
  0x29   :  { %s5419_s2 = smov [#allocation11]   ;;  %s5420_s27 = smov [#allocation14]  }
  0x2a   :  { %s75_s26 = sshll.u32 %s5419_s2, 4  ;;  %s100_s28 = sshll.u32 %s5420_s27, 4  ;;  %s76_s26 = int_to_ptr.vmem [resolvable:$true] %s75_s26  ;;  %s101_s28 = int_to_ptr.vmem [resolvable:$true] %s100_s28 }
  0x2b   :  { %s6302_s4 = sld [smem:[#allocation46_spill]] }
  0x31   :  { %s5022_s30 = scalar_lea.hbm %s6302_s4, 512 }
  0x32   :  { %p5023_p8 = scmp.ne.s32.totalorder %s6302_s4, %s5022_s30  ;;  %p5026_p9 = scmp.lt.u32.totalorder %s5022_s30, %s6302_s4 }
  0x34   :  { %p5028_p10 = pnand %p5026_p9, %p5023_p8 }
  0x36   :  { %5031 = shalt.err (!%p5028_p10)
}
  0x37   :  { %s5032_s25 = scalar_lea.vmem %s76_s26, 512  ;;  %p5037_p12 = scmp.lt.s32.totalorder %s76_s26, %s76_s26 }
  0x38   :  { %p5033_p11 = scmp.ne.s32.totalorder %s76_s26, %s5032_s25  ;;  %p5038_p13 = scmp.lt.s32.totalorder %s5032_s25, %s5032_s25 }
  0x3a   :  { %p5039_p0 = por %p5038_p13, %p5037_p12 }
  0x3c   :  { %p5040_p1 = pnand %p5039_p0, %p5033_p11 }
  0x3e   :  { %5043 = shalt.err (!%p5040_p1)
}
  0x3f   :  { %81 = dma.hbm_to_vmem [thread:$0]  %s6302_s4, 512, %s76_s26, [#allocation12], %s5417_s22, %s5417_s22, %s5418_s23  }
  0x40   :  { %s6303_s20 = sld [smem:[#allocation48_spill]] }
  0x46   :  { %s5044_s24 = scalar_lea.hbm %s6303_s20, 16 }
  0x47   :  { %p5045_p2 = scmp.ne.s32.totalorder %s6303_s20, %s5044_s24  ;;  %p5048_p3 = scmp.lt.u32.totalorder %s5044_s24, %s6303_s20 }
  0x49   :  { %p5050_p4 = pnand %p5048_p3, %p5045_p2 }
  0x4b   :  { %5053 = shalt.err (!%p5050_p4)
}
  0x4c   :  { %s5054_s30 = scalar_lea.vmem %s101_s28, 16  ;;  %s5058_s5 = scalar_lea.vmem %s101_s28, 32 }
  0x4d   :  { %p5055_p5 = scmp.ne.s32.totalorder %s101_s28, %s5054_s30  ;;  %p5059_p6 = scmp.lt.s32.totalorder %s101_s28, %s101_s28 }
  0x4e   :  { %p5060_p7 = scmp.lt.s32.totalorder %s5058_s5, %s5054_s30 }
  0x50   :  { %p5061_p8 = por %p5060_p7, %p5059_p6 }
  0x52   :  { %p5062_p9 = pnand %p5061_p8, %p5055_p5 }
  0x54   :  { %5065 = shalt.err (!%p5062_p9)
}
  0x55   :  { %103 = dma.hbm_to_vmem [thread:$0]  %s6303_s20, 16, %s101_s28, [#allocation15]  }
  0x56   :  { %s5421_s25 = smov [#allocation17]   ;;  %s5422_s1 = smov [#allocation20]  }
  0x57   :  { %s119_s3 = sshll.u32 %s5421_s25, 4  ;;  %s144_s21 = sshll.u32 %s5422_s1, 4  ;;  %s120_s3 = int_to_ptr.vmem [resolvable:$true] %s119_s3  ;;  %s145_s21 = int_to_ptr.vmem [resolvable:$true] %s144_s21 }
  0x58   :  { %s5066_s2 = scalar_lea.hbm %s6270_s7, 512 }
  0x59   :  { %p5067_p10 = scmp.ne.s32.totalorder %s6270_s7, %s5066_s2  ;;  %p5070_p11 = scmp.lt.u32.totalorder %s5066_s2, %s6270_s7 }
  0x5b   :  { %p5072_p12 = pnand %p5070_p11, %p5067_p10 }
  0x5d   :  { %5075 = shalt.err (!%p5072_p12)
}
  0x5e   :  { %s5076_s28 = scalar_lea.vmem %s120_s3, 512  ;;  %p5081_p0 = scmp.lt.s32.totalorder %s120_s3, %s120_s3 }
  0x5f   :  { %p5077_p13 = scmp.ne.s32.totalorder %s120_s3, %s5076_s28  ;;  %p5082_p1 = scmp.lt.s32.totalorder %s5076_s28, %s5076_s28 }
  0x61   :  { %p5083_p2 = por %p5082_p1, %p5081_p0 }
  0x63   :  { %p5084_p3 = pnand %p5083_p2, %p5077_p13 }
  0x65   :  { %5087 = shalt.err (!%p5084_p3)
}
  0x66   :  { %125 = dma.hbm_to_vmem [thread:$0]  %s6270_s7, 512, %s120_s3, [#allocation18], %s5417_s22, %s5417_s22, %s5418_s23  }
  0x67   :  { %s5088_s25 = scalar_lea.hbm %s6272_s9, 16 }
  0x68   :  { %p5089_p4 = scmp.ne.s32.totalorder %s6272_s9, %s5088_s25  ;;  %p5092_p5 = scmp.lt.u32.totalorder %s5088_s25, %s6272_s9 }
  0x6a   :  { %p5094_p6 = pnand %p5092_p5, %p5089_p4 }
  0x6c   :  { %5097 = shalt.err (!%p5094_p6)
}
  0x6d   :  { %s5098_s27 = scalar_lea.vmem %s145_s21, 16  ;;  %s5102_s29 = scalar_lea.vmem %s145_s21, 32 }
  0x6e   :  { %p5099_p7 = scmp.ne.s32.totalorder %s145_s21, %s5098_s27  ;;  %p5103_p8 = scmp.lt.s32.totalorder %s145_s21, %s145_s21 }
  0x6f   :  { %p5104_p9 = scmp.lt.s32.totalorder %s5102_s29, %s5098_s27 }
  0x71   :  { %p5105_p10 = por %p5104_p9, %p5103_p8 }
  0x73   :  { %p5106_p11 = pnand %p5105_p10, %p5099_p7 }
  0x75   :  { %5109 = shalt.err (!%p5106_p11)
}
  0x76   :  { %147 = dma.hbm_to_vmem [thread:$0]  %s6272_s9, 16, %s145_s21, [#allocation21]  }
  0x77   :  { %s5423_s0 = smov [#allocation23]   ;;  %s5424_s28 = smov [#allocation26]  }
  0x78   :  { %s165_s30 = sshll.u32 %s5423_s0, 4  ;;  %s188_s20 = sshll.u32 %s5424_s28, 4  ;;  %s166_s30 = int_to_ptr.vmem [resolvable:$true] %s165_s30  ;;  %s189_s20 = int_to_ptr.vmem [resolvable:$true] %s188_s20 }
  0x79   :  { %s5110_s4 = scalar_lea.hbm %s6275_s12, 512 }
  0x7a   :  { %p5111_p12 = scmp.ne.s32.totalorder %s6275_s12, %s5110_s4  ;;  %p5114_p13 = scmp.lt.u32.totalorder %s5110_s4, %s6275_s12 }
  0x7c   :  { %p5116_p0 = pnand %p5114_p13, %p5111_p12 }
  0x7e   :  { %5119 = shalt.err (!%p5116_p0)
}
  0x7f   :  { %s5120_s9 = scalar_lea.vmem %s166_s30, 512  ;;  %p5125_p2 = scmp.lt.s32.totalorder %s166_s30, %s166_s30 }
  0x80   :  { %p5121_p1 = scmp.ne.s32.totalorder %s166_s30, %s5120_s9  ;;  %p5126_p3 = scmp.lt.s32.totalorder %s5120_s9, %s5120_s9 }
  0x82   :  { %p5127_p4 = por %p5126_p3, %p5125_p2 }
  0x84   :  { %p5128_p5 = pnand %p5127_p4, %p5121_p1 }
  0x86   :  { %5131 = shalt.err (!%p5128_p5)
}
  0x87   :  { %171 = dma.hbm_to_vmem [thread:$0]  %s6275_s12, 512, %s166_s30, [#allocation24], %s5417_s22, %s5417_s22, %s5418_s23  }
  0x88   :  { %s5132_s7 = scalar_lea.hbm %s6277_s14, 16 }
  0x89   :  { %p5133_p6 = scmp.ne.s32.totalorder %s6277_s14, %s5132_s7  ;;  %p5136_p7 = scmp.lt.u32.totalorder %s5132_s7, %s6277_s14 }
  0x8b   :  { %p5138_p8 = pnand %p5136_p7, %p5133_p6 }
  0x8d   :  { %5141 = shalt.err (!%p5138_p8)
}
  0x8e   :  { %s5142_s26 = scalar_lea.vmem %s189_s20, 16  ;;  %s5146_s4 = scalar_lea.vmem %s189_s20, 32 }
  0x8f   :  { %p5143_p9 = scmp.ne.s32.totalorder %s189_s20, %s5142_s26  ;;  %p5147_p10 = scmp.lt.s32.totalorder %s189_s20, %s189_s20 }
  0x90   :  { %p5148_p11 = scmp.lt.s32.totalorder %s5146_s4, %s5142_s26 }
  0x92   :  { %p5149_p12 = por %p5148_p11, %p5147_p10 }
  0x94   :  { %p5150_p13 = pnand %p5149_p12, %p5143_p9 }
  0x96   :  { %5153 = shalt.err (!%p5150_p13)
}
  0x97   :  { %191 = dma.hbm_to_vmem [thread:$0]  %s6277_s14, 16, %s189_s20, [#allocation27]  }
  0x98   :  { %s5425_s25 = smov [#allocation29]   ;;  %s5426_s18 = smov [#allocation5]  }
  0x99   :  { %s210_s1 = sshll.u32 %s5425_s25, 4  ;;  %s41_s24 = sshll.u32 %s5426_s18, 4  ;;  %s211_s1 = int_to_ptr.vmem [resolvable:$true] %s210_s1  ;;  %s42_s24 = int_to_ptr.vmem [resolvable:$true] %s41_s24 }
  0x9a   :  { %s5154_s2 = scalar_lea.hbm %s6279_s16, 16 }
  0x9b   :  { %p5155_p0 = scmp.ne.s32.totalorder %s6279_s16, %s5154_s2  ;;  %p5158_p1 = scmp.lt.u32.totalorder %s5154_s2, %s6279_s16 }
  0x9d   :  { %p5160_p2 = pnand %p5158_p1, %p5155_p0 }
  0x9f   :  { %5163 = shalt.err (!%p5160_p2)
}
  0xa0   :  { %s5164_s14 = scalar_lea.vmem %s211_s1, 16  ;;  %s5168_s20 = scalar_lea.vmem %s211_s1, 32 }
  0xa1   :  { %p5165_p3 = scmp.ne.s32.totalorder %s211_s1, %s5164_s14  ;;  %p5169_p4 = scmp.lt.s32.totalorder %s211_s1, %s211_s1 }
  0xa2   :  { %p5170_p5 = scmp.lt.s32.totalorder %s5168_s20, %s5164_s14 }
  0xa4   :  { %p5171_p6 = por %p5170_p5, %p5169_p4 }
  0xa6   :  { %p5172_p7 = pnand %p5171_p6, %p5165_p3 }
  0xa8   :  { %5175 = shalt.err (!%p5172_p7)
}
  0xa9   :  { %213 = dma.hbm_to_vmem [thread:$0]  %s6279_s16, 16, %s211_s1, [#allocation30]  }
  0xaa   :  { %s6304_s4 = sld [smem:[#allocation43_spill]] }
  0xb0   :  { %s5176_s12 = scalar_lea.hbm %s6304_s4, 256 }
  0xb1   :  { %p5177_p8 = scmp.ne.s32.totalorder %s6304_s4, %s5176_s12  ;;  %p5180_p9 = scmp.lt.u32.totalorder %s5176_s12, %s6304_s4 }
  0xb3   :  { %p5182_p10 = pnand %p5180_p9, %p5177_p8 }
  0xb5   :  { %5185 = shalt.err (!%p5182_p10)
}
  0xb6   :  { %s5186_s21 = scalar_lea.vmem %s42_s24, 256  ;;  %p5191_p12 = scmp.lt.s32.totalorder %s42_s24, %s42_s24 }
  0xb7   :  { %p5187_p11 = scmp.ne.s32.totalorder %s42_s24, %s5186_s21  ;;  %p5192_p13 = scmp.lt.s32.totalorder %s5186_s21, %s5186_s21 }
  0xb9   :  { %p5193_p0 = por %p5192_p13, %p5191_p12 }
  0xbb   :  { %p5194_p1 = pnand %p5193_p0, %p5187_p11 }
  0xbd   :  { %5197 = shalt.err (!%p5194_p1)
}
  0xbe   :  { %s5427_s16 = smov 32   ;;  %s5428_s1 = smov 2  }
  0xbf   :  { %47 = dma.hbm_to_vmem [thread:$0]  %s6304_s4, 256, %s42_s24, [#allocation6], %s5427_s16, %s5427_s16, %s5428_s1  }
  0xc0   :  { %s5429_s29 = smov [#allocation10]   ;;  %s5430_s3 = smov [#allocation13]  }
  0xc1   :  { %s66_s7 = sshll.u32 %s5429_s29, 4  ;;  %s87_s14 = sshll.u32 %s5430_s3, 4  ;;  %s67_s7 = int_to_ptr.vmem [resolvable:$true] %s66_s7  ;;  %s88_s14 = int_to_ptr.vmem [resolvable:$true] %s87_s14 }
  0xc2   :  { %s6305_s28 = sld [smem:[#allocation45_spill]] }
  0xc8   :  { %s5198_s5 = scalar_lea.hbm %s6305_s28, 16 }
  0xc9   :  { %p5199_p2 = scmp.ne.s32.totalorder %s6305_s28, %s5198_s5  ;;  %p5202_p3 = scmp.lt.u32.totalorder %s5198_s5, %s6305_s28 }
  0xcb   :  { %p5204_p4 = pnand %p5202_p3, %p5199_p2 }
  0xcd   :  { %5207 = shalt.err (!%p5204_p4)
}
  0xce   :  { %s5208_s24 = scalar_lea.vmem %s67_s7, 16  ;;  %s5212_s4 = scalar_lea.vmem %s67_s7, 32 }
  0xcf   :  { %p5209_p5 = scmp.ne.s32.totalorder %s67_s7, %s5208_s24  ;;  %p5213_p6 = scmp.lt.s32.totalorder %s67_s7, %s67_s7 }
  0xd0   :  { %p5214_p7 = scmp.lt.s32.totalorder %s5212_s4, %s5208_s24 }
  0xd2   :  { %p5215_p8 = por %p5214_p7, %p5213_p6 }
  0xd4   :  { %p5216_p9 = pnand %p5215_p8, %p5209_p5 }
  0xd6   :  { %5219 = shalt.err (!%p5216_p9)
}
  0xd7   :  { %69 = dma.hbm_to_vmem [thread:$0]  %s6305_s28, 16, %s67_s7, [#allocation9]  }
  0xd8   :  { %s6306_s27 = sld [smem:[#allocation47_spill]] }
  0xde   :  { %s5220_s29 = scalar_lea.hbm %s6306_s27, 512 }
  0xdf   :  { %p5221_p10 = scmp.ne.s32.totalorder %s6306_s27, %s5220_s29  ;;  %p5224_p11 = scmp.lt.u32.totalorder %s5220_s29, %s6306_s27 }
  0xe1   :  { %p5226_p12 = pnand %p5224_p11, %p5221_p10 }
  0xe3   :  { %5229 = shalt.err (!%p5226_p12)
}
  0xe4   :  { %s5230_s26 = scalar_lea.vmem %s88_s14, 512  ;;  %p5235_p0 = scmp.lt.s32.totalorder %s88_s14, %s88_s14 }
  0xe5   :  { %p5231_p13 = scmp.ne.s32.totalorder %s88_s14, %s5230_s26  ;;  %p5236_p1 = scmp.lt.s32.totalorder %s5230_s26, %s5230_s26 }
  0xe7   :  { %p5237_p2 = por %p5236_p1, %p5235_p0 }
  0xe9   :  { %p5238_p3 = pnand %p5237_p2, %p5231_p13 }
  0xeb   :  { %5241 = shalt.err (!%p5238_p3)
}
  0xec   :  { %93 = dma.hbm_to_vmem [thread:$0]  %s6306_s27, 512, %s88_s14, [#allocation12], %s5417_s22, %s5417_s22, %s5418_s23  }
  0xed   :  { %s5431_s12 = smov [#allocation16]   ;;  %s5432_s25 = smov [#allocation19]  }
  0xee   :  { %s110_s30 = sshll.u32 %s5431_s12, 4  ;;  %s131_s24 = sshll.u32 %s5432_s25, 4  ;;  %s111_s30 = int_to_ptr.vmem [resolvable:$true] %s110_s30  ;;  %s132_s24 = int_to_ptr.vmem [resolvable:$true] %s131_s24 }
  0xef   :  { %s5242_s9 = scalar_lea.hbm %s6269_s6, 16 }
  0xf0   :  { %p5243_p4 = scmp.ne.s32.totalorder %s6269_s6, %s5242_s9  ;;  %p5246_p5 = scmp.lt.u32.totalorder %s5242_s9, %s6269_s6 }
  0xf2   :  { %p5248_p6 = pnand %p5246_p5, %p5243_p4 }
  0xf4   :  { %5251 = shalt.err (!%p5248_p6)
}
  0xf5   :  { %s5252_s14 = scalar_lea.vmem %s111_s30, 16  ;;  %s5256_s27 = scalar_lea.vmem %s111_s30, 32 }
  0xf6   :  { %p5253_p7 = scmp.ne.s32.totalorder %s111_s30, %s5252_s14  ;;  %p5257_p8 = scmp.lt.s32.totalorder %s111_s30, %s111_s30 }
  0xf7   :  { %p5258_p9 = scmp.lt.s32.totalorder %s5256_s27, %s5252_s14 }
  0xf9   :  { %p5259_p10 = por %p5258_p9, %p5257_p8 }
  0xfb   :  { %p5260_p11 = pnand %p5259_p10, %p5253_p7 }
  0xfd   :  { %5263 = shalt.err (!%p5260_p11)
}
  0xfe   :  { %113 = dma.hbm_to_vmem [thread:$0]  %s6269_s6, 16, %s111_s30, [#allocation15]  }
  0xff   :  { %s5264_s7 = scalar_lea.hbm %s6271_s8, 512 }
 0x100   :  { %p5265_p12 = scmp.ne.s32.totalorder %s6271_s8, %s5264_s7  ;;  %p5268_p13 = scmp.lt.u32.totalorder %s5264_s7, %s6271_s8 }
 0x102   :  { %p5270_p0 = pnand %p5268_p13, %p5265_p12 }
 0x104   :  { %5273 = shalt.err (!%p5270_p0)
}
 0x105   :  { %s5274_s18 = scalar_lea.vmem %s132_s24, 512  ;;  %p5279_p2 = scmp.lt.s32.totalorder %s132_s24, %s132_s24 }
 0x106   :  { %p5275_p1 = scmp.ne.s32.totalorder %s132_s24, %s5274_s18  ;;  %p5280_p3 = scmp.lt.s32.totalorder %s5274_s18, %s5274_s18 }
 0x108   :  { %p5281_p4 = por %p5280_p3, %p5279_p2 }
 0x10a   :  { %p5282_p5 = pnand %p5281_p4, %p5275_p1 }
 0x10c   :  { %5285 = shalt.err (!%p5282_p5)
}
 0x10d   :  { %137 = dma.hbm_to_vmem [thread:$0]  %s6271_s8, 512, %s132_s24, [#allocation18], %s5417_s22, %s5417_s22, %s5418_s23  }
 0x10e   :  { %s5433_s9 = smov [#allocation22]   ;;  %s5434_s2 = smov [#allocation25]  }
 0x10f   :  { %s154_s21 = sshll.u32 %s5433_s9, 4  ;;  %s178_s29 = sshll.u32 %s5434_s2, 4  ;;  %s155_s21 = int_to_ptr.vmem [resolvable:$true] %s154_s21  ;;  %s179_s29 = int_to_ptr.vmem [resolvable:$true] %s178_s29 }
 0x110   :  { %s5286_s27 = scalar_lea.hbm %s6273_s10, 16 }
 0x111   :  { %p5287_p6 = scmp.ne.s32.totalorder %s6273_s10, %s5286_s27  ;;  %p5290_p7 = scmp.lt.u32.totalorder %s5286_s27, %s6273_s10 }
 0x113   :  { %p5292_p8 = pnand %p5290_p7, %p5287_p6 }
 0x115   :  { %5295 = shalt.err (!%p5292_p8)
}
 0x116   :  { %s5296_s8 = scalar_lea.vmem %s155_s21, 16  ;;  %s5300_s24 = scalar_lea.vmem %s155_s21, 32 }
 0x117   :  { %p5297_p9 = scmp.ne.s32.totalorder %s155_s21, %s5296_s8  ;;  %p5301_p10 = scmp.lt.s32.totalorder %s155_s21, %s155_s21 }
 0x118   :  { %p5302_p11 = scmp.lt.s32.totalorder %s5300_s24, %s5296_s8 }
 0x11a   :  { %p5303_p12 = por %p5302_p11, %p5301_p10 }
 0x11c   :  { %p5304_p13 = pnand %p5303_p12, %p5297_p9 }
 0x11e   :  { %5307 = shalt.err (!%p5304_p13)
}
 0x11f   :  { %157 = dma.hbm_to_vmem [thread:$0]  %s6273_s10, 16, %s155_s21, [#allocation21]  }
 0x120   :  { %s5308_s4 = scalar_lea.hbm %s6276_s13, 16 }
 0x121   :  { %p5309_p0 = scmp.ne.s32.totalorder %s6276_s13, %s5308_s4  ;;  %p5312_p1 = scmp.lt.u32.totalorder %s5308_s4, %s6276_s13 }
 0x123   :  { %p5314_p2 = pnand %p5312_p1, %p5309_p0 }
 0x125   :  { %5317 = shalt.err (!%p5314_p2)
}
 0x126   :  { %s5318_s2 = scalar_lea.vmem %s179_s29, 16  ;;  %s5322_s3 = scalar_lea.vmem %s179_s29, 32 }
 0x127   :  { %p5319_p3 = scmp.ne.s32.totalorder %s179_s29, %s5318_s2  ;;  %p5323_p4 = scmp.lt.s32.totalorder %s179_s29, %s179_s29 }
 0x128   :  { %p5324_p5 = scmp.lt.s32.totalorder %s5322_s3, %s5318_s2 }
 0x12a   :  { %p5325_p6 = por %p5324_p5, %p5323_p4 }
 0x12c   :  { %p5326_p7 = pnand %p5325_p6, %p5319_p3 }
 0x12e   :  { %5329 = shalt.err (!%p5326_p7)
}
 0x12f   :  { %181 = dma.hbm_to_vmem [thread:$0]  %s6276_s13, 16, %s179_s29, [#allocation24]  }
 0x130   :  { %s5435_s14 = smov [#allocation28]   ;;  %s5436_s20 = smov [#allocation31]  }
 0x131   :  { %s197_s27 = sshll.u32 %s5435_s14, 4  ;;  %s223_s0 = sshll.u32 %s5436_s20, 4  ;;  %s198_s27 = int_to_ptr.vmem [resolvable:$true] %s197_s27  ;;  %s224_s0 = int_to_ptr.vmem [resolvable:$true] %s223_s0 }
 0x132   :  { %s5330_s8 = scalar_lea.hbm %s6278_s15, 512 }
 0x133   :  { %p5331_p8 = scmp.ne.s32.totalorder %s6278_s15, %s5330_s8  ;;  %p5334_p9 = scmp.lt.u32.totalorder %s5330_s8, %s6278_s15 }
 0x135   :  { %p5336_p10 = pnand %p5334_p9, %p5331_p8 }
 0x137   :  { %5339 = shalt.err (!%p5336_p10)
}
 0x138   :  { %s5340_s13 = scalar_lea.vmem %s198_s27, 512  ;;  %p5345_p12 = scmp.lt.s32.totalorder %s198_s27, %s198_s27 }
 0x139   :  { %p5341_p11 = scmp.ne.s32.totalorder %s198_s27, %s5340_s13  ;;  %p5346_p13 = scmp.lt.s32.totalorder %s5340_s13, %s5340_s13 }
 0x13b   :  { %p5347_p0 = por %p5346_p13, %p5345_p12 }
 0x13d   :  { %p5348_p1 = pnand %p5347_p0, %p5341_p11 }
 0x13f   :  { %5351 = shalt.err (!%p5348_p1)
}
 0x140   :  { %203 = dma.hbm_to_vmem [thread:$0]  %s6278_s15, 512, %s198_s27, [#allocation27], %s5417_s22, %s5417_s22, %s5418_s23  }
 0x141   :  { %s5352_s6 = scalar_lea.hbm %s6282_s19, 512 }
 0x142   :  { %p5353_p2 = scmp.ne.s32.totalorder %s6282_s19, %s5352_s6  ;;  %p5356_p3 = scmp.lt.u32.totalorder %s5352_s6, %s6282_s19 }
 0x144   :  { %p5358_p4 = pnand %p5356_p3, %p5353_p2 }
 0x146   :  { %5361 = shalt.err (!%p5358_p4)
}
 0x147   :  { %s5362_s10 = scalar_lea.vmem %s224_s0, 512  ;;  %p5367_p6 = scmp.lt.s32.totalorder %s224_s0, %s224_s0 }
 0x148   :  { %p5363_p5 = scmp.ne.s32.totalorder %s224_s0, %s5362_s10  ;;  %p5368_p7 = scmp.lt.s32.totalorder %s5362_s10, %s5362_s10 }
 0x14a   :  { %p5369_p8 = por %p5368_p7, %p5367_p6 }
 0x14c   :  { %p5370_p9 = pnand %p5369_p8, %p5363_p5 }
 0x14e   :  { %5373 = shalt.err (!%p5370_p9)
}
 0x14f   :  { %229 = dma.hbm_to_vmem [thread:$0]  %s6282_s19, 512, %s224_s0, [#allocation30], %s5417_s22, %s5417_s22, %s5418_s23  }
 0x150   :  { %5396 = dma.done.wait [#allocation6], 256  }
 0x151   :  { %5397 = vsyncadd [#allocation6], 4294967040 }
 0x152   :  { %5398 = dma.done.wait [#allocation9], 272  }
 0x153   :  { %5399 = vsyncadd [#allocation9], 4294967024 }
 0x154   :  { %5400 = dma.done.wait [#allocation12], 1024  }
 0x155   :  { %5401 = vsyncadd [#allocation12], 4294966272 }
 0x156   :  { %5402 = dma.done.wait [#allocation15], 32  }
 0x157   :  { %5403 = vsyncadd [#allocation15], 4294967264 }
 0x158   :  { %5404 = dma.done.wait [#allocation18], 1024  }
 0x159   :  { %5405 = vsyncadd [#allocation18], 4294966272 }
 0x15a   :  { %5406 = dma.done.wait [#allocation21], 32  }
 0x15b   :  { %5407 = vsyncadd [#allocation21], 4294967264 }
 0x15c   :  { %5408 = dma.done.wait [#allocation24], 528  }
 0x15d   :  { %5409 = vsyncadd [#allocation24], 4294966768 }
 0x15e   :  { %5410 = dma.done.wait [#allocation27], 528  }
 0x15f   :  { %5411 = vsyncadd [#allocation27], 4294966768 }
 0x160   :  { %5412 = dma.done.wait [#allocation30], 528  }
 0x161   :  { %5413 = vsyncadd [#allocation30], 4294966768  ;;  %v313_v0 = vlaneseq  ;;  %v5437_v1 = vmov 1983009808   ;;  %vm347_vm0 = vcmask 1043456   ;;  %vm5438_vm1 = vmmov 1  }
 0x162   :  { %v311_v2 = vunpack.c.l.s4 %v5437_v1  ;;  %vm5786_vm2 = vmpackc.low %vm347_vm0, %vm5438_vm1  ;;  %v291_v6 = vld [vmem:[#allocation8] sm:$0xff]  ;;  %v292_v7 = vld [vmem:[#allocation8 + $0x8] sm:$0xf]  ;;  %vm342_vm3 = vcmask 97280   ;;  %v5439_v28 = vmov 0.0|0.0   ;;  %vm5440_vm4 = vmmov 0  }
 0x163   :  { %v314_v4 = vshrl.u32 %v313_v0, 7  ;;  %v283_v8 = vld [vmem:[#allocation5] sm:$0x3]  ;;  %v4629_v10 = vpack.c.bf16 %v292_v7, %v291_v6  ;;  %v284_v11 = vld [vmem:[#allocation5 + $0x2] sm:$0x3]  ;;  %v580_v25 = vld [vmem:[#allocation13 + $0x8] sm:$0xff] }
 0x164   :  { %v312_v3 = vunpack.c.0.s8 %v311_v2  ;;  %v285_v12 = vld [vmem:[#allocation5 + $0x4] sm:$0x3]  ;;  %v286_v13 = vld [vmem:[#allocation5 + $0x6] sm:$0x3]  ;;  %v308_v14 = vcombine.low %v283_v8, %v284_v11  ;;  %v287_v16 = vld [vmem:[#allocation5 + $0x8] sm:$0x3] }
 0x165   :  { %v309_v15 = vcombine.low %v285_v12, %v286_v13  ;;  %v288_v17 = vld [vmem:[#allocation5 + $0xa] sm:$0x3]  ;;  %v289_v18 = vld [vmem:[#allocation5 + $0xc] sm:$0x3]  ;;  %4631 = vmatprep.subr.msk.bf16.mxu0 %vm5786_vm2, %v4629_v10  ;;  %v290_v19 = vld [vmem:[#allocation5 + $0xe] sm:$0x3] }
 0x166   :  { %v5790_v9 = vsub.s32 %v312_v3, %v314_v4  ;;  %v325_v20 = vcombine.low %v287_v16, %v288_v17  ;;  %4634 = vmatpush3.bf16.msk.msra.mxu0 %vm5786_vm2, %v4629_v10  ;;  %v326_v23 = vcombine.low %v289_v18, %v290_v19  ;;  %v579_v24 = vld [vmem:[#allocation13] sm:$0xff]  ;;  %v427_v29 = vld [vmem:[#allocation11 + $0x8] sm:$0xff]  ;;  %v581_v35 = vld [vmem:[#allocation13 + $0x10] sm:$0xff]  ;;  %v5441_v38 = vmov 0.0   ;;  %s5442_s19 = smov 64   ;;  %s5443_s22 = smov 96  }
 0x167   :  { %v426_v26 = vld [vmem:[#allocation11] sm:$0xff]  ;;  %4643 = vmatprep.subr.bf16.mxu0 %v5439_v28  ;;  %v5801_v33 = vpack.c.bf16 %v580_v25, %v579_v24  ;;  %v582_v36 = vld [vmem:[#allocation13 + $0x18] sm:$0xff]  ;;  %v428_v39 = vld [vmem:[#allocation11 + $0x10] sm:$0xff]  ;;  %vm437_vm5 = vcmask 261120   ;;  %vm563_vm6 = vcmask 779264   ;;  %vm690_vm7 = vcmask 254976  }
 0x168   :  { %v316_v21 = vrot.slane %v308_v14, %v5790_v9  ;;  %v323_v22 = vrot.slane %v309_v15, %v5790_v9  ;;  %v333_v27 = vrot.slane %v325_v20, %v5790_v9  ;;  %v340_v31 = vrot.slane %v326_v23, %v5790_v9  ;;  %v429_v40 = vld [vmem:[#allocation11 + $0x18] sm:$0xff]  ;;  %v5821_v47 = vld [vmem:[#allocation16] ss:$0 sm:$0xff]  ;;  %v4062_v51 = vld [vmem:[#allocation14] ss:$0 sm:$0xff]  ;;  %s6309_s18 = sld [smem:[#allocation49_spill]] }
 0x169   :  { %v4635_v32 = vpack.c.bf16 %v427_v29, %v426_v26  ;;  %v5804_v37 = vpack.c.bf16 %v582_v36, %v581_v35  ;;  %v4639_v41 = vpack.c.bf16 %v429_v40, %v428_v39  ;;  %v4058_v42 = vld [vmem:[#allocation10] ss:$0 sm:$0xff]  ;;  %s6310_s9 = sld [smem:[#allocation50_spill]]  ;;  %s5444_s2 = smov [#allocation32]  }
 0x16a   :  { %v324_v30 = vcombine.low %v316_v21, %v323_v22  ;;  %v341_v34 = vcombine.low %v333_v27, %v340_v31  ;;  %s4038_s3 = sshll.u32 %s5444_s2, 4  ;;  %s4039_s3 = int_to_ptr.vmem [resolvable:$true] %s4038_s3 }
 0x16b   :  { %4636 = vmatprep.subr.bf16.mxu1 %v4635_v32  ;;  %s5374_s10 = scalar_lea.vmem %s4039_s3, 256  ;;  %p5379_p11 = scmp.lt.s32.totalorder %s4039_s3, %s4039_s3 }
 0x16c   :  { %4296 = vmatprep.mubr.msk.f32.mxu0 %vm342_vm3, %v324_v30  ;;  %4638 = vmatpush3.bf16.msra.mxu1 %v4635_v32  ;;  %p5375_p10 = scmp.ne.s32.totalorder %s4039_s3, %s5374_s10  ;;  %p5380_p12 = scmp.lt.s32.totalorder %s5374_s10, %s5374_s10 }
 0x16d   :  { %4297 = vmatmul.mubr.msk.f32.vlgmr.msra.gmra.mrb[0].mxu0 %vm342_vm3, %v341_v34  ;;  %4640 = vmatprep.subr.bf16.mxu1 %v4639_v41 }
 0x16e   :  { %4645 = vmatpush3.bf16.msra.mxu0 %v5801_v33  ;;  %4318 = vmatprep.mubr.msk.f32.mxu0 %vm5440_vm4, %v5441_v38  ;;  %p5381_p13 = por %p5380_p12, %p5379_p11 }
 0x16f   :  { %4646 = vmatprep.subr.bf16.mxu0 %v5439_v28 }
 0x170   :  { %4642 = vmatpush3.bf16.msra.mxu1 %v4639_v41  ;;  %p5382_p0 = pnand %p5381_p13, %p5375_p10 }
 0x171   :  { %4649 = vmatprep.subr.bf16.mxu1 %v5439_v28 }
 0x172   :  { %4648 = vmatpush3.bf16.msra.mxu0 %v5804_v37 }
 0x173   :  { %4655 = vmatprep.subr.bf16.mxu0 %v5439_v28 }
 0x175   :  { %4319 = vmatmul.mubr.f32.vlgmr.msra.gmra.mrb[2].mxu0 %v5441_v38 }
 0x176   :  { %4657 = vmatpush3.bf16.msra.mxu0 %v5801_v33  ;;  %4340 = vmatprep.mubr.msk.f32.mxu0 %vm5440_vm4, %v5441_v38 }
 0x177   :  { %4658 = vmatprep.subr.bf16.mxu0 %v5439_v28 }
 0x17a   :  { %4660 = vmatpush3.bf16.msra.mxu0 %v5804_v37 }
 0x17b   :  { %4667 = vmatprep.subr.bf16.mxu0 %v5439_v28 }
 0x240   :  { %v4298_v43 = vpop.f32.mrb[0].mxu0 }
 0x241   :  { %v417_v44 = vpop.f32.mrb[1].mxu0  ;;  %v423_v46 = vadd.f32 %v4298_v43, %v4058_v42 }
 0x242   :  { %v418_v45 = vadd.f32 %v4058_v42, %v417_v44 }
 0x244   :  { %4307 = vmatprep.mubr.msk.f32.mxu1 %vm437_vm5, %v418_v45 }
 0x245   :  { %4308 = vmatmul.mubr.msk.f32.vlgmr.msra.gmra.mrb[0].mxu1 %vm437_vm5, %v423_v46 }
 0x246   :  { %4651 = vmatpush3.bf16.msra.mxu1 %v5801_v33  ;;  %4329 = vmatprep.mubr.msk.f32.mxu1 %vm5440_vm4, %v5441_v38 }
 0x247   :  { %4652 = vmatprep.subr.bf16.mxu1 %v5439_v28 }
 0x248   :  { %v652_v48 = vpop.f32.mrb[2].mxu0 }
 0x249   :  { %v653_v49 = vadd.f32 %v5821_v47, %v652_v48  ;;  %v4320_v50 = vpop.f32.mrb[3].mxu0 }
 0x24a   :  { %4654 = vmatpush3.bf16.msra.mxu1 %v5804_v37 }
 0x24b   :  { %665 = vrot.lane.b32.xlu0 %v653_v49, %s5442_s19  ;;  %4661 = vmatprep.subr.bf16.mxu1 %v5439_v28 }
 0x2bd   :  { %v666_v7 = vpop.permute.xlu0 %665 }
 0x318   :  { %v4309_v52 = vpop.f32.mrb[0].mxu1 }
 0x319   :  { %v516_v53 = vadd.f32 %v4309_v52, %v4062_v51  ;;  %v510_v54 = vpop.f32.mrb[1].mxu1 }
 0x31a   :  { %v511_v55 = vadd.f32 %v4062_v51, %v510_v54 }
 0x31b   :  { %v538_v56 = vcombine.high %v516_v53, %v516_v53  ;;  %v545_v57 = vrot.slane %v516_v53, %v5790_v9 }
 0x31c   :  { %v521_v58 = vcombine.high %v511_v55, %v511_v55  ;;  %v528_v59 = vrot.slane %v511_v55, %v5790_v9 }
 0x31d   :  { %v552_v60 = vrot.slane %v538_v56, %v5790_v9  ;;  %v553_v61 = vcombine.high %v545_v57, %v545_v57  ;;  %568 = vst.msk [vmem:[#allocation2 + $0x8] sm:$0x3] %vm563_vm6, %v545_v57 }
 0x31e   :  { %v535_v62 = vrot.slane %v521_v58, %v5790_v9  ;;  %v536_v63 = vcombine.high %v528_v59, %v528_v59  ;;  %564 = vst.msk [vmem:[#allocation2] sm:$0x3] %vm563_vm6, %v528_v59 }
 0x31f   :  { %v554_v0 = vcombine.high %v552_v60, %v552_v60  ;;  %569 = vst.msk [vmem:[#allocation2 + $0xa] sm:$0x3] %vm563_vm6, %v553_v61  ;;  %570 = vst.msk [vmem:[#allocation2 + $0xc] sm:$0x3] %vm563_vm6, %v552_v60 }
 0x320   :  { %v537_v1 = vcombine.high %v535_v62, %v535_v62  ;;  %565 = vst.msk [vmem:[#allocation2 + $0x2] sm:$0x3] %vm563_vm6, %v536_v63  ;;  %566 = vst.msk [vmem:[#allocation2 + $0x4] sm:$0x3] %vm563_vm6, %v535_v62 }
 0x321   :  { %571 = vst.msk [vmem:[#allocation2 + $0xe] sm:$0x3] %vm563_vm6, %v554_v0 }
 0x322   :  { %567 = vst.msk [vmem:[#allocation2 + $0x6] sm:$0x3] %vm563_vm6, %v537_v1 }
 0x325   :  { %v656_v2 = vld [vmem:[#allocation2] sm:$0x3] }
 0x326   :  { %v657_v3 = vadd.f32 %v656_v2, %v653_v49 }
 0x327   :  { %v769_v23 = vld [vmem:[#allocation2 + $0x2] sm:$0x3]  ;;  %v882_v48 = vld [vmem:[#allocation2 + $0x4] sm:$0x3] }
 0x328   :  { %v4066_v4 = vmul.f32 -1.442695, %v657_v3 }
 0x32a   :  { %4856 = vpow2.f32 %v4066_v4  ;;  %v995_v4 = vld [vmem:[#allocation2 + $0x6] sm:$0x3] }
 0x334   :  { %v4857_v5 = vpop.eup %4856 }
 0x335   :  { %v661_v6 = vadd.f32 1.0, %v4857_v5 }
 0x337   :  { %4858 = vrcp.f32 %v661_v6 }
 0x341   :  { %v4859_v8 = vpop.eup %4858 }
 0x342   :  { %v668_v10 = vmul.f32 %v4859_v8, %v666_v7 }
 0x344   :  { %670 = vrot.lane.b32.xlu0 %v668_v10, %s5442_s19 }
 0x3b6   :  { %v671_v11 = vpop.permute.xlu0 %670 }
 0x3b7   :  { %v673_v12 = vadd.f32 %v671_v11, %v656_v2 }
 0x3b9   :  { %4860 = vtanh.f32 %v673_v12 }
 0x3c3   :  { %v4861_v13 = vpop.eup %4860 }
 0x3c4   :  { %v675_v14 = vsub.f32 0.0, %v4861_v13 }
 0x3c6   :  { %677 = vrot.lane.b32.xlu1 %v675_v14, %s5443_s22 }
 0x438   :  { %v678_v15 = vpop.permute.xlu1 %677 }
 0x439   :  { %v680_v16 = vmul.f32 %v4859_v8, %v678_v15 }
 0x43b   :  { %682 = vrot.lane.b32.xlu1 %v680_v16, %s5427_s16 }
 0x4ad   :  { %v683_v17 = vpop.permute.xlu1 %682 }
 0x4ae   :  { %v685_v18 = vadd.f32 %v4861_v13, %v683_v17 }
 0x4b0   :  { %687 = vrot.lane.b32.xlu0 %v685_v18, %s5442_s19 }
 0x522   :  { %v688_v19 = vpop.permute.xlu0 %687 }
 0x523   :  { %691 = vst.msk [vmem:[#allocation3] sm:$0x3] %vm690_vm7, %v688_v19  ;;  %4330 = vmatmul.mubr.msk.f32.vlgmr.msra.gmra.mrb[2].mxu1 %vm437_vm5, %v688_v19 }
 0x524   :  { %4663 = vmatpush3.bf16.msra.mxu1 %v5801_v33  ;;  %4351 = vmatprep.mubr.msk.f32.mxu1 %vm5440_vm4, %v5441_v38 }
 0x525   :  { %4664 = vmatprep.subr.bf16.mxu1 %v5439_v28 }
 0x528   :  { %4666 = vmatpush3.bf16.msra.mxu1 %v5804_v37 }
 0x529   :  { %4673 = vmatprep.subr.bf16.mxu1 %v5439_v28 }
 0x5f6   :  { %v764_v20 = vpop.f32.mrb[2].mxu1 }
 0x5f7   :  { %v765_v21 = vadd.f32 %v5821_v47, %v764_v20  ;;  %v4331_v22 = vpop.f32.mrb[3].mxu1 }
 0x5f9   :  { %778 = vrot.lane.b32.xlu1 %v765_v21, %s5442_s19  ;;  %v770_v24 = vadd.f32 %v769_v23, %v765_v21 }
 0x5fb   :  { %v4068_v25 = vmul.f32 -1.442695, %v770_v24 }
 0x5fd   :  { %4862 = vpow2.f32 %v4068_v25  ;;  %v1108_v25 = vld [vmem:[#allocation2 + $0x8] sm:$0x3] }
 0x607   :  { %v4863_v26 = vpop.eup %4862 }
 0x608   :  { %v774_v27 = vadd.f32 1.0, %v4863_v26 }
 0x60a   :  { %4864 = vrcp.f32 %v774_v27 }
 0x614   :  { %v4865_v29 = vpop.eup %4864 }
 0x66b   :  { %v779_v30 = vpop.permute.xlu1 %778 }
 0x66c   :  { %v781_v31 = vmul.f32 %v4865_v29, %v779_v30 }
 0x66e   :  { %783 = vrot.lane.b32.xlu0 %v781_v31, %s5442_s19 }
 0x6e0   :  { %v784_v32 = vpop.permute.xlu0 %783 }
 0x6e1   :  { %v786_v34 = vadd.f32 %v784_v32, %v769_v23 }
 0x6e3   :  { %4866 = vtanh.f32 %v786_v34 }
 0x6ed   :  { %v4867_v35 = vpop.eup %4866 }
 0x6ee   :  { %v788_v36 = vsub.f32 %v685_v18, %v4867_v35 }
 0x6f0   :  { %790 = vrot.lane.b32.xlu1 %v788_v36, %s5443_s22 }
 0x762   :  { %v791_v39 = vpop.permute.xlu1 %790 }
 0x763   :  { %v793_v40 = vmul.f32 %v4865_v29, %v791_v39 }
 0x765   :  { %795 = vrot.lane.b32.xlu0 %v793_v40, %s5427_s16 }
 0x7d7   :  { %v796_v41 = vpop.permute.xlu0 %795 }
 0x7d8   :  { %v798_v42 = vadd.f32 %v4867_v35, %v796_v41 }
 0x7da   :  { %800 = vrot.lane.b32.xlu1 %v798_v42, %s5442_s19 }
 0x84c   :  { %v801_v43 = vpop.permute.xlu1 %800 }
 0x84d   :  { %804 = vst.msk [vmem:[#allocation3 + $0x2] sm:$0x3] %vm690_vm7, %v801_v43  ;;  %4341 = vmatmul.mubr.msk.f32.vlgmr.msra.gmra.mrb[4].mxu0 %vm437_vm5, %v801_v43 }
 0x84e   :  { %4669 = vmatpush3.bf16.msra.mxu0 %v5801_v33  ;;  %4362 = vmatprep.mubr.msk.f32.mxu0 %vm5440_vm4, %v5441_v38 }
 0x84f   :  { %4670 = vmatprep.subr.bf16.mxu0 %v5439_v28 }
 0x852   :  { %4672 = vmatpush3.bf16.msra.mxu0 %v5804_v37 }
 0x853   :  { %4679 = vmatprep.subr.bf16.mxu0 %v5439_v28 }
 0x920   :  { %v877_v44 = vpop.f32.mrb[4].mxu0 }
 0x921   :  { %v878_v45 = vadd.f32 %v5821_v47, %v877_v44  ;;  %v4342_v46 = vpop.f32.mrb[5].mxu0 }
 0x923   :  { %891 = vrot.lane.b32.xlu0 %v878_v45, %s5442_s19  ;;  %v883_v49 = vadd.f32 %v882_v48, %v878_v45 }
 0x925   :  { %v4070_v50 = vmul.f32 -1.442695, %v883_v49 }
 0x927   :  { %4868 = vpow2.f32 %v4070_v50  ;;  %v1221_v50 = vld [vmem:[#allocation2 + $0xa] sm:$0x3] }
 0x931   :  { %v4869_v51 = vpop.eup %4868 }
 0x932   :  { %v887_v52 = vadd.f32 1.0, %v4869_v51 }
 0x934   :  { %4870 = vrcp.f32 %v887_v52 }
 0x93e   :  { %v4871_v53 = vpop.eup %4870 }
 0x995   :  { %v892_v54 = vpop.permute.xlu0 %891 }
 0x996   :  { %v894_v55 = vmul.f32 %v4871_v53, %v892_v54 }
 0x998   :  { %896 = vrot.lane.b32.xlu1 %v894_v55, %s5442_s19 }
 0xa0a   :  { %v897_v56 = vpop.permute.xlu1 %896 }
 0xa0b   :  { %v899_v57 = vadd.f32 %v897_v56, %v882_v48 }
 0xa0d   :  { %4872 = vtanh.f32 %v899_v57 }
 0xa17   :  { %v4873_v58 = vpop.eup %4872 }
 0xa18   :  { %v901_v59 = vsub.f32 %v798_v42, %v4873_v58 }
 0xa1a   :  { %903 = vrot.lane.b32.xlu0 %v901_v59, %s5443_s22 }
 0xa8c   :  { %v904_v60 = vpop.permute.xlu0 %903 }
 0xa8d   :  { %v906_v61 = vmul.f32 %v4871_v53, %v904_v60 }
 0xa8f   :  { %908 = vrot.lane.b32.xlu1 %v906_v61, %s5427_s16 }
 0xb01   :  { %v909_v62 = vpop.permute.xlu1 %908 }
 0xb02   :  { %v911_v63 = vadd.f32 %v4873_v58, %v909_v62 }
 0xb04   :  { %913 = vrot.lane.b32.xlu0 %v911_v63, %s5442_s19 }
 0xb76   :  { %v914_v0 = vpop.permute.xlu0 %913 }
 0xb77   :  { %917 = vst.msk [vmem:[#allocation3 + $0x4] sm:$0x3] %vm690_vm7, %v914_v0  ;;  %4352 = vmatmul.mubr.msk.f32.vlgmr.msra.gmra.mrb[4].mxu1 %vm437_vm5, %v914_v0 }
 0xb78   :  { %4675 = vmatpush3.bf16.msra.mxu1 %v5801_v33  ;;  %4373 = vmatprep.mubr.msk.f32.mxu1 %vm5440_vm4, %v5441_v38 }
 0xb79   :  { %4676 = vmatprep.subr.bf16.mxu1 %v5439_v28 }
 0xb7c   :  { %4678 = vmatpush3.bf16.msra.mxu1 %v5804_v37 }
 0xb7d   :  { %4685 = vmatprep.subr.bf16.mxu1 %v5439_v28 }
 0xc4a   :  { %v990_v1 = vpop.f32.mrb[4].mxu1 }
 0xc4b   :  { %v991_v2 = vadd.f32 %v5821_v47, %v990_v1  ;;  %v4353_v3 = vpop.f32.mrb[5].mxu1  ;;  %v1484_v1 = vld [vmem:[#allocation3 + $0x2] sm:$0x3] }
 0xc4d   :  { %1004 = vrot.lane.b32.xlu1 %v991_v2, %s5442_s19  ;;  %v996_v5 = vadd.f32 %v995_v4, %v991_v2  ;;  %v1485_v2 = vld [vmem:[#allocation3 + $0x4] sm:$0x3] }
 0xc4f   :  { %v4072_v6 = vmul.f32 -1.442695, %v996_v5 }
 0xc51   :  { %4874 = vpow2.f32 %v4072_v6 }
 0xc5b   :  { %v4875_v7 = vpop.eup %4874 }
 0xc5c   :  { %v1000_v8 = vadd.f32 1.0, %v4875_v7 }
 0xc5e   :  { %4876 = vrcp.f32 %v1000_v8 }
 0xc68   :  { %v4877_v10 = vpop.eup %4876 }
 0xcbf   :  { %v1005_v11 = vpop.permute.xlu1 %1004 }
 0xcc0   :  { %v1007_v12 = vmul.f32 %v4877_v10, %v1005_v11 }
 0xcc2   :  { %1009 = vrot.lane.b32.xlu0 %v1007_v12, %s5442_s19 }
 0xd34   :  { %v1010_v13 = vpop.permute.xlu0 %1009 }
 0xd35   :  { %v1012_v14 = vadd.f32 %v1010_v13, %v995_v4  ;;  %v1483_v4 = vld [vmem:[#allocation3] sm:$0x3] }
 0xd36   :  { %v1510_v5 = vcombine.low %v1483_v4, %v1484_v1 }
 0xd37   :  { %4878 = vtanh.f32 %v1012_v14  ;;  %v1334_v14 = vld [vmem:[#allocation2 + $0xc] sm:$0x3] }
 0xd38   :  { %v1518_v7 = vrot.slane %v1510_v5, %v5790_v9 }
 0xd41   :  { %v4879_v15 = vpop.eup %4878 }
 0xd42   :  { %v1014_v16 = vsub.f32 %v911_v63, %v4879_v15 }
 0xd44   :  { %1016 = vrot.lane.b32.xlu1 %v1014_v16, %s5443_s22 }
 0xdb6   :  { %v1017_v17 = vpop.permute.xlu1 %1016 }
 0xdb7   :  { %v1019_v18 = vmul.f32 %v4877_v10, %v1017_v17 }
 0xdb9   :  { %1021 = vrot.lane.b32.xlu0 %v1019_v18, %s5427_s16 }
 0xe2b   :  { %v1022_v19 = vpop.permute.xlu0 %1021 }
 0xe2c   :  { %v1024_v20 = vadd.f32 %v4879_v15, %v1022_v19 }
 0xe2e   :  { %1026 = vrot.lane.b32.xlu1 %v1024_v20, %s5442_s19 }
 0xea0   :  { %v1027_v21 = vpop.permute.xlu1 %1026 }
 0xea1   :  { %1030 = vst.msk [vmem:[#allocation3 + $0x6] sm:$0x3] %vm690_vm7, %v1027_v21  ;;  %4363 = vmatmul.mubr.msk.f32.vlgmr.msra.gmra.mrb[6].mxu0 %vm437_vm5, %v1027_v21 }
 0xea2   :  { %4681 = vmatpush3.bf16.msra.mxu0 %v5801_v33  ;;  %4384 = vmatprep.mubr.msk.f32.mxu0 %vm5440_vm4, %v5441_v38 }
 0xea3   :  { %4682 = vmatprep.subr.bf16.mxu0 %v5439_v28 }
 0xea6   :  { %4684 = vmatpush3.bf16.msra.mxu0 %v5804_v37 }
 0xea8   :  { %v1486_v0 = vld [vmem:[#allocation3 + $0x6] sm:$0x3] }
 0xea9   :  { %v1511_v3 = vcombine.low %v1485_v2, %v1486_v0  ;;  %v5953_v0 = vld [vmem:[#allocation22] ss:$0 sm:$0xff] }
 0xeab   :  { %v1525_v6 = vrot.slane %v1511_v3, %v5790_v9 }
 0xead   :  { %v1526_v10 = vcombine.low %v1518_v7, %v1525_v6 }
 0xf74   :  { %v1103_v22 = vpop.f32.mrb[6].mxu0 }
 0xf75   :  { %v1104_v23 = vadd.f32 %v5821_v47, %v1103_v22  ;;  %v4364_v24 = vpop.f32.mrb[7].mxu0 }
 0xf77   :  { %1117 = vrot.lane.b32.xlu0 %v1104_v23, %s5442_s19  ;;  %v1109_v26 = vadd.f32 %v1108_v25, %v1104_v23 }
 0xf79   :  { %v4074_v27 = vmul.f32 -1.442695, %v1109_v26 }
 0xf7b   :  { %4880 = vpow2.f32 %v4074_v27 }
 0xf85   :  { %v4881_v29 = vpop.eup %4880 }
 0xf86   :  { %v1113_v30 = vadd.f32 1.0, %v4881_v29 }
 0xf88   :  { %4882 = vrcp.f32 %v1113_v30 }
 0xf92   :  { %v4883_v31 = vpop.eup %4882 }
 0xfe9   :  { %v1118_v32 = vpop.permute.xlu0 %1117 }
 0xfea   :  { %v1120_v34 = vmul.f32 %v4883_v31, %v1118_v32 }
 0xfec   :  { %1122 = vrot.lane.b32.xlu1 %v1120_v34, %s5442_s19 }
0x105e   :  { %v1123_v35 = vpop.permute.xlu1 %1122 }
0x105f   :  { %v1125_v36 = vadd.f32 %v1123_v35, %v1108_v25 }
0x1061   :  { %4884 = vtanh.f32 %v1125_v36  ;;  %v1447_v36 = vld [vmem:[#allocation2 + $0xe] sm:$0x3] }
0x106b   :  { %v4885_v39 = vpop.eup %4884 }
0x106c   :  { %v1127_v40 = vsub.f32 %v1024_v20, %v4885_v39 }
0x106e   :  { %1129 = vrot.lane.b32.xlu0 %v1127_v40, %s5443_s22 }
0x10e0   :  { %v1130_v41 = vpop.permute.xlu0 %1129 }
0x10e1   :  { %v1132_v42 = vmul.f32 %v4883_v31, %v1130_v41 }
0x10e3   :  { %1134 = vrot.lane.b32.xlu1 %v1132_v42, %s5427_s16 }
0x1155   :  { %v1135_v43 = vpop.permute.xlu1 %1134 }
0x1156   :  { %v1137_v44 = vadd.f32 %v4885_v39, %v1135_v43 }
0x1158   :  { %1139 = vrot.lane.b32.xlu0 %v1137_v44, %s5442_s19 }
0x11ca   :  { %v1140_v45 = vpop.permute.xlu0 %1139 }
0x11cb   :  { %1143 = vst.msk [vmem:[#allocation3 + $0x8] sm:$0x3] %vm690_vm7, %v1140_v45  ;;  %4374 = vmatmul.mubr.msk.f32.vlgmr.msra.gmra.mrb[6].mxu1 %vm437_vm5, %v1140_v45 }
0x11cc   :  { %4687 = vmatpush3.bf16.msra.mxu1 %v5801_v33  ;;  %4395 = vmatprep.mubr.msk.f32.mxu1 %vm5440_vm4, %v5441_v38 }
0x11cd   :  { %4688 = vmatprep.subr.bf16.mxu1 %v5439_v28 }
0x11d0   :  { %4690 = vmatpush3.bf16.msra.mxu1 %v5804_v37 }
0x11d1   :  { %4699 = vmatprep.subr.bf16.mxu1 %v5439_v28 }
0x11d2   :  { %v1487_v6 = vld [vmem:[#allocation3 + $0x8] sm:$0x3] }
0x129e   :  { %v1216_v46 = vpop.f32.mrb[6].mxu1 }
0x129f   :  { %v1217_v48 = vadd.f32 %v5821_v47, %v1216_v46  ;;  %v4375_v49 = vpop.f32.mrb[7].mxu1 }
0x12a1   :  { %1230 = vrot.lane.b32.xlu1 %v1217_v48, %s5442_s19  ;;  %v1222_v51 = vadd.f32 %v1221_v50, %v1217_v48 }
0x12a3   :  { %v4076_v52 = vmul.f32 -1.442695, %v1222_v51  ;;  %v1683_v51 = vld [vmem:[#allocation19 + $0x8] sm:$0xff] }
0x12a5   :  { %4886 = vpow2.f32 %v4076_v52  ;;  %v1684_v52 = vld [vmem:[#allocation19 + $0x10] sm:$0xff] }
0x12af   :  { %v4887_v33 = vpop.eup %4886 }
0x12b0   :  { %v1226_v53 = vadd.f32 1.0, %v4887_v33 }
0x12b2   :  { %4888 = vrcp.f32 %v1226_v53  ;;  %v1685_v53 = vld [vmem:[#allocation19 + $0x18] sm:$0xff] }
0x12bc   :  { %v4889_v54 = vpop.eup %4888 }
0x1313   :  { %v1231_v55 = vpop.permute.xlu1 %1230 }
0x1314   :  { %v1233_v56 = vmul.f32 %v4889_v54, %v1231_v55 }
0x1316   :  { %1235 = vrot.lane.b32.xlu0 %v1233_v56, %s5442_s19 }
0x1388   :  { %v1236_v37 = vpop.permute.xlu0 %1235 }
0x1389   :  { %v1238_v57 = vadd.f32 %v1236_v37, %v1221_v50  ;;  %v1682_v50 = vld [vmem:[#allocation19] sm:$0xff] }
0x138a   :  { %v5935_v33 = vpack.c.bf16 %v1683_v51, %v1682_v50  ;;  %v1491_v37 = vld [vmem:[#allocation17] sm:$0xff] }
0x138b   :  { %4890 = vtanh.f32 %v1238_v57  ;;  %v1492_v57 = vld [vmem:[#allocation17 + $0x8] sm:$0xff] }
0x1395   :  { %v4891_v58 = vpop.eup %4890 }
0x1396   :  { %v1240_v59 = vsub.f32 %v1137_v44, %v4891_v58 }
0x1398   :  { %1242 = vrot.lane.b32.xlu1 %v1240_v59, %s5443_s22  ;;  %v4691_v59 = vpack.c.bf16 %v1492_v57, %v1491_v37 }
0x139a   :  { %4692 = vmatprep.subr.bf16.mxu0 %v4691_v59 }
0x140a   :  { %v1243_v60 = vpop.permute.xlu1 %1242 }
0x140b   :  { %v1245_v61 = vmul.f32 %v4889_v54, %v1243_v60  ;;  %v5938_v54 = vpack.c.bf16 %v1685_v53, %v1684_v52  ;;  %v1494_v60 = vld [vmem:[#allocation17 + $0x18] sm:$0xff] }
0x140d   :  { %1247 = vrot.lane.b32.xlu0 %v1245_v61, %s5427_s16 }
0x147f   :  { %v1248_v62 = vpop.permute.xlu0 %1247 }
0x1480   :  { %v1250_v63 = vadd.f32 %v4891_v58, %v1248_v62  ;;  %v1493_v58 = vld [vmem:[#allocation17 + $0x10] sm:$0xff] }
0x1481   :  { %v4695_v61 = vpack.c.bf16 %v1494_v60, %v1493_v58 }
0x1482   :  { %1252 = vrot.lane.b32.xlu1 %v1250_v63, %s5442_s19 }
0x14f4   :  { %v1253_v8 = vpop.permute.xlu1 %1252 }
0x14f5   :  { %1256 = vst.msk [vmem:[#allocation3 + $0xa] sm:$0x3] %vm690_vm7, %v1253_v8  ;;  %4385 = vmatmul.mubr.msk.f32.vlgmr.msra.gmra.mrb[8].mxu0 %vm437_vm5, %v1253_v8 }
0x14f6   :  { %4406 = vmatprep.mubr.msk.f32.mxu0 %vm437_vm5, %v1526_v10  ;;  %4694 = vmatpush3.bf16.msra.mxu0 %v4691_v59 }
0x14f7   :  { %4696 = vmatprep.subr.bf16.mxu0 %v4695_v61 }
0x14fa   :  { %4698 = vmatpush3.bf16.msra.mxu0 %v4695_v61 }
0x14fb   :  { %4705 = vmatprep.subr.bf16.mxu0 %v5439_v28 }
0x14fc   :  { %v1488_v5 = vld [vmem:[#allocation3 + $0xa] sm:$0x3] }
0x14fd   :  { %v1527_v7 = vcombine.low %v1487_v6, %v1488_v5 }
0x15c8   :  { %v1329_v11 = vpop.f32.mrb[8].mxu0 }
0x15c9   :  { %v1330_v12 = vadd.f32 %v5821_v47, %v1329_v11  ;;  %v4386_v13 = vpop.f32.mrb[9].mxu0 }
0x15cb   :  { %1343 = vrot.lane.b32.xlu0 %v1330_v12, %s5442_s19  ;;  %v1335_v15 = vadd.f32 %v1334_v14, %v1330_v12  ;;  %v1535_v12 = vrot.slane %v1527_v7, %v5790_v9 }
0x15cd   :  { %v4078_v16 = vmul.f32 -1.442695, %v1335_v15  ;;  %v4081_v15 = vld [vmem:[#allocation20] ss:$0 sm:$0xff] }
0x15cf   :  { %4892 = vpow2.f32 %v4078_v16 }
0x15d9   :  { %v4893_v17 = vpop.eup %4892 }
0x15da   :  { %v1339_v18 = vadd.f32 1.0, %v4893_v17 }
0x15dc   :  { %4894 = vrcp.f32 %v1339_v18 }
0x15e6   :  { %v4895_v19 = vpop.eup %4894 }
0x163d   :  { %v1344_v20 = vpop.permute.xlu0 %1343 }
0x163e   :  { %v1346_v21 = vmul.f32 %v4895_v19, %v1344_v20 }
0x1640   :  { %1348 = vrot.lane.b32.xlu1 %v1346_v21, %s5442_s19 }
0x16b2   :  { %v1349_v22 = vpop.permute.xlu1 %1348 }
0x16b3   :  { %v1351_v23 = vadd.f32 %v1349_v22, %v1334_v14 }
0x16b5   :  { %4896 = vtanh.f32 %v1351_v23 }
0x16bf   :  { %v4897_v24 = vpop.eup %4896 }
0x16c0   :  { %v1353_v25 = vsub.f32 %v1250_v63, %v4897_v24 }
0x16c2   :  { %1355 = vrot.lane.b32.xlu0 %v1353_v25, %s5443_s22 }
0x1734   :  { %v1356_v26 = vpop.permute.xlu0 %1355 }
0x1735   :  { %v1358_v27 = vmul.f32 %v4895_v19, %v1356_v26 }
0x1737   :  { %1360 = vrot.lane.b32.xlu1 %v1358_v27, %s5427_s16 }
0x17a9   :  { %v1361_v29 = vpop.permute.xlu1 %1360 }
0x17aa   :  { %v1363_v30 = vadd.f32 %v4897_v24, %v1361_v29 }
0x17ac   :  { %1365 = vrot.lane.b32.xlu0 %v1363_v30, %s5442_s19 }
0x181e   :  { %v1366_v31 = vpop.permute.xlu0 %1365 }
0x181f   :  { %1369 = vst.msk [vmem:[#allocation3 + $0xc] sm:$0x3] %vm690_vm7, %v1366_v31  ;;  %4396 = vmatmul.mubr.msk.f32.vlgmr.msra.gmra.mrb[8].mxu1 %vm437_vm5, %v1366_v31 }
0x1820   :  { %4417 = vmatprep.mubr.msk.f32.mxu1 %vm5440_vm4, %v5441_v38  ;;  %4701 = vmatpush3.bf16.msra.mxu1 %v5935_v33 }
0x1821   :  { %4702 = vmatprep.subr.bf16.mxu1 %v5439_v28 }
0x1824   :  { %4704 = vmatpush3.bf16.msra.mxu1 %v5938_v54 }
0x1825   :  { %4711 = vmatprep.subr.bf16.mxu1 %v5439_v28 }
0x1826   :  { %v1489_v8 = vld [vmem:[#allocation3 + $0xc] sm:$0x3] }
0x1827   :  { %4418 = vmatmul.mubr.f32.vlgmr.msra.gmra.mrb[10].mxu1 %v5441_v38 }
0x1828   :  { %4713 = vmatpush3.bf16.msra.mxu1 %v5935_v33  ;;  %4439 = vmatprep.mubr.msk.f32.mxu1 %vm5440_vm4, %v5441_v38 }
0x1829   :  { %4714 = vmatprep.subr.bf16.mxu1 %v5439_v28 }
0x182c   :  { %4716 = vmatpush3.bf16.msra.mxu1 %v5938_v54 }
0x182d   :  { %4723 = vmatprep.subr.bf16.mxu1 %v5439_v28 }
0x18f2   :  { %v1442_v32 = vpop.f32.mrb[8].mxu1 }
0x18f3   :  { %v1443_v34 = vadd.f32 %v5821_v47, %v1442_v32  ;;  %v4397_v35 = vpop.f32.mrb[9].mxu1 }
0x18f5   :  { %1456 = vrot.lane.b32.xlu1 %v1443_v34, %s5442_s19  ;;  %v1448_v39 = vadd.f32 %v1447_v36, %v1443_v34 }
0x18f7   :  { %v4080_v40 = vmul.f32 -1.442695, %v1448_v39 }
0x18f9   :  { %4898 = vpow2.f32 %v4080_v40 }
0x18fa   :  { %v1752_v1 = vpop.f32.mrb[10].mxu1 }
0x18fb   :  { %v1753_v2 = vadd.f32 %v5953_v0, %v1752_v1  ;;  %v4419_v3 = vpop.f32.mrb[11].mxu1 }
0x1903   :  { %v4899_v41 = vpop.eup %4898 }
0x1904   :  { %v1452_v42 = vadd.f32 1.0, %v4899_v41 }
0x1906   :  { %4900 = vrcp.f32 %v1452_v42 }
0x1910   :  { %v4901_v43 = vpop.eup %4900 }
0x1967   :  { %v1457_v44 = vpop.permute.xlu1 %1456 }
0x1968   :  { %v1459_v45 = vmul.f32 %v4901_v43, %v1457_v44 }
0x196a   :  { %1461 = vrot.lane.b32.xlu0 %v1459_v45, %s5442_s19 }
0x19dc   :  { %v1462_v46 = vpop.permute.xlu0 %1461 }
0x19dd   :  { %v1464_v48 = vadd.f32 %v1462_v46, %v1447_v36 }
0x19df   :  { %4902 = vtanh.f32 %v1464_v48 }
0x19e9   :  { %v4903_v49 = vpop.eup %4902 }
0x19ea   :  { %v1466_v47 = vsub.f32 %v1363_v30, %v4903_v49 }
0x19ec   :  { %1468 = vrot.lane.b32.xlu1 %v1466_v47, %s5443_s22 }
0x1a5e   :  { %v1469_v55 = vpop.permute.xlu1 %1468 }
0x1a5f   :  { %v1471_v56 = vmul.f32 %v4901_v43, %v1469_v55 }
0x1a61   :  { %1473 = vrot.lane.b32.xlu0 %v1471_v56, %s5427_s16 }
0x1a65   :  { %1765 = vrot.lane.b32.xlu0 %v1753_v2, %s5442_s19 }
0x1ad3   :  { %v1474_v62 = vpop.permute.xlu0 %1473 }
0x1ad4   :  { %v1476_v63 = vadd.f32 %v4903_v49, %v1474_v62 }
0x1ad6   :  { %1478 = vrot.lane.b32.xlu1 %v1476_v63, %s5442_s19 }
0x1ad7   :  { %v1766_v39 = vpop.permute.xlu0 %1765 }
0x1b48   :  { %v1479_v4 = vpop.permute.xlu1 %1478 }
0x1b49   :  { %1482 = vst.msk [vmem:[#allocation3 + $0xe] sm:$0x3] %vm690_vm7, %v1479_v4 }
0x1b50   :  { %v1490_v10 = vld [vmem:[#allocation3 + $0xe] sm:$0x3] }
0x1b51   :  { %v1528_v11 = vcombine.low %v1489_v8, %v1490_v10 }
0x1b53   :  { %v1542_v13 = vrot.slane %v1528_v11, %v5790_v9 }
0x1b55   :  { %v1543_v14 = vcombine.low %v1535_v12, %v1542_v13 }
0x1b57   :  { %4407 = vmatmul.mubr.msk.f32.vlgmr.msra.gmra.mrb[10].mxu0 %vm437_vm5, %v1543_v14 }
0x1b58   :  { %4707 = vmatpush3.bf16.msra.mxu0 %v5935_v33  ;;  %4428 = vmatprep.mubr.msk.f32.mxu0 %vm5440_vm4, %v5441_v38 }
0x1b59   :  { %4708 = vmatprep.subr.bf16.mxu0 %v5439_v28 }
0x1b5c   :  { %4710 = vmatpush3.bf16.msra.mxu0 %v5938_v54 }
0x1b5d   :  { %4717 = vmatprep.subr.bf16.mxu0 %v5439_v28 }
0x1c2a   :  { %v4408_v16 = vpop.f32.mrb[10].mxu0 }
0x1c2b   :  { %v1620_v17 = vadd.f32 %v4408_v16, %v4081_v15  ;;  %v1614_v18 = vpop.f32.mrb[11].mxu0 }
0x1c2c   :  { %v1615_v19 = vadd.f32 %v4081_v15, %v1614_v18 }
0x1c2d   :  { %v1642_v20 = vcombine.high %v1620_v17, %v1620_v17  ;;  %v1649_v21 = vrot.slane %v1620_v17, %v5790_v9 }
0x1c2e   :  { %v1625_v22 = vcombine.high %v1615_v19, %v1615_v19  ;;  %v1632_v23 = vrot.slane %v1615_v19, %v5790_v9 }
0x1c2f   :  { %v1656_v24 = vrot.slane %v1642_v20, %v5790_v9  ;;  %v1657_v25 = vcombine.high %v1649_v21, %v1649_v21  ;;  %1671 = vst.msk [vmem:[#allocation2 + $0x8] sm:$0x3] %vm563_vm6, %v1649_v21 }
0x1c30   :  { %v1639_v26 = vrot.slane %v1625_v22, %v5790_v9  ;;  %v1640_v27 = vcombine.high %v1632_v23, %v1632_v23  ;;  %1667 = vst.msk [vmem:[#allocation2] sm:$0x3] %vm563_vm6, %v1632_v23 }
0x1c31   :  { %v1658_v29 = vcombine.high %v1656_v24, %v1656_v24  ;;  %1672 = vst.msk [vmem:[#allocation2 + $0xa] sm:$0x3] %vm563_vm6, %v1657_v25  ;;  %1673 = vst.msk [vmem:[#allocation2 + $0xc] sm:$0x3] %vm563_vm6, %v1656_v24 }
0x1c32   :  { %v1641_v30 = vcombine.high %v1639_v26, %v1639_v26  ;;  %1668 = vst.msk [vmem:[#allocation2 + $0x2] sm:$0x3] %vm563_vm6, %v1640_v27  ;;  %1669 = vst.msk [vmem:[#allocation2 + $0x4] sm:$0x3] %vm563_vm6, %v1639_v26 }
0x1c33   :  { %1674 = vst.msk [vmem:[#allocation2 + $0xe] sm:$0x3] %vm563_vm6, %v1658_v29 }
0x1c34   :  { %1670 = vst.msk [vmem:[#allocation2 + $0x6] sm:$0x3] %vm563_vm6, %v1641_v30 }
0x1c37   :  { %v1756_v31 = vld [vmem:[#allocation2] sm:$0x3] }
0x1c38   :  { %v1757_v32 = vadd.f32 %v1756_v31, %v1753_v2 }
0x1c39   :  { %v1867_v55 = vld [vmem:[#allocation2 + $0x2] sm:$0x3]  ;;  %v1978_v12 = vld [vmem:[#allocation2 + $0x4] sm:$0x3] }
0x1c3a   :  { %v4085_v34 = vmul.f32 -1.442695, %v1757_v32 }
0x1c3c   :  { %4904 = vpow2.f32 %v4085_v34  ;;  %v2089_v34 = vld [vmem:[#allocation2 + $0x6] sm:$0x3] }
0x1c46   :  { %v4905_v35 = vpop.eup %4904 }
0x1c47   :  { %v1761_v36 = vadd.f32 1.0, %v4905_v35 }
0x1c49   :  { %4906 = vrcp.f32 %v1761_v36 }
0x1c53   :  { %v4907_v40 = vpop.eup %4906 }
0x1c54   :  { %v1768_v41 = vmul.f32 %v4907_v40, %v1766_v39 }
0x1c56   :  { %1770 = vrot.lane.b32.xlu1 %v1768_v41, %s5442_s19 }
0x1cc8   :  { %v1771_v42 = vpop.permute.xlu1 %1770 }
0x1cc9   :  { %v1773_v43 = vadd.f32 %v1771_v42, %v1756_v31 }
0x1ccb   :  { %4908 = vtanh.f32 %v1773_v43 }
0x1cd5   :  { %v4909_v44 = vpop.eup %4908 }
0x1cd6   :  { %v1775_v45 = vsub.f32 0.0, %v4909_v44 }
0x1cd8   :  { %1777 = vrot.lane.b32.xlu0 %v1775_v45, %s5443_s22 }
0x1d4a   :  { %v1778_v46 = vpop.permute.xlu0 %1777 }
0x1d4b   :  { %v1780_v48 = vmul.f32 %v4907_v40, %v1778_v46 }
0x1d4d   :  { %1782 = vrot.lane.b32.xlu1 %v1780_v48, %s5427_s16 }
0x1dbf   :  { %v1783_v49 = vpop.permute.xlu1 %1782 }
0x1dc0   :  { %v1785_v47 = vadd.f32 %v4909_v44, %v1783_v49 }
0x1dc2   :  { %1787 = vrot.lane.b32.xlu0 %v1785_v47, %s5442_s19 }
0x1e34   :  { %v1788_v50 = vpop.permute.xlu0 %1787 }
0x1e35   :  { %1790 = vst.msk [vmem:[#allocation3] sm:$0x3] %vm690_vm7, %v1788_v50  ;;  %4429 = vmatmul.mubr.msk.f32.vlgmr.msra.gmra.mrb[12].mxu0 %vm437_vm5, %v1788_v50 }
0x1e36   :  { %4719 = vmatpush3.bf16.msra.mxu0 %v5935_v33  ;;  %4450 = vmatprep.mubr.msk.f32.mxu0 %vm5440_vm4, %v5441_v38 }
0x1e37   :  { %4720 = vmatprep.subr.bf16.mxu0 %v5439_v28 }
0x1e3a   :  { %4722 = vmatpush3.bf16.msra.mxu0 %v5938_v54 }
0x1e3b   :  { %4729 = vmatprep.subr.bf16.mxu0 %v5439_v28 }
0x1f08   :  { %v1863_v51 = vpop.f32.mrb[12].mxu0 }
0x1f09   :  { %v1864_v52 = vadd.f32 %v5953_v0, %v1863_v51  ;;  %v4430_v53 = vpop.f32.mrb[13].mxu0 }
0x1f0b   :  { %1876 = vrot.lane.b32.xlu1 %v1864_v52, %s5442_s19  ;;  %v1868_v56 = vadd.f32 %v1867_v55, %v1864_v52 }
0x1f0d   :  { %v4087_v37 = vmul.f32 -1.442695, %v1868_v56 }
0x1f0f   :  { %4910 = vpow2.f32 %v4087_v37  ;;  %v2200_v37 = vld [vmem:[#allocation2 + $0x8] sm:$0x3] }
0x1f19   :  { %v4911_v57 = vpop.eup %4910 }
0x1f1a   :  { %v1872_v58 = vadd.f32 1.0, %v4911_v57 }
0x1f1c   :  { %4912 = vrcp.f32 %v1872_v58 }
0x1f26   :  { %v4913_v59 = vpop.eup %4912 }
0x1f7d   :  { %v1877_v60 = vpop.permute.xlu1 %1876 }
0x1f7e   :  { %v1879_v61 = vmul.f32 %v4913_v59, %v1877_v60 }
0x1f80   :  { %1881 = vrot.lane.b32.xlu0 %v1879_v61, %s5442_s19 }
0x1ff2   :  { %v1882_v62 = vpop.permute.xlu0 %1881 }
0x1ff3   :  { %v1884_v63 = vadd.f32 %v1882_v62, %v1867_v55 }
0x1ff5   :  { %4914 = vtanh.f32 %v1884_v63 }
0x1fff   :  { %v4915_v1 = vpop.eup %4914 }
0x2000   :  { %v1886_v2 = vsub.f32 %v1785_v47, %v4915_v1 }
0x2002   :  { %1888 = vrot.lane.b32.xlu1 %v1886_v2, %s5443_s22 }
0x2074   :  { %v1889_v3 = vpop.permute.xlu1 %1888 }
0x2075   :  { %v1891_v4 = vmul.f32 %v4913_v59, %v1889_v3 }
0x2077   :  { %1893 = vrot.lane.b32.xlu0 %v1891_v4, %s5427_s16 }
0x20e9   :  { %v1894_v5 = vpop.permute.xlu0 %1893 }
0x20ea   :  { %v1896_v6 = vadd.f32 %v4915_v1, %v1894_v5 }
0x20ec   :  { %1898 = vrot.lane.b32.xlu1 %v1896_v6, %s5442_s19 }
0x215e   :  { %v1899_v7 = vpop.permute.xlu1 %1898 }
0x215f   :  { %1901 = vst.msk [vmem:[#allocation3 + $0x2] sm:$0x3] %vm690_vm7, %v1899_v7  ;;  %4440 = vmatmul.mubr.msk.f32.vlgmr.msra.gmra.mrb[12].mxu1 %vm437_vm5, %v1899_v7 }
0x2160   :  { %4725 = vmatpush3.bf16.msra.mxu1 %v5935_v33  ;;  %4461 = vmatprep.mubr.msk.f32.mxu1 %vm5440_vm4, %v5441_v38 }
0x2161   :  { %4726 = vmatprep.subr.bf16.mxu1 %v5439_v28 }
0x2164   :  { %4728 = vmatpush3.bf16.msra.mxu1 %v5938_v54 }
0x2165   :  { %4735 = vmatprep.subr.bf16.mxu1 %v5439_v28 }
0x2232   :  { %v1974_v8 = vpop.f32.mrb[12].mxu1 }
0x2233   :  { %v1975_v10 = vadd.f32 %v5953_v0, %v1974_v8  ;;  %v4441_v11 = vpop.f32.mrb[13].mxu1 }
0x2235   :  { %1987 = vrot.lane.b32.xlu0 %v1975_v10, %s5442_s19  ;;  %v1979_v13 = vadd.f32 %v1978_v12, %v1975_v10 }
0x2237   :  { %v4089_v14 = vmul.f32 -1.442695, %v1979_v13 }
0x2239   :  { %4916 = vpow2.f32 %v4089_v14  ;;  %v2311_v14 = vld [vmem:[#allocation2 + $0xa] sm:$0x3] }
0x2243   :  { %v4917_v15 = vpop.eup %4916 }
0x2244   :  { %v1983_v16 = vadd.f32 1.0, %v4917_v15 }
0x2246   :  { %4918 = vrcp.f32 %v1983_v16 }
0x2250   :  { %v4919_v17 = vpop.eup %4918 }
0x22a7   :  { %v1988_v18 = vpop.permute.xlu0 %1987 }
0x22a8   :  { %v1990_v19 = vmul.f32 %v4919_v17, %v1988_v18 }
0x22aa   :  { %1992 = vrot.lane.b32.xlu1 %v1990_v19, %s5442_s19 }
0x231c   :  { %v1993_v20 = vpop.permute.xlu1 %1992 }
0x231d   :  { %v1995_v21 = vadd.f32 %v1993_v20, %v1978_v12 }
0x231f   :  { %4920 = vtanh.f32 %v1995_v21 }
0x2329   :  { %v4921_v22 = vpop.eup %4920 }
0x232a   :  { %v1997_v23 = vsub.f32 %v1896_v6, %v4921_v22 }
0x232c   :  { %1999 = vrot.lane.b32.xlu0 %v1997_v23, %s5443_s22 }
0x239e   :  { %v2000_v24 = vpop.permute.xlu0 %1999 }
0x239f   :  { %v2002_v25 = vmul.f32 %v4919_v17, %v2000_v24 }
0x23a1   :  { %2004 = vrot.lane.b32.xlu1 %v2002_v25, %s5427_s16 }
0x2413   :  { %v2005_v26 = vpop.permute.xlu1 %2004 }
0x2414   :  { %v2007_v27 = vadd.f32 %v4921_v22, %v2005_v26 }
0x2416   :  { %2009 = vrot.lane.b32.xlu0 %v2007_v27, %s5442_s19 }
0x2488   :  { %v2010_v29 = vpop.permute.xlu0 %2009 }
0x2489   :  { %2012 = vst.msk [vmem:[#allocation3 + $0x4] sm:$0x3] %vm690_vm7, %v2010_v29  ;;  %4451 = vmatmul.mubr.msk.f32.vlgmr.msra.gmra.mrb[14].mxu0 %vm437_vm5, %v2010_v29 }
0x248a   :  { %4731 = vmatpush3.bf16.msra.mxu0 %v5935_v33  ;;  %4472 = vmatprep.mubr.msk.f32.mxu0 %vm5440_vm4, %v5441_v38 }
0x248b   :  { %4732 = vmatprep.subr.bf16.mxu0 %v5439_v28 }
0x248e   :  { %4734 = vmatpush3.bf16.msra.mxu0 %v5938_v54 }
0x248f   :  { %4741 = vmatprep.subr.bf16.mxu0 %v5439_v28 }
0x255c   :  { %v2085_v30 = vpop.f32.mrb[14].mxu0 }
0x255d   :  { %v2086_v31 = vadd.f32 %v5953_v0, %v2085_v30  ;;  %v4452_v32 = vpop.f32.mrb[15].mxu0  ;;  %v2569_v30 = vld [vmem:[#allocation3 + $0x2] sm:$0x3] }
0x255f   :  { %2098 = vrot.lane.b32.xlu1 %v2086_v31, %s5442_s19  ;;  %v2090_v35 = vadd.f32 %v2089_v34, %v2086_v31  ;;  %v2570_v31 = vld [vmem:[#allocation3 + $0x4] sm:$0x3] }
0x2561   :  { %v4091_v36 = vmul.f32 -1.442695, %v2090_v35 }
0x2563   :  { %4922 = vpow2.f32 %v4091_v36 }
0x256d   :  { %v4923_v39 = vpop.eup %4922 }
0x256e   :  { %v2094_v40 = vadd.f32 1.0, %v4923_v39 }
0x2570   :  { %4924 = vrcp.f32 %v2094_v40 }
0x257a   :  { %v4925_v41 = vpop.eup %4924 }
0x25d1   :  { %v2099_v42 = vpop.permute.xlu1 %2098 }
0x25d2   :  { %v2101_v43 = vmul.f32 %v4925_v41, %v2099_v42 }
0x25d4   :  { %2103 = vrot.lane.b32.xlu0 %v2101_v43, %s5442_s19 }
0x2646   :  { %v2104_v44 = vpop.permute.xlu0 %2103 }
0x2647   :  { %v2106_v45 = vadd.f32 %v2104_v44, %v2089_v34  ;;  %v2568_v34 = vld [vmem:[#allocation3] sm:$0x3] }
0x2648   :  { %v2595_v35 = vcombine.low %v2568_v34, %v2569_v30 }
0x2649   :  { %4926 = vtanh.f32 %v2106_v45  ;;  %v2422_v45 = vld [vmem:[#allocation2 + $0xc] sm:$0x3] }
0x264a   :  { %v2603_v39 = vrot.slane %v2595_v35, %v5790_v9 }
0x2653   :  { %v4927_v46 = vpop.eup %4926 }
0x2654   :  { %v2108_v48 = vsub.f32 %v2007_v27, %v4927_v46 }
0x2656   :  { %2110 = vrot.lane.b32.xlu1 %v2108_v48, %s5443_s22 }
0x26c8   :  { %v2111_v49 = vpop.permute.xlu1 %2110 }
0x26c9   :  { %v2113_v47 = vmul.f32 %v4925_v41, %v2111_v49 }
0x26cb   :  { %2115 = vrot.lane.b32.xlu0 %v2113_v47, %s5427_s16 }
0x273d   :  { %v2116_v50 = vpop.permute.xlu0 %2115 }
0x273e   :  { %v2118_v51 = vadd.f32 %v4927_v46, %v2116_v50 }
0x2740   :  { %2120 = vrot.lane.b32.xlu1 %v2118_v51, %s5442_s19 }
0x27b2   :  { %v2121_v52 = vpop.permute.xlu1 %2120 }
0x27b3   :  { %2123 = vst.msk [vmem:[#allocation3 + $0x6] sm:$0x3] %vm690_vm7, %v2121_v52  ;;  %4462 = vmatmul.mubr.msk.f32.vlgmr.msra.gmra.mrb[14].mxu1 %vm437_vm5, %v2121_v52 }
0x27b4   :  { %4737 = vmatpush3.bf16.msra.mxu1 %v5935_v33  ;;  %4483 = vmatprep.mubr.msk.f32.mxu1 %vm5440_vm4, %v5441_v38 }
0x27b5   :  { %4738 = vmatprep.subr.bf16.mxu1 %v5439_v28 }
0x27b8   :  { %4740 = vmatpush3.bf16.msra.mxu1 %v5938_v54 }
0x27ba   :  { %v2571_v29 = vld [vmem:[#allocation3 + $0x6] sm:$0x3] }
0x27bb   :  { %v2596_v32 = vcombine.low %v2570_v31, %v2571_v29  ;;  %v6101_v29 = vld [vmem:[#allocation26] ss:$0 sm:$0xff] }
0x27bd   :  { %v2610_v36 = vrot.slane %v2596_v32, %v5790_v9 }
0x27bf   :  { %v2611_v41 = vcombine.low %v2603_v39, %v2610_v36 }
0x2886   :  { %v2196_v53 = vpop.f32.mrb[14].mxu1 }
0x2887   :  { %v2197_v55 = vadd.f32 %v5953_v0, %v2196_v53  ;;  %v4463_v56 = vpop.f32.mrb[15].mxu1 }
0x2889   :  { %2209 = vrot.lane.b32.xlu0 %v2197_v55, %s5442_s19  ;;  %v2201_v57 = vadd.f32 %v2200_v37, %v2197_v55 }
0x288b   :  { %v4093_v58 = vmul.f32 -1.442695, %v2201_v57 }
0x288d   :  { %4928 = vpow2.f32 %v4093_v58 }
0x2897   :  { %v4929_v59 = vpop.eup %4928 }
0x2898   :  { %v2205_v60 = vadd.f32 1.0, %v4929_v59 }
0x289a   :  { %4930 = vrcp.f32 %v2205_v60 }
0x28a4   :  { %v4931_v61 = vpop.eup %4930 }
0x28fb   :  { %v2210_v62 = vpop.permute.xlu0 %2209 }
0x28fc   :  { %v2212_v63 = vmul.f32 %v4931_v61, %v2210_v62 }
0x28fe   :  { %2214 = vrot.lane.b32.xlu1 %v2212_v63, %s5442_s19 }
0x2970   :  { %v2215_v1 = vpop.permute.xlu1 %2214 }
0x2971   :  { %v2217_v2 = vadd.f32 %v2215_v1, %v2200_v37 }
0x2973   :  { %4932 = vtanh.f32 %v2217_v2  ;;  %v2533_v2 = vld [vmem:[#allocation2 + $0xe] sm:$0x3] }
0x297d   :  { %v4933_v3 = vpop.eup %4932 }
0x297e   :  { %v2219_v4 = vsub.f32 %v2118_v51, %v4933_v3 }
0x2980   :  { %2221 = vrot.lane.b32.xlu0 %v2219_v4, %s5443_s22 }
0x29f2   :  { %v2222_v5 = vpop.permute.xlu0 %2221 }
0x29f3   :  { %v2224_v6 = vmul.f32 %v4931_v61, %v2222_v5 }
0x29f5   :  { %2226 = vrot.lane.b32.xlu1 %v2224_v6, %s5427_s16 }
0x2a67   :  { %v2227_v7 = vpop.permute.xlu1 %2226 }
0x2a68   :  { %v2229_v8 = vadd.f32 %v4933_v3, %v2227_v7 }
0x2a6a   :  { %2231 = vrot.lane.b32.xlu0 %v2229_v8, %s5442_s19 }
0x2adc   :  { %v2232_v10 = vpop.permute.xlu0 %2231 }
0x2add   :  { %2234 = vst.msk [vmem:[#allocation3 + $0x8] sm:$0x3] %vm690_vm7, %v2232_v10  ;;  %4473 = vmatmul.mubr.msk.f32.vlgmr.msra.gmra.mrb[16].mxu0 %vm437_vm5, %v2232_v10 }
0x2ade   :  { %4743 = vmatpush3.bf16.msra.mxu0 %v5935_v33  ;;  %4494 = vmatprep.mubr.msk.f32.mxu0 %vm5440_vm4, %v5441_v38 }
0x2adf   :  { %4744 = vmatprep.subr.bf16.mxu0 %v5439_v28 }
0x2ae2   :  { %4746 = vmatpush3.bf16.msra.mxu0 %v5938_v54 }
0x2ae3   :  { %4755 = vmatprep.subr.bf16.mxu0 %v5439_v28 }
0x2ae4   :  { %v2572_v36 = vld [vmem:[#allocation3 + $0x8] sm:$0x3] }
0x2bb0   :  { %v2307_v11 = vpop.f32.mrb[16].mxu0 }
0x2bb1   :  { %v2308_v12 = vadd.f32 %v5953_v0, %v2307_v11  ;;  %v4474_v13 = vpop.f32.mrb[17].mxu0 }
0x2bb3   :  { %2320 = vrot.lane.b32.xlu1 %v2308_v12, %s5442_s19  ;;  %v2312_v15 = vadd.f32 %v2311_v14, %v2308_v12 }
0x2bb5   :  { %v4095_v16 = vmul.f32 -1.442695, %v2312_v15  ;;  %v2768_v15 = vld [vmem:[#allocation23 + $0x8] sm:$0xff] }
0x2bb7   :  { %4934 = vpow2.f32 %v4095_v16  ;;  %v2769_v16 = vld [vmem:[#allocation23 + $0x10] sm:$0xff] }
0x2bc1   :  { %v4935_v33 = vpop.eup %4934 }
0x2bc2   :  { %v2316_v17 = vadd.f32 1.0, %v4935_v33 }
0x2bc4   :  { %4936 = vrcp.f32 %v2316_v17  ;;  %v2770_v17 = vld [vmem:[#allocation23 + $0x18] sm:$0xff] }
0x2bce   :  { %v4937_v18 = vpop.eup %4936 }
0x2c25   :  { %v2321_v19 = vpop.permute.xlu1 %2320 }
0x2c26   :  { %v2323_v20 = vmul.f32 %v4937_v18, %v2321_v19 }
0x2c28   :  { %2325 = vrot.lane.b32.xlu0 %v2323_v20, %s5442_s19 }
0x2c9a   :  { %v2326_v54 = vpop.permute.xlu0 %2325 }
0x2c9b   :  { %v2328_v21 = vadd.f32 %v2326_v54, %v2311_v14  ;;  %v2767_v14 = vld [vmem:[#allocation23] sm:$0xff]  ;;  %v2576_v54 = vld [vmem:[%s6274_s11] sm:$0xff] }
0x2c9c   :  { %v6071_v33 = vpack.c.bf16 %v2768_v15, %v2767_v14 }
0x2c9d   :  { %4938 = vtanh.f32 %v2328_v21  ;;  %v2577_v21 = vld [vmem:[%s6274_s11 + $0x8] sm:$0xff] }
0x2ca7   :  { %v4939_v22 = vpop.eup %4938 }
0x2ca8   :  { %v2330_v23 = vsub.f32 %v2229_v8, %v4939_v22 }
0x2caa   :  { %2332 = vrot.lane.b32.xlu1 %v2330_v23, %s5443_s22  ;;  %v4747_v23 = vpack.c.bf16 %v2577_v21, %v2576_v54 }
0x2cac   :  { %4748 = vmatprep.subr.bf16.mxu1 %v4747_v23 }
0x2d1c   :  { %v2333_v24 = vpop.permute.xlu1 %2332 }
0x2d1d   :  { %v2335_v25 = vmul.f32 %v4937_v18, %v2333_v24  ;;  %v6074_v18 = vpack.c.bf16 %v2770_v17, %v2769_v16  ;;  %v2579_v24 = vld [vmem:[%s6274_s11 + $0x18] sm:$0xff] }
0x2d1f   :  { %2337 = vrot.lane.b32.xlu0 %v2335_v25, %s5427_s16 }
0x2d91   :  { %v2338_v26 = vpop.permute.xlu0 %2337 }
0x2d92   :  { %v2340_v27 = vadd.f32 %v4939_v22, %v2338_v26  ;;  %v2578_v22 = vld [vmem:[%s6274_s11 + $0x10] sm:$0xff] }
0x2d93   :  { %v4751_v25 = vpack.c.bf16 %v2579_v24, %v2578_v22 }
0x2d94   :  { %2342 = vrot.lane.b32.xlu1 %v2340_v27, %s5442_s19 }
0x2e06   :  { %v2343_v40 = vpop.permute.xlu1 %2342 }
0x2e07   :  { %2345 = vst.msk [vmem:[#allocation3 + $0xa] sm:$0x3] %vm690_vm7, %v2343_v40  ;;  %4484 = vmatmul.mubr.msk.f32.vlgmr.msra.gmra.mrb[16].mxu1 %vm437_vm5, %v2343_v40 }
0x2e08   :  { %4505 = vmatprep.mubr.msk.f32.mxu1 %vm437_vm5, %v2611_v41  ;;  %4750 = vmatpush3.bf16.msra.mxu1 %v4747_v23 }
0x2e09   :  { %4752 = vmatprep.subr.bf16.mxu1 %v4751_v25 }
0x2e0c   :  { %4754 = vmatpush3.bf16.msra.mxu1 %v4751_v25 }
0x2e0d   :  { %4761 = vmatprep.subr.bf16.mxu1 %v5439_v28 }
0x2e0e   :  { %v2573_v35 = vld [vmem:[#allocation3 + $0xa] sm:$0x3] }
0x2e0f   :  { %v2612_v39 = vcombine.low %v2572_v36, %v2573_v35 }
0x2eda   :  { %v2418_v42 = vpop.f32.mrb[16].mxu1 }
0x2edb   :  { %v2419_v43 = vadd.f32 %v5953_v0, %v2418_v42  ;;  %v4485_v44 = vpop.f32.mrb[17].mxu1 }
0x2edd   :  { %2431 = vrot.lane.b32.xlu0 %v2419_v43, %s5442_s19  ;;  %v2423_v46 = vadd.f32 %v2422_v45, %v2419_v43  ;;  %v2620_v43 = vrot.slane %v2612_v39, %v5790_v9 }
0x2edf   :  { %v4097_v48 = vmul.f32 -1.442695, %v2423_v46  ;;  %v4100_v46 = vld [vmem:[#allocation25] ss:$0 sm:$0xff] }
0x2ee1   :  { %4940 = vpow2.f32 %v4097_v48 }
0x2eeb   :  { %v4941_v49 = vpop.eup %4940 }
0x2eec   :  { %v2427_v47 = vadd.f32 1.0, %v4941_v49 }
0x2eee   :  { %4942 = vrcp.f32 %v2427_v47 }
0x2ef8   :  { %v4943_v50 = vpop.eup %4942 }
0x2f4f   :  { %v2432_v51 = vpop.permute.xlu0 %2431 }
0x2f50   :  { %v2434_v52 = vmul.f32 %v4943_v50, %v2432_v51 }
0x2f52   :  { %2436 = vrot.lane.b32.xlu1 %v2434_v52, %s5442_s19 }
0x2fc4   :  { %v2437_v53 = vpop.permute.xlu1 %2436 }
0x2fc5   :  { %v2439_v55 = vadd.f32 %v2437_v53, %v2422_v45 }
0x2fc7   :  { %4944 = vtanh.f32 %v2439_v55 }
0x2fd1   :  { %v4945_v56 = vpop.eup %4944 }
0x2fd2   :  { %v2441_v37 = vsub.f32 %v2340_v27, %v4945_v56 }
0x2fd4   :  { %2443 = vrot.lane.b32.xlu0 %v2441_v37, %s5443_s22 }
0x3046   :  { %v2444_v57 = vpop.permute.xlu0 %2443 }
0x3047   :  { %v2446_v58 = vmul.f32 %v4943_v50, %v2444_v57 }
0x3049   :  { %2448 = vrot.lane.b32.xlu1 %v2446_v58, %s5427_s16 }
0x30bb   :  { %v2449_v59 = vpop.permute.xlu1 %2448 }
0x30bc   :  { %v2451_v60 = vadd.f32 %v4945_v56, %v2449_v59 }
0x30be   :  { %2453 = vrot.lane.b32.xlu0 %v2451_v60, %s5442_s19 }
0x3130   :  { %v2454_v61 = vpop.permute.xlu0 %2453 }
0x3131   :  { %2456 = vst.msk [vmem:[#allocation3 + $0xc] sm:$0x3] %vm690_vm7, %v2454_v61  ;;  %4495 = vmatmul.mubr.msk.f32.vlgmr.msra.gmra.mrb[18].mxu0 %vm437_vm5, %v2454_v61 }
0x3132   :  { %4516 = vmatprep.mubr.msk.f32.mxu0 %vm5440_vm4, %v5441_v38  ;;  %4757 = vmatpush3.bf16.msra.mxu0 %v6071_v33 }
0x3133   :  { %4758 = vmatprep.subr.bf16.mxu0 %v5439_v28 }
0x3136   :  { %4760 = vmatpush3.bf16.msra.mxu0 %v6074_v18 }
0x3137   :  { %4767 = vmatprep.subr.bf16.mxu0 %v5439_v28 }
0x3138   :  { %v2574_v40 = vld [vmem:[#allocation3 + $0xc] sm:$0x3] }
0x3139   :  { %4517 = vmatmul.mubr.f32.vlgmr.msra.gmra.mrb[20].mxu0 %v5441_v38 }
0x313a   :  { %4769 = vmatpush3.bf16.msra.mxu0 %v6071_v33  ;;  %4538 = vmatprep.mubr.msk.f32.mxu0 %vm5440_vm4, %v5441_v38 }
0x313b   :  { %4770 = vmatprep.subr.bf16.mxu0 %v5439_v28 }
0x313e   :  { %4772 = vmatpush3.bf16.msra.mxu0 %v6074_v18 }
0x313f   :  { %4779 = vmatprep.subr.bf16.mxu0 %v5439_v28 }
0x3204   :  { %v2529_v62 = vpop.f32.mrb[18].mxu0 }
0x3205   :  { %v2530_v63 = vadd.f32 %v5953_v0, %v2529_v62  ;;  %v4496_v1 = vpop.f32.mrb[19].mxu0 }
0x3207   :  { %2542 = vrot.lane.b32.xlu1 %v2530_v63, %s5442_s19  ;;  %v2534_v3 = vadd.f32 %v2533_v2, %v2530_v63 }
0x3209   :  { %v4099_v4 = vmul.f32 -1.442695, %v2534_v3 }
0x320b   :  { %4946 = vpow2.f32 %v4099_v4 }
0x320c   :  { %v2837_v30 = vpop.f32.mrb[20].mxu0 }
0x320d   :  { %v2838_v31 = vadd.f32 %v6101_v29, %v2837_v30  ;;  %v4518_v32 = vpop.f32.mrb[21].mxu0 }
0x3215   :  { %v4947_v5 = vpop.eup %4946 }
0x3216   :  { %v2538_v6 = vadd.f32 1.0, %v4947_v5 }
0x3218   :  { %4948 = vrcp.f32 %v2538_v6 }
0x3222   :  { %v4949_v7 = vpop.eup %4948 }
0x3279   :  { %v2543_v8 = vpop.permute.xlu1 %2542 }
0x327a   :  { %v2545_v10 = vmul.f32 %v4949_v7, %v2543_v8 }
0x327c   :  { %2547 = vrot.lane.b32.xlu0 %v2545_v10, %s5442_s19 }
0x32ee   :  { %v2548_v11 = vpop.permute.xlu0 %2547 }
0x32ef   :  { %v2550_v12 = vadd.f32 %v2548_v11, %v2533_v2 }
0x32f1   :  { %4950 = vtanh.f32 %v2550_v12 }
0x32fb   :  { %v4951_v13 = vpop.eup %4950 }
0x32fc   :  { %v2552_v0 = vsub.f32 %v2451_v60, %v4951_v13 }
0x32fe   :  { %2554 = vrot.lane.b32.xlu1 %v2552_v0, %s5443_s22 }
0x3370   :  { %v2555_v19 = vpop.permute.xlu1 %2554 }
0x3371   :  { %v2557_v20 = vmul.f32 %v4949_v7, %v2555_v19 }
0x3373   :  { %2559 = vrot.lane.b32.xlu0 %v2557_v20, %s5427_s16 }
0x3377   :  { %2850 = vrot.lane.b32.xlu0 %v2838_v31, %s5442_s19 }
0x33e5   :  { %v2560_v26 = vpop.permute.xlu0 %2559 }
0x33e6   :  { %v2562_v27 = vadd.f32 %v4951_v13, %v2560_v26 }
0x33e8   :  { %2564 = vrot.lane.b32.xlu1 %v2562_v27, %s5442_s19 }
0x33e9   :  { %v2851_v3 = vpop.permute.xlu0 %2850 }
0x345a   :  { %v2565_v34 = vpop.permute.xlu1 %2564 }
0x345b   :  { %2567 = vst.msk [vmem:[#allocation3 + $0xe] sm:$0x3] %vm690_vm7, %v2565_v34 }
0x3462   :  { %v2575_v41 = vld [vmem:[#allocation3 + $0xe] sm:$0x3] }
0x3463   :  { %v2613_v42 = vcombine.low %v2574_v40, %v2575_v41 }
0x3465   :  { %v2627_v44 = vrot.slane %v2613_v42, %v5790_v9 }
0x3467   :  { %v2628_v45 = vcombine.low %v2620_v43, %v2627_v44 }
0x3469   :  { %4506 = vmatmul.mubr.msk.f32.vlgmr.msra.gmra.mrb[18].mxu1 %vm437_vm5, %v2628_v45 }
0x346a   :  { %4763 = vmatpush3.bf16.msra.mxu1 %v6071_v33  ;;  %4527 = vmatprep.mubr.msk.f32.mxu1 %vm5440_vm4, %v5441_v38 }
0x346b   :  { %4764 = vmatprep.subr.bf16.mxu1 %v5439_v28 }
0x346e   :  { %4766 = vmatpush3.bf16.msra.mxu1 %v6074_v18 }
0x346f   :  { %4773 = vmatprep.subr.bf16.mxu1 %v5439_v28 }
0x353c   :  { %v4507_v48 = vpop.f32.mrb[18].mxu1 }
0x353d   :  { %v2705_v49 = vadd.f32 %v4507_v48, %v4100_v46  ;;  %v2699_v47 = vpop.f32.mrb[19].mxu1 }
0x353e   :  { %v2700_v50 = vadd.f32 %v4100_v46, %v2699_v47 }
0x353f   :  { %v2727_v51 = vcombine.high %v2705_v49, %v2705_v49  ;;  %v2734_v52 = vrot.slane %v2705_v49, %v5790_v9 }
0x3540   :  { %v2710_v53 = vcombine.high %v2700_v50, %v2700_v50  ;;  %v2717_v55 = vrot.slane %v2700_v50, %v5790_v9 }
0x3541   :  { %v2741_v56 = vrot.slane %v2727_v51, %v5790_v9  ;;  %v2742_v37 = vcombine.high %v2734_v52, %v2734_v52  ;;  %2756 = vst.msk [vmem:[#allocation2 + $0x8] sm:$0x3] %vm563_vm6, %v2734_v52 }
0x3542   :  { %v2724_v57 = vrot.slane %v2710_v53, %v5790_v9  ;;  %v2725_v58 = vcombine.high %v2717_v55, %v2717_v55  ;;  %2752 = vst.msk [vmem:[#allocation2] sm:$0x3] %vm563_vm6, %v2717_v55 }
0x3543   :  { %v2743_v59 = vcombine.high %v2741_v56, %v2741_v56  ;;  %2757 = vst.msk [vmem:[#allocation2 + $0xa] sm:$0x3] %vm563_vm6, %v2742_v37  ;;  %2758 = vst.msk [vmem:[#allocation2 + $0xc] sm:$0x3] %vm563_vm6, %v2741_v56 }
0x3544   :  { %v2726_v60 = vcombine.high %v2724_v57, %v2724_v57  ;;  %2753 = vst.msk [vmem:[#allocation2 + $0x2] sm:$0x3] %vm563_vm6, %v2725_v58  ;;  %2754 = vst.msk [vmem:[#allocation2 + $0x4] sm:$0x3] %vm563_vm6, %v2724_v57 }
0x3545   :  { %2759 = vst.msk [vmem:[#allocation2 + $0xe] sm:$0x3] %vm563_vm6, %v2743_v59 }
0x3546   :  { %2755 = vst.msk [vmem:[#allocation2 + $0x6] sm:$0x3] %vm563_vm6, %v2726_v60 }
0x3549   :  { %v2841_v61 = vld [vmem:[#allocation2] sm:$0x3] }
0x354a   :  { %v2842_v62 = vadd.f32 %v2841_v61, %v2838_v31 }
0x354b   :  { %v2952_v19 = vld [vmem:[#allocation2 + $0x2] sm:$0x3]  ;;  %v3063_v43 = vld [vmem:[#allocation2 + $0x4] sm:$0x3] }
0x354c   :  { %v4104_v63 = vmul.f32 -1.442695, %v2842_v62 }
0x354e   :  { %4952 = vpow2.f32 %v4104_v63  ;;  %v3174_v63 = vld [vmem:[#allocation2 + $0x6] sm:$0x3] }
0x3558   :  { %v4953_v1 = vpop.eup %4952 }
0x3559   :  { %v2846_v2 = vadd.f32 1.0, %v4953_v1 }
0x355b   :  { %4954 = vrcp.f32 %v2846_v2 }
0x3565   :  { %v4955_v4 = vpop.eup %4954 }
0x3566   :  { %v2853_v5 = vmul.f32 %v4955_v4, %v2851_v3 }
0x3568   :  { %2855 = vrot.lane.b32.xlu1 %v2853_v5, %s5442_s19 }
0x35da   :  { %v2856_v6 = vpop.permute.xlu1 %2855 }
0x35db   :  { %v2858_v7 = vadd.f32 %v2856_v6, %v2841_v61 }
0x35dd   :  { %4956 = vtanh.f32 %v2858_v7 }
0x35e7   :  { %v4957_v8 = vpop.eup %4956 }
0x35e8   :  { %v2860_v10 = vsub.f32 0.0, %v4957_v8 }
0x35ea   :  { %2862 = vrot.lane.b32.xlu0 %v2860_v10, %s5443_s22 }
0x365c   :  { %v2863_v11 = vpop.permute.xlu0 %2862 }
0x365d   :  { %v2865_v12 = vmul.f32 %v4955_v4, %v2863_v11 }
0x365f   :  { %2867 = vrot.lane.b32.xlu1 %v2865_v12, %s5427_s16 }
0x36d1   :  { %v2868_v13 = vpop.permute.xlu1 %2867 }
0x36d2   :  { %v2870_v0 = vadd.f32 %v4957_v8, %v2868_v13 }
0x36d4   :  { %2872 = vrot.lane.b32.xlu0 %v2870_v0, %s5442_s19 }
0x3746   :  { %v2873_v14 = vpop.permute.xlu0 %2872 }
0x3747   :  { %2875 = vst.msk [vmem:[#allocation3] sm:$0x3] %vm690_vm7, %v2873_v14  ;;  %4528 = vmatmul.mubr.msk.f32.vlgmr.msra.gmra.mrb[20].mxu1 %vm437_vm5, %v2873_v14 }
0x3748   :  { %4775 = vmatpush3.bf16.msra.mxu1 %v6071_v33  ;;  %4549 = vmatprep.mubr.msk.f32.mxu1 %vm5440_vm4, %v5441_v38 }
0x3749   :  { %4776 = vmatprep.subr.bf16.mxu1 %v5439_v28 }
0x374c   :  { %4778 = vmatpush3.bf16.msra.mxu1 %v6074_v18 }
0x374d   :  { %4785 = vmatprep.subr.bf16.mxu1 %v5439_v28 }
0x381a   :  { %v2948_v15 = vpop.f32.mrb[20].mxu1 }
0x381b   :  { %v2949_v16 = vadd.f32 %v6101_v29, %v2948_v15  ;;  %v4529_v17 = vpop.f32.mrb[21].mxu1 }
0x381d   :  { %2961 = vrot.lane.b32.xlu1 %v2949_v16, %s5442_s19  ;;  %v2953_v20 = vadd.f32 %v2952_v19, %v2949_v16 }
0x381f   :  { %v4106_v54 = vmul.f32 -1.442695, %v2953_v20 }
0x3821   :  { %4958 = vpow2.f32 %v4106_v54  ;;  %v3285_v54 = vld [vmem:[#allocation2 + $0x8] sm:$0x3] }
0x382b   :  { %v4959_v21 = vpop.eup %4958 }
0x382c   :  { %v2957_v22 = vadd.f32 1.0, %v4959_v21 }
0x382e   :  { %4960 = vrcp.f32 %v2957_v22 }
0x3838   :  { %v4961_v23 = vpop.eup %4960 }
0x388f   :  { %v2962_v24 = vpop.permute.xlu1 %2961 }
0x3890   :  { %v2964_v25 = vmul.f32 %v4961_v23, %v2962_v24 }
0x3892   :  { %2966 = vrot.lane.b32.xlu0 %v2964_v25, %s5442_s19 }
0x3904   :  { %v2967_v26 = vpop.permute.xlu0 %2966 }
0x3905   :  { %v2969_v27 = vadd.f32 %v2967_v26, %v2952_v19 }
0x3907   :  { %4962 = vtanh.f32 %v2969_v27 }
0x3911   :  { %v4963_v30 = vpop.eup %4962 }
0x3912   :  { %v2971_v31 = vsub.f32 %v2870_v0, %v4963_v30 }
0x3914   :  { %2973 = vrot.lane.b32.xlu1 %v2971_v31, %s5443_s22 }
0x3986   :  { %v2974_v32 = vpop.permute.xlu1 %2973 }
0x3987   :  { %v2976_v34 = vmul.f32 %v4961_v23, %v2974_v32 }
0x3989   :  { %2978 = vrot.lane.b32.xlu0 %v2976_v34, %s5427_s16 }
0x39fb   :  { %v2979_v35 = vpop.permute.xlu0 %2978 }
0x39fc   :  { %v2981_v36 = vadd.f32 %v4963_v30, %v2979_v35 }
0x39fe   :  { %2983 = vrot.lane.b32.xlu1 %v2981_v36, %s5442_s19 }
0x3a70   :  { %v2984_v39 = vpop.permute.xlu1 %2983 }
0x3a71   :  { %2986 = vst.msk [vmem:[#allocation3 + $0x2] sm:$0x3] %vm690_vm7, %v2984_v39  ;;  %4539 = vmatmul.mubr.msk.f32.vlgmr.msra.gmra.mrb[22].mxu0 %vm437_vm5, %v2984_v39 }
0x3a72   :  { %4781 = vmatpush3.bf16.msra.mxu0 %v6071_v33  ;;  %4560 = vmatprep.mubr.msk.f32.mxu0 %vm5440_vm4, %v5441_v38 }
0x3a73   :  { %4782 = vmatprep.subr.bf16.mxu0 %v5439_v28 }
0x3a76   :  { %4784 = vmatpush3.bf16.msra.mxu0 %v6074_v18 }
0x3a77   :  { %4791 = vmatprep.subr.bf16.mxu0 %v5439_v28 }
0x3b44   :  { %v3059_v40 = vpop.f32.mrb[22].mxu0 }
0x3b45   :  { %v3060_v41 = vadd.f32 %v6101_v29, %v3059_v40  ;;  %v4540_v42 = vpop.f32.mrb[23].mxu0 }
0x3b47   :  { %3072 = vrot.lane.b32.xlu0 %v3060_v41, %s5442_s19  ;;  %v3064_v44 = vadd.f32 %v3063_v43, %v3060_v41 }
0x3b49   :  { %v4108_v45 = vmul.f32 -1.442695, %v3064_v44 }
0x3b4b   :  { %4964 = vpow2.f32 %v4108_v45  ;;  %v3396_v45 = vld [vmem:[#allocation2 + $0xa] sm:$0x3] }
0x3b55   :  { %v4965_v46 = vpop.eup %4964 }
0x3b56   :  { %v3068_v48 = vadd.f32 1.0, %v4965_v46 }
0x3b58   :  { %4966 = vrcp.f32 %v3068_v48 }
0x3b62   :  { %v4967_v49 = vpop.eup %4966 }
0x3bb9   :  { %v3073_v47 = vpop.permute.xlu0 %3072 }
0x3bba   :  { %v3075_v50 = vmul.f32 %v4967_v49, %v3073_v47 }
0x3bbc   :  { %3077 = vrot.lane.b32.xlu1 %v3075_v50, %s5442_s19 }
0x3c2e   :  { %v3078_v51 = vpop.permute.xlu1 %3077 }
0x3c2f   :  { %v3080_v52 = vadd.f32 %v3078_v51, %v3063_v43 }
0x3c31   :  { %4968 = vtanh.f32 %v3080_v52 }
0x3c3b   :  { %v4969_v53 = vpop.eup %4968 }
0x3c3c   :  { %v3082_v55 = vsub.f32 %v2981_v36, %v4969_v53 }
0x3c3e   :  { %3084 = vrot.lane.b32.xlu0 %v3082_v55, %s5443_s22 }
0x3cb0   :  { %v3085_v56 = vpop.permute.xlu0 %3084 }
0x3cb1   :  { %v3087_v37 = vmul.f32 %v4967_v49, %v3085_v56 }
0x3cb3   :  { %3089 = vrot.lane.b32.xlu1 %v3087_v37, %s5427_s16 }
0x3d25   :  { %v3090_v57 = vpop.permute.xlu1 %3089 }
0x3d26   :  { %v3092_v58 = vadd.f32 %v4969_v53, %v3090_v57 }
0x3d28   :  { %3094 = vrot.lane.b32.xlu0 %v3092_v58, %s5442_s19 }
0x3d9a   :  { %v3095_v59 = vpop.permute.xlu0 %3094 }
0x3d9b   :  { %3097 = vst.msk [vmem:[#allocation3 + $0x4] sm:$0x3] %vm690_vm7, %v3095_v59  ;;  %4550 = vmatmul.mubr.msk.f32.vlgmr.msra.gmra.mrb[22].mxu1 %vm437_vm5, %v3095_v59 }
0x3d9c   :  { %4787 = vmatpush3.bf16.msra.mxu1 %v6071_v33  ;;  %4571 = vmatprep.mubr.msk.f32.mxu1 %vm5440_vm4, %v5441_v38 }
0x3d9d   :  { %4788 = vmatprep.subr.bf16.mxu1 %v5439_v28 }
0x3da0   :  { %4790 = vmatpush3.bf16.msra.mxu1 %v6074_v18 }
0x3da1   :  { %4797 = vmatprep.subr.bf16.mxu1 %v5439_v28 }
0x3da2   :  { %v3655_v59 = vld [vmem:[#allocation3 + $0x4] sm:$0x3] }
0x3e6e   :  { %v3170_v60 = vpop.f32.mrb[22].mxu1 }
0x3e6f   :  { %v3171_v61 = vadd.f32 %v6101_v29, %v3170_v60  ;;  %v4551_v62 = vpop.f32.mrb[23].mxu1 }
0x3e71   :  { %3183 = vrot.lane.b32.xlu1 %v3171_v61, %s5442_s19  ;;  %v3175_v1 = vadd.f32 %v3174_v63, %v3171_v61  ;;  %v3653_v61 = vld [vmem:[#allocation3] sm:$0x3] }
0x3e73   :  { %v4110_v2 = vmul.f32 -1.442695, %v3175_v1 }
0x3e75   :  { %4970 = vpow2.f32 %v4110_v2 }
0x3e7f   :  { %v4971_v3 = vpop.eup %4970 }
0x3e80   :  { %v3179_v4 = vadd.f32 1.0, %v4971_v3 }
0x3e82   :  { %4972 = vrcp.f32 %v3179_v4 }
0x3e8c   :  { %v4973_v5 = vpop.eup %4972 }
0x3ee3   :  { %v3184_v6 = vpop.permute.xlu1 %3183 }
0x3ee4   :  { %v3186_v7 = vmul.f32 %v4973_v5, %v3184_v6 }
0x3ee6   :  { %3188 = vrot.lane.b32.xlu0 %v3186_v7, %s5442_s19  ;;  %v3507_v7 = vld [vmem:[#allocation2 + $0xc] sm:$0x3] }
0x3f58   :  { %v3189_v8 = vpop.permute.xlu0 %3188 }
0x3f59   :  { %v3191_v10 = vadd.f32 %v3189_v8, %v3174_v63 }
0x3f5b   :  { %4974 = vtanh.f32 %v3191_v10 }
0x3f65   :  { %v4975_v11 = vpop.eup %4974 }
0x3f66   :  { %v3193_v12 = vsub.f32 %v3092_v58, %v4975_v11  ;;  %v3654_v58 = vld [vmem:[#allocation3 + $0x2] sm:$0x3] }
0x3f67   :  { %v3680_v62 = vcombine.low %v3653_v61, %v3654_v58 }
0x3f68   :  { %3195 = vrot.lane.b32.xlu1 %v3193_v12, %s5443_s22 }
0x3f69   :  { %v3688_v1 = vrot.slane %v3680_v62, %v5790_v9  ;;  %v3797_v62 = vld [vmem:[%s6280_s17 + $0x10] sm:$0xff] }
0x3fda   :  { %v3196_v13 = vpop.permute.xlu1 %3195 }
0x3fdb   :  { %v3198_v0 = vmul.f32 %v4973_v5, %v3196_v13 }
0x3fdd   :  { %3200 = vrot.lane.b32.xlu0 %v3198_v0, %s5427_s16 }
0x404f   :  { %v3201_v14 = vpop.permute.xlu0 %3200 }
0x4050   :  { %v3203_v15 = vadd.f32 %v4975_v11, %v3201_v14 }
0x4052   :  { %3205 = vrot.lane.b32.xlu1 %v3203_v15, %s5442_s19 }
0x40c4   :  { %v3206_v16 = vpop.permute.xlu1 %3205 }
0x40c5   :  { %3208 = vst.msk [vmem:[#allocation3 + $0x6] sm:$0x3] %vm690_vm7, %v3206_v16  ;;  %4561 = vmatmul.mubr.msk.f32.vlgmr.msra.gmra.mrb[24].mxu0 %vm437_vm5, %v3206_v16 }
0x40c6   :  { %4793 = vmatpush3.bf16.msra.mxu0 %v6071_v33  ;;  %4582 = vmatprep.mubr.msk.f32.mxu0 %vm5440_vm4, %v5441_v38 }
0x40c7   :  { %4794 = vmatprep.subr.bf16.mxu0 %v5439_v28 }
0x40ca   :  { %4796 = vmatpush3.bf16.msra.mxu0 %v6074_v18 }
0x40cc   :  { %v3656_v57 = vld [vmem:[#allocation3 + $0x6] sm:$0x3] }
0x40cd   :  { %v3681_v60 = vcombine.low %v3655_v59, %v3656_v57 }
0x40cf   :  { %v3695_v63 = vrot.slane %v3681_v60, %v5790_v9 }
0x40d1   :  { %v3696_v3 = vcombine.low %v3688_v1, %v3695_v63  ;;  %v3798_v63 = vld [vmem:[%s6280_s17 + $0x18] sm:$0xff] }
0x40d2   :  { %v4815_v1 = vpack.c.bf16 %v3798_v63, %v3797_v62 }
0x4198   :  { %v3281_v17 = vpop.f32.mrb[24].mxu0 }
0x4199   :  { %v3282_v19 = vadd.f32 %v6101_v29, %v3281_v17  ;;  %v4562_v20 = vpop.f32.mrb[25].mxu0 }
0x419b   :  { %3294 = vrot.lane.b32.xlu0 %v3282_v19, %s5442_s19  ;;  %v3286_v21 = vadd.f32 %v3285_v54, %v3282_v19 }
0x419d   :  { %v4112_v22 = vmul.f32 -1.442695, %v3286_v21 }
0x419f   :  { %4976 = vpow2.f32 %v4112_v22 }
0x41a9   :  { %v4977_v23 = vpop.eup %4976 }
0x41aa   :  { %v3290_v24 = vadd.f32 1.0, %v4977_v23 }
0x41ac   :  { %4978 = vrcp.f32 %v3290_v24 }
0x41b6   :  { %v4979_v25 = vpop.eup %4978 }
0x420d   :  { %v3295_v26 = vpop.permute.xlu0 %3294 }
0x420e   :  { %v3297_v27 = vmul.f32 %v4979_v25, %v3295_v26 }
0x4210   :  { %3299 = vrot.lane.b32.xlu1 %v3297_v27, %s5442_s19  ;;  %v3618_v27 = vld [vmem:[#allocation2 + $0xe] sm:$0x3] }
0x4282   :  { %v3300_v30 = vpop.permute.xlu1 %3299 }
0x4283   :  { %v3302_v31 = vadd.f32 %v3300_v30, %v3285_v54 }
0x4285   :  { %4980 = vtanh.f32 %v3302_v31 }
0x428f   :  { %v4981_v32 = vpop.eup %4980 }
0x4290   :  { %v3304_v34 = vsub.f32 %v3203_v15, %v4981_v32 }
0x4292   :  { %3306 = vrot.lane.b32.xlu0 %v3304_v34, %s5443_s22 }
0x4304   :  { %v3307_v35 = vpop.permute.xlu0 %3306 }
0x4305   :  { %v3309_v36 = vmul.f32 %v4979_v25, %v3307_v35 }
0x4307   :  { %3311 = vrot.lane.b32.xlu1 %v3309_v36, %s5427_s16 }
0x4379   :  { %v3312_v39 = vpop.permute.xlu1 %3311 }
0x437a   :  { %v3314_v40 = vadd.f32 %v4981_v32, %v3312_v39 }
0x437c   :  { %3316 = vrot.lane.b32.xlu0 %v3314_v40, %s5442_s19 }
0x43ee   :  { %v3317_v41 = vpop.permute.xlu0 %3316 }
0x43ef   :  { %3319 = vst.msk [vmem:[#allocation3 + $0x8] sm:$0x3] %vm690_vm7, %v3317_v41  ;;  %4572 = vmatmul.mubr.msk.f32.vlgmr.msra.gmra.mrb[24].mxu1 %vm437_vm5, %v3317_v41 }
0x43f0   :  { %4799 = vmatpush3.bf16.msra.mxu1 %v6071_v33  ;;  %4593 = vmatprep.mubr.msk.f32.mxu1 %vm5440_vm4, %v5441_v38 }
0x43f1   :  { %4800 = vmatprep.subr.bf16.mxu1 %v5439_v28 }
0x43f4   :  { %4802 = vmatpush3.bf16.msra.mxu1 %v6074_v18 }
0x44c2   :  { %v3392_v42 = vpop.f32.mrb[24].mxu1 }
0x44c3   :  { %v3393_v43 = vadd.f32 %v6101_v29, %v3392_v42  ;;  %v4573_v44 = vpop.f32.mrb[25].mxu1 }
0x44c5   :  { %3405 = vrot.lane.b32.xlu1 %v3393_v43, %s5442_s19  ;;  %v3397_v46 = vadd.f32 %v3396_v45, %v3393_v43 }
0x44c7   :  { %v4114_v48 = vmul.f32 -1.442695, %v3397_v46  ;;  %v3662_v46 = vld [vmem:[#allocation28 + $0x8] sm:$0xff] }
0x44c9   :  { %4982 = vpow2.f32 %v4114_v48  ;;  %v3663_v48 = vld [vmem:[#allocation28 + $0x10] sm:$0xff] }
0x44d3   :  { %v4983_v49 = vpop.eup %4982 }
0x44d4   :  { %v3401_v47 = vadd.f32 1.0, %v4983_v49 }
0x44d6   :  { %4984 = vrcp.f32 %v3401_v47  ;;  %v3664_v47 = vld [vmem:[#allocation28 + $0x18] sm:$0xff] }
0x44e0   :  { %v4985_v33 = vpop.eup %4984 }
0x4537   :  { %v3406_v50 = vpop.permute.xlu1 %3405 }
0x4538   :  { %v3408_v38 = vmul.f32 %v4985_v33, %v3406_v50 }
0x453a   :  { %3410 = vrot.lane.b32.xlu0 %v3408_v38, %s5442_s19 }
0x45ac   :  { %v3411_v28 = vpop.permute.xlu0 %3410 }
0x45ad   :  { %v3413_v18 = vadd.f32 %v3411_v28, %v3396_v45  ;;  %v3661_v45 = vld [vmem:[#allocation28] sm:$0xff]  ;;  %v3795_v28 = vld [vmem:[%s6280_s17] sm:$0xff] }
0x45ae   :  { %v4803_v49 = vpack.c.bf16 %v3662_v46, %v3661_v45 }
0x45af   :  { %4986 = vtanh.f32 %v3413_v18  ;;  %v3796_v18 = vld [vmem:[%s6280_s17 + $0x8] sm:$0xff] }
0x45b0   :  { %4804 = vmatprep.subr.bf16.mxu0 %v4803_v49 }
0x45b9   :  { %v4987_v51 = vpop.eup %4986 }
0x45ba   :  { %v3415_v52 = vsub.f32 %v3314_v40, %v4987_v51 }
0x45bc   :  { %3417 = vrot.lane.b32.xlu1 %v3415_v52, %s5443_s22 }
0x462e   :  { %v3418_v53 = vpop.permute.xlu1 %3417 }
0x462f   :  { %v3420_v55 = vmul.f32 %v4985_v33, %v3418_v53  ;;  %v4807_v33 = vpack.c.bf16 %v3664_v47, %v3663_v48 }
0x4631   :  { %3422 = vrot.lane.b32.xlu0 %v3420_v55, %s5427_s16  ;;  %v3657_v55 = vld [vmem:[#allocation3 + $0x8] sm:$0x3] }
0x46a3   :  { %v3423_v56 = vpop.permute.xlu0 %3422 }
0x46a4   :  { %v3425_v37 = vadd.f32 %v4987_v51, %v3423_v56  ;;  %v4811_v51 = vpack.c.bf16 %v3796_v18, %v3795_v28 }
0x46a6   :  { %3427 = vrot.lane.b32.xlu1 %v3425_v37, %s5442_s19  ;;  %4812 = vmatprep.subr.bf16.mxu1 %v4811_v51 }
0x4718   :  { %v3428_v2 = vpop.permute.xlu1 %3427 }
0x4719   :  { %3430 = vst.msk [vmem:[#allocation3 + $0xa] sm:$0x3] %vm690_vm7, %v3428_v2  ;;  %4583 = vmatmul.mubr.msk.f32.vlgmr.msra.gmra.mrb[26].mxu0 %vm437_vm5, %v3428_v2  ;;  %v3889_v2 = vld [vmem:[#allocation31] sm:$0xff] }
0x471a   :  { %4604 = vmatprep.mubr.msk.f32.mxu0 %vm437_vm5, %v3696_v3  ;;  %4806 = vmatpush3.bf16.msra.mxu0 %v4803_v49  ;;  %v3890_v3 = vld [vmem:[#allocation31 + $0x8] sm:$0xff] }
0x471b   :  { %4808 = vmatprep.subr.bf16.mxu0 %v4807_v33 }
0x471e   :  { %4810 = vmatpush3.bf16.msra.mxu0 %v4807_v33 }
0x4720   :  { %v3658_v53 = vld [vmem:[#allocation3 + $0xa] sm:$0x3] }
0x4721   :  { %v3697_v56 = vcombine.low %v3657_v55, %v3658_v53 }
0x4723   :  { %v3705_v59 = vrot.slane %v3697_v56, %v5790_v9 }
0x47ec   :  { %v3503_v4 = vpop.f32.mrb[26].mxu0 }
0x47ed   :  { %v3504_v5 = vadd.f32 %v6101_v29, %v3503_v4  ;;  %v4584_v6 = vpop.f32.mrb[27].mxu0  ;;  %v4819_v4 = vpack.c.bf16 %v3890_v3, %v3889_v2 }
0x47ef   :  { %3516 = vrot.lane.b32.xlu0 %v3504_v5, %s5442_s19  ;;  %v3508_v8 = vadd.f32 %v3507_v7, %v3504_v5  ;;  %4820 = vmatprep.subr.bf16.mxu0 %v4819_v4  ;;  %v4119_v5 = vld [vmem:[#allocation29] ss:$0 sm:$0xff] }
0x47f1   :  { %v4116_v10 = vmul.f32 -1.442695, %v3508_v8 }
0x47f3   :  { %4988 = vpow2.f32 %v4116_v10 }
0x47fd   :  { %v4989_v11 = vpop.eup %4988 }
0x47fe   :  { %v3512_v12 = vadd.f32 1.0, %v4989_v11 }
0x4800   :  { %4990 = vrcp.f32 %v3512_v12 }
0x480a   :  { %v4991_v13 = vpop.eup %4990 }
0x4861   :  { %v3517_v0 = vpop.permute.xlu0 %3516 }
0x4862   :  { %v3519_v14 = vmul.f32 %v4991_v13, %v3517_v0  ;;  %v3892_v0 = vld [vmem:[#allocation31 + $0x18] sm:$0xff] }
0x4864   :  { %3521 = vrot.lane.b32.xlu1 %v3519_v14, %s5442_s19 }
0x48d6   :  { %v3522_v15 = vpop.permute.xlu1 %3521 }
0x48d7   :  { %v3524_v16 = vadd.f32 %v3522_v15, %v3507_v7  ;;  %v4122_v15 = vld [vmem:[%s6309_s18] ss:$0 sm:$0xff] }
0x48d9   :  { %4992 = vtanh.f32 %v3524_v16 }
0x48e3   :  { %v4993_v17 = vpop.eup %4992 }
0x48e4   :  { %v3526_v19 = vsub.f32 %v3425_v37, %v4993_v17 }
0x48e6   :  { %3528 = vrot.lane.b32.xlu0 %v3526_v19, %s5443_s22 }
0x4958   :  { %v3529_v20 = vpop.permute.xlu0 %3528 }
0x4959   :  { %v3531_v54 = vmul.f32 %v4991_v13, %v3529_v20  ;;  %v3891_v13 = vld [vmem:[#allocation31 + $0x10] sm:$0xff] }
0x495a   :  { %v4823_v14 = vpack.c.bf16 %v3892_v0, %v3891_v13 }
0x495b   :  { %3533 = vrot.lane.b32.xlu1 %v3531_v54, %s5427_s16 }
0x49cd   :  { %v3534_v21 = vpop.permute.xlu1 %3533 }
0x49ce   :  { %v3536_v22 = vadd.f32 %v4993_v17, %v3534_v21 }
0x49d0   :  { %3538 = vrot.lane.b32.xlu0 %v3536_v22, %s5442_s19 }
0x4a42   :  { %v3539_v23 = vpop.permute.xlu0 %3538 }
0x4a43   :  { %3541 = vst.msk [vmem:[#allocation3 + $0xc] sm:$0x3] %vm690_vm7, %v3539_v23  ;;  %4594 = vmatmul.mubr.msk.f32.vlgmr.msra.gmra.mrb[26].mxu1 %vm437_vm5, %v3539_v23 }
0x4a44   :  { %4814 = vmatpush3.bf16.msra.mxu1 %v4811_v51 }
0x4a45   :  { %4816 = vmatprep.subr.bf16.mxu1 %v4815_v1 }
0x4a48   :  { %4818 = vmatpush3.bf16.msra.mxu1 %v4815_v1 }
0x4a4a   :  { %v3659_v37 = vld [vmem:[#allocation3 + $0xc] sm:$0x3] }
0x4b16   :  { %v3614_v24 = vpop.f32.mrb[26].mxu1 }
0x4b17   :  { %v3615_v25 = vadd.f32 %v6101_v29, %v3614_v24  ;;  %v4595_v26 = vpop.f32.mrb[27].mxu1 }
0x4b19   :  { %3627 = vrot.lane.b32.xlu1 %v3615_v25, %s5442_s19  ;;  %v3619_v30 = vadd.f32 %v3618_v27, %v3615_v25 }
0x4b1b   :  { %v4118_v31 = vmul.f32 -1.442695, %v3619_v30 }
0x4b1d   :  { %4994 = vpow2.f32 %v4118_v31 }
0x4b27   :  { %v4995_v32 = vpop.eup %4994 }
0x4b28   :  { %v3623_v34 = vadd.f32 1.0, %v4995_v32 }
0x4b2a   :  { %4996 = vrcp.f32 %v3623_v34 }
0x4b34   :  { %v4997_v35 = vpop.eup %4996 }
0x4b8b   :  { %v3628_v36 = vpop.permute.xlu1 %3627 }
0x4b8c   :  { %v3630_v39 = vmul.f32 %v4997_v35, %v3628_v36 }
0x4b8e   :  { %3632 = vrot.lane.b32.xlu0 %v3630_v39, %s5442_s19 }
0x4c00   :  { %v3633_v40 = vpop.permute.xlu0 %3632 }
0x4c01   :  { %v3635_v41 = vadd.f32 %v3633_v40, %v3618_v27 }
0x4c03   :  { %4998 = vtanh.f32 %v3635_v41 }
0x4c0d   :  { %v4999_v42 = vpop.eup %4998 }
0x4c0e   :  { %v3637_v29 = vsub.f32 %v3536_v22, %v4999_v42  ;;  %v4125_v22 = vld [vmem:[%s6310_s9] ss:$0 sm:$0xff] }
0x4c10   :  { %3639 = vrot.lane.b32.xlu1 %v3637_v29, %s5443_s22 }
0x4c82   :  { %v3640_v43 = vpop.permute.xlu1 %3639 }
0x4c83   :  { %v3642_v44 = vmul.f32 %v4997_v35, %v3640_v43 }
0x4c85   :  { %3644 = vrot.lane.b32.xlu0 %v3642_v44, %s5427_s16 }
0x4cf7   :  { %v3645_v50 = vpop.permute.xlu0 %3644 }
0x4cf8   :  { %v3647_v38 = vadd.f32 %v4999_v42, %v3645_v50 }
0x4cfa   :  { %3649 = vrot.lane.b32.xlu1 %v3647_v38, %s5442_s19 }
0x4d6c   :  { %v3650_v52 = vpop.permute.xlu1 %3649 }
0x4d6d   :  { %3652 = vst.msk [vmem:[#allocation3 + $0xe] sm:$0x3] %vm690_vm7, %v3650_v52 }
0x4d74   :  { %v3660_v57 = vld [vmem:[#allocation3 + $0xe] sm:$0x3] }
0x4d75   :  { %v3698_v58 = vcombine.low %v3659_v37, %v3660_v57 }
0x4d77   :  { %v3712_v60 = vrot.slane %v3698_v58, %v5790_v9 }
0x4d79   :  { %v3713_v61 = vcombine.low %v3705_v59, %v3712_v60 }
0x4d7b   :  { %4605 = vmatmul.mubr.msk.f32.vlgmr.msra.gmra.mrb[28].mxu0 %vm437_vm5, %v3713_v61 }
0x4d7c   :  { %4822 = vmatpush3.bf16.msra.mxu0 %v4819_v4 }
0x4d7d   :  { %4824 = vmatprep.subr.bf16.mxu0 %v4823_v14 }
0x4d80   :  { %4826 = vmatpush3.bf16.msra.mxu0 %v4823_v14 }
0x4e4e   :  { %v4606_v6 = vpop.f32.mrb[28].mxu0 }
0x4e4f   :  { %v3790_v7 = vadd.f32 %v4606_v6, %v4119_v5  ;;  %v3784_v8 = vpop.f32.mrb[29].mxu0 }
0x4e50   :  { %v3785_v10 = vadd.f32 %v4119_v5, %v3784_v8 }
0x4e51   :  { %v3794_v12 = vmax.f32 %v3790_v7, 0.0 }
0x4e52   :  { %v3793_v11 = vmax.f32 %v3785_v10, 0.0 }
0x4e54   :  { %4615 = vmatprep.mubr.msk.f32.mxu1 %vm437_vm5, %v3793_v11 }
0x4e55   :  { %4616 = vmatmul.mubr.msk.f32.vlgmr.msra.gmra.mrb[28].mxu1 %vm437_vm5, %v3794_v12 }
0x4f28   :  { %v4617_v16 = vpop.f32.mrb[28].mxu1 }
0x4f29   :  { %v3884_v17 = vadd.f32 %v4617_v16, %v4122_v15  ;;  %v3878_v19 = vpop.f32.mrb[29].mxu1 }
0x4f2a   :  { %v3879_v20 = vadd.f32 %v4122_v15, %v3878_v19 }
0x4f2b   :  { %v3888_v21 = vmax.f32 %v3884_v17, 0.0 }
0x4f2c   :  { %v3887_v54 = vmax.f32 %v3879_v20, 0.0 }
0x4f2e   :  { %4626 = vmatprep.mubr.msk.f32.mxu0 %vm437_vm5, %v3887_v54 }
0x4f2f   :  { %4627 = vmatmul.mubr.msk.f32.vlgmr.msra.gmra.mrb[30].mxu0 %vm437_vm5, %v3888_v21 }
0x5002   :  { %v4628_v23 = vpop.f32.mrb[30].mxu0 }
0x5003   :  { %v3978_v24 = vadd.f32 %v4628_v23, %v4125_v22  ;;  %v3972_v25 = vpop.f32.mrb[31].mxu0 }
0x5004   :  { %v3973_v26 = vadd.f32 %v4125_v22, %v3972_v25 }
0x5005   :  { %v4000_v27 = vcombine.high %v3978_v24, %v3978_v24  ;;  %v4007_v30 = vrot.slane %v3978_v24, %v5790_v9  ;;  %4130 = vst.sshfl [vmem:[#allocation32 + $0x8] sm:$0x3 pattern:$0x76325410] %v3978_v24 }
0x5006   :  { %v3983_v31 = vcombine.high %v3973_v26, %v3973_v26  ;;  %v3990_v32 = vrot.slane %v3973_v26, %v5790_v9  ;;  %4128 = vst.sshfl [vmem:[#allocation32] sm:$0x3 pattern:$0x76325410] %v3973_v26 }
0x5007   :  { %v4014_v34 = vrot.slane %v4000_v27, %v5790_v9  ;;  %v4015_v35 = vcombine.high %v4007_v30, %v4007_v30  ;;  %4131 = vst.sshfl [vmem:[#allocation32 + $0xc] sm:$0x3 pattern:$0x76325410] %v4000_v27 }
0x5008   :  { %v3997_v36 = vrot.slane %v3983_v31, %v5790_v9  ;;  %v3998_v39 = vcombine.high %v3990_v32, %v3990_v32  ;;  %4129 = vst.sshfl [vmem:[#allocation32 + $0x4] sm:$0x3 pattern:$0x76325410] %v3983_v31 }
0x5009   :  { %v4016_v40 = vcombine.high %v4014_v34, %v4014_v34  ;;  %4030 = vst [vmem:[#allocation32 + $0xa] sm:$0x3] %v4015_v35 }
0x500a   :  { %v3999_v41 = vcombine.high %v3997_v36, %v3997_v36  ;;  %4026 = vst [vmem:[#allocation32 + $0x2] sm:$0x3] %v3998_v39 }
0x500b   :  { %4032 = vst [vmem:[#allocation32 + $0xe] sm:$0x3] %v4016_v40 }
0x500c   :  { %4028 = vst [vmem:[#allocation32 + $0x6] sm:$0x3] %v3999_v41 }
0x500d   :  { %5385 = shalt.err (!%p5382_p0)
}
0x500e   :  { %s6311_s19 = sld [smem:[#allocation51_spill]] }
0x5014   :  { %s5386_s22 = scalar_lea.hbm %s6311_s19, 256 }
0x5015   :  { %p5387_p1 = scmp.ne.s32.totalorder %s6311_s19, %s5386_s22  ;;  %p5390_p2 = scmp.lt.u32.totalorder %s5386_s22, %s6311_s19 }
0x5017   :  { %p5392_p3 = pnand %p5390_p2, %p5387_p1 }
0x5019   :  { %5395 = shalt.err (!%p5392_p3)
}
0x501a   :  { %4044 = dma.vmem_to_hbm [thread:$0]  %s4039_s3, 256, %s6311_s19, [#allocation7], %s5427_s16, %s5427_s16, %s5428_s1  }
0x501b   :  { %5414 = dma.done.wait [#allocation7], 256  }
0x501c   :  { %5415 = vsyncadd [#allocation7], 4294967040 }
0x501d   :  { %4048 = vsyncpa [#allocation6], 1 }
0x501e   :  { %4049 = vsyncpa [#allocation9], 1 }
0x501f   :  { %4050 = vsyncpa [#allocation12], 1 }
0x5020   :  { %4051 = vsyncpa [#allocation15], 1 }
0x5021   :  { %4052 = vsyncpa [#allocation18], 1 }
0x5022   :  { %4053 = vsyncpa [#allocation21], 1 }
0x5023   :  { %4054 = vsyncpa [#allocation24], 1 }
0x5024   :  { %4055 = vsyncpa [#allocation27], 1 }
0x5025   :  { %4056 = vsyncpa [#allocation30], 1 }
0x5026   :  { %4057 = vsyncpa [#allocation7], 1 }

</bundles_post_ra>
